<compile_context>
chip_gen: v7x
topology: tpu7x:2x2x1
jax: 0.10.0
libtpu: 0.0.40
codegen_flags: <defaults>
</compile_context>

<pallas_src>
from functools import partial
from typing import NamedTuple

import jax
import jax.numpy as jnp
from jax.experimental import pallas as pl
from jax.experimental.pallas import tpu as pltpu


class LayerCfg(NamedTuple):
    cin: int        # true input channels
    cout: int       # true output channels
    groups: int
    k: int          # kernel size
    pad: int        # conv zero padding
    act: str        # "leaky" | "relu" | "none"
    lin: int        # valid input length
    lout: int       # valid output length
    cin_w: int      # per-group in-channels as stored in the prepped weight
    cout_pad: int   # out channels padded to a multiple of 8 (sublane tile)


def _round_up(x, m):
    return (x + m - 1) // m * m


# ----------------------------------------------------------------------------
# Fused Pallas kernel: whole conv stack, VMEM-resident intermediates,
# one grid step per batch element.
# ----------------------------------------------------------------------------
def _fused_block_kernel(*refs, cfg, lpad):
    """refs = [x] + [w_i, b_i]*n + [o_i]*n  (per batch element)
       x   : (groups0*cin_w0, LPAD) f32, zeros beyond lin0 and in padded rows
       w_i : (K, cout_pad, cin_w)   f32, w[k, o, c] = W_torch[o, c, k]
       b_i : (cout_pad, 1)          f32
       o_i : (cout_pad, LPAD)       lane-dense output slab
    """
    n = len(cfg)
    x_ref = refs[0]
    w_refs = [refs[1 + 2 * i] for i in range(n)]
    b_refs = [refs[2 + 2 * i] for i in range(n)]
    o_refs = [refs[1 + 2 * n + i] for i in range(n)]

    lane = jax.lax.broadcasted_iota(jnp.int32, (1, lpad), 1)

    cur = x_ref[...]                                        # (rows, LPAD) f32
    for i, c in enumerate(cfg):
        cout_g = c.cout_pad // c.groups
        accs = [jnp.zeros((cout_g, lpad), jnp.float32) for _ in range(c.groups)]
        # K accumulated matmuls; shifted taps built with pltpu.roll (XLU),
        # never materialising an im2col patch matrix.
        for k in range(c.k):
            shift = (c.pad - k) % lpad
            r = pltpu.roll(cur, shift=shift, axis=1) if shift else cur
            w_k = w_refs[i][k]                              # (cout_pad, cin_w)
            for g in range(c.groups):
                lhs = w_k[g * cout_g:(g + 1) * cout_g, :]   # (cout_g, cin_w)
                rhs = r[g * c.cin_w:(g + 1) * c.cin_w, :]   # (cin_w, LPAD)
                accs[g] = accs[g] + jnp.dot(
                    lhs, rhs, preferred_element_type=jnp.float32)
        y = accs[0] if c.groups == 1 else jnp.concatenate(accs, axis=0)
        y = y + b_refs[i][...]                              # (cout_pad, LPAD)

        if c.act == "leaky":
            y = jnp.where(y >= 0.0, y, 0.2 * y)
        elif c.act == "relu":
            y = jnp.maximum(y, 0.0)

        # Zero lanes >= lout: keeps the "zeros beyond valid length" invariant
        # the next layer's rolled taps rely on (and cleans the padded output).
        y = jnp.where(lane < c.lout, y, 0.0)

        o_refs[i][...] = y.astype(o_refs[i].dtype)          # full-lane store
        cur = y                                             # next layer input


def fused_discriminator_block(x_slab, weights_k, biases_k, cfg, lpad,
                              out_dtype=jnp.float32):
    """x_slab: (B, rows0, LPAD) f32 lane/sublane-aligned input slab.
       Returns list of (B, cout_pad, LPAD) slabs, one per conv layer."""
    B, rows0, _ = x_slab.shape
    n = len(cfg)

    args = [x_slab]
    in_specs = [pl.BlockSpec((None, rows0, lpad), lambda b: (b, 0, 0))]
    for w, bb in zip(weights_k, biases_k):
        args.append(w)
        args.append(bb)
        # Constant index maps: weights/biases are DMA'd once and stay resident.
        in_specs.append(pl.BlockSpec(w.shape, lambda b: (0, 0, 0)))
        in_specs.append(pl.BlockSpec(bb.shape, lambda b: (0, 0)))

    out_shape = tuple(
        jax.ShapeDtypeStruct((B, c.cout_pad, lpad), out_dtype) for c in cfg)
    out_specs = tuple(
        pl.BlockSpec((None, c.cout_pad, lpad), lambda b: (b, 0, 0)) for c in cfg)

    # Real (grouped) FLOPs and actual stored bytes only.
    flops = sum(2 * c.cout * (c.cin // c.groups) * c.k * c.lout * B for c in cfg)
    out_bytes = sum(B * c.cout_pad * lpad * jnp.dtype(out_dtype).itemsize
                    for c in cfg)
    bytes_accessed = (x_slab.size * 4
                      + sum(w.size * 4 + bb.size * 4
                            for w, bb in zip(weights_k, biases_k))
                      + out_bytes)

    outs = pl.pallas_call(
        partial(_fused_block_kernel, cfg=tuple(cfg), lpad=lpad),
        grid=(B,),
        out_shape=out_shape,
        in_specs=in_specs,
        out_specs=out_specs,
        compiler_params=pltpu.CompilerParams(
            dimension_semantics=("parallel",)),
        cost_estimate=pl.CostEstimate(
            flops=flops, transcendentals=0, bytes_accessed=bytes_accessed),
        # TODO(synk): for realistic audio lengths (LPAD in the tens of
        # thousands), add a length-tiled grid axis with a sum(k_i-1)=60-element
        # halo, size the tile against v7x's 64 MiB VMEM, and raise
        # vmem_limit_bytes on v6e for larger tiles.
    )(*args)
    return list(outs)


# ----------------------------------------------------------------------------
# Plain-JAX glue: padding, weight-norm reparameterization, weight prep.
# ----------------------------------------------------------------------------
def reflect_pad1d(x, p):
    return jnp.pad(x, ((0, 0), (0, 0), (p, p)), mode="reflect")


def weight_norm(v, g):
    """nn.utils.weight_norm effective weight: g * v / ||v|| (per out-channel)."""
    norm = jnp.sqrt(jnp.sum(v * v, axis=(1, 2), keepdims=True))
    return g.reshape(-1, 1, 1) * v / norm


def _prep_layer_weight(w, c):
    """(cout, cin_g, K) -> (K, cout_pad, cin_w), zero-padded where needed."""
    wk = jnp.transpose(w, (2, 0, 1))                        # (K, cout, cin_g)
    wk = jnp.pad(wk, ((0, 0),
                      (0, c.cout_pad - w.shape[0]),
                      (0, c.cin_w - w.shape[1])))
    return wk.astype(jnp.float32)


def _prep_layer_bias(b, c):
    return jnp.pad(b, (0, c.cout_pad - b.shape[0])).reshape(
        c.cout_pad, 1).astype(jnp.float32)


def init_params(key, downsampling_layers_num=4, features=16, downsampling_factor=1):
    assert downsampling_factor == 1, "defaults only (stride 1)"
    params = {}
    keys = jax.random.split(key, 4 * (downsampling_layers_num + 3))
    ki = iter(range(len(keys)))

    def nrm(shape, scale=0.1):
        return scale * jax.random.normal(keys[next(ki)], shape, jnp.float32)

    # conv_layer_0: Conv1d(1 -> features, k=15), weight_norm, LeakyReLU(0.2)
    v = nrm((features, 1, 15))
    g = 1.0 + 0.1 * jax.random.normal(keys[next(ki)], (features,), jnp.float32)
    params["w0"] = weight_norm(v, g)
    params["b0"] = nrm((features,), 0.05)

    # downsampling layers: Conv1d(16->16, k=11, stride=1, groups=4), weight_norm
    cur = features
    kernel_size = downsampling_factor * 10 + 1
    for i in range(1, downsampling_layers_num + 1):
        cin = min(cur, 1024)
        cout = min(cur * downsampling_factor, 1024)
        groups = min(cur * downsampling_factor // 4, 256)
        v = nrm((cout, cin // groups, kernel_size))
        g = 1.0 + 0.1 * jax.random.normal(keys[next(ki)], (cout,), jnp.float32)
        params[f"wd{i}"] = weight_norm(v, g)          # native grouped form
        params[f"bd{i}"] = nrm((cout,), 0.05)
        cur *= downsampling_factor

    # conv_layer_{N+1}: Conv1d(16 -> 32, k=5, pad=2), weight_norm, ReLU
    cin = min(cur, 1024)
    cout = min(cur * 2, 1024)
    v = nrm((cout, cin, 5))
    g = 1.0 + 0.1 * jax.random.normal(keys[next(ki)], (cout,), jnp.float32)
    params["w5"] = weight_norm(v, g)
    params["b5"] = nrm((cout,), 0.05)

    # output_layer: Conv1d(32 -> 1, k=3, pad=1), weight_norm, no activation
    v = nrm((1, cout, 3))
    g = 1.0 + 0.1 * jax.random.normal(keys[next(ki)], (1,), jnp.float32)
    params["wo"] = weight_norm(v, g)
    params["bo"] = nrm((1,), 0.05)
    return params


def _build_cfg(l0, downsampling_layers_num=4, features=16, downsampling_factor=1):
    assert downsampling_factor == 1, "stride-1 path only"
    # TODO(synk): stride > 1 (downsampling_factor > 1) needs strided tap accumulation.
    cfg = []
    l = l0
    lout = l - 15 + 1
    cfg.append(LayerCfg(1, features, 1, 15, 0, "leaky", l, lout,
                        cin_w=_round_up(1, 8), cout_pad=_round_up(features, 8)))
    l = lout
    cur = features
    ksize = downsampling_factor * 10 + 1
    for _ in range(downsampling_layers_num):
        cin = min(cur, 1024)
        cout = min(cur * downsampling_factor, 1024)
        groups = min(cur * downsampling_factor // 4, 256)
        lout = l - ksize + 1
        cfg.append(LayerCfg(cin, cout, groups, ksize, 0, "leaky", l, lout,
                            cin_w=cin // groups, cout_pad=_round_up(cout, 8)))
        l = lout
        cur *= downsampling_factor
    cin = min(cur, 1024)
    cout = min(cur * 2, 1024)
    lout = l + 2 * 2 - 5 + 1
    cfg.append(LayerCfg(cin, cout, 1, 5, 2, "relu", l, lout,
                        cin_w=cin, cout_pad=_round_up(cout, 8)))
    l = lout
    lout = l + 2 * 1 - 3 + 1
    cfg.append(LayerCfg(cout, 1, 1, 3, 1, "none", l, lout,
                        cin_w=cout, cout_pad=8))

    # Channel-chain consistency for the padded in-kernel layout.
    rows = _round_up(cfg[0].cin, 8)
    for c in cfg:
        assert c.groups * c.cin_w == rows, (c, rows)
        assert c.cout_pad % 8 == 0
        assert c.groups == 1 or (c.cout_pad == c.cout and c.cout % c.groups == 0)
        rows = c.cout_pad
    return cfg


def discriminator_block_forward(inp, params, downsampling_layers_num=4,
                                features=16, downsampling_factor=1,
                                out_dtype=jnp.float32):
    """Mirrors DiscriminatorBlock.forward (including double reflection padding)."""
    padded = reflect_pad1d(inp, 7)          # pre-loop 'input_padding'
    dpadded = reflect_pad1d(padded, 7)      # the loop applies it AGAIN first
    l0 = dpadded.shape[-1]
    cfg = _build_cfg(l0, downsampling_layers_num, features, downsampling_factor)
    lpad = _round_up(l0 + 3, 128)           # lane-aligned slab length

    wnames = (["w0"] + [f"wd{i}" for i in range(1, downsampling_layers_num + 1)]
              + ["w5", "wo"])
    bnames = (["b0"] + [f"bd{i}" for i in range(1, downsampling_layers_num + 1)]
              + ["b5", "bo"])
    weights_k = [_prep_layer_weight(params[w], c) for w, c in zip(wnames, cfg)]
    biases_k = [_prep_layer_bias(params[b], c) for b, c in zip(bnames, cfg)]

    rows0 = cfg[0].groups * cfg[0].cin_w
    x_slab = jnp.pad(dpadded.astype(jnp.float32),
                     ((0, 0), (0, rows0 - dpadded.shape[1]), (0, lpad - l0)))

    slabs = fused_discriminator_block(x_slab, weights_k, biases_k, cfg, lpad,
                                      out_dtype=out_dtype)

    features_list = [dpadded]
    for y, c in zip(slabs, cfg):
        features_list.append(y[:, :c.cout, :c.lout])   # strip layout padding
    return features_list


# ----------------------------------------------------------------------------
# Pure-JAX reference for correctness checks.
# ----------------------------------------------------------------------------
def _ref_conv1d(x, w, b, act, pad, groups):
    if pad:
        x = jnp.pad(x, ((0, 0), (0, 0), (pad, pad)))
    y = jax.lax.conv_general_dilated(
        x, w, window_strides=(1,), padding="VALID",
        dimension_numbers=("NCH", "OIH", "NCH"),
        feature_group_count=groups,
        precision=jax.lax.Precision.HIGHEST,
        preferred_element_type=jnp.float32)
    y = y + b.reshape(1, -1, 1)
    if act == "leaky":
        y = jnp.where(y >= 0.0, y, 0.2 * y)
    elif act == "relu":
        y = jnp.maximum(y, 0.0)
    return y


def _ref_forward(inp, params, n=4):
    padded = reflect_pad1d(inp, 7)
    feats = reflect_pad1d(padded, 7)
    outs = [feats]
    feats = _ref_conv1d(feats, params["w0"], params["b0"], "leaky", 0, 1)
    outs.append(feats)
    for i in range(1, n + 1):
        groups = feats.shape[1] // params[f"wd{i}"].shape[1]
        feats = _ref_conv1d(feats, params[f"wd{i}"], params[f"bd{i}"],
                            "leaky", 0, groups)
        outs.append(feats)
    feats = _ref_conv1d(feats, params["w5"], params["b5"], "relu", 2, 1)
    outs.append(feats)
    feats = _ref_conv1d(feats, params["wo"], params["bo"], "none", 1, 1)
    outs.append(feats)
    return outs


# ----------------------------------------------------------------------------
if __name__ == "__main__":
    key = jax.random.PRNGKey(0)
    k_inp, k_par = jax.random.split(key)

    B, L = 2, 64                      # input is (batch, 1 channel, length)
    inp = jax.random.normal(k_inp, (B, 1, L), jnp.float32)
    params = init_params(k_par)

    outs = discriminator_block_forward(inp, params)
    outs = [jax.block_until_ready(o) for o in outs]

    refs = _ref_forward(inp, params)
    assert len(outs) == len(refs) == 8
    for o, r in zip(outs, refs):
        assert o.shape == r.shape, (o.shape, r.shape)
        err = float(jnp.max(jnp.abs(o.astype(jnp.float32) - r)))
        assert err < 5e-2, err

    print("KERNEL_OK")
</pallas_src>

<mosaic_0001>
module attributes {stable_mosaic.version = 11 : i64} {
  func.func @_fused_block_kernel(%arg0: i32, %arg1: memref<1x8x128xf32, #tpu.memory_space<vmem>>, %arg2: memref<15x16x8xf32, #tpu.memory_space<vmem>>, %arg3: memref<16x1xf32, #tpu.memory_space<vmem>>, %arg4: memref<11x16x4xf32, #tpu.memory_space<vmem>>, %arg5: memref<16x1xf32, #tpu.memory_space<vmem>>, %arg6: memref<11x16x4xf32, #tpu.memory_space<vmem>>, %arg7: memref<16x1xf32, #tpu.memory_space<vmem>>, %arg8: memref<11x16x4xf32, #tpu.memory_space<vmem>>, %arg9: memref<16x1xf32, #tpu.memory_space<vmem>>, %arg10: memref<11x16x4xf32, #tpu.memory_space<vmem>>, %arg11: memref<16x1xf32, #tpu.memory_space<vmem>>, %arg12: memref<5x32x16xf32, #tpu.memory_space<vmem>>, %arg13: memref<32x1xf32, #tpu.memory_space<vmem>>, %arg14: memref<3x8x32xf32, #tpu.memory_space<vmem>>, %arg15: memref<8x1xf32, #tpu.memory_space<vmem>>, %arg16: memref<1x16x128xf32, #tpu.memory_space<vmem>>, %arg17: memref<1x16x128xf32, #tpu.memory_space<vmem>>, %arg18: memref<1x16x128xf32, #tpu.memory_space<vmem>>, %arg19: memref<1x16x128xf32, #tpu.memory_space<vmem>>, %arg20: memref<1x16x128xf32, #tpu.memory_space<vmem>>, %arg21: memref<1x32x128xf32, #tpu.memory_space<vmem>>, %arg22: memref<1x8x128xf32, #tpu.memory_space<vmem>>) attributes {dimension_semantics = [#tpu.dimension_semantics<parallel>], iteration_bounds = array<i64: 2>, scalar_prefetch = 0 : i64, scratch_operands = 0 : i64, tpu.core_type = #tpu.core_type<tc>, window_params = [{transform_indices = @transform_0, window_bounds = array<i64: 1, 8, 128>}, {pipeline_mode = #tpu.pipeline_mode<synchronous>, transform_indices = @transform_1, window_bounds = array<i64: 15, 16, 8>}, {pipeline_mode = #tpu.pipeline_mode<synchronous>, transform_indices = @transform_2, window_bounds = array<i64: 16, 1>}, {pipeline_mode = #tpu.pipeline_mode<synchronous>, transform_indices = @transform_3, window_bounds = array<i64: 11, 16, 4>}, {pipeline_mode = #tpu.pipeline_mode<synchronous>, transform_indices = @transform_4, window_bounds = array<i64: 16, 1>}, {pipeline_mode = #tpu.pipeline_mode<synchronous>, transform_indices = @transform_5, window_bounds = array<i64: 11, 16, 4>}, {pipeline_mode = #tpu.pipeline_mode<synchronous>, transform_indices = @transform_6, window_bounds = array<i64: 16, 1>}, {pipeline_mode = #tpu.pipeline_mode<synchronous>, transform_indices = @transform_7, window_bounds = array<i64: 11, 16, 4>}, {pipeline_mode = #tpu.pipeline_mode<synchronous>, transform_indices = @transform_8, window_bounds = array<i64: 16, 1>}, {pipeline_mode = #tpu.pipeline_mode<synchronous>, transform_indices = @transform_9, window_bounds = array<i64: 11, 16, 4>}, {pipeline_mode = #tpu.pipeline_mode<synchronous>, transform_indices = @transform_10, window_bounds = array<i64: 16, 1>}, {pipeline_mode = #tpu.pipeline_mode<synchronous>, transform_indices = @transform_11, window_bounds = array<i64: 5, 32, 16>}, {pipeline_mode = #tpu.pipeline_mode<synchronous>, transform_indices = @transform_12, window_bounds = array<i64: 32, 1>}, {pipeline_mode = #tpu.pipeline_mode<synchronous>, transform_indices = @transform_13, window_bounds = array<i64: 3, 8, 32>}, {pipeline_mode = #tpu.pipeline_mode<synchronous>, transform_indices = @transform_14, window_bounds = array<i64: 8, 1>}, {transform_indices = @transform_15, window_bounds = array<i64: 1, 16, 128>}, {transform_indices = @transform_16, window_bounds = array<i64: 1, 16, 128>}, {transform_indices = @transform_17, window_bounds = array<i64: 1, 16, 128>}, {transform_indices = @transform_18, window_bounds = array<i64: 1, 16, 128>}, {transform_indices = @transform_19, window_bounds = array<i64: 1, 16, 128>}, {transform_indices = @transform_20, window_bounds = array<i64: 1, 32, 128>}, {transform_indices = @transform_21, window_bounds = array<i64: 1, 8, 128>}]} {
    %0 = tpu.iota {dimensions = array<i32: 1>} : vector<1x128xi32>
    %c0 = arith.constant 0 : index
    %c0_0 = arith.constant 0 : index
    %c0_1 = arith.constant 0 : index
    %1 = vector.load %arg1[%c0, %c0_0, %c0_1] : memref<1x8x128xf32, #tpu.memory_space<vmem>>, vector<1x8x128xf32>
    %2 = vector.shape_cast %1 : vector<1x8x128xf32> to vector<8x128xf32>
    %cst = arith.constant 0.000000e+00 : f32
    %3 = vector.broadcast %cst : f32 to vector<16x128xf32>
    %c0_2 = arith.constant 0 : index
    %c0_3 = arith.constant 0 : index
    %c0_4 = arith.constant 0 : index
    %4 = vector.load %arg2[%c0_2, %c0_3, %c0_4] : memref<15x16x8xf32, #tpu.memory_space<vmem>>, vector<1x16x8xf32>
    %5 = vector.shape_cast %4 : vector<1x16x8xf32> to vector<16x8xf32>
    %cst_5 = arith.constant dense<0.000000e+00> : vector<16x128xf32>
    %6 = tpu.matmul %5, %2, %cst_5 {dimension_numbers = #tpu.dot_dimension_numbers<[1], [0], [0], [1], [0, 0, 1, 1], [], []>} : vector<16x8xf32>, vector<8x128xf32>, vector<16x128xf32> -> vector<16x128xf32>
    %7 = arith.addf %3, %6 : vector<16x128xf32>
    %c127_i32 = arith.constant 127 : i32
    %8 = tpu.dynamic_rotate %2 by %c127_i32 dim 1 : vector<8x128xf32>, i32 -> vector<8x128xf32>
    %c1 = arith.constant 1 : index
    %c0_6 = arith.constant 0 : index
    %c0_7 = arith.constant 0 : index
    %9 = vector.load %arg2[%c1, %c0_6, %c0_7] : memref<15x16x8xf32, #tpu.memory_space<vmem>>, vector<1x16x8xf32>
    %10 = vector.shape_cast %9 : vector<1x16x8xf32> to vector<16x8xf32>
    %cst_8 = arith.constant dense<0.000000e+00> : vector<16x128xf32>
    %11 = tpu.matmul %10, %8, %cst_8 {dimension_numbers = #tpu.dot_dimension_numbers<[1], [0], [0], [1], [0, 0, 1, 1], [], []>} : vector<16x8xf32>, vector<8x128xf32>, vector<16x128xf32> -> vector<16x128xf32>
    %12 = arith.addf %7, %11 : vector<16x128xf32>
    %c126_i32 = arith.constant 126 : i32
    %13 = tpu.dynamic_rotate %2 by %c126_i32 dim 1 : vector<8x128xf32>, i32 -> vector<8x128xf32>
    %c2 = arith.constant 2 : index
    %c0_9 = arith.constant 0 : index
    %c0_10 = arith.constant 0 : index
    %14 = vector.load %arg2[%c2, %c0_9, %c0_10] : memref<15x16x8xf32, #tpu.memory_space<vmem>>, vector<1x16x8xf32>
    %15 = vector.shape_cast %14 : vector<1x16x8xf32> to vector<16x8xf32>
    %cst_11 = arith.constant dense<0.000000e+00> : vector<16x128xf32>
    %16 = tpu.matmul %15, %13, %cst_11 {dimension_numbers = #tpu.dot_dimension_numbers<[1], [0], [0], [1], [0, 0, 1, 1], [], []>} : vector<16x8xf32>, vector<8x128xf32>, vector<16x128xf32> -> vector<16x128xf32>
    %17 = arith.addf %12, %16 : vector<16x128xf32>
    %c125_i32 = arith.constant 125 : i32
    %18 = tpu.dynamic_rotate %2 by %c125_i32 dim 1 : vector<8x128xf32>, i32 -> vector<8x128xf32>
    %c3 = arith.constant 3 : index
    %c0_12 = arith.constant 0 : index
    %c0_13 = arith.constant 0 : index
    %19 = vector.load %arg2[%c3, %c0_12, %c0_13] : memref<15x16x8xf32, #tpu.memory_space<vmem>>, vector<1x16x8xf32>
    %20 = vector.shape_cast %19 : vector<1x16x8xf32> to vector<16x8xf32>
    %cst_14 = arith.constant dense<0.000000e+00> : vector<16x128xf32>
    %21 = tpu.matmul %20, %18, %cst_14 {dimension_numbers = #tpu.dot_dimension_numbers<[1], [0], [0], [1], [0, 0, 1, 1], [], []>} : vector<16x8xf32>, vector<8x128xf32>, vector<16x128xf32> -> vector<16x128xf32>
    %22 = arith.addf %17, %21 : vector<16x128xf32>
    %c124_i32 = arith.constant 124 : i32
    %23 = tpu.dynamic_rotate %2 by %c124_i32 dim 1 : vector<8x128xf32>, i32 -> vector<8x128xf32>
    %c4 = arith.constant 4 : index
    %c0_15 = arith.constant 0 : index
    %c0_16 = arith.constant 0 : index
    %24 = vector.load %arg2[%c4, %c0_15, %c0_16] : memref<15x16x8xf32, #tpu.memory_space<vmem>>, vector<1x16x8xf32>
    %25 = vector.shape_cast %24 : vector<1x16x8xf32> to vector<16x8xf32>
    %cst_17 = arith.constant dense<0.000000e+00> : vector<16x128xf32>
    %26 = tpu.matmul %25, %23, %cst_17 {dimension_numbers = #tpu.dot_dimension_numbers<[1], [0], [0], [1], [0, 0, 1, 1], [], []>} : vector<16x8xf32>, vector<8x128xf32>, vector<16x128xf32> -> vector<16x128xf32>
    %27 = arith.addf %22, %26 : vector<16x128xf32>
    %c123_i32 = arith.constant 123 : i32
    %28 = tpu.dynamic_rotate %2 by %c123_i32 dim 1 : vector<8x128xf32>, i32 -> vector<8x128xf32>
    %c5 = arith.constant 5 : index
    %c0_18 = arith.constant 0 : index
    %c0_19 = arith.constant 0 : index
    %29 = vector.load %arg2[%c5, %c0_18, %c0_19] : memref<15x16x8xf32, #tpu.memory_space<vmem>>, vector<1x16x8xf32>
    %30 = vector.shape_cast %29 : vector<1x16x8xf32> to vector<16x8xf32>
    %cst_20 = arith.constant dense<0.000000e+00> : vector<16x128xf32>
    %31 = tpu.matmul %30, %28, %cst_20 {dimension_numbers = #tpu.dot_dimension_numbers<[1], [0], [0], [1], [0, 0, 1, 1], [], []>} : vector<16x8xf32>, vector<8x128xf32>, vector<16x128xf32> -> vector<16x128xf32>
    %32 = arith.addf %27, %31 : vector<16x128xf32>
    %c122_i32 = arith.constant 122 : i32
    %33 = tpu.dynamic_rotate %2 by %c122_i32 dim 1 : vector<8x128xf32>, i32 -> vector<8x128xf32>
    %c6 = arith.constant 6 : index
    %c0_21 = arith.constant 0 : index
    %c0_22 = arith.constant 0 : index
    %34 = vector.load %arg2[%c6, %c0_21, %c0_22] : memref<15x16x8xf32, #tpu.memory_space<vmem>>, vector<1x16x8xf32>
    %35 = vector.shape_cast %34 : vector<1x16x8xf32> to vector<16x8xf32>
    %cst_23 = arith.constant dense<0.000000e+00> : vector<16x128xf32>
    %36 = tpu.matmul %35, %33, %cst_23 {dimension_numbers = #tpu.dot_dimension_numbers<[1], [0], [0], [1], [0, 0, 1, 1], [], []>} : vector<16x8xf32>, vector<8x128xf32>, vector<16x128xf32> -> vector<16x128xf32>
    %37 = arith.addf %32, %36 : vector<16x128xf32>
    %c121_i32 = arith.constant 121 : i32
    %38 = tpu.dynamic_rotate %2 by %c121_i32 dim 1 : vector<8x128xf32>, i32 -> vector<8x128xf32>
    %c7 = arith.constant 7 : index
    %c0_24 = arith.constant 0 : index
    %c0_25 = arith.constant 0 : index
    %39 = vector.load %arg2[%c7, %c0_24, %c0_25] : memref<15x16x8xf32, #tpu.memory_space<vmem>>, vector<1x16x8xf32>
    %40 = vector.shape_cast %39 : vector<1x16x8xf32> to vector<16x8xf32>
    %cst_26 = arith.constant dense<0.000000e+00> : vector<16x128xf32>
    %41 = tpu.matmul %40, %38, %cst_26 {dimension_numbers = #tpu.dot_dimension_numbers<[1], [0], [0], [1], [0, 0, 1, 1], [], []>} : vector<16x8xf32>, vector<8x128xf32>, vector<16x128xf32> -> vector<16x128xf32>
    %42 = arith.addf %37, %41 : vector<16x128xf32>
    %c120_i32 = arith.constant 120 : i32
    %43 = tpu.dynamic_rotate %2 by %c120_i32 dim 1 : vector<8x128xf32>, i32 -> vector<8x128xf32>
    %c8 = arith.constant 8 : index
    %c0_27 = arith.constant 0 : index
    %c0_28 = arith.constant 0 : index
    %44 = vector.load %arg2[%c8, %c0_27, %c0_28] : memref<15x16x8xf32, #tpu.memory_space<vmem>>, vector<1x16x8xf32>
    %45 = vector.shape_cast %44 : vector<1x16x8xf32> to vector<16x8xf32>
    %cst_29 = arith.constant dense<0.000000e+00> : vector<16x128xf32>
    %46 = tpu.matmul %45, %43, %cst_29 {dimension_numbers = #tpu.dot_dimension_numbers<[1], [0], [0], [1], [0, 0, 1, 1], [], []>} : vector<16x8xf32>, vector<8x128xf32>, vector<16x128xf32> -> vector<16x128xf32>
    %47 = arith.addf %42, %46 : vector<16x128xf32>
    %c119_i32 = arith.constant 119 : i32
    %48 = tpu.dynamic_rotate %2 by %c119_i32 dim 1 : vector<8x128xf32>, i32 -> vector<8x128xf32>
    %c9 = arith.constant 9 : index
    %c0_30 = arith.constant 0 : index
    %c0_31 = arith.constant 0 : index
    %49 = vector.load %arg2[%c9, %c0_30, %c0_31] : memref<15x16x8xf32, #tpu.memory_space<vmem>>, vector<1x16x8xf32>
    %50 = vector.shape_cast %49 : vector<1x16x8xf32> to vector<16x8xf32>
    %cst_32 = arith.constant dense<0.000000e+00> : vector<16x128xf32>
    %51 = tpu.matmul %50, %48, %cst_32 {dimension_numbers = #tpu.dot_dimension_numbers<[1], [0], [0], [1], [0, 0, 1, 1], [], []>} : vector<16x8xf32>, vector<8x128xf32>, vector<16x128xf32> -> vector<16x128xf32>
    %52 = arith.addf %47, %51 : vector<16x128xf32>
    %c118_i32 = arith.constant 118 : i32
    %53 = tpu.dynamic_rotate %2 by %c118_i32 dim 1 : vector<8x128xf32>, i32 -> vector<8x128xf32>
    %c10 = arith.constant 10 : index
    %c0_33 = arith.constant 0 : index
    %c0_34 = arith.constant 0 : index
    %54 = vector.load %arg2[%c10, %c0_33, %c0_34] : memref<15x16x8xf32, #tpu.memory_space<vmem>>, vector<1x16x8xf32>
    %55 = vector.shape_cast %54 : vector<1x16x8xf32> to vector<16x8xf32>
    %cst_35 = arith.constant dense<0.000000e+00> : vector<16x128xf32>
    %56 = tpu.matmul %55, %53, %cst_35 {dimension_numbers = #tpu.dot_dimension_numbers<[1], [0], [0], [1], [0, 0, 1, 1], [], []>} : vector<16x8xf32>, vector<8x128xf32>, vector<16x128xf32> -> vector<16x128xf32>
    %57 = arith.addf %52, %56 : vector<16x128xf32>
    %c117_i32 = arith.constant 117 : i32
    %58 = tpu.dynamic_rotate %2 by %c117_i32 dim 1 : vector<8x128xf32>, i32 -> vector<8x128xf32>
    %c11 = arith.constant 11 : index
    %c0_36 = arith.constant 0 : index
    %c0_37 = arith.constant 0 : index
    %59 = vector.load %arg2[%c11, %c0_36, %c0_37] : memref<15x16x8xf32, #tpu.memory_space<vmem>>, vector<1x16x8xf32>
    %60 = vector.shape_cast %59 : vector<1x16x8xf32> to vector<16x8xf32>
    %cst_38 = arith.constant dense<0.000000e+00> : vector<16x128xf32>
    %61 = tpu.matmul %60, %58, %cst_38 {dimension_numbers = #tpu.dot_dimension_numbers<[1], [0], [0], [1], [0, 0, 1, 1], [], []>} : vector<16x8xf32>, vector<8x128xf32>, vector<16x128xf32> -> vector<16x128xf32>
    %62 = arith.addf %57, %61 : vector<16x128xf32>
    %c116_i32 = arith.constant 116 : i32
    %63 = tpu.dynamic_rotate %2 by %c116_i32 dim 1 : vector<8x128xf32>, i32 -> vector<8x128xf32>
    %c12 = arith.constant 12 : index
    %c0_39 = arith.constant 0 : index
    %c0_40 = arith.constant 0 : index
    %64 = vector.load %arg2[%c12, %c0_39, %c0_40] : memref<15x16x8xf32, #tpu.memory_space<vmem>>, vector<1x16x8xf32>
    %65 = vector.shape_cast %64 : vector<1x16x8xf32> to vector<16x8xf32>
    %cst_41 = arith.constant dense<0.000000e+00> : vector<16x128xf32>
    %66 = tpu.matmul %65, %63, %cst_41 {dimension_numbers = #tpu.dot_dimension_numbers<[1], [0], [0], [1], [0, 0, 1, 1], [], []>} : vector<16x8xf32>, vector<8x128xf32>, vector<16x128xf32> -> vector<16x128xf32>
    %67 = arith.addf %62, %66 : vector<16x128xf32>
    %c115_i32 = arith.constant 115 : i32
    %68 = tpu.dynamic_rotate %2 by %c115_i32 dim 1 : vector<8x128xf32>, i32 -> vector<8x128xf32>
    %c13 = arith.constant 13 : index
    %c0_42 = arith.constant 0 : index
    %c0_43 = arith.constant 0 : index
    %69 = vector.load %arg2[%c13, %c0_42, %c0_43] : memref<15x16x8xf32, #tpu.memory_space<vmem>>, vector<1x16x8xf32>
    %70 = vector.shape_cast %69 : vector<1x16x8xf32> to vector<16x8xf32>
    %cst_44 = arith.constant dense<0.000000e+00> : vector<16x128xf32>
    %71 = tpu.matmul %70, %68, %cst_44 {dimension_numbers = #tpu.dot_dimension_numbers<[1], [0], [0], [1], [0, 0, 1, 1], [], []>} : vector<16x8xf32>, vector<8x128xf32>, vector<16x128xf32> -> vector<16x128xf32>
    %72 = arith.addf %67, %71 : vector<16x128xf32>
    %c114_i32 = arith.constant 114 : i32
    %73 = tpu.dynamic_rotate %2 by %c114_i32 dim 1 : vector<8x128xf32>, i32 -> vector<8x128xf32>
    %c14 = arith.constant 14 : index
    %c0_45 = arith.constant 0 : index
    %c0_46 = arith.constant 0 : index
    %74 = vector.load %arg2[%c14, %c0_45, %c0_46] : memref<15x16x8xf32, #tpu.memory_space<vmem>>, vector<1x16x8xf32>
    %75 = vector.shape_cast %74 : vector<1x16x8xf32> to vector<16x8xf32>
    %cst_47 = arith.constant dense<0.000000e+00> : vector<16x128xf32>
    %76 = tpu.matmul %75, %73, %cst_47 {dimension_numbers = #tpu.dot_dimension_numbers<[1], [0], [0], [1], [0, 0, 1, 1], [], []>} : vector<16x8xf32>, vector<8x128xf32>, vector<16x128xf32> -> vector<16x128xf32>
    %77 = arith.addf %72, %76 : vector<16x128xf32>
    %c0_48 = arith.constant 0 : index
    %c0_49 = arith.constant 0 : index
    %78 = vector.load %arg3[%c0_48, %c0_49] : memref<16x1xf32, #tpu.memory_space<vmem>>, vector<16x1xf32>
    %79 = vector.broadcast %78 : vector<16x1xf32> to vector<16x128xf32>
    %80 = arith.addf %77, %79 : vector<16x128xf32>
    %cst_50 = arith.constant 0.000000e+00 : f32
    %81 = vector.broadcast %cst_50 : f32 to vector<16x128xf32>
    %82 = arith.cmpf oge, %80, %81 : vector<16x128xf32>
    %cst_51 = arith.constant 2.000000e-01 : f32
    %83 = vector.broadcast %cst_51 : f32 to vector<16x128xf32>
    %84 = arith.mulf %83, %80 : vector<16x128xf32>
    %85 = arith.select %82, %80, %84 : vector<16x128xi1>, vector<16x128xf32>
    %c78_i32 = arith.constant 78 : i32
    %86 = vector.broadcast %c78_i32 : i32 to vector<1x128xi32>
    %87 = arith.cmpi slt, %0, %86 : vector<1x128xi32>
    %cst_52 = arith.constant 0.000000e+00 : f32
    %88 = vector.shape_cast %87 : vector<1x128xi1> to vector<1x128xi1>
    %89 = vector.broadcast %88 : vector<1x128xi1> to vector<16x128xi1>
    %90 = vector.broadcast %cst_52 : f32 to vector<16x128xf32>
    %91 = arith.select %89, %85, %90 : vector<16x128xi1>, vector<16x128xf32>
    %c0_53 = arith.constant 0 : index
    %c0_54 = arith.constant 0 : index
    %c0_55 = arith.constant 0 : index
    %92 = vector.load %arg16[%c0_53, %c0_54, %c0_55] : memref<1x16x128xf32, #tpu.memory_space<vmem>>, vector<1x16x128xf32>
    %93 = vector.shape_cast %92 : vector<1x16x128xf32> to vector<16x128xf32>
    %94 = vector.shape_cast %91 : vector<16x128xf32> to vector<1x16x128xf32>
    tpu.vector_store %arg16[%c0_53, %c0_54, %c0_55], %94 {strides = array<i32>} : memref<1x16x128xf32, #tpu.memory_space<vmem>>, vector<1x16x128xf32>,
    %cst_56 = arith.constant 0.000000e+00 : f32
    %95 = vector.broadcast %cst_56 : f32 to vector<4x128xf32>
    %cst_57 = arith.constant 0.000000e+00 : f32
    %96 = vector.broadcast %cst_57 : f32 to vector<4x128xf32>
    %cst_58 = arith.constant 0.000000e+00 : f32
    %97 = vector.broadcast %cst_58 : f32 to vector<4x128xf32>
    %cst_59 = arith.constant 0.000000e+00 : f32
    %98 = vector.broadcast %cst_59 : f32 to vector<4x128xf32>
    %c0_60 = arith.constant 0 : index
    %c0_61 = arith.constant 0 : index
    %c0_62 = arith.constant 0 : index
    %99 = vector.load %arg4[%c0_60, %c0_61, %c0_62] : memref<11x16x4xf32, #tpu.memory_space<vmem>>, vector<1x16x4xf32>
    %100 = vector.shape_cast %99 : vector<1x16x4xf32> to vector<16x4xf32>
    %101 = vector.extract_strided_slice %100 {offsets = [0, 0], sizes = [4, 4], strides = [1, 1]} : vector<16x4xf32> to vector<4x4xf32>
    %102 = vector.extract_strided_slice %91 {offsets = [0, 0], sizes = [4, 128], strides = [1, 1]} : vector<16x128xf32> to vector<4x128xf32>
    %cst_63 = arith.constant dense<0.000000e+00> : vector<4x128xf32>
    %103 = tpu.matmul %101, %102, %cst_63 {dimension_numbers = #tpu.dot_dimension_numbers<[1], [0], [0], [1], [0, 0, 1, 1], [], []>} : vector<4x4xf32>, vector<4x128xf32>, vector<4x128xf32> -> vector<4x128xf32>
    %104 = arith.addf %95, %103 : vector<4x128xf32>
    %105 = vector.extract_strided_slice %100 {offsets = [4, 0], sizes = [4, 4], strides = [1, 1]} : vector<16x4xf32> to vector<4x4xf32>
    %106 = vector.extract_strided_slice %91 {offsets = [4, 0], sizes = [4, 128], strides = [1, 1]} : vector<16x128xf32> to vector<4x128xf32>
    %cst_64 = arith.constant dense<0.000000e+00> : vector<4x128xf32>
    %107 = tpu.matmul %105, %106, %cst_64 {dimension_numbers = #tpu.dot_dimension_numbers<[1], [0], [0], [1], [0, 0, 1, 1], [], []>} : vector<4x4xf32>, vector<4x128xf32>, vector<4x128xf32> -> vector<4x128xf32>
    %108 = arith.addf %96, %107 : vector<4x128xf32>
    %109 = vector.extract_strided_slice %100 {offsets = [8, 0], sizes = [4, 4], strides = [1, 1]} : vector<16x4xf32> to vector<4x4xf32>
    %110 = vector.extract_strided_slice %91 {offsets = [8, 0], sizes = [4, 128], strides = [1, 1]} : vector<16x128xf32> to vector<4x128xf32>
    %cst_65 = arith.constant dense<0.000000e+00> : vector<4x128xf32>
    %111 = tpu.matmul %109, %110, %cst_65 {dimension_numbers = #tpu.dot_dimension_numbers<[1], [0], [0], [1], [0, 0, 1, 1], [], []>} : vector<4x4xf32>, vector<4x128xf32>, vector<4x128xf32> -> vector<4x128xf32>
    %112 = arith.addf %97, %111 : vector<4x128xf32>
    %113 = vector.extract_strided_slice %100 {offsets = [12, 0], sizes = [4, 4], strides = [1, 1]} : vector<16x4xf32> to vector<4x4xf32>
    %114 = vector.extract_strided_slice %91 {offsets = [12, 0], sizes = [4, 128], strides = [1, 1]} : vector<16x128xf32> to vector<4x128xf32>
    %cst_66 = arith.constant dense<0.000000e+00> : vector<4x128xf32>
    %115 = tpu.matmul %113, %114, %cst_66 {dimension_numbers = #tpu.dot_dimension_numbers<[1], [0], [0], [1], [0, 0, 1, 1], [], []>} : vector<4x4xf32>, vector<4x128xf32>, vector<4x128xf32> -> vector<4x128xf32>
    %116 = arith.addf %98, %115 : vector<4x128xf32>
    %c127_i32_67 = arith.constant 127 : i32
    %117 = tpu.dynamic_rotate %91 by %c127_i32_67 dim 1 : vector<16x128xf32>, i32 -> vector<16x128xf32>
    %c1_68 = arith.constant 1 : index
    %c0_69 = arith.constant 0 : index
    %c0_70 = arith.constant 0 : index
    %118 = vector.load %arg4[%c1_68, %c0_69, %c0_70] : memref<11x16x4xf32, #tpu.memory_space<vmem>>, vector<1x16x4xf32>
    %119 = vector.shape_cast %118 : vector<1x16x4xf32> to vector<16x4xf32>
    %120 = vector.extract_strided_slice %119 {offsets = [0, 0], sizes = [4, 4], strides = [1, 1]} : vector<16x4xf32> to vector<4x4xf32>
    %121 = vector.extract_strided_slice %117 {offsets = [0, 0], sizes = [4, 128], strides = [1, 1]} : vector<16x128xf32> to vector<4x128xf32>
    %cst_71 = arith.constant dense<0.000000e+00> : vector<4x128xf32>
    %122 = tpu.matmul %120, %121, %cst_71 {dimension_numbers = #tpu.dot_dimension_numbers<[1], [0], [0], [1], [0, 0, 1, 1], [], []>} : vector<4x4xf32>, vector<4x128xf32>, vector<4x128xf32> -> vector<4x128xf32>
    %123 = arith.addf %104, %122 : vector<4x128xf32>
    %124 = vector.extract_strided_slice %119 {offsets = [4, 0], sizes = [4, 4], strides = [1, 1]} : vector<16x4xf32> to vector<4x4xf32>
    %125 = vector.extract_strided_slice %117 {offsets = [4, 0], sizes = [4, 128], strides = [1, 1]} : vector<16x128xf32> to vector<4x128xf32>
    %cst_72 = arith.constant dense<0.000000e+00> : vector<4x128xf32>
    %126 = tpu.matmul %124, %125, %cst_72 {dimension_numbers = #tpu.dot_dimension_numbers<[1], [0], [0], [1], [0, 0, 1, 1], [], []>} : vector<4x4xf32>, vector<4x128xf32>, vector<4x128xf32> -> vector<4x128xf32>
    %127 = arith.addf %108, %126 : vector<4x128xf32>
    %128 = vector.extract_strided_slice %119 {offsets = [8, 0], sizes = [4, 4], strides = [1, 1]} : vector<16x4xf32> to vector<4x4xf32>
    %129 = vector.extract_strided_slice %117 {offsets = [8, 0], sizes = [4, 128], strides = [1, 1]} : vector<16x128xf32> to vector<4x128xf32>
    %cst_73 = arith.constant dense<0.000000e+00> : vector<4x128xf32>
    %130 = tpu.matmul %128, %129, %cst_73 {dimension_numbers = #tpu.dot_dimension_numbers<[1], [0], [0], [1], [0, 0, 1, 1], [], []>} : vector<4x4xf32>, vector<4x128xf32>, vector<4x128xf32> -> vector<4x128xf32>
    %131 = arith.addf %112, %130 : vector<4x128xf32>
    %132 = vector.extract_strided_slice %119 {offsets = [12, 0], sizes = [4, 4], strides = [1, 1]} : vector<16x4xf32> to vector<4x4xf32>
    %133 = vector.extract_strided_slice %117 {offsets = [12, 0], sizes = [4, 128], strides = [1, 1]} : vector<16x128xf32> to vector<4x128xf32>
    %cst_74 = arith.constant dense<0.000000e+00> : vector<4x128xf32>
    %134 = tpu.matmul %132, %133, %cst_74 {dimension_numbers = #tpu.dot_dimension_numbers<[1], [0], [0], [1], [0, 0, 1, 1], [], []>} : vector<4x4xf32>, vector<4x128xf32>, vector<4x128xf32> -> vector<4x128xf32>
    %135 = arith.addf %116, %134 : vector<4x128xf32>
    %c126_i32_75 = arith.constant 126 : i32
    %136 = tpu.dynamic_rotate %91 by %c126_i32_75 dim 1 : vector<16x128xf32>, i32 -> vector<16x128xf32>
    %c2_76 = arith.constant 2 : index
    %c0_77 = arith.constant 0 : index
    %c0_78 = arith.constant 0 : index
    %137 = vector.load %arg4[%c2_76, %c0_77, %c0_78] : memref<11x16x4xf32, #tpu.memory_space<vmem>>, vector<1x16x4xf32>
    %138 = vector.shape_cast %137 : vector<1x16x4xf32> to vector<16x4xf32>
    %139 = vector.extract_strided_slice %138 {offsets = [0, 0], sizes = [4, 4], strides = [1, 1]} : vector<16x4xf32> to vector<4x4xf32>
    %140 = vector.extract_strided_slice %136 {offsets = [0, 0], sizes = [4, 128], strides = [1, 1]} : vector<16x128xf32> to vector<4x128xf32>
    %cst_79 = arith.constant dense<0.000000e+00> : vector<4x128xf32>
    %141 = tpu.matmul %139, %140, %cst_79 {dimension_numbers = #tpu.dot_dimension_numbers<[1], [0], [0], [1], [0, 0, 1, 1], [], []>} : vector<4x4xf32>, vector<4x128xf32>, vector<4x128xf32> -> vector<4x128xf32>
    %142 = arith.addf %123, %141 : vector<4x128xf32>
    %143 = vector.extract_strided_slice %138 {offsets = [4, 0], sizes = [4, 4], strides = [1, 1]} : vector<16x4xf32> to vector<4x4xf32>
    %144 = vector.extract_strided_slice %136 {offsets = [4, 0], sizes = [4, 128], strides = [1, 1]} : vector<16x128xf32> to vector<4x128xf32>
    %cst_80 = arith.constant dense<0.000000e+00> : vector<4x128xf32>
    %145 = tpu.matmul %143, %144, %cst_80 {dimension_numbers = #tpu.dot_dimension_numbers<[1], [0], [0], [1], [0, 0, 1, 1], [], []>} : vector<4x4xf32>, vector<4x128xf32>, vector<4x128xf32> -> vector<4x128xf32>
    %146 = arith.addf %127, %145 : vector<4x128xf32>
    %147 = vector.extract_strided_slice %138 {offsets = [8, 0], sizes = [4, 4], strides = [1, 1]} : vector<16x4xf32> to vector<4x4xf32>
    %148 = vector.extract_strided_slice %136 {offsets = [8, 0], sizes = [4, 128], strides = [1, 1]} : vector<16x128xf32> to vector<4x128xf32>
    %cst_81 = arith.constant dense<0.000000e+00> : vector<4x128xf32>
    %149 = tpu.matmul %147, %148, %cst_81 {dimension_numbers = #tpu.dot_dimension_numbers<[1], [0], [0], [1], [0, 0, 1, 1], [], []>} : vector<4x4xf32>, vector<4x128xf32>, vector<4x128xf32> -> vector<4x128xf32>
    %150 = arith.addf %131, %149 : vector<4x128xf32>
    %151 = vector.extract_strided_slice %138 {offsets = [12, 0], sizes = [4, 4], strides = [1, 1]} : vector<16x4xf32> to vector<4x4xf32>
    %152 = vector.extract_strided_slice %136 {offsets = [12, 0], sizes = [4, 128], strides = [1, 1]} : vector<16x128xf32> to vector<4x128xf32>
    %cst_82 = arith.constant dense<0.000000e+00> : vector<4x128xf32>
    %153 = tpu.matmul %151, %152, %cst_82 {dimension_numbers = #tpu.dot_dimension_numbers<[1], [0], [0], [1], [0, 0, 1, 1], [], []>} : vector<4x4xf32>, vector<4x128xf32>, vector<4x128xf32> -> vector<4x128xf32>
    %154 = arith.addf %135, %153 : vector<4x128xf32>
    %c125_i32_83 = arith.constant 125 : i32
    %155 = tpu.dynamic_rotate %91 by %c125_i32_83 dim 1 : vector<16x128xf32>, i32 -> vector<16x128xf32>
    %c3_84 = arith.constant 3 : index
    %c0_85 = arith.constant 0 : index
    %c0_86 = arith.constant 0 : index
    %156 = vector.load %arg4[%c3_84, %c0_85, %c0_86] : memref<11x16x4xf32, #tpu.memory_space<vmem>>, vector<1x16x4xf32>
    %157 = vector.shape_cast %156 : vector<1x16x4xf32> to vector<16x4xf32>
    %158 = vector.extract_strided_slice %157 {offsets = [0, 0], sizes = [4, 4], strides = [1, 1]} : vector<16x4xf32> to vector<4x4xf32>
    %159 = vector.extract_strided_slice %155 {offsets = [0, 0], sizes = [4, 128], strides = [1, 1]} : vector<16x128xf32> to vector<4x128xf32>
    %cst_87 = arith.constant dense<0.000000e+00> : vector<4x128xf32>
    %160 = tpu.matmul %158, %159, %cst_87 {dimension_numbers = #tpu.dot_dimension_numbers<[1], [0], [0], [1], [0, 0, 1, 1], [], []>} : vector<4x4xf32>, vector<4x128xf32>, vector<4x128xf32> -> vector<4x128xf32>
    %161 = arith.addf %142, %160 : vector<4x128xf32>
    %162 = vector.extract_strided_slice %157 {offsets = [4, 0], sizes = [4, 4], strides = [1, 1]} : vector<16x4xf32> to vector<4x4xf32>
    %163 = vector.extract_strided_slice %155 {offsets = [4, 0], sizes = [4, 128], strides = [1, 1]} : vector<16x128xf32> to vector<4x128xf32>
    %cst_88 = arith.constant dense<0.000000e+00> : vector<4x128xf32>
    %164 = tpu.matmul %162, %163, %cst_88 {dimension_numbers = #tpu.dot_dimension_numbers<[1], [0], [0], [1], [0, 0, 1, 1], [], []>} : vector<4x4xf32>, vector<4x128xf32>, vector<4x128xf32> -> vector<4x128xf32>
    %165 = arith.addf %146, %164 : vector<4x128xf32>
    %166 = vector.extract_strided_slice %157 {offsets = [8, 0], sizes = [4, 4], strides = [1, 1]} : vector<16x4xf32> to vector<4x4xf32>
    %167 = vector.extract_strided_slice %155 {offsets = [8, 0], sizes = [4, 128], strides = [1, 1]} : vector<16x128xf32> to vector<4x128xf32>
    %cst_89 = arith.constant dense<0.000000e+00> : vector<4x128xf32>
    %168 = tpu.matmul %166, %167, %cst_89 {dimension_numbers = #tpu.dot_dimension_numbers<[1], [0], [0], [1], [0, 0, 1, 1], [], []>} : vector<4x4xf32>, vector<4x128xf32>, vector<4x128xf32> -> vector<4x128xf32>
    %169 = arith.addf %150, %168 : vector<4x128xf32>
    %170 = vector.extract_strided_slice %157 {offsets = [12, 0], sizes = [4, 4], strides = [1, 1]} : vector<16x4xf32> to vector<4x4xf32>
    %171 = vector.extract_strided_slice %155 {offsets = [12, 0], sizes = [4, 128], strides = [1, 1]} : vector<16x128xf32> to vector<4x128xf32>
    %cst_90 = arith.constant dense<0.000000e+00> : vector<4x128xf32>
    %172 = tpu.matmul %170, %171, %cst_90 {dimension_numbers = #tpu.dot_dimension_numbers<[1], [0], [0], [1], [0, 0, 1, 1], [], []>} : vector<4x4xf32>, vector<4x128xf32>, vector<4x128xf32> -> vector<4x128xf32>
    %173 = arith.addf %154, %172 : vector<4x128xf32>
    %c124_i32_91 = arith.constant 124 : i32
    %174 = tpu.dynamic_rotate %91 by %c124_i32_91 dim 1 : vector<16x128xf32>, i32 -> vector<16x128xf32>
    %c4_92 = arith.constant 4 : index
    %c0_93 = arith.constant 0 : index
    %c0_94 = arith.constant 0 : index
    %175 = vector.load %arg4[%c4_92, %c0_93, %c0_94] : memref<11x16x4xf32, #tpu.memory_space<vmem>>, vector<1x16x4xf32>
    %176 = vector.shape_cast %175 : vector<1x16x4xf32> to vector<16x4xf32>
    %177 = vector.extract_strided_slice %176 {offsets = [0, 0], sizes = [4, 4], strides = [1, 1]} : vector<16x4xf32> to vector<4x4xf32>
    %178 = vector.extract_strided_slice %174 {offsets = [0, 0], sizes = [4, 128], strides = [1, 1]} : vector<16x128xf32> to vector<4x128xf32>
    %cst_95 = arith.constant dense<0.000000e+00> : vector<4x128xf32>
    %179 = tpu.matmul %177, %178, %cst_95 {dimension_numbers = #tpu.dot_dimension_numbers<[1], [0], [0], [1], [0, 0, 1, 1], [], []>} : vector<4x4xf32>, vector<4x128xf32>, vector<4x128xf32> -> vector<4x128xf32>
    %180 = arith.addf %161, %179 : vector<4x128xf32>
    %181 = vector.extract_strided_slice %176 {offsets = [4, 0], sizes = [4, 4], strides = [1, 1]} : vector<16x4xf32> to vector<4x4xf32>
    %182 = vector.extract_strided_slice %174 {offsets = [4, 0], sizes = [4, 128], strides = [1, 1]} : vector<16x128xf32> to vector<4x128xf32>
    %cst_96 = arith.constant dense<0.000000e+00> : vector<4x128xf32>
    %183 = tpu.matmul %181, %182, %cst_96 {dimension_numbers = #tpu.dot_dimension_numbers<[1], [0], [0], [1], [0, 0, 1, 1], [], []>} : vector<4x4xf32>, vector<4x128xf32>, vector<4x128xf32> -> vector<4x128xf32>
    %184 = arith.addf %165, %183 : vector<4x128xf32>
    %185 = vector.extract_strided_slice %176 {offsets = [8, 0], sizes = [4, 4], strides = [1, 1]} : vector<16x4xf32> to vector<4x4xf32>
    %186 = vector.extract_strided_slice %174 {offsets = [8, 0], sizes = [4, 128], strides = [1, 1]} : vector<16x128xf32> to vector<4x128xf32>
    %cst_97 = arith.constant dense<0.000000e+00> : vector<4x128xf32>
    %187 = tpu.matmul %185, %186, %cst_97 {dimension_numbers = #tpu.dot_dimension_numbers<[1], [0], [0], [1], [0, 0, 1, 1], [], []>} : vector<4x4xf32>, vector<4x128xf32>, vector<4x128xf32> -> vector<4x128xf32>
    %188 = arith.addf %169, %187 : vector<4x128xf32>
    %189 = vector.extract_strided_slice %176 {offsets = [12, 0], sizes = [4, 4], strides = [1, 1]} : vector<16x4xf32> to vector<4x4xf32>
    %190 = vector.extract_strided_slice %174 {offsets = [12, 0], sizes = [4, 128], strides = [1, 1]} : vector<16x128xf32> to vector<4x128xf32>
    %cst_98 = arith.constant dense<0.000000e+00> : vector<4x128xf32>
    %191 = tpu.matmul %189, %190, %cst_98 {dimension_numbers = #tpu.dot_dimension_numbers<[1], [0], [0], [1], [0, 0, 1, 1], [], []>} : vector<4x4xf32>, vector<4x128xf32>, vector<4x128xf32> -> vector<4x128xf32>
    %192 = arith.addf %173, %191 : vector<4x128xf32>
    %c123_i32_99 = arith.constant 123 : i32
    %193 = tpu.dynamic_rotate %91 by %c123_i32_99 dim 1 : vector<16x128xf32>, i32 -> vector<16x128xf32>
    %c5_100 = arith.constant 5 : index
    %c0_101 = arith.constant 0 : index
    %c0_102 = arith.constant 0 : index
    %194 = vector.load %arg4[%c5_100, %c0_101, %c0_102] : memref<11x16x4xf32, #tpu.memory_space<vmem>>, vector<1x16x4xf32>
    %195 = vector.shape_cast %194 : vector<1x16x4xf32> to vector<16x4xf32>
    %196 = vector.extract_strided_slice %195 {offsets = [0, 0], sizes = [4, 4], strides = [1, 1]} : vector<16x4xf32> to vector<4x4xf32>
    %197 = vector.extract_strided_slice %193 {offsets = [0, 0], sizes = [4, 128], strides = [1, 1]} : vector<16x128xf32> to vector<4x128xf32>
    %cst_103 = arith.constant dense<0.000000e+00> : vector<4x128xf32>
    %198 = tpu.matmul %196, %197, %cst_103 {dimension_numbers = #tpu.dot_dimension_numbers<[1], [0], [0], [1], [0, 0, 1, 1], [], []>} : vector<4x4xf32>, vector<4x128xf32>, vector<4x128xf32> -> vector<4x128xf32>
    %199 = arith.addf %180, %198 : vector<4x128xf32>
    %200 = vector.extract_strided_slice %195 {offsets = [4, 0], sizes = [4, 4], strides = [1, 1]} : vector<16x4xf32> to vector<4x4xf32>
    %201 = vector.extract_strided_slice %193 {offsets = [4, 0], sizes = [4, 128], strides = [1, 1]} : vector<16x128xf32> to vector<4x128xf32>
    %cst_104 = arith.constant dense<0.000000e+00> : vector<4x128xf32>
    %202 = tpu.matmul %200, %201, %cst_104 {dimension_numbers = #tpu.dot_dimension_numbers<[1], [0], [0], [1], [0, 0, 1, 1], [], []>} : vector<4x4xf32>, vector<4x128xf32>, vector<4x128xf32> -> vector<4x128xf32>
    %203 = arith.addf %184, %202 : vector<4x128xf32>
    %204 = vector.extract_strided_slice %195 {offsets = [8, 0], sizes = [4, 4], strides = [1, 1]} : vector<16x4xf32> to vector<4x4xf32>
    %205 = vector.extract_strided_slice %193 {offsets = [8, 0], sizes = [4, 128], strides = [1, 1]} : vector<16x128xf32> to vector<4x128xf32>
    %cst_105 = arith.constant dense<0.000000e+00> : vector<4x128xf32>
    %206 = tpu.matmul %204, %205, %cst_105 {dimension_numbers = #tpu.dot_dimension_numbers<[1], [0], [0], [1], [0, 0, 1, 1], [], []>} : vector<4x4xf32>, vector<4x128xf32>, vector<4x128xf32> -> vector<4x128xf32>
    %207 = arith.addf %188, %206 : vector<4x128xf32>
    %208 = vector.extract_strided_slice %195 {offsets = [12, 0], sizes = [4, 4], strides = [1, 1]} : vector<16x4xf32> to vector<4x4xf32>
    %209 = vector.extract_strided_slice %193 {offsets = [12, 0], sizes = [4, 128], strides = [1, 1]} : vector<16x128xf32> to vector<4x128xf32>
    %cst_106 = arith.constant dense<0.000000e+00> : vector<4x128xf32>
    %210 = tpu.matmul %208, %209, %cst_106 {dimension_numbers = #tpu.dot_dimension_numbers<[1], [0], [0], [1], [0, 0, 1, 1], [], []>} : vector<4x4xf32>, vector<4x128xf32>, vector<4x128xf32> -> vector<4x128xf32>
    %211 = arith.addf %192, %210 : vector<4x128xf32>
    %c122_i32_107 = arith.constant 122 : i32
    %212 = tpu.dynamic_rotate %91 by %c122_i32_107 dim 1 : vector<16x128xf32>, i32 -> vector<16x128xf32>
    %c6_108 = arith.constant 6 : index
    %c0_109 = arith.constant 0 : index
    %c0_110 = arith.constant 0 : index
    %213 = vector.load %arg4[%c6_108, %c0_109, %c0_110] : memref<11x16x4xf32, #tpu.memory_space<vmem>>, vector<1x16x4xf32>
    %214 = vector.shape_cast %213 : vector<1x16x4xf32> to vector<16x4xf32>
    %215 = vector.extract_strided_slice %214 {offsets = [0, 0], sizes = [4, 4], strides = [1, 1]} : vector<16x4xf32> to vector<4x4xf32>
    %216 = vector.extract_strided_slice %212 {offsets = [0, 0], sizes = [4, 128], strides = [1, 1]} : vector<16x128xf32> to vector<4x128xf32>
    %cst_111 = arith.constant dense<0.000000e+00> : vector<4x128xf32>
    %217 = tpu.matmul %215, %216, %cst_111 {dimension_numbers = #tpu.dot_dimension_numbers<[1], [0], [0], [1], [0, 0, 1, 1], [], []>} : vector<4x4xf32>, vector<4x128xf32>, vector<4x128xf32> -> vector<4x128xf32>
    %218 = arith.addf %199, %217 : vector<4x128xf32>
    %219 = vector.extract_strided_slice %214 {offsets = [4, 0], sizes = [4, 4], strides = [1, 1]} : vector<16x4xf32> to vector<4x4xf32>
    %220 = vector.extract_strided_slice %212 {offsets = [4, 0], sizes = [4, 128], strides = [1, 1]} : vector<16x128xf32> to vector<4x128xf32>
    %cst_112 = arith.constant dense<0.000000e+00> : vector<4x128xf32>
    %221 = tpu.matmul %219, %220, %cst_112 {dimension_numbers = #tpu.dot_dimension_numbers<[1], [0], [0], [1], [0, 0, 1, 1], [], []>} : vector<4x4xf32>, vector<4x128xf32>, vector<4x128xf32> -> vector<4x128xf32>
    %222 = arith.addf %203, %221 : vector<4x128xf32>
    %223 = vector.extract_strided_slice %214 {offsets = [8, 0], sizes = [4, 4], strides = [1, 1]} : vector<16x4xf32> to vector<4x4xf32>
    %224 = vector.extract_strided_slice %212 {offsets = [8, 0], sizes = [4, 128], strides = [1, 1]} : vector<16x128xf32> to vector<4x128xf32>
    %cst_113 = arith.constant dense<0.000000e+00> : vector<4x128xf32>
    %225 = tpu.matmul %223, %224, %cst_113 {dimension_numbers = #tpu.dot_dimension_numbers<[1], [0], [0], [1], [0, 0, 1, 1], [], []>} : vector<4x4xf32>, vector<4x128xf32>, vector<4x128xf32> -> vector<4x128xf32>
    %226 = arith.addf %207, %225 : vector<4x128xf32>
    %227 = vector.extract_strided_slice %214 {offsets = [12, 0], sizes = [4, 4], strides = [1, 1]} : vector<16x4xf32> to vector<4x4xf32>
    %228 = vector.extract_strided_slice %212 {offsets = [12, 0], sizes = [4, 128], strides = [1, 1]} : vector<16x128xf32> to vector<4x128xf32>
    %cst_114 = arith.constant dense<0.000000e+00> : vector<4x128xf32>
    %229 = tpu.matmul %227, %228, %cst_114 {dimension_numbers = #tpu.dot_dimension_numbers<[1], [0], [0], [1], [0, 0, 1, 1], [], []>} : vector<4x4xf32>, vector<4x128xf32>, vector<4x128xf32> -> vector<4x128xf32>
    %230 = arith.addf %211, %229 : vector<4x128xf32>
    %c121_i32_115 = arith.constant 121 : i32
    %231 = tpu.dynamic_rotate %91 by %c121_i32_115 dim 1 : vector<16x128xf32>, i32 -> vector<16x128xf32>
    %c7_116 = arith.constant 7 : index
    %c0_117 = arith.constant 0 : index
    %c0_118 = arith.constant 0 : index
    %232 = vector.load %arg4[%c7_116, %c0_117, %c0_118] : memref<11x16x4xf32, #tpu.memory_space<vmem>>, vector<1x16x4xf32>
    %233 = vector.shape_cast %232 : vector<1x16x4xf32> to vector<16x4xf32>
    %234 = vector.extract_strided_slice %233 {offsets = [0, 0], sizes = [4, 4], strides = [1, 1]} : vector<16x4xf32> to vector<4x4xf32>
    %235 = vector.extract_strided_slice %231 {offsets = [0, 0], sizes = [4, 128], strides = [1, 1]} : vector<16x128xf32> to vector<4x128xf32>
    %cst_119 = arith.constant dense<0.000000e+00> : vector<4x128xf32>
    %236 = tpu.matmul %234, %235, %cst_119 {dimension_numbers = #tpu.dot_dimension_numbers<[1], [0], [0], [1], [0, 0, 1, 1], [], []>} : vector<4x4xf32>, vector<4x128xf32>, vector<4x128xf32> -> vector<4x128xf32>
    %237 = arith.addf %218, %236 : vector<4x128xf32>
    %238 = vector.extract_strided_slice %233 {offsets = [4, 0], sizes = [4, 4], strides = [1, 1]} : vector<16x4xf32> to vector<4x4xf32>
    %239 = vector.extract_strided_slice %231 {offsets = [4, 0], sizes = [4, 128], strides = [1, 1]} : vector<16x128xf32> to vector<4x128xf32>
    %cst_120 = arith.constant dense<0.000000e+00> : vector<4x128xf32>
    %240 = tpu.matmul %238, %239, %cst_120 {dimension_numbers = #tpu.dot_dimension_numbers<[1], [0], [0], [1], [0, 0, 1, 1], [], []>} : vector<4x4xf32>, vector<4x128xf32>, vector<4x128xf32> -> vector<4x128xf32>
    %241 = arith.addf %222, %240 : vector<4x128xf32>
    %242 = vector.extract_strided_slice %233 {offsets = [8, 0], sizes = [4, 4], strides = [1, 1]} : vector<16x4xf32> to vector<4x4xf32>
    %243 = vector.extract_strided_slice %231 {offsets = [8, 0], sizes = [4, 128], strides = [1, 1]} : vector<16x128xf32> to vector<4x128xf32>
    %cst_121 = arith.constant dense<0.000000e+00> : vector<4x128xf32>
    %244 = tpu.matmul %242, %243, %cst_121 {dimension_numbers = #tpu.dot_dimension_numbers<[1], [0], [0], [1], [0, 0, 1, 1], [], []>} : vector<4x4xf32>, vector<4x128xf32>, vector<4x128xf32> -> vector<4x128xf32>
    %245 = arith.addf %226, %244 : vector<4x128xf32>
    %246 = vector.extract_strided_slice %233 {offsets = [12, 0], sizes = [4, 4], strides = [1, 1]} : vector<16x4xf32> to vector<4x4xf32>
    %247 = vector.extract_strided_slice %231 {offsets = [12, 0], sizes = [4, 128], strides = [1, 1]} : vector<16x128xf32> to vector<4x128xf32>
    %cst_122 = arith.constant dense<0.000000e+00> : vector<4x128xf32>
    %248 = tpu.matmul %246, %247, %cst_122 {dimension_numbers = #tpu.dot_dimension_numbers<[1], [0], [0], [1], [0, 0, 1, 1], [], []>} : vector<4x4xf32>, vector<4x128xf32>, vector<4x128xf32> -> vector<4x128xf32>
    %249 = arith.addf %230, %248 : vector<4x128xf32>
    %c120_i32_123 = arith.constant 120 : i32
    %250 = tpu.dynamic_rotate %91 by %c120_i32_123 dim 1 : vector<16x128xf32>, i32 -> vector<16x128xf32>
    %c8_124 = arith.constant 8 : index
    %c0_125 = arith.constant 0 : index
    %c0_126 = arith.constant 0 : index
    %251 = vector.load %arg4[%c8_124, %c0_125, %c0_126] : memref<11x16x4xf32, #tpu.memory_space<vmem>>, vector<1x16x4xf32>
    %252 = vector.shape_cast %251 : vector<1x16x4xf32> to vector<16x4xf32>
    %253 = vector.extract_strided_slice %252 {offsets = [0, 0], sizes = [4, 4], strides = [1, 1]} : vector<16x4xf32> to vector<4x4xf32>
    %254 = vector.extract_strided_slice %250 {offsets = [0, 0], sizes = [4, 128], strides = [1, 1]} : vector<16x128xf32> to vector<4x128xf32>
    %cst_127 = arith.constant dense<0.000000e+00> : vector<4x128xf32>
    %255 = tpu.matmul %253, %254, %cst_127 {dimension_numbers = #tpu.dot_dimension_numbers<[1], [0], [0], [1], [0, 0, 1, 1], [], []>} : vector<4x4xf32>, vector<4x128xf32>, vector<4x128xf32> -> vector<4x128xf32>
    %256 = arith.addf %237, %255 : vector<4x128xf32>
    %257 = vector.extract_strided_slice %252 {offsets = [4, 0], sizes = [4, 4], strides = [1, 1]} : vector<16x4xf32> to vector<4x4xf32>
    %258 = vector.extract_strided_slice %250 {offsets = [4, 0], sizes = [4, 128], strides = [1, 1]} : vector<16x128xf32> to vector<4x128xf32>
    %cst_128 = arith.constant dense<0.000000e+00> : vector<4x128xf32>
    %259 = tpu.matmul %257, %258, %cst_128 {dimension_numbers = #tpu.dot_dimension_numbers<[1], [0], [0], [1], [0, 0, 1, 1], [], []>} : vector<4x4xf32>, vector<4x128xf32>, vector<4x128xf32> -> vector<4x128xf32>
    %260 = arith.addf %241, %259 : vector<4x128xf32>
    %261 = vector.extract_strided_slice %252 {offsets = [8, 0], sizes = [4, 4], strides = [1, 1]} : vector<16x4xf32> to vector<4x4xf32>
    %262 = vector.extract_strided_slice %250 {offsets = [8, 0], sizes = [4, 128], strides = [1, 1]} : vector<16x128xf32> to vector<4x128xf32>
    %cst_129 = arith.constant dense<0.000000e+00> : vector<4x128xf32>
    %263 = tpu.matmul %261, %262, %cst_129 {dimension_numbers = #tpu.dot_dimension_numbers<[1], [0], [0], [1], [0, 0, 1, 1], [], []>} : vector<4x4xf32>, vector<4x128xf32>, vector<4x128xf32> -> vector<4x128xf32>
    %264 = arith.addf %245, %263 : vector<4x128xf32>
    %265 = vector.extract_strided_slice %252 {offsets = [12, 0], sizes = [4, 4], strides = [1, 1]} : vector<16x4xf32> to vector<4x4xf32>
    %266 = vector.extract_strided_slice %250 {offsets = [12, 0], sizes = [4, 128], strides = [1, 1]} : vector<16x128xf32> to vector<4x128xf32>
    %cst_130 = arith.constant dense<0.000000e+00> : vector<4x128xf32>
    %267 = tpu.matmul %265, %266, %cst_130 {dimension_numbers = #tpu.dot_dimension_numbers<[1], [0], [0], [1], [0, 0, 1, 1], [], []>} : vector<4x4xf32>, vector<4x128xf32>, vector<4x128xf32> -> vector<4x128xf32>
    %268 = arith.addf %249, %267 : vector<4x128xf32>
    %c119_i32_131 = arith.constant 119 : i32
    %269 = tpu.dynamic_rotate %91 by %c119_i32_131 dim 1 : vector<16x128xf32>, i32 -> vector<16x128xf32>
    %c9_132 = arith.constant 9 : index
    %c0_133 = arith.constant 0 : index
    %c0_134 = arith.constant 0 : index
    %270 = vector.load %arg4[%c9_132, %c0_133, %c0_134] : memref<11x16x4xf32, #tpu.memory_space<vmem>>, vector<1x16x4xf32>
    %271 = vector.shape_cast %270 : vector<1x16x4xf32> to vector<16x4xf32>
    %272 = vector.extract_strided_slice %271 {offsets = [0, 0], sizes = [4, 4], strides = [1, 1]} : vector<16x4xf32> to vector<4x4xf32>
    %273 = vector.extract_strided_slice %269 {offsets = [0, 0], sizes = [4, 128], strides = [1, 1]} : vector<16x128xf32> to vector<4x128xf32>
    %cst_135 = arith.constant dense<0.000000e+00> : vector<4x128xf32>
    %274 = tpu.matmul %272, %273, %cst_135 {dimension_numbers = #tpu.dot_dimension_numbers<[1], [0], [0], [1], [0, 0, 1, 1], [], []>} : vector<4x4xf32>, vector<4x128xf32>, vector<4x128xf32> -> vector<4x128xf32>
    %275 = arith.addf %256, %274 : vector<4x128xf32>
    %276 = vector.extract_strided_slice %271 {offsets = [4, 0], sizes = [4, 4], strides = [1, 1]} : vector<16x4xf32> to vector<4x4xf32>
    %277 = vector.extract_strided_slice %269 {offsets = [4, 0], sizes = [4, 128], strides = [1, 1]} : vector<16x128xf32> to vector<4x128xf32>
    %cst_136 = arith.constant dense<0.000000e+00> : vector<4x128xf32>
    %278 = tpu.matmul %276, %277, %cst_136 {dimension_numbers = #tpu.dot_dimension_numbers<[1], [0], [0], [1], [0, 0, 1, 1], [], []>} : vector<4x4xf32>, vector<4x128xf32>, vector<4x128xf32> -> vector<4x128xf32>
    %279 = arith.addf %260, %278 : vector<4x128xf32>
    %280 = vector.extract_strided_slice %271 {offsets = [8, 0], sizes = [4, 4], strides = [1, 1]} : vector<16x4xf32> to vector<4x4xf32>
    %281 = vector.extract_strided_slice %269 {offsets = [8, 0], sizes = [4, 128], strides = [1, 1]} : vector<16x128xf32> to vector<4x128xf32>
    %cst_137 = arith.constant dense<0.000000e+00> : vector<4x128xf32>
    %282 = tpu.matmul %280, %281, %cst_137 {dimension_numbers = #tpu.dot_dimension_numbers<[1], [0], [0], [1], [0, 0, 1, 1], [], []>} : vector<4x4xf32>, vector<4x128xf32>, vector<4x128xf32> -> vector<4x128xf32>
    %283 = arith.addf %264, %282 : vector<4x128xf32>
    %284 = vector.extract_strided_slice %271 {offsets = [12, 0], sizes = [4, 4], strides = [1, 1]} : vector<16x4xf32> to vector<4x4xf32>
    %285 = vector.extract_strided_slice %269 {offsets = [12, 0], sizes = [4, 128], strides = [1, 1]} : vector<16x128xf32> to vector<4x128xf32>
    %cst_138 = arith.constant dense<0.000000e+00> : vector<4x128xf32>
    %286 = tpu.matmul %284, %285, %cst_138 {dimension_numbers = #tpu.dot_dimension_numbers<[1], [0], [0], [1], [0, 0, 1, 1], [], []>} : vector<4x4xf32>, vector<4x128xf32>, vector<4x128xf32> -> vector<4x128xf32>
    %287 = arith.addf %268, %286 : vector<4x128xf32>
    %c118_i32_139 = arith.constant 118 : i32
    %288 = tpu.dynamic_rotate %91 by %c118_i32_139 dim 1 : vector<16x128xf32>, i32 -> vector<16x128xf32>
    %c10_140 = arith.constant 10 : index
    %c0_141 = arith.constant 0 : index
    %c0_142 = arith.constant 0 : index
    %289 = vector.load %arg4[%c10_140, %c0_141, %c0_142] : memref<11x16x4xf32, #tpu.memory_space<vmem>>, vector<1x16x4xf32>
    %290 = vector.shape_cast %289 : vector<1x16x4xf32> to vector<16x4xf32>
    %291 = vector.extract_strided_slice %290 {offsets = [0, 0], sizes = [4, 4], strides = [1, 1]} : vector<16x4xf32> to vector<4x4xf32>
    %292 = vector.extract_strided_slice %288 {offsets = [0, 0], sizes = [4, 128], strides = [1, 1]} : vector<16x128xf32> to vector<4x128xf32>
    %cst_143 = arith.constant dense<0.000000e+00> : vector<4x128xf32>
    %293 = tpu.matmul %291, %292, %cst_143 {dimension_numbers = #tpu.dot_dimension_numbers<[1], [0], [0], [1], [0, 0, 1, 1], [], []>} : vector<4x4xf32>, vector<4x128xf32>, vector<4x128xf32> -> vector<4x128xf32>
    %294 = arith.addf %275, %293 : vector<4x128xf32>
    %295 = vector.extract_strided_slice %290 {offsets = [4, 0], sizes = [4, 4], strides = [1, 1]} : vector<16x4xf32> to vector<4x4xf32>
    %296 = vector.extract_strided_slice %288 {offsets = [4, 0], sizes = [4, 128], strides = [1, 1]} : vector<16x128xf32> to vector<4x128xf32>
    %cst_144 = arith.constant dense<0.000000e+00> : vector<4x128xf32>
    %297 = tpu.matmul %295, %296, %cst_144 {dimension_numbers = #tpu.dot_dimension_numbers<[1], [0], [0], [1], [0, 0, 1, 1], [], []>} : vector<4x4xf32>, vector<4x128xf32>, vector<4x128xf32> -> vector<4x128xf32>
    %298 = arith.addf %279, %297 : vector<4x128xf32>
    %299 = vector.extract_strided_slice %290 {offsets = [8, 0], sizes = [4, 4], strides = [1, 1]} : vector<16x4xf32> to vector<4x4xf32>
    %300 = vector.extract_strided_slice %288 {offsets = [8, 0], sizes = [4, 128], strides = [1, 1]} : vector<16x128xf32> to vector<4x128xf32>
    %cst_145 = arith.constant dense<0.000000e+00> : vector<4x128xf32>
    %301 = tpu.matmul %299, %300, %cst_145 {dimension_numbers = #tpu.dot_dimension_numbers<[1], [0], [0], [1], [0, 0, 1, 1], [], []>} : vector<4x4xf32>, vector<4x128xf32>, vector<4x128xf32> -> vector<4x128xf32>
    %302 = arith.addf %283, %301 : vector<4x128xf32>
    %303 = vector.extract_strided_slice %290 {offsets = [12, 0], sizes = [4, 4], strides = [1, 1]} : vector<16x4xf32> to vector<4x4xf32>
    %304 = vector.extract_strided_slice %288 {offsets = [12, 0], sizes = [4, 128], strides = [1, 1]} : vector<16x128xf32> to vector<4x128xf32>
    %cst_146 = arith.constant dense<0.000000e+00> : vector<4x128xf32>
    %305 = tpu.matmul %303, %304, %cst_146 {dimension_numbers = #tpu.dot_dimension_numbers<[1], [0], [0], [1], [0, 0, 1, 1], [], []>} : vector<4x4xf32>, vector<4x128xf32>, vector<4x128xf32> -> vector<4x128xf32>
    %306 = arith.addf %287, %305 : vector<4x128xf32>
    %307 = tpu.concatenate %294, %298, %302, %306 in 0 : vector<4x128xf32>, vector<4x128xf32>, vector<4x128xf32>, vector<4x128xf32> -> vector<16x128xf32>
    %c0_147 = arith.constant 0 : index
    %c0_148 = arith.constant 0 : index
    %308 = vector.load %arg5[%c0_147, %c0_148] : memref<16x1xf32, #tpu.memory_space<vmem>>, vector<16x1xf32>
    %309 = vector.broadcast %308 : vector<16x1xf32> to vector<16x128xf32>
    %310 = arith.addf %307, %309 : vector<16x128xf32>
    %cst_149 = arith.constant 0.000000e+00 : f32
    %311 = vector.broadcast %cst_149 : f32 to vector<16x128xf32>
    %312 = arith.cmpf oge, %310, %311 : vector<16x128xf32>
    %cst_150 = arith.constant 2.000000e-01 : f32
    %313 = vector.broadcast %cst_150 : f32 to vector<16x128xf32>
    %314 = arith.mulf %313, %310 : vector<16x128xf32>
    %315 = arith.select %312, %310, %314 : vector<16x128xi1>, vector<16x128xf32>
    %c68_i32 = arith.constant 68 : i32
    %316 = vector.broadcast %c68_i32 : i32 to vector<1x128xi32>
    %317 = arith.cmpi slt, %0, %316 : vector<1x128xi32>
    %cst_151 = arith.constant 0.000000e+00 : f32
    %318 = vector.shape_cast %317 : vector<1x128xi1> to vector<1x128xi1>
    %319 = vector.broadcast %318 : vector<1x128xi1> to vector<16x128xi1>
    %320 = vector.broadcast %cst_151 : f32 to vector<16x128xf32>
    %321 = arith.select %319, %315, %320 : vector<16x128xi1>, vector<16x128xf32>
    %c0_152 = arith.constant 0 : index
    %c0_153 = arith.constant 0 : index
    %c0_154 = arith.constant 0 : index
    %322 = vector.load %arg17[%c0_152, %c0_153, %c0_154] : memref<1x16x128xf32, #tpu.memory_space<vmem>>, vector<1x16x128xf32>
    %323 = vector.shape_cast %322 : vector<1x16x128xf32> to vector<16x128xf32>
    %324 = vector.shape_cast %321 : vector<16x128xf32> to vector<1x16x128xf32>
    tpu.vector_store %arg17[%c0_152, %c0_153, %c0_154], %324 {strides = array<i32>} : memref<1x16x128xf32, #tpu.memory_space<vmem>>, vector<1x16x128xf32>,
    %cst_155 = arith.constant 0.000000e+00 : f32
    %325 = vector.broadcast %cst_155 : f32 to vector<4x128xf32>
    %cst_156 = arith.constant 0.000000e+00 : f32
    %326 = vector.broadcast %cst_156 : f32 to vector<4x128xf32>
    %cst_157 = arith.constant 0.000000e+00 : f32
    %327 = vector.broadcast %cst_157 : f32 to vector<4x128xf32>
    %cst_158 = arith.constant 0.000000e+00 : f32
    %328 = vector.broadcast %cst_158 : f32 to vector<4x128xf32>
    %c0_159 = arith.constant 0 : index
    %c0_160 = arith.constant 0 : index
    %c0_161 = arith.constant 0 : index
    %329 = vector.load %arg6[%c0_159, %c0_160, %c0_161] : memref<11x16x4xf32, #tpu.memory_space<vmem>>, vector<1x16x4xf32>
    %330 = vector.shape_cast %329 : vector<1x16x4xf32> to vector<16x4xf32>
    %331 = vector.extract_strided_slice %330 {offsets = [0, 0], sizes = [4, 4], strides = [1, 1]} : vector<16x4xf32> to vector<4x4xf32>
    %332 = vector.extract_strided_slice %321 {offsets = [0, 0], sizes = [4, 128], strides = [1, 1]} : vector<16x128xf32> to vector<4x128xf32>
    %cst_162 = arith.constant dense<0.000000e+00> : vector<4x128xf32>
    %333 = tpu.matmul %331, %332, %cst_162 {dimension_numbers = #tpu.dot_dimension_numbers<[1], [0], [0], [1], [0, 0, 1, 1], [], []>} : vector<4x4xf32>, vector<4x128xf32>, vector<4x128xf32> -> vector<4x128xf32>
    %334 = arith.addf %325, %333 : vector<4x128xf32>
    %335 = vector.extract_strided_slice %330 {offsets = [4, 0], sizes = [4, 4], strides = [1, 1]} : vector<16x4xf32> to vector<4x4xf32>
    %336 = vector.extract_strided_slice %321 {offsets = [4, 0], sizes = [4, 128], strides = [1, 1]} : vector<16x128xf32> to vector<4x128xf32>
    %cst_163 = arith.constant dense<0.000000e+00> : vector<4x128xf32>
    %337 = tpu.matmul %335, %336, %cst_163 {dimension_numbers = #tpu.dot_dimension_numbers<[1], [0], [0], [1], [0, 0, 1, 1], [], []>} : vector<4x4xf32>, vector<4x128xf32>, vector<4x128xf32> -> vector<4x128xf32>
    %338 = arith.addf %326, %337 : vector<4x128xf32>
    %339 = vector.extract_strided_slice %330 {offsets = [8, 0], sizes = [4, 4], strides = [1, 1]} : vector<16x4xf32> to vector<4x4xf32>
    %340 = vector.extract_strided_slice %321 {offsets = [8, 0], sizes = [4, 128], strides = [1, 1]} : vector<16x128xf32> to vector<4x128xf32>
    %cst_164 = arith.constant dense<0.000000e+00> : vector<4x128xf32>
    %341 = tpu.matmul %339, %340, %cst_164 {dimension_numbers = #tpu.dot_dimension_numbers<[1], [0], [0], [1], [0, 0, 1, 1], [], []>} : vector<4x4xf32>, vector<4x128xf32>, vector<4x128xf32> -> vector<4x128xf32>
    %342 = arith.addf %327, %341 : vector<4x128xf32>
    %343 = vector.extract_strided_slice %330 {offsets = [12, 0], sizes = [4, 4], strides = [1, 1]} : vector<16x4xf32> to vector<4x4xf32>
    %344 = vector.extract_strided_slice %321 {offsets = [12, 0], sizes = [4, 128], strides = [1, 1]} : vector<16x128xf32> to vector<4x128xf32>
    %cst_165 = arith.constant dense<0.000000e+00> : vector<4x128xf32>
    %345 = tpu.matmul %343, %344, %cst_165 {dimension_numbers = #tpu.dot_dimension_numbers<[1], [0], [0], [1], [0, 0, 1, 1], [], []>} : vector<4x4xf32>, vector<4x128xf32>, vector<4x128xf32> -> vector<4x128xf32>
    %346 = arith.addf %328, %345 : vector<4x128xf32>
    %c127_i32_166 = arith.constant 127 : i32
    %347 = tpu.dynamic_rotate %321 by %c127_i32_166 dim 1 : vector<16x128xf32>, i32 -> vector<16x128xf32>
    %c1_167 = arith.constant 1 : index
    %c0_168 = arith.constant 0 : index
    %c0_169 = arith.constant 0 : index
    %348 = vector.load %arg6[%c1_167, %c0_168, %c0_169] : memref<11x16x4xf32, #tpu.memory_space<vmem>>, vector<1x16x4xf32>
    %349 = vector.shape_cast %348 : vector<1x16x4xf32> to vector<16x4xf32>
    %350 = vector.extract_strided_slice %349 {offsets = [0, 0], sizes = [4, 4], strides = [1, 1]} : vector<16x4xf32> to vector<4x4xf32>
    %351 = vector.extract_strided_slice %347 {offsets = [0, 0], sizes = [4, 128], strides = [1, 1]} : vector<16x128xf32> to vector<4x128xf32>
    %cst_170 = arith.constant dense<0.000000e+00> : vector<4x128xf32>
    %352 = tpu.matmul %350, %351, %cst_170 {dimension_numbers = #tpu.dot_dimension_numbers<[1], [0], [0], [1], [0, 0, 1, 1], [], []>} : vector<4x4xf32>, vector<4x128xf32>, vector<4x128xf32> -> vector<4x128xf32>
    %353 = arith.addf %334, %352 : vector<4x128xf32>
    %354 = vector.extract_strided_slice %349 {offsets = [4, 0], sizes = [4, 4], strides = [1, 1]} : vector<16x4xf32> to vector<4x4xf32>
    %355 = vector.extract_strided_slice %347 {offsets = [4, 0], sizes = [4, 128], strides = [1, 1]} : vector<16x128xf32> to vector<4x128xf32>
    %cst_171 = arith.constant dense<0.000000e+00> : vector<4x128xf32>
    %356 = tpu.matmul %354, %355, %cst_171 {dimension_numbers = #tpu.dot_dimension_numbers<[1], [0], [0], [1], [0, 0, 1, 1], [], []>} : vector<4x4xf32>, vector<4x128xf32>, vector<4x128xf32> -> vector<4x128xf32>
    %357 = arith.addf %338, %356 : vector<4x128xf32>
    %358 = vector.extract_strided_slice %349 {offsets = [8, 0], sizes = [4, 4], strides = [1, 1]} : vector<16x4xf32> to vector<4x4xf32>
    %359 = vector.extract_strided_slice %347 {offsets = [8, 0], sizes = [4, 128], strides = [1, 1]} : vector<16x128xf32> to vector<4x128xf32>
    %cst_172 = arith.constant dense<0.000000e+00> : vector<4x128xf32>
    %360 = tpu.matmul %358, %359, %cst_172 {dimension_numbers = #tpu.dot_dimension_numbers<[1], [0], [0], [1], [0, 0, 1, 1], [], []>} : vector<4x4xf32>, vector<4x128xf32>, vector<4x128xf32> -> vector<4x128xf32>
    %361 = arith.addf %342, %360 : vector<4x128xf32>
    %362 = vector.extract_strided_slice %349 {offsets = [12, 0], sizes = [4, 4], strides = [1, 1]} : vector<16x4xf32> to vector<4x4xf32>
    %363 = vector.extract_strided_slice %347 {offsets = [12, 0], sizes = [4, 128], strides = [1, 1]} : vector<16x128xf32> to vector<4x128xf32>
    %cst_173 = arith.constant dense<0.000000e+00> : vector<4x128xf32>
    %364 = tpu.matmul %362, %363, %cst_173 {dimension_numbers = #tpu.dot_dimension_numbers<[1], [0], [0], [1], [0, 0, 1, 1], [], []>} : vector<4x4xf32>, vector<4x128xf32>, vector<4x128xf32> -> vector<4x128xf32>
    %365 = arith.addf %346, %364 : vector<4x128xf32>
    %c126_i32_174 = arith.constant 126 : i32
    %366 = tpu.dynamic_rotate %321 by %c126_i32_174 dim 1 : vector<16x128xf32>, i32 -> vector<16x128xf32>
    %c2_175 = arith.constant 2 : index
    %c0_176 = arith.constant 0 : index
    %c0_177 = arith.constant 0 : index
    %367 = vector.load %arg6[%c2_175, %c0_176, %c0_177] : memref<11x16x4xf32, #tpu.memory_space<vmem>>, vector<1x16x4xf32>
    %368 = vector.shape_cast %367 : vector<1x16x4xf32> to vector<16x4xf32>
    %369 = vector.extract_strided_slice %368 {offsets = [0, 0], sizes = [4, 4], strides = [1, 1]} : vector<16x4xf32> to vector<4x4xf32>
    %370 = vector.extract_strided_slice %366 {offsets = [0, 0], sizes = [4, 128], strides = [1, 1]} : vector<16x128xf32> to vector<4x128xf32>
    %cst_178 = arith.constant dense<0.000000e+00> : vector<4x128xf32>
    %371 = tpu.matmul %369, %370, %cst_178 {dimension_numbers = #tpu.dot_dimension_numbers<[1], [0], [0], [1], [0, 0, 1, 1], [], []>} : vector<4x4xf32>, vector<4x128xf32>, vector<4x128xf32> -> vector<4x128xf32>
    %372 = arith.addf %353, %371 : vector<4x128xf32>
    %373 = vector.extract_strided_slice %368 {offsets = [4, 0], sizes = [4, 4], strides = [1, 1]} : vector<16x4xf32> to vector<4x4xf32>
    %374 = vector.extract_strided_slice %366 {offsets = [4, 0], sizes = [4, 128], strides = [1, 1]} : vector<16x128xf32> to vector<4x128xf32>
    %cst_179 = arith.constant dense<0.000000e+00> : vector<4x128xf32>
    %375 = tpu.matmul %373, %374, %cst_179 {dimension_numbers = #tpu.dot_dimension_numbers<[1], [0], [0], [1], [0, 0, 1, 1], [], []>} : vector<4x4xf32>, vector<4x128xf32>, vector<4x128xf32> -> vector<4x128xf32>
    %376 = arith.addf %357, %375 : vector<4x128xf32>
    %377 = vector.extract_strided_slice %368 {offsets = [8, 0], sizes = [4, 4], strides = [1, 1]} : vector<16x4xf32> to vector<4x4xf32>
    %378 = vector.extract_strided_slice %366 {offsets = [8, 0], sizes = [4, 128], strides = [1, 1]} : vector<16x128xf32> to vector<4x128xf32>
    %cst_180 = arith.constant dense<0.000000e+00> : vector<4x128xf32>
    %379 = tpu.matmul %377, %378, %cst_180 {dimension_numbers = #tpu.dot_dimension_numbers<[1], [0], [0], [1], [0, 0, 1, 1], [], []>} : vector<4x4xf32>, vector<4x128xf32>, vector<4x128xf32> -> vector<4x128xf32>
    %380 = arith.addf %361, %379 : vector<4x128xf32>
    %381 = vector.extract_strided_slice %368 {offsets = [12, 0], sizes = [4, 4], strides = [1, 1]} : vector<16x4xf32> to vector<4x4xf32>
    %382 = vector.extract_strided_slice %366 {offsets = [12, 0], sizes = [4, 128], strides = [1, 1]} : vector<16x128xf32> to vector<4x128xf32>
    %cst_181 = arith.constant dense<0.000000e+00> : vector<4x128xf32>
    %383 = tpu.matmul %381, %382, %cst_181 {dimension_numbers = #tpu.dot_dimension_numbers<[1], [0], [0], [1], [0, 0, 1, 1], [], []>} : vector<4x4xf32>, vector<4x128xf32>, vector<4x128xf32> -> vector<4x128xf32>
    %384 = arith.addf %365, %383 : vector<4x128xf32>
    %c125_i32_182 = arith.constant 125 : i32
    %385 = tpu.dynamic_rotate %321 by %c125_i32_182 dim 1 : vector<16x128xf32>, i32 -> vector<16x128xf32>
    %c3_183 = arith.constant 3 : index
    %c0_184 = arith.constant 0 : index
    %c0_185 = arith.constant 0 : index
    %386 = vector.load %arg6[%c3_183, %c0_184, %c0_185] : memref<11x16x4xf32, #tpu.memory_space<vmem>>, vector<1x16x4xf32>
    %387 = vector.shape_cast %386 : vector<1x16x4xf32> to vector<16x4xf32>
    %388 = vector.extract_strided_slice %387 {offsets = [0, 0], sizes = [4, 4], strides = [1, 1]} : vector<16x4xf32> to vector<4x4xf32>
    %389 = vector.extract_strided_slice %385 {offsets = [0, 0], sizes = [4, 128], strides = [1, 1]} : vector<16x128xf32> to vector<4x128xf32>
    %cst_186 = arith.constant dense<0.000000e+00> : vector<4x128xf32>
    %390 = tpu.matmul %388, %389, %cst_186 {dimension_numbers = #tpu.dot_dimension_numbers<[1], [0], [0], [1], [0, 0, 1, 1], [], []>} : vector<4x4xf32>, vector<4x128xf32>, vector<4x128xf32> -> vector<4x128xf32>
    %391 = arith.addf %372, %390 : vector<4x128xf32>
    %392 = vector.extract_strided_slice %387 {offsets = [4, 0], sizes = [4, 4], strides = [1, 1]} : vector<16x4xf32> to vector<4x4xf32>
    %393 = vector.extract_strided_slice %385 {offsets = [4, 0], sizes = [4, 128], strides = [1, 1]} : vector<16x128xf32> to vector<4x128xf32>
    %cst_187 = arith.constant dense<0.000000e+00> : vector<4x128xf32>
    %394 = tpu.matmul %392, %393, %cst_187 {dimension_numbers = #tpu.dot_dimension_numbers<[1], [0], [0], [1], [0, 0, 1, 1], [], []>} : vector<4x4xf32>, vector<4x128xf32>, vector<4x128xf32> -> vector<4x128xf32>
    %395 = arith.addf %376, %394 : vector<4x128xf32>
    %396 = vector.extract_strided_slice %387 {offsets = [8, 0], sizes = [4, 4], strides = [1, 1]} : vector<16x4xf32> to vector<4x4xf32>
    %397 = vector.extract_strided_slice %385 {offsets = [8, 0], sizes = [4, 128], strides = [1, 1]} : vector<16x128xf32> to vector<4x128xf32>
    %cst_188 = arith.constant dense<0.000000e+00> : vector<4x128xf32>
    %398 = tpu.matmul %396, %397, %cst_188 {dimension_numbers = #tpu.dot_dimension_numbers<[1], [0], [0], [1], [0, 0, 1, 1], [], []>} : vector<4x4xf32>, vector<4x128xf32>, vector<4x128xf32> -> vector<4x128xf32>
    %399 = arith.addf %380, %398 : vector<4x128xf32>
    %400 = vector.extract_strided_slice %387 {offsets = [12, 0], sizes = [4, 4], strides = [1, 1]} : vector<16x4xf32> to vector<4x4xf32>
    %401 = vector.extract_strided_slice %385 {offsets = [12, 0], sizes = [4, 128], strides = [1, 1]} : vector<16x128xf32> to vector<4x128xf32>
    %cst_189 = arith.constant dense<0.000000e+00> : vector<4x128xf32>
    %402 = tpu.matmul %400, %401, %cst_189 {dimension_numbers = #tpu.dot_dimension_numbers<[1], [0], [0], [1], [0, 0, 1, 1], [], []>} : vector<4x4xf32>, vector<4x128xf32>, vector<4x128xf32> -> vector<4x128xf32>
    %403 = arith.addf %384, %402 : vector<4x128xf32>
    %c124_i32_190 = arith.constant 124 : i32
    %404 = tpu.dynamic_rotate %321 by %c124_i32_190 dim 1 : vector<16x128xf32>, i32 -> vector<16x128xf32>
    %c4_191 = arith.constant 4 : index
    %c0_192 = arith.constant 0 : index
    %c0_193 = arith.constant 0 : index
    %405 = vector.load %arg6[%c4_191, %c0_192, %c0_193] : memref<11x16x4xf32, #tpu.memory_space<vmem>>, vector<1x16x4xf32>
    %406 = vector.shape_cast %405 : vector<1x16x4xf32> to vector<16x4xf32>
    %407 = vector.extract_strided_slice %406 {offsets = [0, 0], sizes = [4, 4], strides = [1, 1]} : vector<16x4xf32> to vector<4x4xf32>
    %408 = vector.extract_strided_slice %404 {offsets = [0, 0], sizes = [4, 128], strides = [1, 1]} : vector<16x128xf32> to vector<4x128xf32>
    %cst_194 = arith.constant dense<0.000000e+00> : vector<4x128xf32>
    %409 = tpu.matmul %407, %408, %cst_194 {dimension_numbers = #tpu.dot_dimension_numbers<[1], [0], [0], [1], [0, 0, 1, 1], [], []>} : vector<4x4xf32>, vector<4x128xf32>, vector<4x128xf32> -> vector<4x128xf32>
    %410 = arith.addf %391, %409 : vector<4x128xf32>
    %411 = vector.extract_strided_slice %406 {offsets = [4, 0], sizes = [4, 4], strides = [1, 1]} : vector<16x4xf32> to vector<4x4xf32>
    %412 = vector.extract_strided_slice %404 {offsets = [4, 0], sizes = [4, 128], strides = [1, 1]} : vector<16x128xf32> to vector<4x128xf32>
    %cst_195 = arith.constant dense<0.000000e+00> : vector<4x128xf32>
    %413 = tpu.matmul %411, %412, %cst_195 {dimension_numbers = #tpu.dot_dimension_numbers<[1], [0], [0], [1], [0, 0, 1, 1], [], []>} : vector<4x4xf32>, vector<4x128xf32>, vector<4x128xf32> -> vector<4x128xf32>
    %414 = arith.addf %395, %413 : vector<4x128xf32>
    %415 = vector.extract_strided_slice %406 {offsets = [8, 0], sizes = [4, 4], strides = [1, 1]} : vector<16x4xf32> to vector<4x4xf32>
    %416 = vector.extract_strided_slice %404 {offsets = [8, 0], sizes = [4, 128], strides = [1, 1]} : vector<16x128xf32> to vector<4x128xf32>
    %cst_196 = arith.constant dense<0.000000e+00> : vector<4x128xf32>
    %417 = tpu.matmul %415, %416, %cst_196 {dimension_numbers = #tpu.dot_dimension_numbers<[1], [0], [0], [1], [0, 0, 1, 1], [], []>} : vector<4x4xf32>, vector<4x128xf32>, vector<4x128xf32> -> vector<4x128xf32>
    %418 = arith.addf %399, %417 : vector<4x128xf32>
    %419 = vector.extract_strided_slice %406 {offsets = [12, 0], sizes = [4, 4], strides = [1, 1]} : vector<16x4xf32> to vector<4x4xf32>
    %420 = vector.extract_strided_slice %404 {offsets = [12, 0], sizes = [4, 128], strides = [1, 1]} : vector<16x128xf32> to vector<4x128xf32>
    %cst_197 = arith.constant dense<0.000000e+00> : vector<4x128xf32>
    %421 = tpu.matmul %419, %420, %cst_197 {dimension_numbers = #tpu.dot_dimension_numbers<[1], [0], [0], [1], [0, 0, 1, 1], [], []>} : vector<4x4xf32>, vector<4x128xf32>, vector<4x128xf32> -> vector<4x128xf32>
    %422 = arith.addf %403, %421 : vector<4x128xf32>
    %c123_i32_198 = arith.constant 123 : i32
    %423 = tpu.dynamic_rotate %321 by %c123_i32_198 dim 1 : vector<16x128xf32>, i32 -> vector<16x128xf32>
    %c5_199 = arith.constant 5 : index
    %c0_200 = arith.constant 0 : index
    %c0_201 = arith.constant 0 : index
    %424 = vector.load %arg6[%c5_199, %c0_200, %c0_201] : memref<11x16x4xf32, #tpu.memory_space<vmem>>, vector<1x16x4xf32>
    %425 = vector.shape_cast %424 : vector<1x16x4xf32> to vector<16x4xf32>
    %426 = vector.extract_strided_slice %425 {offsets = [0, 0], sizes = [4, 4], strides = [1, 1]} : vector<16x4xf32> to vector<4x4xf32>
    %427 = vector.extract_strided_slice %423 {offsets = [0, 0], sizes = [4, 128], strides = [1, 1]} : vector<16x128xf32> to vector<4x128xf32>
    %cst_202 = arith.constant dense<0.000000e+00> : vector<4x128xf32>
    %428 = tpu.matmul %426, %427, %cst_202 {dimension_numbers = #tpu.dot_dimension_numbers<[1], [0], [0], [1], [0, 0, 1, 1], [], []>} : vector<4x4xf32>, vector<4x128xf32>, vector<4x128xf32> -> vector<4x128xf32>
    %429 = arith.addf %410, %428 : vector<4x128xf32>
    %430 = vector.extract_strided_slice %425 {offsets = [4, 0], sizes = [4, 4], strides = [1, 1]} : vector<16x4xf32> to vector<4x4xf32>
    %431 = vector.extract_strided_slice %423 {offsets = [4, 0], sizes = [4, 128], strides = [1, 1]} : vector<16x128xf32> to vector<4x128xf32>
    %cst_203 = arith.constant dense<0.000000e+00> : vector<4x128xf32>
    %432 = tpu.matmul %430, %431, %cst_203 {dimension_numbers = #tpu.dot_dimension_numbers<[1], [0], [0], [1], [0, 0, 1, 1], [], []>} : vector<4x4xf32>, vector<4x128xf32>, vector<4x128xf32> -> vector<4x128xf32>
    %433 = arith.addf %414, %432 : vector<4x128xf32>
    %434 = vector.extract_strided_slice %425 {offsets = [8, 0], sizes = [4, 4], strides = [1, 1]} : vector<16x4xf32> to vector<4x4xf32>
    %435 = vector.extract_strided_slice %423 {offsets = [8, 0], sizes = [4, 128], strides = [1, 1]} : vector<16x128xf32> to vector<4x128xf32>
    %cst_204 = arith.constant dense<0.000000e+00> : vector<4x128xf32>
    %436 = tpu.matmul %434, %435, %cst_204 {dimension_numbers = #tpu.dot_dimension_numbers<[1], [0], [0], [1], [0, 0, 1, 1], [], []>} : vector<4x4xf32>, vector<4x128xf32>, vector<4x128xf32> -> vector<4x128xf32>
    %437 = arith.addf %418, %436 : vector<4x128xf32>
    %438 = vector.extract_strided_slice %425 {offsets = [12, 0], sizes = [4, 4], strides = [1, 1]} : vector<16x4xf32> to vector<4x4xf32>
    %439 = vector.extract_strided_slice %423 {offsets = [12, 0], sizes = [4, 128], strides = [1, 1]} : vector<16x128xf32> to vector<4x128xf32>
    %cst_205 = arith.constant dense<0.000000e+00> : vector<4x128xf32>
    %440 = tpu.matmul %438, %439, %cst_205 {dimension_numbers = #tpu.dot_dimension_numbers<[1], [0], [0], [1], [0, 0, 1, 1], [], []>} : vector<4x4xf32>, vector<4x128xf32>, vector<4x128xf32> -> vector<4x128xf32>
    %441 = arith.addf %422, %440 : vector<4x128xf32>
    %c122_i32_206 = arith.constant 122 : i32
    %442 = tpu.dynamic_rotate %321 by %c122_i32_206 dim 1 : vector<16x128xf32>, i32 -> vector<16x128xf32>
    %c6_207 = arith.constant 6 : index
    %c0_208 = arith.constant 0 : index
    %c0_209 = arith.constant 0 : index
    %443 = vector.load %arg6[%c6_207, %c0_208, %c0_209] : memref<11x16x4xf32, #tpu.memory_space<vmem>>, vector<1x16x4xf32>
    %444 = vector.shape_cast %443 : vector<1x16x4xf32> to vector<16x4xf32>
    %445 = vector.extract_strided_slice %444 {offsets = [0, 0], sizes = [4, 4], strides = [1, 1]} : vector<16x4xf32> to vector<4x4xf32>
    %446 = vector.extract_strided_slice %442 {offsets = [0, 0], sizes = [4, 128], strides = [1, 1]} : vector<16x128xf32> to vector<4x128xf32>
    %cst_210 = arith.constant dense<0.000000e+00> : vector<4x128xf32>
    %447 = tpu.matmul %445, %446, %cst_210 {dimension_numbers = #tpu.dot_dimension_numbers<[1], [0], [0], [1], [0, 0, 1, 1], [], []>} : vector<4x4xf32>, vector<4x128xf32>, vector<4x128xf32> -> vector<4x128xf32>
    %448 = arith.addf %429, %447 : vector<4x128xf32>
    %449 = vector.extract_strided_slice %444 {offsets = [4, 0], sizes = [4, 4], strides = [1, 1]} : vector<16x4xf32> to vector<4x4xf32>
    %450 = vector.extract_strided_slice %442 {offsets = [4, 0], sizes = [4, 128], strides = [1, 1]} : vector<16x128xf32> to vector<4x128xf32>
    %cst_211 = arith.constant dense<0.000000e+00> : vector<4x128xf32>
    %451 = tpu.matmul %449, %450, %cst_211 {dimension_numbers = #tpu.dot_dimension_numbers<[1], [0], [0], [1], [0, 0, 1, 1], [], []>} : vector<4x4xf32>, vector<4x128xf32>, vector<4x128xf32> -> vector<4x128xf32>
    %452 = arith.addf %433, %451 : vector<4x128xf32>
    %453 = vector.extract_strided_slice %444 {offsets = [8, 0], sizes = [4, 4], strides = [1, 1]} : vector<16x4xf32> to vector<4x4xf32>
    %454 = vector.extract_strided_slice %442 {offsets = [8, 0], sizes = [4, 128], strides = [1, 1]} : vector<16x128xf32> to vector<4x128xf32>
    %cst_212 = arith.constant dense<0.000000e+00> : vector<4x128xf32>
    %455 = tpu.matmul %453, %454, %cst_212 {dimension_numbers = #tpu.dot_dimension_numbers<[1], [0], [0], [1], [0, 0, 1, 1], [], []>} : vector<4x4xf32>, vector<4x128xf32>, vector<4x128xf32> -> vector<4x128xf32>
    %456 = arith.addf %437, %455 : vector<4x128xf32>
    %457 = vector.extract_strided_slice %444 {offsets = [12, 0], sizes = [4, 4], strides = [1, 1]} : vector<16x4xf32> to vector<4x4xf32>
    %458 = vector.extract_strided_slice %442 {offsets = [12, 0], sizes = [4, 128], strides = [1, 1]} : vector<16x128xf32> to vector<4x128xf32>
    %cst_213 = arith.constant dense<0.000000e+00> : vector<4x128xf32>
    %459 = tpu.matmul %457, %458, %cst_213 {dimension_numbers = #tpu.dot_dimension_numbers<[1], [0], [0], [1], [0, 0, 1, 1], [], []>} : vector<4x4xf32>, vector<4x128xf32>, vector<4x128xf32> -> vector<4x128xf32>
    %460 = arith.addf %441, %459 : vector<4x128xf32>
    %c121_i32_214 = arith.constant 121 : i32
    %461 = tpu.dynamic_rotate %321 by %c121_i32_214 dim 1 : vector<16x128xf32>, i32 -> vector<16x128xf32>
    %c7_215 = arith.constant 7 : index
    %c0_216 = arith.constant 0 : index
    %c0_217 = arith.constant 0 : index
    %462 = vector.load %arg6[%c7_215, %c0_216, %c0_217] : memref<11x16x4xf32, #tpu.memory_space<vmem>>, vector<1x16x4xf32>
    %463 = vector.shape_cast %462 : vector<1x16x4xf32> to vector<16x4xf32>
    %464 = vector.extract_strided_slice %463 {offsets = [0, 0], sizes = [4, 4], strides = [1, 1]} : vector<16x4xf32> to vector<4x4xf32>
    %465 = vector.extract_strided_slice %461 {offsets = [0, 0], sizes = [4, 128], strides = [1, 1]} : vector<16x128xf32> to vector<4x128xf32>
    %cst_218 = arith.constant dense<0.000000e+00> : vector<4x128xf32>
    %466 = tpu.matmul %464, %465, %cst_218 {dimension_numbers = #tpu.dot_dimension_numbers<[1], [0], [0], [1], [0, 0, 1, 1], [], []>} : vector<4x4xf32>, vector<4x128xf32>, vector<4x128xf32> -> vector<4x128xf32>
    %467 = arith.addf %448, %466 : vector<4x128xf32>
    %468 = vector.extract_strided_slice %463 {offsets = [4, 0], sizes = [4, 4], strides = [1, 1]} : vector<16x4xf32> to vector<4x4xf32>
    %469 = vector.extract_strided_slice %461 {offsets = [4, 0], sizes = [4, 128], strides = [1, 1]} : vector<16x128xf32> to vector<4x128xf32>
    %cst_219 = arith.constant dense<0.000000e+00> : vector<4x128xf32>
    %470 = tpu.matmul %468, %469, %cst_219 {dimension_numbers = #tpu.dot_dimension_numbers<[1], [0], [0], [1], [0, 0, 1, 1], [], []>} : vector<4x4xf32>, vector<4x128xf32>, vector<4x128xf32> -> vector<4x128xf32>
    %471 = arith.addf %452, %470 : vector<4x128xf32>
    %472 = vector.extract_strided_slice %463 {offsets = [8, 0], sizes = [4, 4], strides = [1, 1]} : vector<16x4xf32> to vector<4x4xf32>
    %473 = vector.extract_strided_slice %461 {offsets = [8, 0], sizes = [4, 128], strides = [1, 1]} : vector<16x128xf32> to vector<4x128xf32>
    %cst_220 = arith.constant dense<0.000000e+00> : vector<4x128xf32>
    %474 = tpu.matmul %472, %473, %cst_220 {dimension_numbers = #tpu.dot_dimension_numbers<[1], [0], [0], [1], [0, 0, 1, 1], [], []>} : vector<4x4xf32>, vector<4x128xf32>, vector<4x128xf32> -> vector<4x128xf32>
    %475 = arith.addf %456, %474 : vector<4x128xf32>
    %476 = vector.extract_strided_slice %463 {offsets = [12, 0], sizes = [4, 4], strides = [1, 1]} : vector<16x4xf32> to vector<4x4xf32>
    %477 = vector.extract_strided_slice %461 {offsets = [12, 0], sizes = [4, 128], strides = [1, 1]} : vector<16x128xf32> to vector<4x128xf32>
    %cst_221 = arith.constant dense<0.000000e+00> : vector<4x128xf32>
    %478 = tpu.matmul %476, %477, %cst_221 {dimension_numbers = #tpu.dot_dimension_numbers<[1], [0], [0], [1], [0, 0, 1, 1], [], []>} : vector<4x4xf32>, vector<4x128xf32>, vector<4x128xf32> -> vector<4x128xf32>
    %479 = arith.addf %460, %478 : vector<4x128xf32>
    %c120_i32_222 = arith.constant 120 : i32
    %480 = tpu.dynamic_rotate %321 by %c120_i32_222 dim 1 : vector<16x128xf32>, i32 -> vector<16x128xf32>
    %c8_223 = arith.constant 8 : index
    %c0_224 = arith.constant 0 : index
    %c0_225 = arith.constant 0 : index
    %481 = vector.load %arg6[%c8_223, %c0_224, %c0_225] : memref<11x16x4xf32, #tpu.memory_space<vmem>>, vector<1x16x4xf32>
    %482 = vector.shape_cast %481 : vector<1x16x4xf32> to vector<16x4xf32>
    %483 = vector.extract_strided_slice %482 {offsets = [0, 0], sizes = [4, 4], strides = [1, 1]} : vector<16x4xf32> to vector<4x4xf32>
    %484 = vector.extract_strided_slice %480 {offsets = [0, 0], sizes = [4, 128], strides = [1, 1]} : vector<16x128xf32> to vector<4x128xf32>
    %cst_226 = arith.constant dense<0.000000e+00> : vector<4x128xf32>
    %485 = tpu.matmul %483, %484, %cst_226 {dimension_numbers = #tpu.dot_dimension_numbers<[1], [0], [0], [1], [0, 0, 1, 1], [], []>} : vector<4x4xf32>, vector<4x128xf32>, vector<4x128xf32> -> vector<4x128xf32>
    %486 = arith.addf %467, %485 : vector<4x128xf32>
    %487 = vector.extract_strided_slice %482 {offsets = [4, 0], sizes = [4, 4], strides = [1, 1]} : vector<16x4xf32> to vector<4x4xf32>
    %488 = vector.extract_strided_slice %480 {offsets = [4, 0], sizes = [4, 128], strides = [1, 1]} : vector<16x128xf32> to vector<4x128xf32>
    %cst_227 = arith.constant dense<0.000000e+00> : vector<4x128xf32>
    %489 = tpu.matmul %487, %488, %cst_227 {dimension_numbers = #tpu.dot_dimension_numbers<[1], [0], [0], [1], [0, 0, 1, 1], [], []>} : vector<4x4xf32>, vector<4x128xf32>, vector<4x128xf32> -> vector<4x128xf32>
    %490 = arith.addf %471, %489 : vector<4x128xf32>
    %491 = vector.extract_strided_slice %482 {offsets = [8, 0], sizes = [4, 4], strides = [1, 1]} : vector<16x4xf32> to vector<4x4xf32>
    %492 = vector.extract_strided_slice %480 {offsets = [8, 0], sizes = [4, 128], strides = [1, 1]} : vector<16x128xf32> to vector<4x128xf32>
    %cst_228 = arith.constant dense<0.000000e+00> : vector<4x128xf32>
    %493 = tpu.matmul %491, %492, %cst_228 {dimension_numbers = #tpu.dot_dimension_numbers<[1], [0], [0], [1], [0, 0, 1, 1], [], []>} : vector<4x4xf32>, vector<4x128xf32>, vector<4x128xf32> -> vector<4x128xf32>
    %494 = arith.addf %475, %493 : vector<4x128xf32>
    %495 = vector.extract_strided_slice %482 {offsets = [12, 0], sizes = [4, 4], strides = [1, 1]} : vector<16x4xf32> to vector<4x4xf32>
    %496 = vector.extract_strided_slice %480 {offsets = [12, 0], sizes = [4, 128], strides = [1, 1]} : vector<16x128xf32> to vector<4x128xf32>
    %cst_229 = arith.constant dense<0.000000e+00> : vector<4x128xf32>
    %497 = tpu.matmul %495, %496, %cst_229 {dimension_numbers = #tpu.dot_dimension_numbers<[1], [0], [0], [1], [0, 0, 1, 1], [], []>} : vector<4x4xf32>, vector<4x128xf32>, vector<4x128xf32> -> vector<4x128xf32>
    %498 = arith.addf %479, %497 : vector<4x128xf32>
    %c119_i32_230 = arith.constant 119 : i32
    %499 = tpu.dynamic_rotate %321 by %c119_i32_230 dim 1 : vector<16x128xf32>, i32 -> vector<16x128xf32>
    %c9_231 = arith.constant 9 : index
    %c0_232 = arith.constant 0 : index
    %c0_233 = arith.constant 0 : index
    %500 = vector.load %arg6[%c9_231, %c0_232, %c0_233] : memref<11x16x4xf32, #tpu.memory_space<vmem>>, vector<1x16x4xf32>
    %501 = vector.shape_cast %500 : vector<1x16x4xf32> to vector<16x4xf32>
    %502 = vector.extract_strided_slice %501 {offsets = [0, 0], sizes = [4, 4], strides = [1, 1]} : vector<16x4xf32> to vector<4x4xf32>
    %503 = vector.extract_strided_slice %499 {offsets = [0, 0], sizes = [4, 128], strides = [1, 1]} : vector<16x128xf32> to vector<4x128xf32>
    %cst_234 = arith.constant dense<0.000000e+00> : vector<4x128xf32>
    %504 = tpu.matmul %502, %503, %cst_234 {dimension_numbers = #tpu.dot_dimension_numbers<[1], [0], [0], [1], [0, 0, 1, 1], [], []>} : vector<4x4xf32>, vector<4x128xf32>, vector<4x128xf32> -> vector<4x128xf32>
    %505 = arith.addf %486, %504 : vector<4x128xf32>
    %506 = vector.extract_strided_slice %501 {offsets = [4, 0], sizes = [4, 4], strides = [1, 1]} : vector<16x4xf32> to vector<4x4xf32>
    %507 = vector.extract_strided_slice %499 {offsets = [4, 0], sizes = [4, 128], strides = [1, 1]} : vector<16x128xf32> to vector<4x128xf32>
    %cst_235 = arith.constant dense<0.000000e+00> : vector<4x128xf32>
    %508 = tpu.matmul %506, %507, %cst_235 {dimension_numbers = #tpu.dot_dimension_numbers<[1], [0], [0], [1], [0, 0, 1, 1], [], []>} : vector<4x4xf32>, vector<4x128xf32>, vector<4x128xf32> -> vector<4x128xf32>
    %509 = arith.addf %490, %508 : vector<4x128xf32>
    %510 = vector.extract_strided_slice %501 {offsets = [8, 0], sizes = [4, 4], strides = [1, 1]} : vector<16x4xf32> to vector<4x4xf32>
    %511 = vector.extract_strided_slice %499 {offsets = [8, 0], sizes = [4, 128], strides = [1, 1]} : vector<16x128xf32> to vector<4x128xf32>
    %cst_236 = arith.constant dense<0.000000e+00> : vector<4x128xf32>
    %512 = tpu.matmul %510, %511, %cst_236 {dimension_numbers = #tpu.dot_dimension_numbers<[1], [0], [0], [1], [0, 0, 1, 1], [], []>} : vector<4x4xf32>, vector<4x128xf32>, vector<4x128xf32> -> vector<4x128xf32>
    %513 = arith.addf %494, %512 : vector<4x128xf32>
    %514 = vector.extract_strided_slice %501 {offsets = [12, 0], sizes = [4, 4], strides = [1, 1]} : vector<16x4xf32> to vector<4x4xf32>
    %515 = vector.extract_strided_slice %499 {offsets = [12, 0], sizes = [4, 128], strides = [1, 1]} : vector<16x128xf32> to vector<4x128xf32>
    %cst_237 = arith.constant dense<0.000000e+00> : vector<4x128xf32>
    %516 = tpu.matmul %514, %515, %cst_237 {dimension_numbers = #tpu.dot_dimension_numbers<[1], [0], [0], [1], [0, 0, 1, 1], [], []>} : vector<4x4xf32>, vector<4x128xf32>, vector<4x128xf32> -> vector<4x128xf32>
    %517 = arith.addf %498, %516 : vector<4x128xf32>
    %c118_i32_238 = arith.constant 118 : i32
    %518 = tpu.dynamic_rotate %321 by %c118_i32_238 dim 1 : vector<16x128xf32>, i32 -> vector<16x128xf32>
    %c10_239 = arith.constant 10 : index
    %c0_240 = arith.constant 0 : index
    %c0_241 = arith.constant 0 : index
    %519 = vector.load %arg6[%c10_239, %c0_240, %c0_241] : memref<11x16x4xf32, #tpu.memory_space<vmem>>, vector<1x16x4xf32>
    %520 = vector.shape_cast %519 : vector<1x16x4xf32> to vector<16x4xf32>
    %521 = vector.extract_strided_slice %520 {offsets = [0, 0], sizes = [4, 4], strides = [1, 1]} : vector<16x4xf32> to vector<4x4xf32>
    %522 = vector.extract_strided_slice %518 {offsets = [0, 0], sizes = [4, 128], strides = [1, 1]} : vector<16x128xf32> to vector<4x128xf32>
    %cst_242 = arith.constant dense<0.000000e+00> : vector<4x128xf32>
    %523 = tpu.matmul %521, %522, %cst_242 {dimension_numbers = #tpu.dot_dimension_numbers<[1], [0], [0], [1], [0, 0, 1, 1], [], []>} : vector<4x4xf32>, vector<4x128xf32>, vector<4x128xf32> -> vector<4x128xf32>
    %524 = arith.addf %505, %523 : vector<4x128xf32>
    %525 = vector.extract_strided_slice %520 {offsets = [4, 0], sizes = [4, 4], strides = [1, 1]} : vector<16x4xf32> to vector<4x4xf32>
    %526 = vector.extract_strided_slice %518 {offsets = [4, 0], sizes = [4, 128], strides = [1, 1]} : vector<16x128xf32> to vector<4x128xf32>
    %cst_243 = arith.constant dense<0.000000e+00> : vector<4x128xf32>
    %527 = tpu.matmul %525, %526, %cst_243 {dimension_numbers = #tpu.dot_dimension_numbers<[1], [0], [0], [1], [0, 0, 1, 1], [], []>} : vector<4x4xf32>, vector<4x128xf32>, vector<4x128xf32> -> vector<4x128xf32>
    %528 = arith.addf %509, %527 : vector<4x128xf32>
    %529 = vector.extract_strided_slice %520 {offsets = [8, 0], sizes = [4, 4], strides = [1, 1]} : vector<16x4xf32> to vector<4x4xf32>
    %530 = vector.extract_strided_slice %518 {offsets = [8, 0], sizes = [4, 128], strides = [1, 1]} : vector<16x128xf32> to vector<4x128xf32>
    %cst_244 = arith.constant dense<0.000000e+00> : vector<4x128xf32>
    %531 = tpu.matmul %529, %530, %cst_244 {dimension_numbers = #tpu.dot_dimension_numbers<[1], [0], [0], [1], [0, 0, 1, 1], [], []>} : vector<4x4xf32>, vector<4x128xf32>, vector<4x128xf32> -> vector<4x128xf32>
    %532 = arith.addf %513, %531 : vector<4x128xf32>
    %533 = vector.extract_strided_slice %520 {offsets = [12, 0], sizes = [4, 4], strides = [1, 1]} : vector<16x4xf32> to vector<4x4xf32>
    %534 = vector.extract_strided_slice %518 {offsets = [12, 0], sizes = [4, 128], strides = [1, 1]} : vector<16x128xf32> to vector<4x128xf32>
    %cst_245 = arith.constant dense<0.000000e+00> : vector<4x128xf32>
    %535 = tpu.matmul %533, %534, %cst_245 {dimension_numbers = #tpu.dot_dimension_numbers<[1], [0], [0], [1], [0, 0, 1, 1], [], []>} : vector<4x4xf32>, vector<4x128xf32>, vector<4x128xf32> -> vector<4x128xf32>
    %536 = arith.addf %517, %535 : vector<4x128xf32>
    %537 = tpu.concatenate %524, %528, %532, %536 in 0 : vector<4x128xf32>, vector<4x128xf32>, vector<4x128xf32>, vector<4x128xf32> -> vector<16x128xf32>
    %c0_246 = arith.constant 0 : index
    %c0_247 = arith.constant 0 : index
    %538 = vector.load %arg7[%c0_246, %c0_247] : memref<16x1xf32, #tpu.memory_space<vmem>>, vector<16x1xf32>
    %539 = vector.broadcast %538 : vector<16x1xf32> to vector<16x128xf32>
    %540 = arith.addf %537, %539 : vector<16x128xf32>
    %cst_248 = arith.constant 0.000000e+00 : f32
    %541 = vector.broadcast %cst_248 : f32 to vector<16x128xf32>
    %542 = arith.cmpf oge, %540, %541 : vector<16x128xf32>
    %cst_249 = arith.constant 2.000000e-01 : f32
    %543 = vector.broadcast %cst_249 : f32 to vector<16x128xf32>
    %544 = arith.mulf %543, %540 : vector<16x128xf32>
    %545 = arith.select %542, %540, %544 : vector<16x128xi1>, vector<16x128xf32>
    %c58_i32 = arith.constant 58 : i32
    %546 = vector.broadcast %c58_i32 : i32 to vector<1x128xi32>
    %547 = arith.cmpi slt, %0, %546 : vector<1x128xi32>
    %cst_250 = arith.constant 0.000000e+00 : f32
    %548 = vector.shape_cast %547 : vector<1x128xi1> to vector<1x128xi1>
    %549 = vector.broadcast %548 : vector<1x128xi1> to vector<16x128xi1>
    %550 = vector.broadcast %cst_250 : f32 to vector<16x128xf32>
    %551 = arith.select %549, %545, %550 : vector<16x128xi1>, vector<16x128xf32>
    %c0_251 = arith.constant 0 : index
    %c0_252 = arith.constant 0 : index
    %c0_253 = arith.constant 0 : index
    %552 = vector.load %arg18[%c0_251, %c0_252, %c0_253] : memref<1x16x128xf32, #tpu.memory_space<vmem>>, vector<1x16x128xf32>
    %553 = vector.shape_cast %552 : vector<1x16x128xf32> to vector<16x128xf32>
    %554 = vector.shape_cast %551 : vector<16x128xf32> to vector<1x16x128xf32>
    tpu.vector_store %arg18[%c0_251, %c0_252, %c0_253], %554 {strides = array<i32>} : memref<1x16x128xf32, #tpu.memory_space<vmem>>, vector<1x16x128xf32>,
    %cst_254 = arith.constant 0.000000e+00 : f32
    %555 = vector.broadcast %cst_254 : f32 to vector<4x128xf32>
    %cst_255 = arith.constant 0.000000e+00 : f32
    %556 = vector.broadcast %cst_255 : f32 to vector<4x128xf32>
    %cst_256 = arith.constant 0.000000e+00 : f32
    %557 = vector.broadcast %cst_256 : f32 to vector<4x128xf32>
    %cst_257 = arith.constant 0.000000e+00 : f32
    %558 = vector.broadcast %cst_257 : f32 to vector<4x128xf32>
    %c0_258 = arith.constant 0 : index
    %c0_259 = arith.constant 0 : index
    %c0_260 = arith.constant 0 : index
    %559 = vector.load %arg8[%c0_258, %c0_259, %c0_260] : memref<11x16x4xf32, #tpu.memory_space<vmem>>, vector<1x16x4xf32>
    %560 = vector.shape_cast %559 : vector<1x16x4xf32> to vector<16x4xf32>
    %561 = vector.extract_strided_slice %560 {offsets = [0, 0], sizes = [4, 4], strides = [1, 1]} : vector<16x4xf32> to vector<4x4xf32>
    %562 = vector.extract_strided_slice %551 {offsets = [0, 0], sizes = [4, 128], strides = [1, 1]} : vector<16x128xf32> to vector<4x128xf32>
    %cst_261 = arith.constant dense<0.000000e+00> : vector<4x128xf32>
    %563 = tpu.matmul %561, %562, %cst_261 {dimension_numbers = #tpu.dot_dimension_numbers<[1], [0], [0], [1], [0, 0, 1, 1], [], []>} : vector<4x4xf32>, vector<4x128xf32>, vector<4x128xf32> -> vector<4x128xf32>
    %564 = arith.addf %555, %563 : vector<4x128xf32>
    %565 = vector.extract_strided_slice %560 {offsets = [4, 0], sizes = [4, 4], strides = [1, 1]} : vector<16x4xf32> to vector<4x4xf32>
    %566 = vector.extract_strided_slice %551 {offsets = [4, 0], sizes = [4, 128], strides = [1, 1]} : vector<16x128xf32> to vector<4x128xf32>
    %cst_262 = arith.constant dense<0.000000e+00> : vector<4x128xf32>
    %567 = tpu.matmul %565, %566, %cst_262 {dimension_numbers = #tpu.dot_dimension_numbers<[1], [0], [0], [1], [0, 0, 1, 1], [], []>} : vector<4x4xf32>, vector<4x128xf32>, vector<4x128xf32> -> vector<4x128xf32>
    %568 = arith.addf %556, %567 : vector<4x128xf32>
    %569 = vector.extract_strided_slice %560 {offsets = [8, 0], sizes = [4, 4], strides = [1, 1]} : vector<16x4xf32> to vector<4x4xf32>
    %570 = vector.extract_strided_slice %551 {offsets = [8, 0], sizes = [4, 128], strides = [1, 1]} : vector<16x128xf32> to vector<4x128xf32>
    %cst_263 = arith.constant dense<0.000000e+00> : vector<4x128xf32>
    %571 = tpu.matmul %569, %570, %cst_263 {dimension_numbers = #tpu.dot_dimension_numbers<[1], [0], [0], [1], [0, 0, 1, 1], [], []>} : vector<4x4xf32>, vector<4x128xf32>, vector<4x128xf32> -> vector<4x128xf32>
    %572 = arith.addf %557, %571 : vector<4x128xf32>
    %573 = vector.extract_strided_slice %560 {offsets = [12, 0], sizes = [4, 4], strides = [1, 1]} : vector<16x4xf32> to vector<4x4xf32>
    %574 = vector.extract_strided_slice %551 {offsets = [12, 0], sizes = [4, 128], strides = [1, 1]} : vector<16x128xf32> to vector<4x128xf32>
    %cst_264 = arith.constant dense<0.000000e+00> : vector<4x128xf32>
    %575 = tpu.matmul %573, %574, %cst_264 {dimension_numbers = #tpu.dot_dimension_numbers<[1], [0], [0], [1], [0, 0, 1, 1], [], []>} : vector<4x4xf32>, vector<4x128xf32>, vector<4x128xf32> -> vector<4x128xf32>
    %576 = arith.addf %558, %575 : vector<4x128xf32>
    %c127_i32_265 = arith.constant 127 : i32
    %577 = tpu.dynamic_rotate %551 by %c127_i32_265 dim 1 : vector<16x128xf32>, i32 -> vector<16x128xf32>
    %c1_266 = arith.constant 1 : index
    %c0_267 = arith.constant 0 : index
    %c0_268 = arith.constant 0 : index
    %578 = vector.load %arg8[%c1_266, %c0_267, %c0_268] : memref<11x16x4xf32, #tpu.memory_space<vmem>>, vector<1x16x4xf32>
    %579 = vector.shape_cast %578 : vector<1x16x4xf32> to vector<16x4xf32>
    %580 = vector.extract_strided_slice %579 {offsets = [0, 0], sizes = [4, 4], strides = [1, 1]} : vector<16x4xf32> to vector<4x4xf32>
    %581 = vector.extract_strided_slice %577 {offsets = [0, 0], sizes = [4, 128], strides = [1, 1]} : vector<16x128xf32> to vector<4x128xf32>
    %cst_269 = arith.constant dense<0.000000e+00> : vector<4x128xf32>
    %582 = tpu.matmul %580, %581, %cst_269 {dimension_numbers = #tpu.dot_dimension_numbers<[1], [0], [0], [1], [0, 0, 1, 1], [], []>} : vector<4x4xf32>, vector<4x128xf32>, vector<4x128xf32> -> vector<4x128xf32>
    %583 = arith.addf %564, %582 : vector<4x128xf32>
    %584 = vector.extract_strided_slice %579 {offsets = [4, 0], sizes = [4, 4], strides = [1, 1]} : vector<16x4xf32> to vector<4x4xf32>
    %585 = vector.extract_strided_slice %577 {offsets = [4, 0], sizes = [4, 128], strides = [1, 1]} : vector<16x128xf32> to vector<4x128xf32>
    %cst_270 = arith.constant dense<0.000000e+00> : vector<4x128xf32>
    %586 = tpu.matmul %584, %585, %cst_270 {dimension_numbers = #tpu.dot_dimension_numbers<[1], [0], [0], [1], [0, 0, 1, 1], [], []>} : vector<4x4xf32>, vector<4x128xf32>, vector<4x128xf32> -> vector<4x128xf32>
    %587 = arith.addf %568, %586 : vector<4x128xf32>
    %588 = vector.extract_strided_slice %579 {offsets = [8, 0], sizes = [4, 4], strides = [1, 1]} : vector<16x4xf32> to vector<4x4xf32>
    %589 = vector.extract_strided_slice %577 {offsets = [8, 0], sizes = [4, 128], strides = [1, 1]} : vector<16x128xf32> to vector<4x128xf32>
    %cst_271 = arith.constant dense<0.000000e+00> : vector<4x128xf32>
    %590 = tpu.matmul %588, %589, %cst_271 {dimension_numbers = #tpu.dot_dimension_numbers<[1], [0], [0], [1], [0, 0, 1, 1], [], []>} : vector<4x4xf32>, vector<4x128xf32>, vector<4x128xf32> -> vector<4x128xf32>
    %591 = arith.addf %572, %590 : vector<4x128xf32>
    %592 = vector.extract_strided_slice %579 {offsets = [12, 0], sizes = [4, 4], strides = [1, 1]} : vector<16x4xf32> to vector<4x4xf32>
    %593 = vector.extract_strided_slice %577 {offsets = [12, 0], sizes = [4, 128], strides = [1, 1]} : vector<16x128xf32> to vector<4x128xf32>
    %cst_272 = arith.constant dense<0.000000e+00> : vector<4x128xf32>
    %594 = tpu.matmul %592, %593, %cst_272 {dimension_numbers = #tpu.dot_dimension_numbers<[1], [0], [0], [1], [0, 0, 1, 1], [], []>} : vector<4x4xf32>, vector<4x128xf32>, vector<4x128xf32> -> vector<4x128xf32>
    %595 = arith.addf %576, %594 : vector<4x128xf32>
    %c126_i32_273 = arith.constant 126 : i32
    %596 = tpu.dynamic_rotate %551 by %c126_i32_273 dim 1 : vector<16x128xf32>, i32 -> vector<16x128xf32>
    %c2_274 = arith.constant 2 : index
    %c0_275 = arith.constant 0 : index
    %c0_276 = arith.constant 0 : index
    %597 = vector.load %arg8[%c2_274, %c0_275, %c0_276] : memref<11x16x4xf32, #tpu.memory_space<vmem>>, vector<1x16x4xf32>
    %598 = vector.shape_cast %597 : vector<1x16x4xf32> to vector<16x4xf32>
    %599 = vector.extract_strided_slice %598 {offsets = [0, 0], sizes = [4, 4], strides = [1, 1]} : vector<16x4xf32> to vector<4x4xf32>
    %600 = vector.extract_strided_slice %596 {offsets = [0, 0], sizes = [4, 128], strides = [1, 1]} : vector<16x128xf32> to vector<4x128xf32>
    %cst_277 = arith.constant dense<0.000000e+00> : vector<4x128xf32>
    %601 = tpu.matmul %599, %600, %cst_277 {dimension_numbers = #tpu.dot_dimension_numbers<[1], [0], [0], [1], [0, 0, 1, 1], [], []>} : vector<4x4xf32>, vector<4x128xf32>, vector<4x128xf32> -> vector<4x128xf32>
    %602 = arith.addf %583, %601 : vector<4x128xf32>
    %603 = vector.extract_strided_slice %598 {offsets = [4, 0], sizes = [4, 4], strides = [1, 1]} : vector<16x4xf32> to vector<4x4xf32>
    %604 = vector.extract_strided_slice %596 {offsets = [4, 0], sizes = [4, 128], strides = [1, 1]} : vector<16x128xf32> to vector<4x128xf32>
    %cst_278 = arith.constant dense<0.000000e+00> : vector<4x128xf32>
    %605 = tpu.matmul %603, %604, %cst_278 {dimension_numbers = #tpu.dot_dimension_numbers<[1], [0], [0], [1], [0, 0, 1, 1], [], []>} : vector<4x4xf32>, vector<4x128xf32>, vector<4x128xf32> -> vector<4x128xf32>
    %606 = arith.addf %587, %605 : vector<4x128xf32>
    %607 = vector.extract_strided_slice %598 {offsets = [8, 0], sizes = [4, 4], strides = [1, 1]} : vector<16x4xf32> to vector<4x4xf32>
    %608 = vector.extract_strided_slice %596 {offsets = [8, 0], sizes = [4, 128], strides = [1, 1]} : vector<16x128xf32> to vector<4x128xf32>
    %cst_279 = arith.constant dense<0.000000e+00> : vector<4x128xf32>
    %609 = tpu.matmul %607, %608, %cst_279 {dimension_numbers = #tpu.dot_dimension_numbers<[1], [0], [0], [1], [0, 0, 1, 1], [], []>} : vector<4x4xf32>, vector<4x128xf32>, vector<4x128xf32> -> vector<4x128xf32>
    %610 = arith.addf %591, %609 : vector<4x128xf32>
    %611 = vector.extract_strided_slice %598 {offsets = [12, 0], sizes = [4, 4], strides = [1, 1]} : vector<16x4xf32> to vector<4x4xf32>
    %612 = vector.extract_strided_slice %596 {offsets = [12, 0], sizes = [4, 128], strides = [1, 1]} : vector<16x128xf32> to vector<4x128xf32>
    %cst_280 = arith.constant dense<0.000000e+00> : vector<4x128xf32>
    %613 = tpu.matmul %611, %612, %cst_280 {dimension_numbers = #tpu.dot_dimension_numbers<[1], [0], [0], [1], [0, 0, 1, 1], [], []>} : vector<4x4xf32>, vector<4x128xf32>, vector<4x128xf32> -> vector<4x128xf32>
    %614 = arith.addf %595, %613 : vector<4x128xf32>
    %c125_i32_281 = arith.constant 125 : i32
    %615 = tpu.dynamic_rotate %551 by %c125_i32_281 dim 1 : vector<16x128xf32>, i32 -> vector<16x128xf32>
    %c3_282 = arith.constant 3 : index
    %c0_283 = arith.constant 0 : index
    %c0_284 = arith.constant 0 : index
    %616 = vector.load %arg8[%c3_282, %c0_283, %c0_284] : memref<11x16x4xf32, #tpu.memory_space<vmem>>, vector<1x16x4xf32>
    %617 = vector.shape_cast %616 : vector<1x16x4xf32> to vector<16x4xf32>
    %618 = vector.extract_strided_slice %617 {offsets = [0, 0], sizes = [4, 4], strides = [1, 1]} : vector<16x4xf32> to vector<4x4xf32>
    %619 = vector.extract_strided_slice %615 {offsets = [0, 0], sizes = [4, 128], strides = [1, 1]} : vector<16x128xf32> to vector<4x128xf32>
    %cst_285 = arith.constant dense<0.000000e+00> : vector<4x128xf32>
    %620 = tpu.matmul %618, %619, %cst_285 {dimension_numbers = #tpu.dot_dimension_numbers<[1], [0], [0], [1], [0, 0, 1, 1], [], []>} : vector<4x4xf32>, vector<4x128xf32>, vector<4x128xf32> -> vector<4x128xf32>
    %621 = arith.addf %602, %620 : vector<4x128xf32>
    %622 = vector.extract_strided_slice %617 {offsets = [4, 0], sizes = [4, 4], strides = [1, 1]} : vector<16x4xf32> to vector<4x4xf32>
    %623 = vector.extract_strided_slice %615 {offsets = [4, 0], sizes = [4, 128], strides = [1, 1]} : vector<16x128xf32> to vector<4x128xf32>
    %cst_286 = arith.constant dense<0.000000e+00> : vector<4x128xf32>
    %624 = tpu.matmul %622, %623, %cst_286 {dimension_numbers = #tpu.dot_dimension_numbers<[1], [0], [0], [1], [0, 0, 1, 1], [], []>} : vector<4x4xf32>, vector<4x128xf32>, vector<4x128xf32> -> vector<4x128xf32>
    %625 = arith.addf %606, %624 : vector<4x128xf32>
    %626 = vector.extract_strided_slice %617 {offsets = [8, 0], sizes = [4, 4], strides = [1, 1]} : vector<16x4xf32> to vector<4x4xf32>
    %627 = vector.extract_strided_slice %615 {offsets = [8, 0], sizes = [4, 128], strides = [1, 1]} : vector<16x128xf32> to vector<4x128xf32>
    %cst_287 = arith.constant dense<0.000000e+00> : vector<4x128xf32>
    %628 = tpu.matmul %626, %627, %cst_287 {dimension_numbers = #tpu.dot_dimension_numbers<[1], [0], [0], [1], [0, 0, 1, 1], [], []>} : vector<4x4xf32>, vector<4x128xf32>, vector<4x128xf32> -> vector<4x128xf32>
    %629 = arith.addf %610, %628 : vector<4x128xf32>
    %630 = vector.extract_strided_slice %617 {offsets = [12, 0], sizes = [4, 4], strides = [1, 1]} : vector<16x4xf32> to vector<4x4xf32>
    %631 = vector.extract_strided_slice %615 {offsets = [12, 0], sizes = [4, 128], strides = [1, 1]} : vector<16x128xf32> to vector<4x128xf32>
    %cst_288 = arith.constant dense<0.000000e+00> : vector<4x128xf32>
    %632 = tpu.matmul %630, %631, %cst_288 {dimension_numbers = #tpu.dot_dimension_numbers<[1], [0], [0], [1], [0, 0, 1, 1], [], []>} : vector<4x4xf32>, vector<4x128xf32>, vector<4x128xf32> -> vector<4x128xf32>
    %633 = arith.addf %614, %632 : vector<4x128xf32>
    %c124_i32_289 = arith.constant 124 : i32
    %634 = tpu.dynamic_rotate %551 by %c124_i32_289 dim 1 : vector<16x128xf32>, i32 -> vector<16x128xf32>
    %c4_290 = arith.constant 4 : index
    %c0_291 = arith.constant 0 : index
    %c0_292 = arith.constant 0 : index
    %635 = vector.load %arg8[%c4_290, %c0_291, %c0_292] : memref<11x16x4xf32, #tpu.memory_space<vmem>>, vector<1x16x4xf32>
    %636 = vector.shape_cast %635 : vector<1x16x4xf32> to vector<16x4xf32>
    %637 = vector.extract_strided_slice %636 {offsets = [0, 0], sizes = [4, 4], strides = [1, 1]} : vector<16x4xf32> to vector<4x4xf32>
    %638 = vector.extract_strided_slice %634 {offsets = [0, 0], sizes = [4, 128], strides = [1, 1]} : vector<16x128xf32> to vector<4x128xf32>
    %cst_293 = arith.constant dense<0.000000e+00> : vector<4x128xf32>
    %639 = tpu.matmul %637, %638, %cst_293 {dimension_numbers = #tpu.dot_dimension_numbers<[1], [0], [0], [1], [0, 0, 1, 1], [], []>} : vector<4x4xf32>, vector<4x128xf32>, vector<4x128xf32> -> vector<4x128xf32>
    %640 = arith.addf %621, %639 : vector<4x128xf32>
    %641 = vector.extract_strided_slice %636 {offsets = [4, 0], sizes = [4, 4], strides = [1, 1]} : vector<16x4xf32> to vector<4x4xf32>
    %642 = vector.extract_strided_slice %634 {offsets = [4, 0], sizes = [4, 128], strides = [1, 1]} : vector<16x128xf32> to vector<4x128xf32>
    %cst_294 = arith.constant dense<0.000000e+00> : vector<4x128xf32>
    %643 = tpu.matmul %641, %642, %cst_294 {dimension_numbers = #tpu.dot_dimension_numbers<[1], [0], [0], [1], [0, 0, 1, 1], [], []>} : vector<4x4xf32>, vector<4x128xf32>, vector<4x128xf32> -> vector<4x128xf32>
    %644 = arith.addf %625, %643 : vector<4x128xf32>
    %645 = vector.extract_strided_slice %636 {offsets = [8, 0], sizes = [4, 4], strides = [1, 1]} : vector<16x4xf32> to vector<4x4xf32>
    %646 = vector.extract_strided_slice %634 {offsets = [8, 0], sizes = [4, 128], strides = [1, 1]} : vector<16x128xf32> to vector<4x128xf32>
    %cst_295 = arith.constant dense<0.000000e+00> : vector<4x128xf32>
    %647 = tpu.matmul %645, %646, %cst_295 {dimension_numbers = #tpu.dot_dimension_numbers<[1], [0], [0], [1], [0, 0, 1, 1], [], []>} : vector<4x4xf32>, vector<4x128xf32>, vector<4x128xf32> -> vector<4x128xf32>
    %648 = arith.addf %629, %647 : vector<4x128xf32>
    %649 = vector.extract_strided_slice %636 {offsets = [12, 0], sizes = [4, 4], strides = [1, 1]} : vector<16x4xf32> to vector<4x4xf32>
    %650 = vector.extract_strided_slice %634 {offsets = [12, 0], sizes = [4, 128], strides = [1, 1]} : vector<16x128xf32> to vector<4x128xf32>
    %cst_296 = arith.constant dense<0.000000e+00> : vector<4x128xf32>
    %651 = tpu.matmul %649, %650, %cst_296 {dimension_numbers = #tpu.dot_dimension_numbers<[1], [0], [0], [1], [0, 0, 1, 1], [], []>} : vector<4x4xf32>, vector<4x128xf32>, vector<4x128xf32> -> vector<4x128xf32>
    %652 = arith.addf %633, %651 : vector<4x128xf32>
    %c123_i32_297 = arith.constant 123 : i32
    %653 = tpu.dynamic_rotate %551 by %c123_i32_297 dim 1 : vector<16x128xf32>, i32 -> vector<16x128xf32>
    %c5_298 = arith.constant 5 : index
    %c0_299 = arith.constant 0 : index
    %c0_300 = arith.constant 0 : index
    %654 = vector.load %arg8[%c5_298, %c0_299, %c0_300] : memref<11x16x4xf32, #tpu.memory_space<vmem>>, vector<1x16x4xf32>
    %655 = vector.shape_cast %654 : vector<1x16x4xf32> to vector<16x4xf32>
    %656 = vector.extract_strided_slice %655 {offsets = [0, 0], sizes = [4, 4], strides = [1, 1]} : vector<16x4xf32> to vector<4x4xf32>
    %657 = vector.extract_strided_slice %653 {offsets = [0, 0], sizes = [4, 128], strides = [1, 1]} : vector<16x128xf32> to vector<4x128xf32>
    %cst_301 = arith.constant dense<0.000000e+00> : vector<4x128xf32>
    %658 = tpu.matmul %656, %657, %cst_301 {dimension_numbers = #tpu.dot_dimension_numbers<[1], [0], [0], [1], [0, 0, 1, 1], [], []>} : vector<4x4xf32>, vector<4x128xf32>, vector<4x128xf32> -> vector<4x128xf32>
    %659 = arith.addf %640, %658 : vector<4x128xf32>
    %660 = vector.extract_strided_slice %655 {offsets = [4, 0], sizes = [4, 4], strides = [1, 1]} : vector<16x4xf32> to vector<4x4xf32>
    %661 = vector.extract_strided_slice %653 {offsets = [4, 0], sizes = [4, 128], strides = [1, 1]} : vector<16x128xf32> to vector<4x128xf32>
    %cst_302 = arith.constant dense<0.000000e+00> : vector<4x128xf32>
    %662 = tpu.matmul %660, %661, %cst_302 {dimension_numbers = #tpu.dot_dimension_numbers<[1], [0], [0], [1], [0, 0, 1, 1], [], []>} : vector<4x4xf32>, vector<4x128xf32>, vector<4x128xf32> -> vector<4x128xf32>
    %663 = arith.addf %644, %662 : vector<4x128xf32>
    %664 = vector.extract_strided_slice %655 {offsets = [8, 0], sizes = [4, 4], strides = [1, 1]} : vector<16x4xf32> to vector<4x4xf32>
    %665 = vector.extract_strided_slice %653 {offsets = [8, 0], sizes = [4, 128], strides = [1, 1]} : vector<16x128xf32> to vector<4x128xf32>
    %cst_303 = arith.constant dense<0.000000e+00> : vector<4x128xf32>
    %666 = tpu.matmul %664, %665, %cst_303 {dimension_numbers = #tpu.dot_dimension_numbers<[1], [0], [0], [1], [0, 0, 1, 1], [], []>} : vector<4x4xf32>, vector<4x128xf32>, vector<4x128xf32> -> vector<4x128xf32>
    %667 = arith.addf %648, %666 : vector<4x128xf32>
    %668 = vector.extract_strided_slice %655 {offsets = [12, 0], sizes = [4, 4], strides = [1, 1]} : vector<16x4xf32> to vector<4x4xf32>
    %669 = vector.extract_strided_slice %653 {offsets = [12, 0], sizes = [4, 128], strides = [1, 1]} : vector<16x128xf32> to vector<4x128xf32>
    %cst_304 = arith.constant dense<0.000000e+00> : vector<4x128xf32>
    %670 = tpu.matmul %668, %669, %cst_304 {dimension_numbers = #tpu.dot_dimension_numbers<[1], [0], [0], [1], [0, 0, 1, 1], [], []>} : vector<4x4xf32>, vector<4x128xf32>, vector<4x128xf32> -> vector<4x128xf32>
    %671 = arith.addf %652, %670 : vector<4x128xf32>
    %c122_i32_305 = arith.constant 122 : i32
    %672 = tpu.dynamic_rotate %551 by %c122_i32_305 dim 1 : vector<16x128xf32>, i32 -> vector<16x128xf32>
    %c6_306 = arith.constant 6 : index
    %c0_307 = arith.constant 0 : index
    %c0_308 = arith.constant 0 : index
    %673 = vector.load %arg8[%c6_306, %c0_307, %c0_308] : memref<11x16x4xf32, #tpu.memory_space<vmem>>, vector<1x16x4xf32>
    %674 = vector.shape_cast %673 : vector<1x16x4xf32> to vector<16x4xf32>
    %675 = vector.extract_strided_slice %674 {offsets = [0, 0], sizes = [4, 4], strides = [1, 1]} : vector<16x4xf32> to vector<4x4xf32>
    %676 = vector.extract_strided_slice %672 {offsets = [0, 0], sizes = [4, 128], strides = [1, 1]} : vector<16x128xf32> to vector<4x128xf32>
    %cst_309 = arith.constant dense<0.000000e+00> : vector<4x128xf32>
    %677 = tpu.matmul %675, %676, %cst_309 {dimension_numbers = #tpu.dot_dimension_numbers<[1], [0], [0], [1], [0, 0, 1, 1], [], []>} : vector<4x4xf32>, vector<4x128xf32>, vector<4x128xf32> -> vector<4x128xf32>
    %678 = arith.addf %659, %677 : vector<4x128xf32>
    %679 = vector.extract_strided_slice %674 {offsets = [4, 0], sizes = [4, 4], strides = [1, 1]} : vector<16x4xf32> to vector<4x4xf32>
    %680 = vector.extract_strided_slice %672 {offsets = [4, 0], sizes = [4, 128], strides = [1, 1]} : vector<16x128xf32> to vector<4x128xf32>
    %cst_310 = arith.constant dense<0.000000e+00> : vector<4x128xf32>
    %681 = tpu.matmul %679, %680, %cst_310 {dimension_numbers = #tpu.dot_dimension_numbers<[1], [0], [0], [1], [0, 0, 1, 1], [], []>} : vector<4x4xf32>, vector<4x128xf32>, vector<4x128xf32> -> vector<4x128xf32>
    %682 = arith.addf %663, %681 : vector<4x128xf32>
    %683 = vector.extract_strided_slice %674 {offsets = [8, 0], sizes = [4, 4], strides = [1, 1]} : vector<16x4xf32> to vector<4x4xf32>
    %684 = vector.extract_strided_slice %672 {offsets = [8, 0], sizes = [4, 128], strides = [1, 1]} : vector<16x128xf32> to vector<4x128xf32>
    %cst_311 = arith.constant dense<0.000000e+00> : vector<4x128xf32>
    %685 = tpu.matmul %683, %684, %cst_311 {dimension_numbers = #tpu.dot_dimension_numbers<[1], [0], [0], [1], [0, 0, 1, 1], [], []>} : vector<4x4xf32>, vector<4x128xf32>, vector<4x128xf32> -> vector<4x128xf32>
    %686 = arith.addf %667, %685 : vector<4x128xf32>
    %687 = vector.extract_strided_slice %674 {offsets = [12, 0], sizes = [4, 4], strides = [1, 1]} : vector<16x4xf32> to vector<4x4xf32>
    %688 = vector.extract_strided_slice %672 {offsets = [12, 0], sizes = [4, 128], strides = [1, 1]} : vector<16x128xf32> to vector<4x128xf32>
    %cst_312 = arith.constant dense<0.000000e+00> : vector<4x128xf32>
    %689 = tpu.matmul %687, %688, %cst_312 {dimension_numbers = #tpu.dot_dimension_numbers<[1], [0], [0], [1], [0, 0, 1, 1], [], []>} : vector<4x4xf32>, vector<4x128xf32>, vector<4x128xf32> -> vector<4x128xf32>
    %690 = arith.addf %671, %689 : vector<4x128xf32>
    %c121_i32_313 = arith.constant 121 : i32
    %691 = tpu.dynamic_rotate %551 by %c121_i32_313 dim 1 : vector<16x128xf32>, i32 -> vector<16x128xf32>
    %c7_314 = arith.constant 7 : index
    %c0_315 = arith.constant 0 : index
    %c0_316 = arith.constant 0 : index
    %692 = vector.load %arg8[%c7_314, %c0_315, %c0_316] : memref<11x16x4xf32, #tpu.memory_space<vmem>>, vector<1x16x4xf32>
    %693 = vector.shape_cast %692 : vector<1x16x4xf32> to vector<16x4xf32>
    %694 = vector.extract_strided_slice %693 {offsets = [0, 0], sizes = [4, 4], strides = [1, 1]} : vector<16x4xf32> to vector<4x4xf32>
    %695 = vector.extract_strided_slice %691 {offsets = [0, 0], sizes = [4, 128], strides = [1, 1]} : vector<16x128xf32> to vector<4x128xf32>
    %cst_317 = arith.constant dense<0.000000e+00> : vector<4x128xf32>
    %696 = tpu.matmul %694, %695, %cst_317 {dimension_numbers = #tpu.dot_dimension_numbers<[1], [0], [0], [1], [0, 0, 1, 1], [], []>} : vector<4x4xf32>, vector<4x128xf32>, vector<4x128xf32> -> vector<4x128xf32>
    %697 = arith.addf %678, %696 : vector<4x128xf32>
    %698 = vector.extract_strided_slice %693 {offsets = [4, 0], sizes = [4, 4], strides = [1, 1]} : vector<16x4xf32> to vector<4x4xf32>
    %699 = vector.extract_strided_slice %691 {offsets = [4, 0], sizes = [4, 128], strides = [1, 1]} : vector<16x128xf32> to vector<4x128xf32>
    %cst_318 = arith.constant dense<0.000000e+00> : vector<4x128xf32>
    %700 = tpu.matmul %698, %699, %cst_318 {dimension_numbers = #tpu.dot_dimension_numbers<[1], [0], [0], [1], [0, 0, 1, 1], [], []>} : vector<4x4xf32>, vector<4x128xf32>, vector<4x128xf32> -> vector<4x128xf32>
    %701 = arith.addf %682, %700 : vector<4x128xf32>
    %702 = vector.extract_strided_slice %693 {offsets = [8, 0], sizes = [4, 4], strides = [1, 1]} : vector<16x4xf32> to vector<4x4xf32>
    %703 = vector.extract_strided_slice %691 {offsets = [8, 0], sizes = [4, 128], strides = [1, 1]} : vector<16x128xf32> to vector<4x128xf32>
    %cst_319 = arith.constant dense<0.000000e+00> : vector<4x128xf32>
    %704 = tpu.matmul %702, %703, %cst_319 {dimension_numbers = #tpu.dot_dimension_numbers<[1], [0], [0], [1], [0, 0, 1, 1], [], []>} : vector<4x4xf32>, vector<4x128xf32>, vector<4x128xf32> -> vector<4x128xf32>
    %705 = arith.addf %686, %704 : vector<4x128xf32>
    %706 = vector.extract_strided_slice %693 {offsets = [12, 0], sizes = [4, 4], strides = [1, 1]} : vector<16x4xf32> to vector<4x4xf32>
    %707 = vector.extract_strided_slice %691 {offsets = [12, 0], sizes = [4, 128], strides = [1, 1]} : vector<16x128xf32> to vector<4x128xf32>
    %cst_320 = arith.constant dense<0.000000e+00> : vector<4x128xf32>
    %708 = tpu.matmul %706, %707, %cst_320 {dimension_numbers = #tpu.dot_dimension_numbers<[1], [0], [0], [1], [0, 0, 1, 1], [], []>} : vector<4x4xf32>, vector<4x128xf32>, vector<4x128xf32> -> vector<4x128xf32>
    %709 = arith.addf %690, %708 : vector<4x128xf32>
    %c120_i32_321 = arith.constant 120 : i32
    %710 = tpu.dynamic_rotate %551 by %c120_i32_321 dim 1 : vector<16x128xf32>, i32 -> vector<16x128xf32>
    %c8_322 = arith.constant 8 : index
    %c0_323 = arith.constant 0 : index
    %c0_324 = arith.constant 0 : index
    %711 = vector.load %arg8[%c8_322, %c0_323, %c0_324] : memref<11x16x4xf32, #tpu.memory_space<vmem>>, vector<1x16x4xf32>
    %712 = vector.shape_cast %711 : vector<1x16x4xf32> to vector<16x4xf32>
    %713 = vector.extract_strided_slice %712 {offsets = [0, 0], sizes = [4, 4], strides = [1, 1]} : vector<16x4xf32> to vector<4x4xf32>
    %714 = vector.extract_strided_slice %710 {offsets = [0, 0], sizes = [4, 128], strides = [1, 1]} : vector<16x128xf32> to vector<4x128xf32>
    %cst_325 = arith.constant dense<0.000000e+00> : vector<4x128xf32>
    %715 = tpu.matmul %713, %714, %cst_325 {dimension_numbers = #tpu.dot_dimension_numbers<[1], [0], [0], [1], [0, 0, 1, 1], [], []>} : vector<4x4xf32>, vector<4x128xf32>, vector<4x128xf32> -> vector<4x128xf32>
    %716 = arith.addf %697, %715 : vector<4x128xf32>
    %717 = vector.extract_strided_slice %712 {offsets = [4, 0], sizes = [4, 4], strides = [1, 1]} : vector<16x4xf32> to vector<4x4xf32>
    %718 = vector.extract_strided_slice %710 {offsets = [4, 0], sizes = [4, 128], strides = [1, 1]} : vector<16x128xf32> to vector<4x128xf32>
    %cst_326 = arith.constant dense<0.000000e+00> : vector<4x128xf32>
    %719 = tpu.matmul %717, %718, %cst_326 {dimension_numbers = #tpu.dot_dimension_numbers<[1], [0], [0], [1], [0, 0, 1, 1], [], []>} : vector<4x4xf32>, vector<4x128xf32>, vector<4x128xf32> -> vector<4x128xf32>
    %720 = arith.addf %701, %719 : vector<4x128xf32>
    %721 = vector.extract_strided_slice %712 {offsets = [8, 0], sizes = [4, 4], strides = [1, 1]} : vector<16x4xf32> to vector<4x4xf32>
    %722 = vector.extract_strided_slice %710 {offsets = [8, 0], sizes = [4, 128], strides = [1, 1]} : vector<16x128xf32> to vector<4x128xf32>
    %cst_327 = arith.constant dense<0.000000e+00> : vector<4x128xf32>
    %723 = tpu.matmul %721, %722, %cst_327 {dimension_numbers = #tpu.dot_dimension_numbers<[1], [0], [0], [1], [0, 0, 1, 1], [], []>} : vector<4x4xf32>, vector<4x128xf32>, vector<4x128xf32> -> vector<4x128xf32>
    %724 = arith.addf %705, %723 : vector<4x128xf32>
    %725 = vector.extract_strided_slice %712 {offsets = [12, 0], sizes = [4, 4], strides = [1, 1]} : vector<16x4xf32> to vector<4x4xf32>
    %726 = vector.extract_strided_slice %710 {offsets = [12, 0], sizes = [4, 128], strides = [1, 1]} : vector<16x128xf32> to vector<4x128xf32>
    %cst_328 = arith.constant dense<0.000000e+00> : vector<4x128xf32>
    %727 = tpu.matmul %725, %726, %cst_328 {dimension_numbers = #tpu.dot_dimension_numbers<[1], [0], [0], [1], [0, 0, 1, 1], [], []>} : vector<4x4xf32>, vector<4x128xf32>, vector<4x128xf32> -> vector<4x128xf32>
    %728 = arith.addf %709, %727 : vector<4x128xf32>
    %c119_i32_329 = arith.constant 119 : i32
    %729 = tpu.dynamic_rotate %551 by %c119_i32_329 dim 1 : vector<16x128xf32>, i32 -> vector<16x128xf32>
    %c9_330 = arith.constant 9 : index
    %c0_331 = arith.constant 0 : index
    %c0_332 = arith.constant 0 : index
    %730 = vector.load %arg8[%c9_330, %c0_331, %c0_332] : memref<11x16x4xf32, #tpu.memory_space<vmem>>, vector<1x16x4xf32>
    %731 = vector.shape_cast %730 : vector<1x16x4xf32> to vector<16x4xf32>
    %732 = vector.extract_strided_slice %731 {offsets = [0, 0], sizes = [4, 4], strides = [1, 1]} : vector<16x4xf32> to vector<4x4xf32>
    %733 = vector.extract_strided_slice %729 {offsets = [0, 0], sizes = [4, 128], strides = [1, 1]} : vector<16x128xf32> to vector<4x128xf32>
    %cst_333 = arith.constant dense<0.000000e+00> : vector<4x128xf32>
    %734 = tpu.matmul %732, %733, %cst_333 {dimension_numbers = #tpu.dot_dimension_numbers<[1], [0], [0], [1], [0, 0, 1, 1], [], []>} : vector<4x4xf32>, vector<4x128xf32>, vector<4x128xf32> -> vector<4x128xf32>
    %735 = arith.addf %716, %734 : vector<4x128xf32>
    %736 = vector.extract_strided_slice %731 {offsets = [4, 0], sizes = [4, 4], strides = [1, 1]} : vector<16x4xf32> to vector<4x4xf32>
    %737 = vector.extract_strided_slice %729 {offsets = [4, 0], sizes = [4, 128], strides = [1, 1]} : vector<16x128xf32> to vector<4x128xf32>
    %cst_334 = arith.constant dense<0.000000e+00> : vector<4x128xf32>
    %738 = tpu.matmul %736, %737, %cst_334 {dimension_numbers = #tpu.dot_dimension_numbers<[1], [0], [0], [1], [0, 0, 1, 1], [], []>} : vector<4x4xf32>, vector<4x128xf32>, vector<4x128xf32> -> vector<4x128xf32>
    %739 = arith.addf %720, %738 : vector<4x128xf32>
    %740 = vector.extract_strided_slice %731 {offsets = [8, 0], sizes = [4, 4], strides = [1, 1]} : vector<16x4xf32> to vector<4x4xf32>
    %741 = vector.extract_strided_slice %729 {offsets = [8, 0], sizes = [4, 128], strides = [1, 1]} : vector<16x128xf32> to vector<4x128xf32>
    %cst_335 = arith.constant dense<0.000000e+00> : vector<4x128xf32>
    %742 = tpu.matmul %740, %741, %cst_335 {dimension_numbers = #tpu.dot_dimension_numbers<[1], [0], [0], [1], [0, 0, 1, 1], [], []>} : vector<4x4xf32>, vector<4x128xf32>, vector<4x128xf32> -> vector<4x128xf32>
    %743 = arith.addf %724, %742 : vector<4x128xf32>
    %744 = vector.extract_strided_slice %731 {offsets = [12, 0], sizes = [4, 4], strides = [1, 1]} : vector<16x4xf32> to vector<4x4xf32>
    %745 = vector.extract_strided_slice %729 {offsets = [12, 0], sizes = [4, 128], strides = [1, 1]} : vector<16x128xf32> to vector<4x128xf32>
    %cst_336 = arith.constant dense<0.000000e+00> : vector<4x128xf32>
    %746 = tpu.matmul %744, %745, %cst_336 {dimension_numbers = #tpu.dot_dimension_numbers<[1], [0], [0], [1], [0, 0, 1, 1], [], []>} : vector<4x4xf32>, vector<4x128xf32>, vector<4x128xf32> -> vector<4x128xf32>
    %747 = arith.addf %728, %746 : vector<4x128xf32>
    %c118_i32_337 = arith.constant 118 : i32
    %748 = tpu.dynamic_rotate %551 by %c118_i32_337 dim 1 : vector<16x128xf32>, i32 -> vector<16x128xf32>
    %c10_338 = arith.constant 10 : index
    %c0_339 = arith.constant 0 : index
    %c0_340 = arith.constant 0 : index
    %749 = vector.load %arg8[%c10_338, %c0_339, %c0_340] : memref<11x16x4xf32, #tpu.memory_space<vmem>>, vector<1x16x4xf32>
    %750 = vector.shape_cast %749 : vector<1x16x4xf32> to vector<16x4xf32>
    %751 = vector.extract_strided_slice %750 {offsets = [0, 0], sizes = [4, 4], strides = [1, 1]} : vector<16x4xf32> to vector<4x4xf32>
    %752 = vector.extract_strided_slice %748 {offsets = [0, 0], sizes = [4, 128], strides = [1, 1]} : vector<16x128xf32> to vector<4x128xf32>
    %cst_341 = arith.constant dense<0.000000e+00> : vector<4x128xf32>
    %753 = tpu.matmul %751, %752, %cst_341 {dimension_numbers = #tpu.dot_dimension_numbers<[1], [0], [0], [1], [0, 0, 1, 1], [], []>} : vector<4x4xf32>, vector<4x128xf32>, vector<4x128xf32> -> vector<4x128xf32>
    %754 = arith.addf %735, %753 : vector<4x128xf32>
    %755 = vector.extract_strided_slice %750 {offsets = [4, 0], sizes = [4, 4], strides = [1, 1]} : vector<16x4xf32> to vector<4x4xf32>
    %756 = vector.extract_strided_slice %748 {offsets = [4, 0], sizes = [4, 128], strides = [1, 1]} : vector<16x128xf32> to vector<4x128xf32>
    %cst_342 = arith.constant dense<0.000000e+00> : vector<4x128xf32>
    %757 = tpu.matmul %755, %756, %cst_342 {dimension_numbers = #tpu.dot_dimension_numbers<[1], [0], [0], [1], [0, 0, 1, 1], [], []>} : vector<4x4xf32>, vector<4x128xf32>, vector<4x128xf32> -> vector<4x128xf32>
    %758 = arith.addf %739, %757 : vector<4x128xf32>
    %759 = vector.extract_strided_slice %750 {offsets = [8, 0], sizes = [4, 4], strides = [1, 1]} : vector<16x4xf32> to vector<4x4xf32>
    %760 = vector.extract_strided_slice %748 {offsets = [8, 0], sizes = [4, 128], strides = [1, 1]} : vector<16x128xf32> to vector<4x128xf32>
    %cst_343 = arith.constant dense<0.000000e+00> : vector<4x128xf32>
    %761 = tpu.matmul %759, %760, %cst_343 {dimension_numbers = #tpu.dot_dimension_numbers<[1], [0], [0], [1], [0, 0, 1, 1], [], []>} : vector<4x4xf32>, vector<4x128xf32>, vector<4x128xf32> -> vector<4x128xf32>
    %762 = arith.addf %743, %761 : vector<4x128xf32>
    %763 = vector.extract_strided_slice %750 {offsets = [12, 0], sizes = [4, 4], strides = [1, 1]} : vector<16x4xf32> to vector<4x4xf32>
    %764 = vector.extract_strided_slice %748 {offsets = [12, 0], sizes = [4, 128], strides = [1, 1]} : vector<16x128xf32> to vector<4x128xf32>
    %cst_344 = arith.constant dense<0.000000e+00> : vector<4x128xf32>
    %765 = tpu.matmul %763, %764, %cst_344 {dimension_numbers = #tpu.dot_dimension_numbers<[1], [0], [0], [1], [0, 0, 1, 1], [], []>} : vector<4x4xf32>, vector<4x128xf32>, vector<4x128xf32> -> vector<4x128xf32>
    %766 = arith.addf %747, %765 : vector<4x128xf32>
    %767 = tpu.concatenate %754, %758, %762, %766 in 0 : vector<4x128xf32>, vector<4x128xf32>, vector<4x128xf32>, vector<4x128xf32> -> vector<16x128xf32>
    %c0_345 = arith.constant 0 : index
    %c0_346 = arith.constant 0 : index
    %768 = vector.load %arg9[%c0_345, %c0_346] : memref<16x1xf32, #tpu.memory_space<vmem>>, vector<16x1xf32>
    %769 = vector.broadcast %768 : vector<16x1xf32> to vector<16x128xf32>
    %770 = arith.addf %767, %769 : vector<16x128xf32>
    %cst_347 = arith.constant 0.000000e+00 : f32
    %771 = vector.broadcast %cst_347 : f32 to vector<16x128xf32>
    %772 = arith.cmpf oge, %770, %771 : vector<16x128xf32>
    %cst_348 = arith.constant 2.000000e-01 : f32
    %773 = vector.broadcast %cst_348 : f32 to vector<16x128xf32>
    %774 = arith.mulf %773, %770 : vector<16x128xf32>
    %775 = arith.select %772, %770, %774 : vector<16x128xi1>, vector<16x128xf32>
    %c48_i32 = arith.constant 48 : i32
    %776 = vector.broadcast %c48_i32 : i32 to vector<1x128xi32>
    %777 = arith.cmpi slt, %0, %776 : vector<1x128xi32>
    %cst_349 = arith.constant 0.000000e+00 : f32
    %778 = vector.shape_cast %777 : vector<1x128xi1> to vector<1x128xi1>
    %779 = vector.broadcast %778 : vector<1x128xi1> to vector<16x128xi1>
    %780 = vector.broadcast %cst_349 : f32 to vector<16x128xf32>
    %781 = arith.select %779, %775, %780 : vector<16x128xi1>, vector<16x128xf32>
    %c0_350 = arith.constant 0 : index
    %c0_351 = arith.constant 0 : index
    %c0_352 = arith.constant 0 : index
    %782 = vector.load %arg19[%c0_350, %c0_351, %c0_352] : memref<1x16x128xf32, #tpu.memory_space<vmem>>, vector<1x16x128xf32>
    %783 = vector.shape_cast %782 : vector<1x16x128xf32> to vector<16x128xf32>
    %784 = vector.shape_cast %781 : vector<16x128xf32> to vector<1x16x128xf32>
    tpu.vector_store %arg19[%c0_350, %c0_351, %c0_352], %784 {strides = array<i32>} : memref<1x16x128xf32, #tpu.memory_space<vmem>>, vector<1x16x128xf32>,
    %cst_353 = arith.constant 0.000000e+00 : f32
    %785 = vector.broadcast %cst_353 : f32 to vector<4x128xf32>
    %cst_354 = arith.constant 0.000000e+00 : f32
    %786 = vector.broadcast %cst_354 : f32 to vector<4x128xf32>
    %cst_355 = arith.constant 0.000000e+00 : f32
    %787 = vector.broadcast %cst_355 : f32 to vector<4x128xf32>
    %cst_356 = arith.constant 0.000000e+00 : f32
    %788 = vector.broadcast %cst_356 : f32 to vector<4x128xf32>
    %c0_357 = arith.constant 0 : index
    %c0_358 = arith.constant 0 : index
    %c0_359 = arith.constant 0 : index
    %789 = vector.load %arg10[%c0_357, %c0_358, %c0_359] : memref<11x16x4xf32, #tpu.memory_space<vmem>>, vector<1x16x4xf32>
    %790 = vector.shape_cast %789 : vector<1x16x4xf32> to vector<16x4xf32>
    %791 = vector.extract_strided_slice %790 {offsets = [0, 0], sizes = [4, 4], strides = [1, 1]} : vector<16x4xf32> to vector<4x4xf32>
    %792 = vector.extract_strided_slice %781 {offsets = [0, 0], sizes = [4, 128], strides = [1, 1]} : vector<16x128xf32> to vector<4x128xf32>
    %cst_360 = arith.constant dense<0.000000e+00> : vector<4x128xf32>
    %793 = tpu.matmul %791, %792, %cst_360 {dimension_numbers = #tpu.dot_dimension_numbers<[1], [0], [0], [1], [0, 0, 1, 1], [], []>} : vector<4x4xf32>, vector<4x128xf32>, vector<4x128xf32> -> vector<4x128xf32>
    %794 = arith.addf %785, %793 : vector<4x128xf32>
    %795 = vector.extract_strided_slice %790 {offsets = [4, 0], sizes = [4, 4], strides = [1, 1]} : vector<16x4xf32> to vector<4x4xf32>
    %796 = vector.extract_strided_slice %781 {offsets = [4, 0], sizes = [4, 128], strides = [1, 1]} : vector<16x128xf32> to vector<4x128xf32>
    %cst_361 = arith.constant dense<0.000000e+00> : vector<4x128xf32>
    %797 = tpu.matmul %795, %796, %cst_361 {dimension_numbers = #tpu.dot_dimension_numbers<[1], [0], [0], [1], [0, 0, 1, 1], [], []>} : vector<4x4xf32>, vector<4x128xf32>, vector<4x128xf32> -> vector<4x128xf32>
    %798 = arith.addf %786, %797 : vector<4x128xf32>
    %799 = vector.extract_strided_slice %790 {offsets = [8, 0], sizes = [4, 4], strides = [1, 1]} : vector<16x4xf32> to vector<4x4xf32>
    %800 = vector.extract_strided_slice %781 {offsets = [8, 0], sizes = [4, 128], strides = [1, 1]} : vector<16x128xf32> to vector<4x128xf32>
    %cst_362 = arith.constant dense<0.000000e+00> : vector<4x128xf32>
    %801 = tpu.matmul %799, %800, %cst_362 {dimension_numbers = #tpu.dot_dimension_numbers<[1], [0], [0], [1], [0, 0, 1, 1], [], []>} : vector<4x4xf32>, vector<4x128xf32>, vector<4x128xf32> -> vector<4x128xf32>
    %802 = arith.addf %787, %801 : vector<4x128xf32>
    %803 = vector.extract_strided_slice %790 {offsets = [12, 0], sizes = [4, 4], strides = [1, 1]} : vector<16x4xf32> to vector<4x4xf32>
    %804 = vector.extract_strided_slice %781 {offsets = [12, 0], sizes = [4, 128], strides = [1, 1]} : vector<16x128xf32> to vector<4x128xf32>
    %cst_363 = arith.constant dense<0.000000e+00> : vector<4x128xf32>
    %805 = tpu.matmul %803, %804, %cst_363 {dimension_numbers = #tpu.dot_dimension_numbers<[1], [0], [0], [1], [0, 0, 1, 1], [], []>} : vector<4x4xf32>, vector<4x128xf32>, vector<4x128xf32> -> vector<4x128xf32>
    %806 = arith.addf %788, %805 : vector<4x128xf32>
    %c127_i32_364 = arith.constant 127 : i32
    %807 = tpu.dynamic_rotate %781 by %c127_i32_364 dim 1 : vector<16x128xf32>, i32 -> vector<16x128xf32>
    %c1_365 = arith.constant 1 : index
    %c0_366 = arith.constant 0 : index
    %c0_367 = arith.constant 0 : index
    %808 = vector.load %arg10[%c1_365, %c0_366, %c0_367] : memref<11x16x4xf32, #tpu.memory_space<vmem>>, vector<1x16x4xf32>
    %809 = vector.shape_cast %808 : vector<1x16x4xf32> to vector<16x4xf32>
    %810 = vector.extract_strided_slice %809 {offsets = [0, 0], sizes = [4, 4], strides = [1, 1]} : vector<16x4xf32> to vector<4x4xf32>
    %811 = vector.extract_strided_slice %807 {offsets = [0, 0], sizes = [4, 128], strides = [1, 1]} : vector<16x128xf32> to vector<4x128xf32>
    %cst_368 = arith.constant dense<0.000000e+00> : vector<4x128xf32>
    %812 = tpu.matmul %810, %811, %cst_368 {dimension_numbers = #tpu.dot_dimension_numbers<[1], [0], [0], [1], [0, 0, 1, 1], [], []>} : vector<4x4xf32>, vector<4x128xf32>, vector<4x128xf32> -> vector<4x128xf32>
    %813 = arith.addf %794, %812 : vector<4x128xf32>
    %814 = vector.extract_strided_slice %809 {offsets = [4, 0], sizes = [4, 4], strides = [1, 1]} : vector<16x4xf32> to vector<4x4xf32>
    %815 = vector.extract_strided_slice %807 {offsets = [4, 0], sizes = [4, 128], strides = [1, 1]} : vector<16x128xf32> to vector<4x128xf32>
    %cst_369 = arith.constant dense<0.000000e+00> : vector<4x128xf32>
    %816 = tpu.matmul %814, %815, %cst_369 {dimension_numbers = #tpu.dot_dimension_numbers<[1], [0], [0], [1], [0, 0, 1, 1], [], []>} : vector<4x4xf32>, vector<4x128xf32>, vector<4x128xf32> -> vector<4x128xf32>
    %817 = arith.addf %798, %816 : vector<4x128xf32>
    %818 = vector.extract_strided_slice %809 {offsets = [8, 0], sizes = [4, 4], strides = [1, 1]} : vector<16x4xf32> to vector<4x4xf32>
    %819 = vector.extract_strided_slice %807 {offsets = [8, 0], sizes = [4, 128], strides = [1, 1]} : vector<16x128xf32> to vector<4x128xf32>
    %cst_370 = arith.constant dense<0.000000e+00> : vector<4x128xf32>
    %820 = tpu.matmul %818, %819, %cst_370 {dimension_numbers = #tpu.dot_dimension_numbers<[1], [0], [0], [1], [0, 0, 1, 1], [], []>} : vector<4x4xf32>, vector<4x128xf32>, vector<4x128xf32> -> vector<4x128xf32>
    %821 = arith.addf %802, %820 : vector<4x128xf32>
    %822 = vector.extract_strided_slice %809 {offsets = [12, 0], sizes = [4, 4], strides = [1, 1]} : vector<16x4xf32> to vector<4x4xf32>
    %823 = vector.extract_strided_slice %807 {offsets = [12, 0], sizes = [4, 128], strides = [1, 1]} : vector<16x128xf32> to vector<4x128xf32>
    %cst_371 = arith.constant dense<0.000000e+00> : vector<4x128xf32>
    %824 = tpu.matmul %822, %823, %cst_371 {dimension_numbers = #tpu.dot_dimension_numbers<[1], [0], [0], [1], [0, 0, 1, 1], [], []>} : vector<4x4xf32>, vector<4x128xf32>, vector<4x128xf32> -> vector<4x128xf32>
    %825 = arith.addf %806, %824 : vector<4x128xf32>
    %c126_i32_372 = arith.constant 126 : i32
    %826 = tpu.dynamic_rotate %781 by %c126_i32_372 dim 1 : vector<16x128xf32>, i32 -> vector<16x128xf32>
    %c2_373 = arith.constant 2 : index
    %c0_374 = arith.constant 0 : index
    %c0_375 = arith.constant 0 : index
    %827 = vector.load %arg10[%c2_373, %c0_374, %c0_375] : memref<11x16x4xf32, #tpu.memory_space<vmem>>, vector<1x16x4xf32>
    %828 = vector.shape_cast %827 : vector<1x16x4xf32> to vector<16x4xf32>
    %829 = vector.extract_strided_slice %828 {offsets = [0, 0], sizes = [4, 4], strides = [1, 1]} : vector<16x4xf32> to vector<4x4xf32>
    %830 = vector.extract_strided_slice %826 {offsets = [0, 0], sizes = [4, 128], strides = [1, 1]} : vector<16x128xf32> to vector<4x128xf32>
    %cst_376 = arith.constant dense<0.000000e+00> : vector<4x128xf32>
    %831 = tpu.matmul %829, %830, %cst_376 {dimension_numbers = #tpu.dot_dimension_numbers<[1], [0], [0], [1], [0, 0, 1, 1], [], []>} : vector<4x4xf32>, vector<4x128xf32>, vector<4x128xf32> -> vector<4x128xf32>
    %832 = arith.addf %813, %831 : vector<4x128xf32>
    %833 = vector.extract_strided_slice %828 {offsets = [4, 0], sizes = [4, 4], strides = [1, 1]} : vector<16x4xf32> to vector<4x4xf32>
    %834 = vector.extract_strided_slice %826 {offsets = [4, 0], sizes = [4, 128], strides = [1, 1]} : vector<16x128xf32> to vector<4x128xf32>
    %cst_377 = arith.constant dense<0.000000e+00> : vector<4x128xf32>
    %835 = tpu.matmul %833, %834, %cst_377 {dimension_numbers = #tpu.dot_dimension_numbers<[1], [0], [0], [1], [0, 0, 1, 1], [], []>} : vector<4x4xf32>, vector<4x128xf32>, vector<4x128xf32> -> vector<4x128xf32>
    %836 = arith.addf %817, %835 : vector<4x128xf32>
    %837 = vector.extract_strided_slice %828 {offsets = [8, 0], sizes = [4, 4], strides = [1, 1]} : vector<16x4xf32> to vector<4x4xf32>
    %838 = vector.extract_strided_slice %826 {offsets = [8, 0], sizes = [4, 128], strides = [1, 1]} : vector<16x128xf32> to vector<4x128xf32>
    %cst_378 = arith.constant dense<0.000000e+00> : vector<4x128xf32>
    %839 = tpu.matmul %837, %838, %cst_378 {dimension_numbers = #tpu.dot_dimension_numbers<[1], [0], [0], [1], [0, 0, 1, 1], [], []>} : vector<4x4xf32>, vector<4x128xf32>, vector<4x128xf32> -> vector<4x128xf32>
    %840 = arith.addf %821, %839 : vector<4x128xf32>
    %841 = vector.extract_strided_slice %828 {offsets = [12, 0], sizes = [4, 4], strides = [1, 1]} : vector<16x4xf32> to vector<4x4xf32>
    %842 = vector.extract_strided_slice %826 {offsets = [12, 0], sizes = [4, 128], strides = [1, 1]} : vector<16x128xf32> to vector<4x128xf32>
    %cst_379 = arith.constant dense<0.000000e+00> : vector<4x128xf32>
    %843 = tpu.matmul %841, %842, %cst_379 {dimension_numbers = #tpu.dot_dimension_numbers<[1], [0], [0], [1], [0, 0, 1, 1], [], []>} : vector<4x4xf32>, vector<4x128xf32>, vector<4x128xf32> -> vector<4x128xf32>
    %844 = arith.addf %825, %843 : vector<4x128xf32>
    %c125_i32_380 = arith.constant 125 : i32
    %845 = tpu.dynamic_rotate %781 by %c125_i32_380 dim 1 : vector<16x128xf32>, i32 -> vector<16x128xf32>
    %c3_381 = arith.constant 3 : index
    %c0_382 = arith.constant 0 : index
    %c0_383 = arith.constant 0 : index
    %846 = vector.load %arg10[%c3_381, %c0_382, %c0_383] : memref<11x16x4xf32, #tpu.memory_space<vmem>>, vector<1x16x4xf32>
    %847 = vector.shape_cast %846 : vector<1x16x4xf32> to vector<16x4xf32>
    %848 = vector.extract_strided_slice %847 {offsets = [0, 0], sizes = [4, 4], strides = [1, 1]} : vector<16x4xf32> to vector<4x4xf32>
    %849 = vector.extract_strided_slice %845 {offsets = [0, 0], sizes = [4, 128], strides = [1, 1]} : vector<16x128xf32> to vector<4x128xf32>
    %cst_384 = arith.constant dense<0.000000e+00> : vector<4x128xf32>
    %850 = tpu.matmul %848, %849, %cst_384 {dimension_numbers = #tpu.dot_dimension_numbers<[1], [0], [0], [1], [0, 0, 1, 1], [], []>} : vector<4x4xf32>, vector<4x128xf32>, vector<4x128xf32> -> vector<4x128xf32>
    %851 = arith.addf %832, %850 : vector<4x128xf32>
    %852 = vector.extract_strided_slice %847 {offsets = [4, 0], sizes = [4, 4], strides = [1, 1]} : vector<16x4xf32> to vector<4x4xf32>
    %853 = vector.extract_strided_slice %845 {offsets = [4, 0], sizes = [4, 128], strides = [1, 1]} : vector<16x128xf32> to vector<4x128xf32>
    %cst_385 = arith.constant dense<0.000000e+00> : vector<4x128xf32>
    %854 = tpu.matmul %852, %853, %cst_385 {dimension_numbers = #tpu.dot_dimension_numbers<[1], [0], [0], [1], [0, 0, 1, 1], [], []>} : vector<4x4xf32>, vector<4x128xf32>, vector<4x128xf32> -> vector<4x128xf32>
    %855 = arith.addf %836, %854 : vector<4x128xf32>
    %856 = vector.extract_strided_slice %847 {offsets = [8, 0], sizes = [4, 4], strides = [1, 1]} : vector<16x4xf32> to vector<4x4xf32>
    %857 = vector.extract_strided_slice %845 {offsets = [8, 0], sizes = [4, 128], strides = [1, 1]} : vector<16x128xf32> to vector<4x128xf32>
    %cst_386 = arith.constant dense<0.000000e+00> : vector<4x128xf32>
    %858 = tpu.matmul %856, %857, %cst_386 {dimension_numbers = #tpu.dot_dimension_numbers<[1], [0], [0], [1], [0, 0, 1, 1], [], []>} : vector<4x4xf32>, vector<4x128xf32>, vector<4x128xf32> -> vector<4x128xf32>
    %859 = arith.addf %840, %858 : vector<4x128xf32>
    %860 = vector.extract_strided_slice %847 {offsets = [12, 0], sizes = [4, 4], strides = [1, 1]} : vector<16x4xf32> to vector<4x4xf32>
    %861 = vector.extract_strided_slice %845 {offsets = [12, 0], sizes = [4, 128], strides = [1, 1]} : vector<16x128xf32> to vector<4x128xf32>
    %cst_387 = arith.constant dense<0.000000e+00> : vector<4x128xf32>
    %862 = tpu.matmul %860, %861, %cst_387 {dimension_numbers = #tpu.dot_dimension_numbers<[1], [0], [0], [1], [0, 0, 1, 1], [], []>} : vector<4x4xf32>, vector<4x128xf32>, vector<4x128xf32> -> vector<4x128xf32>
    %863 = arith.addf %844, %862 : vector<4x128xf32>
    %c124_i32_388 = arith.constant 124 : i32
    %864 = tpu.dynamic_rotate %781 by %c124_i32_388 dim 1 : vector<16x128xf32>, i32 -> vector<16x128xf32>
    %c4_389 = arith.constant 4 : index
    %c0_390 = arith.constant 0 : index
    %c0_391 = arith.constant 0 : index
    %865 = vector.load %arg10[%c4_389, %c0_390, %c0_391] : memref<11x16x4xf32, #tpu.memory_space<vmem>>, vector<1x16x4xf32>
    %866 = vector.shape_cast %865 : vector<1x16x4xf32> to vector<16x4xf32>
    %867 = vector.extract_strided_slice %866 {offsets = [0, 0], sizes = [4, 4], strides = [1, 1]} : vector<16x4xf32> to vector<4x4xf32>
    %868 = vector.extract_strided_slice %864 {offsets = [0, 0], sizes = [4, 128], strides = [1, 1]} : vector<16x128xf32> to vector<4x128xf32>
    %cst_392 = arith.constant dense<0.000000e+00> : vector<4x128xf32>
    %869 = tpu.matmul %867, %868, %cst_392 {dimension_numbers = #tpu.dot_dimension_numbers<[1], [0], [0], [1], [0, 0, 1, 1], [], []>} : vector<4x4xf32>, vector<4x128xf32>, vector<4x128xf32> -> vector<4x128xf32>
    %870 = arith.addf %851, %869 : vector<4x128xf32>
    %871 = vector.extract_strided_slice %866 {offsets = [4, 0], sizes = [4, 4], strides = [1, 1]} : vector<16x4xf32> to vector<4x4xf32>
    %872 = vector.extract_strided_slice %864 {offsets = [4, 0], sizes = [4, 128], strides = [1, 1]} : vector<16x128xf32> to vector<4x128xf32>
    %cst_393 = arith.constant dense<0.000000e+00> : vector<4x128xf32>
    %873 = tpu.matmul %871, %872, %cst_393 {dimension_numbers = #tpu.dot_dimension_numbers<[1], [0], [0], [1], [0, 0, 1, 1], [], []>} : vector<4x4xf32>, vector<4x128xf32>, vector<4x128xf32> -> vector<4x128xf32>
    %874 = arith.addf %855, %873 : vector<4x128xf32>
    %875 = vector.extract_strided_slice %866 {offsets = [8, 0], sizes = [4, 4], strides = [1, 1]} : vector<16x4xf32> to vector<4x4xf32>
    %876 = vector.extract_strided_slice %864 {offsets = [8, 0], sizes = [4, 128], strides = [1, 1]} : vector<16x128xf32> to vector<4x128xf32>
    %cst_394 = arith.constant dense<0.000000e+00> : vector<4x128xf32>
    %877 = tpu.matmul %875, %876, %cst_394 {dimension_numbers = #tpu.dot_dimension_numbers<[1], [0], [0], [1], [0, 0, 1, 1], [], []>} : vector<4x4xf32>, vector<4x128xf32>, vector<4x128xf32> -> vector<4x128xf32>
    %878 = arith.addf %859, %877 : vector<4x128xf32>
    %879 = vector.extract_strided_slice %866 {offsets = [12, 0], sizes = [4, 4], strides = [1, 1]} : vector<16x4xf32> to vector<4x4xf32>
    %880 = vector.extract_strided_slice %864 {offsets = [12, 0], sizes = [4, 128], strides = [1, 1]} : vector<16x128xf32> to vector<4x128xf32>
    %cst_395 = arith.constant dense<0.000000e+00> : vector<4x128xf32>
    %881 = tpu.matmul %879, %880, %cst_395 {dimension_numbers = #tpu.dot_dimension_numbers<[1], [0], [0], [1], [0, 0, 1, 1], [], []>} : vector<4x4xf32>, vector<4x128xf32>, vector<4x128xf32> -> vector<4x128xf32>
    %882 = arith.addf %863, %881 : vector<4x128xf32>
    %c123_i32_396 = arith.constant 123 : i32
    %883 = tpu.dynamic_rotate %781 by %c123_i32_396 dim 1 : vector<16x128xf32>, i32 -> vector<16x128xf32>
    %c5_397 = arith.constant 5 : index
    %c0_398 = arith.constant 0 : index
    %c0_399 = arith.constant 0 : index
    %884 = vector.load %arg10[%c5_397, %c0_398, %c0_399] : memref<11x16x4xf32, #tpu.memory_space<vmem>>, vector<1x16x4xf32>
    %885 = vector.shape_cast %884 : vector<1x16x4xf32> to vector<16x4xf32>
    %886 = vector.extract_strided_slice %885 {offsets = [0, 0], sizes = [4, 4], strides = [1, 1]} : vector<16x4xf32> to vector<4x4xf32>
    %887 = vector.extract_strided_slice %883 {offsets = [0, 0], sizes = [4, 128], strides = [1, 1]} : vector<16x128xf32> to vector<4x128xf32>
    %cst_400 = arith.constant dense<0.000000e+00> : vector<4x128xf32>
    %888 = tpu.matmul %886, %887, %cst_400 {dimension_numbers = #tpu.dot_dimension_numbers<[1], [0], [0], [1], [0, 0, 1, 1], [], []>} : vector<4x4xf32>, vector<4x128xf32>, vector<4x128xf32> -> vector<4x128xf32>
    %889 = arith.addf %870, %888 : vector<4x128xf32>
    %890 = vector.extract_strided_slice %885 {offsets = [4, 0], sizes = [4, 4], strides = [1, 1]} : vector<16x4xf32> to vector<4x4xf32>
    %891 = vector.extract_strided_slice %883 {offsets = [4, 0], sizes = [4, 128], strides = [1, 1]} : vector<16x128xf32> to vector<4x128xf32>
    %cst_401 = arith.constant dense<0.000000e+00> : vector<4x128xf32>
    %892 = tpu.matmul %890, %891, %cst_401 {dimension_numbers = #tpu.dot_dimension_numbers<[1], [0], [0], [1], [0, 0, 1, 1], [], []>} : vector<4x4xf32>, vector<4x128xf32>, vector<4x128xf32> -> vector<4x128xf32>
    %893 = arith.addf %874, %892 : vector<4x128xf32>
    %894 = vector.extract_strided_slice %885 {offsets = [8, 0], sizes = [4, 4], strides = [1, 1]} : vector<16x4xf32> to vector<4x4xf32>
    %895 = vector.extract_strided_slice %883 {offsets = [8, 0], sizes = [4, 128], strides = [1, 1]} : vector<16x128xf32> to vector<4x128xf32>
    %cst_402 = arith.constant dense<0.000000e+00> : vector<4x128xf32>
    %896 = tpu.matmul %894, %895, %cst_402 {dimension_numbers = #tpu.dot_dimension_numbers<[1], [0], [0], [1], [0, 0, 1, 1], [], []>} : vector<4x4xf32>, vector<4x128xf32>, vector<4x128xf32> -> vector<4x128xf32>
    %897 = arith.addf %878, %896 : vector<4x128xf32>
    %898 = vector.extract_strided_slice %885 {offsets = [12, 0], sizes = [4, 4], strides = [1, 1]} : vector<16x4xf32> to vector<4x4xf32>
    %899 = vector.extract_strided_slice %883 {offsets = [12, 0], sizes = [4, 128], strides = [1, 1]} : vector<16x128xf32> to vector<4x128xf32>
    %cst_403 = arith.constant dense<0.000000e+00> : vector<4x128xf32>
    %900 = tpu.matmul %898, %899, %cst_403 {dimension_numbers = #tpu.dot_dimension_numbers<[1], [0], [0], [1], [0, 0, 1, 1], [], []>} : vector<4x4xf32>, vector<4x128xf32>, vector<4x128xf32> -> vector<4x128xf32>
    %901 = arith.addf %882, %900 : vector<4x128xf32>
    %c122_i32_404 = arith.constant 122 : i32
    %902 = tpu.dynamic_rotate %781 by %c122_i32_404 dim 1 : vector<16x128xf32>, i32 -> vector<16x128xf32>
    %c6_405 = arith.constant 6 : index
    %c0_406 = arith.constant 0 : index
    %c0_407 = arith.constant 0 : index
    %903 = vector.load %arg10[%c6_405, %c0_406, %c0_407] : memref<11x16x4xf32, #tpu.memory_space<vmem>>, vector<1x16x4xf32>
    %904 = vector.shape_cast %903 : vector<1x16x4xf32> to vector<16x4xf32>
    %905 = vector.extract_strided_slice %904 {offsets = [0, 0], sizes = [4, 4], strides = [1, 1]} : vector<16x4xf32> to vector<4x4xf32>
    %906 = vector.extract_strided_slice %902 {offsets = [0, 0], sizes = [4, 128], strides = [1, 1]} : vector<16x128xf32> to vector<4x128xf32>
    %cst_408 = arith.constant dense<0.000000e+00> : vector<4x128xf32>
    %907 = tpu.matmul %905, %906, %cst_408 {dimension_numbers = #tpu.dot_dimension_numbers<[1], [0], [0], [1], [0, 0, 1, 1], [], []>} : vector<4x4xf32>, vector<4x128xf32>, vector<4x128xf32> -> vector<4x128xf32>
    %908 = arith.addf %889, %907 : vector<4x128xf32>
    %909 = vector.extract_strided_slice %904 {offsets = [4, 0], sizes = [4, 4], strides = [1, 1]} : vector<16x4xf32> to vector<4x4xf32>
    %910 = vector.extract_strided_slice %902 {offsets = [4, 0], sizes = [4, 128], strides = [1, 1]} : vector<16x128xf32> to vector<4x128xf32>
    %cst_409 = arith.constant dense<0.000000e+00> : vector<4x128xf32>
    %911 = tpu.matmul %909, %910, %cst_409 {dimension_numbers = #tpu.dot_dimension_numbers<[1], [0], [0], [1], [0, 0, 1, 1], [], []>} : vector<4x4xf32>, vector<4x128xf32>, vector<4x128xf32> -> vector<4x128xf32>
    %912 = arith.addf %893, %911 : vector<4x128xf32>
    %913 = vector.extract_strided_slice %904 {offsets = [8, 0], sizes = [4, 4], strides = [1, 1]} : vector<16x4xf32> to vector<4x4xf32>
    %914 = vector.extract_strided_slice %902 {offsets = [8, 0], sizes = [4, 128], strides = [1, 1]} : vector<16x128xf32> to vector<4x128xf32>
    %cst_410 = arith.constant dense<0.000000e+00> : vector<4x128xf32>
    %915 = tpu.matmul %913, %914, %cst_410 {dimension_numbers = #tpu.dot_dimension_numbers<[1], [0], [0], [1], [0, 0, 1, 1], [], []>} : vector<4x4xf32>, vector<4x128xf32>, vector<4x128xf32> -> vector<4x128xf32>
    %916 = arith.addf %897, %915 : vector<4x128xf32>
    %917 = vector.extract_strided_slice %904 {offsets = [12, 0], sizes = [4, 4], strides = [1, 1]} : vector<16x4xf32> to vector<4x4xf32>
    %918 = vector.extract_strided_slice %902 {offsets = [12, 0], sizes = [4, 128], strides = [1, 1]} : vector<16x128xf32> to vector<4x128xf32>
    %cst_411 = arith.constant dense<0.000000e+00> : vector<4x128xf32>
    %919 = tpu.matmul %917, %918, %cst_411 {dimension_numbers = #tpu.dot_dimension_numbers<[1], [0], [0], [1], [0, 0, 1, 1], [], []>} : vector<4x4xf32>, vector<4x128xf32>, vector<4x128xf32> -> vector<4x128xf32>
    %920 = arith.addf %901, %919 : vector<4x128xf32>
    %c121_i32_412 = arith.constant 121 : i32
    %921 = tpu.dynamic_rotate %781 by %c121_i32_412 dim 1 : vector<16x128xf32>, i32 -> vector<16x128xf32>
    %c7_413 = arith.constant 7 : index
    %c0_414 = arith.constant 0 : index
    %c0_415 = arith.constant 0 : index
    %922 = vector.load %arg10[%c7_413, %c0_414, %c0_415] : memref<11x16x4xf32, #tpu.memory_space<vmem>>, vector<1x16x4xf32>
    %923 = vector.shape_cast %922 : vector<1x16x4xf32> to vector<16x4xf32>
    %924 = vector.extract_strided_slice %923 {offsets = [0, 0], sizes = [4, 4], strides = [1, 1]} : vector<16x4xf32> to vector<4x4xf32>
    %925 = vector.extract_strided_slice %921 {offsets = [0, 0], sizes = [4, 128], strides = [1, 1]} : vector<16x128xf32> to vector<4x128xf32>
    %cst_416 = arith.constant dense<0.000000e+00> : vector<4x128xf32>
    %926 = tpu.matmul %924, %925, %cst_416 {dimension_numbers = #tpu.dot_dimension_numbers<[1], [0], [0], [1], [0, 0, 1, 1], [], []>} : vector<4x4xf32>, vector<4x128xf32>, vector<4x128xf32> -> vector<4x128xf32>
    %927 = arith.addf %908, %926 : vector<4x128xf32>
    %928 = vector.extract_strided_slice %923 {offsets = [4, 0], sizes = [4, 4], strides = [1, 1]} : vector<16x4xf32> to vector<4x4xf32>
    %929 = vector.extract_strided_slice %921 {offsets = [4, 0], sizes = [4, 128], strides = [1, 1]} : vector<16x128xf32> to vector<4x128xf32>
    %cst_417 = arith.constant dense<0.000000e+00> : vector<4x128xf32>
    %930 = tpu.matmul %928, %929, %cst_417 {dimension_numbers = #tpu.dot_dimension_numbers<[1], [0], [0], [1], [0, 0, 1, 1], [], []>} : vector<4x4xf32>, vector<4x128xf32>, vector<4x128xf32> -> vector<4x128xf32>
    %931 = arith.addf %912, %930 : vector<4x128xf32>
    %932 = vector.extract_strided_slice %923 {offsets = [8, 0], sizes = [4, 4], strides = [1, 1]} : vector<16x4xf32> to vector<4x4xf32>
    %933 = vector.extract_strided_slice %921 {offsets = [8, 0], sizes = [4, 128], strides = [1, 1]} : vector<16x128xf32> to vector<4x128xf32>
    %cst_418 = arith.constant dense<0.000000e+00> : vector<4x128xf32>
    %934 = tpu.matmul %932, %933, %cst_418 {dimension_numbers = #tpu.dot_dimension_numbers<[1], [0], [0], [1], [0, 0, 1, 1], [], []>} : vector<4x4xf32>, vector<4x128xf32>, vector<4x128xf32> -> vector<4x128xf32>
    %935 = arith.addf %916, %934 : vector<4x128xf32>
    %936 = vector.extract_strided_slice %923 {offsets = [12, 0], sizes = [4, 4], strides = [1, 1]} : vector<16x4xf32> to vector<4x4xf32>
    %937 = vector.extract_strided_slice %921 {offsets = [12, 0], sizes = [4, 128], strides = [1, 1]} : vector<16x128xf32> to vector<4x128xf32>
    %cst_419 = arith.constant dense<0.000000e+00> : vector<4x128xf32>
    %938 = tpu.matmul %936, %937, %cst_419 {dimension_numbers = #tpu.dot_dimension_numbers<[1], [0], [0], [1], [0, 0, 1, 1], [], []>} : vector<4x4xf32>, vector<4x128xf32>, vector<4x128xf32> -> vector<4x128xf32>
    %939 = arith.addf %920, %938 : vector<4x128xf32>
    %c120_i32_420 = arith.constant 120 : i32
    %940 = tpu.dynamic_rotate %781 by %c120_i32_420 dim 1 : vector<16x128xf32>, i32 -> vector<16x128xf32>
    %c8_421 = arith.constant 8 : index
    %c0_422 = arith.constant 0 : index
    %c0_423 = arith.constant 0 : index
    %941 = vector.load %arg10[%c8_421, %c0_422, %c0_423] : memref<11x16x4xf32, #tpu.memory_space<vmem>>, vector<1x16x4xf32>
    %942 = vector.shape_cast %941 : vector<1x16x4xf32> to vector<16x4xf32>
    %943 = vector.extract_strided_slice %942 {offsets = [0, 0], sizes = [4, 4], strides = [1, 1]} : vector<16x4xf32> to vector<4x4xf32>
    %944 = vector.extract_strided_slice %940 {offsets = [0, 0], sizes = [4, 128], strides = [1, 1]} : vector<16x128xf32> to vector<4x128xf32>
    %cst_424 = arith.constant dense<0.000000e+00> : vector<4x128xf32>
    %945 = tpu.matmul %943, %944, %cst_424 {dimension_numbers = #tpu.dot_dimension_numbers<[1], [0], [0], [1], [0, 0, 1, 1], [], []>} : vector<4x4xf32>, vector<4x128xf32>, vector<4x128xf32> -> vector<4x128xf32>
    %946 = arith.addf %927, %945 : vector<4x128xf32>
    %947 = vector.extract_strided_slice %942 {offsets = [4, 0], sizes = [4, 4], strides = [1, 1]} : vector<16x4xf32> to vector<4x4xf32>
    %948 = vector.extract_strided_slice %940 {offsets = [4, 0], sizes = [4, 128], strides = [1, 1]} : vector<16x128xf32> to vector<4x128xf32>
    %cst_425 = arith.constant dense<0.000000e+00> : vector<4x128xf32>
    %949 = tpu.matmul %947, %948, %cst_425 {dimension_numbers = #tpu.dot_dimension_numbers<[1], [0], [0], [1], [0, 0, 1, 1], [], []>} : vector<4x4xf32>, vector<4x128xf32>, vector<4x128xf32> -> vector<4x128xf32>
    %950 = arith.addf %931, %949 : vector<4x128xf32>
    %951 = vector.extract_strided_slice %942 {offsets = [8, 0], sizes = [4, 4], strides = [1, 1]} : vector<16x4xf32> to vector<4x4xf32>
    %952 = vector.extract_strided_slice %940 {offsets = [8, 0], sizes = [4, 128], strides = [1, 1]} : vector<16x128xf32> to vector<4x128xf32>
    %cst_426 = arith.constant dense<0.000000e+00> : vector<4x128xf32>
    %953 = tpu.matmul %951, %952, %cst_426 {dimension_numbers = #tpu.dot_dimension_numbers<[1], [0], [0], [1], [0, 0, 1, 1], [], []>} : vector<4x4xf32>, vector<4x128xf32>, vector<4x128xf32> -> vector<4x128xf32>
    %954 = arith.addf %935, %953 : vector<4x128xf32>
    %955 = vector.extract_strided_slice %942 {offsets = [12, 0], sizes = [4, 4], strides = [1, 1]} : vector<16x4xf32> to vector<4x4xf32>
    %956 = vector.extract_strided_slice %940 {offsets = [12, 0], sizes = [4, 128], strides = [1, 1]} : vector<16x128xf32> to vector<4x128xf32>
    %cst_427 = arith.constant dense<0.000000e+00> : vector<4x128xf32>
    %957 = tpu.matmul %955, %956, %cst_427 {dimension_numbers = #tpu.dot_dimension_numbers<[1], [0], [0], [1], [0, 0, 1, 1], [], []>} : vector<4x4xf32>, vector<4x128xf32>, vector<4x128xf32> -> vector<4x128xf32>
    %958 = arith.addf %939, %957 : vector<4x128xf32>
    %c119_i32_428 = arith.constant 119 : i32
    %959 = tpu.dynamic_rotate %781 by %c119_i32_428 dim 1 : vector<16x128xf32>, i32 -> vector<16x128xf32>
    %c9_429 = arith.constant 9 : index
    %c0_430 = arith.constant 0 : index
    %c0_431 = arith.constant 0 : index
    %960 = vector.load %arg10[%c9_429, %c0_430, %c0_431] : memref<11x16x4xf32, #tpu.memory_space<vmem>>, vector<1x16x4xf32>
    %961 = vector.shape_cast %960 : vector<1x16x4xf32> to vector<16x4xf32>
    %962 = vector.extract_strided_slice %961 {offsets = [0, 0], sizes = [4, 4], strides = [1, 1]} : vector<16x4xf32> to vector<4x4xf32>
    %963 = vector.extract_strided_slice %959 {offsets = [0, 0], sizes = [4, 128], strides = [1, 1]} : vector<16x128xf32> to vector<4x128xf32>
    %cst_432 = arith.constant dense<0.000000e+00> : vector<4x128xf32>
    %964 = tpu.matmul %962, %963, %cst_432 {dimension_numbers = #tpu.dot_dimension_numbers<[1], [0], [0], [1], [0, 0, 1, 1], [], []>} : vector<4x4xf32>, vector<4x128xf32>, vector<4x128xf32> -> vector<4x128xf32>
    %965 = arith.addf %946, %964 : vector<4x128xf32>
    %966 = vector.extract_strided_slice %961 {offsets = [4, 0], sizes = [4, 4], strides = [1, 1]} : vector<16x4xf32> to vector<4x4xf32>
    %967 = vector.extract_strided_slice %959 {offsets = [4, 0], sizes = [4, 128], strides = [1, 1]} : vector<16x128xf32> to vector<4x128xf32>
    %cst_433 = arith.constant dense<0.000000e+00> : vector<4x128xf32>
    %968 = tpu.matmul %966, %967, %cst_433 {dimension_numbers = #tpu.dot_dimension_numbers<[1], [0], [0], [1], [0, 0, 1, 1], [], []>} : vector<4x4xf32>, vector<4x128xf32>, vector<4x128xf32> -> vector<4x128xf32>
    %969 = arith.addf %950, %968 : vector<4x128xf32>
    %970 = vector.extract_strided_slice %961 {offsets = [8, 0], sizes = [4, 4], strides = [1, 1]} : vector<16x4xf32> to vector<4x4xf32>
    %971 = vector.extract_strided_slice %959 {offsets = [8, 0], sizes = [4, 128], strides = [1, 1]} : vector<16x128xf32> to vector<4x128xf32>
    %cst_434 = arith.constant dense<0.000000e+00> : vector<4x128xf32>
    %972 = tpu.matmul %970, %971, %cst_434 {dimension_numbers = #tpu.dot_dimension_numbers<[1], [0], [0], [1], [0, 0, 1, 1], [], []>} : vector<4x4xf32>, vector<4x128xf32>, vector<4x128xf32> -> vector<4x128xf32>
    %973 = arith.addf %954, %972 : vector<4x128xf32>
    %974 = vector.extract_strided_slice %961 {offsets = [12, 0], sizes = [4, 4], strides = [1, 1]} : vector<16x4xf32> to vector<4x4xf32>
    %975 = vector.extract_strided_slice %959 {offsets = [12, 0], sizes = [4, 128], strides = [1, 1]} : vector<16x128xf32> to vector<4x128xf32>
    %cst_435 = arith.constant dense<0.000000e+00> : vector<4x128xf32>
    %976 = tpu.matmul %974, %975, %cst_435 {dimension_numbers = #tpu.dot_dimension_numbers<[1], [0], [0], [1], [0, 0, 1, 1], [], []>} : vector<4x4xf32>, vector<4x128xf32>, vector<4x128xf32> -> vector<4x128xf32>
    %977 = arith.addf %958, %976 : vector<4x128xf32>
    %c118_i32_436 = arith.constant 118 : i32
    %978 = tpu.dynamic_rotate %781 by %c118_i32_436 dim 1 : vector<16x128xf32>, i32 -> vector<16x128xf32>
    %c10_437 = arith.constant 10 : index
    %c0_438 = arith.constant 0 : index
    %c0_439 = arith.constant 0 : index
    %979 = vector.load %arg10[%c10_437, %c0_438, %c0_439] : memref<11x16x4xf32, #tpu.memory_space<vmem>>, vector<1x16x4xf32>
    %980 = vector.shape_cast %979 : vector<1x16x4xf32> to vector<16x4xf32>
    %981 = vector.extract_strided_slice %980 {offsets = [0, 0], sizes = [4, 4], strides = [1, 1]} : vector<16x4xf32> to vector<4x4xf32>
    %982 = vector.extract_strided_slice %978 {offsets = [0, 0], sizes = [4, 128], strides = [1, 1]} : vector<16x128xf32> to vector<4x128xf32>
    %cst_440 = arith.constant dense<0.000000e+00> : vector<4x128xf32>
    %983 = tpu.matmul %981, %982, %cst_440 {dimension_numbers = #tpu.dot_dimension_numbers<[1], [0], [0], [1], [0, 0, 1, 1], [], []>} : vector<4x4xf32>, vector<4x128xf32>, vector<4x128xf32> -> vector<4x128xf32>
    %984 = arith.addf %965, %983 : vector<4x128xf32>
    %985 = vector.extract_strided_slice %980 {offsets = [4, 0], sizes = [4, 4], strides = [1, 1]} : vector<16x4xf32> to vector<4x4xf32>
    %986 = vector.extract_strided_slice %978 {offsets = [4, 0], sizes = [4, 128], strides = [1, 1]} : vector<16x128xf32> to vector<4x128xf32>
    %cst_441 = arith.constant dense<0.000000e+00> : vector<4x128xf32>
    %987 = tpu.matmul %985, %986, %cst_441 {dimension_numbers = #tpu.dot_dimension_numbers<[1], [0], [0], [1], [0, 0, 1, 1], [], []>} : vector<4x4xf32>, vector<4x128xf32>, vector<4x128xf32> -> vector<4x128xf32>
    %988 = arith.addf %969, %987 : vector<4x128xf32>
    %989 = vector.extract_strided_slice %980 {offsets = [8, 0], sizes = [4, 4], strides = [1, 1]} : vector<16x4xf32> to vector<4x4xf32>
    %990 = vector.extract_strided_slice %978 {offsets = [8, 0], sizes = [4, 128], strides = [1, 1]} : vector<16x128xf32> to vector<4x128xf32>
    %cst_442 = arith.constant dense<0.000000e+00> : vector<4x128xf32>
    %991 = tpu.matmul %989, %990, %cst_442 {dimension_numbers = #tpu.dot_dimension_numbers<[1], [0], [0], [1], [0, 0, 1, 1], [], []>} : vector<4x4xf32>, vector<4x128xf32>, vector<4x128xf32> -> vector<4x128xf32>
    %992 = arith.addf %973, %991 : vector<4x128xf32>
    %993 = vector.extract_strided_slice %980 {offsets = [12, 0], sizes = [4, 4], strides = [1, 1]} : vector<16x4xf32> to vector<4x4xf32>
    %994 = vector.extract_strided_slice %978 {offsets = [12, 0], sizes = [4, 128], strides = [1, 1]} : vector<16x128xf32> to vector<4x128xf32>
    %cst_443 = arith.constant dense<0.000000e+00> : vector<4x128xf32>
    %995 = tpu.matmul %993, %994, %cst_443 {dimension_numbers = #tpu.dot_dimension_numbers<[1], [0], [0], [1], [0, 0, 1, 1], [], []>} : vector<4x4xf32>, vector<4x128xf32>, vector<4x128xf32> -> vector<4x128xf32>
    %996 = arith.addf %977, %995 : vector<4x128xf32>
    %997 = tpu.concatenate %984, %988, %992, %996 in 0 : vector<4x128xf32>, vector<4x128xf32>, vector<4x128xf32>, vector<4x128xf32> -> vector<16x128xf32>
    %c0_444 = arith.constant 0 : index
    %c0_445 = arith.constant 0 : index
    %998 = vector.load %arg11[%c0_444, %c0_445] : memref<16x1xf32, #tpu.memory_space<vmem>>, vector<16x1xf32>
    %999 = vector.broadcast %998 : vector<16x1xf32> to vector<16x128xf32>
    %1000 = arith.addf %997, %999 : vector<16x128xf32>
    %cst_446 = arith.constant 0.000000e+00 : f32
    %1001 = vector.broadcast %cst_446 : f32 to vector<16x128xf32>
    %1002 = arith.cmpf oge, %1000, %1001 : vector<16x128xf32>
    %cst_447 = arith.constant 2.000000e-01 : f32
    %1003 = vector.broadcast %cst_447 : f32 to vector<16x128xf32>
    %1004 = arith.mulf %1003, %1000 : vector<16x128xf32>
    %1005 = arith.select %1002, %1000, %1004 : vector<16x128xi1>, vector<16x128xf32>
    %c38_i32 = arith.constant 38 : i32
    %1006 = vector.broadcast %c38_i32 : i32 to vector<1x128xi32>
    %1007 = arith.cmpi slt, %0, %1006 : vector<1x128xi32>
    %cst_448 = arith.constant 0.000000e+00 : f32
    %1008 = vector.shape_cast %1007 : vector<1x128xi1> to vector<1x128xi1>
    %1009 = vector.broadcast %1008 : vector<1x128xi1> to vector<16x128xi1>
    %1010 = vector.broadcast %cst_448 : f32 to vector<16x128xf32>
    %1011 = arith.select %1009, %1005, %1010 : vector<16x128xi1>, vector<16x128xf32>
    %c0_449 = arith.constant 0 : index
    %c0_450 = arith.constant 0 : index
    %c0_451 = arith.constant 0 : index
    %1012 = vector.load %arg20[%c0_449, %c0_450, %c0_451] : memref<1x16x128xf32, #tpu.memory_space<vmem>>, vector<1x16x128xf32>
    %1013 = vector.shape_cast %1012 : vector<1x16x128xf32> to vector<16x128xf32>
    %1014 = vector.shape_cast %1011 : vector<16x128xf32> to vector<1x16x128xf32>
    tpu.vector_store %arg20[%c0_449, %c0_450, %c0_451], %1014 {strides = array<i32>} : memref<1x16x128xf32, #tpu.memory_space<vmem>>, vector<1x16x128xf32>,
    %cst_452 = arith.constant 0.000000e+00 : f32
    %1015 = vector.broadcast %cst_452 : f32 to vector<32x128xf32>
    %c2_i32 = arith.constant 2 : i32
    %1016 = tpu.dynamic_rotate %1011 by %c2_i32 dim 1 : vector<16x128xf32>, i32 -> vector<16x128xf32>
    %c0_453 = arith.constant 0 : index
    %c0_454 = arith.constant 0 : index
    %c0_455 = arith.constant 0 : index
    %1017 = vector.load %arg12[%c0_453, %c0_454, %c0_455] : memref<5x32x16xf32, #tpu.memory_space<vmem>>, vector<1x32x16xf32>
    %1018 = vector.shape_cast %1017 : vector<1x32x16xf32> to vector<32x16xf32>
    %cst_456 = arith.constant dense<0.000000e+00> : vector<32x128xf32>
    %1019 = tpu.matmul %1018, %1016, %cst_456 {dimension_numbers = #tpu.dot_dimension_numbers<[1], [0], [0], [1], [0, 0, 1, 1], [], []>} : vector<32x16xf32>, vector<16x128xf32>, vector<32x128xf32> -> vector<32x128xf32>
    %1020 = arith.addf %1015, %1019 : vector<32x128xf32>
    %c1_i32 = arith.constant 1 : i32
    %1021 = tpu.dynamic_rotate %1011 by %c1_i32 dim 1 : vector<16x128xf32>, i32 -> vector<16x128xf32>
    %c1_457 = arith.constant 1 : index
    %c0_458 = arith.constant 0 : index
    %c0_459 = arith.constant 0 : index
    %1022 = vector.load %arg12[%c1_457, %c0_458, %c0_459] : memref<5x32x16xf32, #tpu.memory_space<vmem>>, vector<1x32x16xf32>
    %1023 = vector.shape_cast %1022 : vector<1x32x16xf32> to vector<32x16xf32>
    %cst_460 = arith.constant dense<0.000000e+00> : vector<32x128xf32>
    %1024 = tpu.matmul %1023, %1021, %cst_460 {dimension_numbers = #tpu.dot_dimension_numbers<[1], [0], [0], [1], [0, 0, 1, 1], [], []>} : vector<32x16xf32>, vector<16x128xf32>, vector<32x128xf32> -> vector<32x128xf32>
    %1025 = arith.addf %1020, %1024 : vector<32x128xf32>
    %c2_461 = arith.constant 2 : index
    %c0_462 = arith.constant 0 : index
    %c0_463 = arith.constant 0 : index
    %1026 = vector.load %arg12[%c2_461, %c0_462, %c0_463] : memref<5x32x16xf32, #tpu.memory_space<vmem>>, vector<1x32x16xf32>
    %1027 = vector.shape_cast %1026 : vector<1x32x16xf32> to vector<32x16xf32>
    %cst_464 = arith.constant dense<0.000000e+00> : vector<32x128xf32>
    %1028 = tpu.matmul %1027, %1011, %cst_464 {dimension_numbers = #tpu.dot_dimension_numbers<[1], [0], [0], [1], [0, 0, 1, 1], [], []>} : vector<32x16xf32>, vector<16x128xf32>, vector<32x128xf32> -> vector<32x128xf32>
    %1029 = arith.addf %1025, %1028 : vector<32x128xf32>
    %c127_i32_465 = arith.constant 127 : i32
    %1030 = tpu.dynamic_rotate %1011 by %c127_i32_465 dim 1 : vector<16x128xf32>, i32 -> vector<16x128xf32>
    %c3_466 = arith.constant 3 : index
    %c0_467 = arith.constant 0 : index
    %c0_468 = arith.constant 0 : index
    %1031 = vector.load %arg12[%c3_466, %c0_467, %c0_468] : memref<5x32x16xf32, #tpu.memory_space<vmem>>, vector<1x32x16xf32>
    %1032 = vector.shape_cast %1031 : vector<1x32x16xf32> to vector<32x16xf32>
    %cst_469 = arith.constant dense<0.000000e+00> : vector<32x128xf32>
    %1033 = tpu.matmul %1032, %1030, %cst_469 {dimension_numbers = #tpu.dot_dimension_numbers<[1], [0], [0], [1], [0, 0, 1, 1], [], []>} : vector<32x16xf32>, vector<16x128xf32>, vector<32x128xf32> -> vector<32x128xf32>
    %1034 = arith.addf %1029, %1033 : vector<32x128xf32>
    %c126_i32_470 = arith.constant 126 : i32
    %1035 = tpu.dynamic_rotate %1011 by %c126_i32_470 dim 1 : vector<16x128xf32>, i32 -> vector<16x128xf32>
    %c4_471 = arith.constant 4 : index
    %c0_472 = arith.constant 0 : index
    %c0_473 = arith.constant 0 : index
    %1036 = vector.load %arg12[%c4_471, %c0_472, %c0_473] : memref<5x32x16xf32, #tpu.memory_space<vmem>>, vector<1x32x16xf32>
    %1037 = vector.shape_cast %1036 : vector<1x32x16xf32> to vector<32x16xf32>
    %cst_474 = arith.constant dense<0.000000e+00> : vector<32x128xf32>
    %1038 = tpu.matmul %1037, %1035, %cst_474 {dimension_numbers = #tpu.dot_dimension_numbers<[1], [0], [0], [1], [0, 0, 1, 1], [], []>} : vector<32x16xf32>, vector<16x128xf32>, vector<32x128xf32> -> vector<32x128xf32>
    %1039 = arith.addf %1034, %1038 : vector<32x128xf32>
    %c0_475 = arith.constant 0 : index
    %c0_476 = arith.constant 0 : index
    %1040 = vector.load %arg13[%c0_475, %c0_476] : memref<32x1xf32, #tpu.memory_space<vmem>>, vector<32x1xf32>
    %1041 = vector.broadcast %1040 : vector<32x1xf32> to vector<32x128xf32>
    %1042 = arith.addf %1039, %1041 : vector<32x128xf32>
    %cst_477 = arith.constant 0.000000e+00 : f32
    %1043 = vector.broadcast %cst_477 : f32 to vector<32x128xf32>
    %1044 = arith.maximumf %1042, %1043 : vector<32x128xf32>
    %c38_i32_478 = arith.constant 38 : i32
    %1045 = vector.broadcast %c38_i32_478 : i32 to vector<1x128xi32>
    %1046 = arith.cmpi slt, %0, %1045 : vector<1x128xi32>
    %cst_479 = arith.constant 0.000000e+00 : f32
    %1047 = vector.shape_cast %1046 : vector<1x128xi1> to vector<1x128xi1>
    %1048 = vector.broadcast %1047 : vector<1x128xi1> to vector<32x128xi1>
    %1049 = vector.broadcast %cst_479 : f32 to vector<32x128xf32>
    %1050 = arith.select %1048, %1044, %1049 : vector<32x128xi1>, vector<32x128xf32>
    %c0_480 = arith.constant 0 : index
    %c0_481 = arith.constant 0 : index
    %c0_482 = arith.constant 0 : index
    %1051 = vector.load %arg21[%c0_480, %c0_481, %c0_482] : memref<1x32x128xf32, #tpu.memory_space<vmem>>, vector<1x32x128xf32>
    %1052 = vector.shape_cast %1051 : vector<1x32x128xf32> to vector<32x128xf32>
    %1053 = vector.shape_cast %1050 : vector<32x128xf32> to vector<1x32x128xf32>
    tpu.vector_store %arg21[%c0_480, %c0_481, %c0_482], %1053 {strides = array<i32>} : memref<1x32x128xf32, #tpu.memory_space<vmem>>, vector<1x32x128xf32>,
    %cst_483 = arith.constant 0.000000e+00 : f32
    %1054 = vector.broadcast %cst_483 : f32 to vector<8x128xf32>
    %c1_i32_484 = arith.constant 1 : i32
    %1055 = tpu.dynamic_rotate %1050 by %c1_i32_484 dim 1 : vector<32x128xf32>, i32 -> vector<32x128xf32>
    %c0_485 = arith.constant 0 : index
    %c0_486 = arith.constant 0 : index
    %c0_487 = arith.constant 0 : index
    %1056 = vector.load %arg14[%c0_485, %c0_486, %c0_487] : memref<3x8x32xf32, #tpu.memory_space<vmem>>, vector<1x8x32xf32>
    %1057 = vector.shape_cast %1056 : vector<1x8x32xf32> to vector<8x32xf32>
    %cst_488 = arith.constant dense<0.000000e+00> : vector<8x128xf32>
    %1058 = tpu.matmul %1057, %1055, %cst_488 {dimension_numbers = #tpu.dot_dimension_numbers<[1], [0], [0], [1], [0, 0, 1, 1], [], []>} : vector<8x32xf32>, vector<32x128xf32>, vector<8x128xf32> -> vector<8x128xf32>
    %1059 = arith.addf %1054, %1058 : vector<8x128xf32>
    %c1_489 = arith.constant 1 : index
    %c0_490 = arith.constant 0 : index
    %c0_491 = arith.constant 0 : index
    %1060 = vector.load %arg14[%c1_489, %c0_490, %c0_491] : memref<3x8x32xf32, #tpu.memory_space<vmem>>, vector<1x8x32xf32>
    %1061 = vector.shape_cast %1060 : vector<1x8x32xf32> to vector<8x32xf32>
    %cst_492 = arith.constant dense<0.000000e+00> : vector<8x128xf32>
    %1062 = tpu.matmul %1061, %1050, %cst_492 {dimension_numbers = #tpu.dot_dimension_numbers<[1], [0], [0], [1], [0, 0, 1, 1], [], []>} : vector<8x32xf32>, vector<32x128xf32>, vector<8x128xf32> -> vector<8x128xf32>
    %1063 = arith.addf %1059, %1062 : vector<8x128xf32>
    %c127_i32_493 = arith.constant 127 : i32
    %1064 = tpu.dynamic_rotate %1050 by %c127_i32_493 dim 1 : vector<32x128xf32>, i32 -> vector<32x128xf32>
    %c2_494 = arith.constant 2 : index
    %c0_495 = arith.constant 0 : index
    %c0_496 = arith.constant 0 : index
    %1065 = vector.load %arg14[%c2_494, %c0_495, %c0_496] : memref<3x8x32xf32, #tpu.memory_space<vmem>>, vector<1x8x32xf32>
    %1066 = vector.shape_cast %1065 : vector<1x8x32xf32> to vector<8x32xf32>
    %cst_497 = arith.constant dense<0.000000e+00> : vector<8x128xf32>
    %1067 = tpu.matmul %1066, %1064, %cst_497 {dimension_numbers = #tpu.dot_dimension_numbers<[1], [0], [0], [1], [0, 0, 1, 1], [], []>} : vector<8x32xf32>, vector<32x128xf32>, vector<8x128xf32> -> vector<8x128xf32>
    %1068 = arith.addf %1063, %1067 : vector<8x128xf32>
    %c0_498 = arith.constant 0 : index
    %c0_499 = arith.constant 0 : index
    %1069 = vector.load %arg15[%c0_498, %c0_499] : memref<8x1xf32, #tpu.memory_space<vmem>>, vector<8x1xf32>
    %1070 = vector.broadcast %1069 : vector<8x1xf32> to vector<8x128xf32>
    %1071 = arith.addf %1068, %1070 : vector<8x128xf32>
    %c38_i32_500 = arith.constant 38 : i32
    %1072 = vector.broadcast %c38_i32_500 : i32 to vector<1x128xi32>
    %1073 = arith.cmpi slt, %0, %1072 : vector<1x128xi32>
    %cst_501 = arith.constant 0.000000e+00 : f32
    %1074 = vector.shape_cast %1073 : vector<1x128xi1> to vector<1x128xi1>
    %1075 = vector.broadcast %1074 : vector<1x128xi1> to vector<8x128xi1>
    %1076 = vector.broadcast %cst_501 : f32 to vector<8x128xf32>
    %1077 = arith.select %1075, %1071, %1076 : vector<8x128xi1>, vector<8x128xf32>
    %c0_502 = arith.constant 0 : index
    %c0_503 = arith.constant 0 : index
    %c0_504 = arith.constant 0 : index
    %1078 = vector.load %arg22[%c0_502, %c0_503, %c0_504] : memref<1x8x128xf32, #tpu.memory_space<vmem>>, vector<1x8x128xf32>
    %1079 = vector.shape_cast %1078 : vector<1x8x128xf32> to vector<8x128xf32>
    %1080 = vector.shape_cast %1077 : vector<8x128xf32> to vector<1x8x128xf32>
    tpu.vector_store %arg22[%c0_502, %c0_503, %c0_504], %1080 {strides = array<i32>} : memref<1x8x128xf32, #tpu.memory_space<vmem>>, vector<1x8x128xf32>,
    return
  }
  func.func @transform_0(%arg0: i32) -> (i32, i32, i32) {
    %c0_i32 = arith.constant 0 : i32
    %c0_i32_0 = arith.constant 0 : i32
    %c0_i32_1 = arith.constant 0 : i32
    return %arg0, %c0_i32, %c0_i32_0 : i32, i32, i32
  }
  func.func @transform_1(%arg0: i32) -> (i32, i32, i32) {
    %c0_i32 = arith.constant 0 : i32
    %c0_i32_0 = arith.constant 0 : i32
    %c0_i32_1 = arith.constant 0 : i32
    %c0_i32_2 = arith.constant 0 : i32
    return %c0_i32, %c0_i32_0, %c0_i32_1 : i32, i32, i32
  }
  func.func @transform_2(%arg0: i32) -> (i32, i32) {
    %c0_i32 = arith.constant 0 : i32
    %c0_i32_0 = arith.constant 0 : i32
    %c0_i32_1 = arith.constant 0 : i32
    return %c0_i32, %c0_i32_0 : i32, i32
  }
  func.func @transform_3(%arg0: i32) -> (i32, i32, i32) {
    %c0_i32 = arith.constant 0 : i32
    %c0_i32_0 = arith.constant 0 : i32
    %c0_i32_1 = arith.constant 0 : i32
    %c0_i32_2 = arith.constant 0 : i32
    return %c0_i32, %c0_i32_0, %c0_i32_1 : i32, i32, i32
  }
  func.func @transform_4(%arg0: i32) -> (i32, i32) {
    %c0_i32 = arith.constant 0 : i32
    %c0_i32_0 = arith.constant 0 : i32
    %c0_i32_1 = arith.constant 0 : i32
    return %c0_i32, %c0_i32_0 : i32, i32
  }
  func.func @transform_5(%arg0: i32) -> (i32, i32, i32) {
    %c0_i32 = arith.constant 0 : i32
    %c0_i32_0 = arith.constant 0 : i32
    %c0_i32_1 = arith.constant 0 : i32
    %c0_i32_2 = arith.constant 0 : i32
    return %c0_i32, %c0_i32_0, %c0_i32_1 : i32, i32, i32
  }
  func.func @transform_6(%arg0: i32) -> (i32, i32) {
    %c0_i32 = arith.constant 0 : i32
    %c0_i32_0 = arith.constant 0 : i32
    %c0_i32_1 = arith.constant 0 : i32
    return %c0_i32, %c0_i32_0 : i32, i32
  }
  func.func @transform_7(%arg0: i32) -> (i32, i32, i32) {
    %c0_i32 = arith.constant 0 : i32
    %c0_i32_0 = arith.constant 0 : i32
    %c0_i32_1 = arith.constant 0 : i32
    %c0_i32_2 = arith.constant 0 : i32
    return %c0_i32, %c0_i32_0, %c0_i32_1 : i32, i32, i32
  }
  func.func @transform_8(%arg0: i32) -> (i32, i32) {
    %c0_i32 = arith.constant 0 : i32
    %c0_i32_0 = arith.constant 0 : i32
    %c0_i32_1 = arith.constant 0 : i32
    return %c0_i32, %c0_i32_0 : i32, i32
  }
  func.func @transform_9(%arg0: i32) -> (i32, i32, i32) {
    %c0_i32 = arith.constant 0 : i32
    %c0_i32_0 = arith.constant 0 : i32
    %c0_i32_1 = arith.constant 0 : i32
    %c0_i32_2 = arith.constant 0 : i32
    return %c0_i32, %c0_i32_0, %c0_i32_1 : i32, i32, i32
  }
  func.func @transform_10(%arg0: i32) -> (i32, i32) {
    %c0_i32 = arith.constant 0 : i32
    %c0_i32_0 = arith.constant 0 : i32
    %c0_i32_1 = arith.constant 0 : i32
    return %c0_i32, %c0_i32_0 : i32, i32
  }
  func.func @transform_11(%arg0: i32) -> (i32, i32, i32) {
    %c0_i32 = arith.constant 0 : i32
    %c0_i32_0 = arith.constant 0 : i32
    %c0_i32_1 = arith.constant 0 : i32
    %c0_i32_2 = arith.constant 0 : i32
    return %c0_i32, %c0_i32_0, %c0_i32_1 : i32, i32, i32
  }
  func.func @transform_12(%arg0: i32) -> (i32, i32) {
    %c0_i32 = arith.constant 0 : i32
    %c0_i32_0 = arith.constant 0 : i32
    %c0_i32_1 = arith.constant 0 : i32
    return %c0_i32, %c0_i32_0 : i32, i32
  }
  func.func @transform_13(%arg0: i32) -> (i32, i32, i32) {
    %c0_i32 = arith.constant 0 : i32
    %c0_i32_0 = arith.constant 0 : i32
    %c0_i32_1 = arith.constant 0 : i32
    %c0_i32_2 = arith.constant 0 : i32
    return %c0_i32, %c0_i32_0, %c0_i32_1 : i32, i32, i32
  }
  func.func @transform_14(%arg0: i32) -> (i32, i32) {
    %c0_i32 = arith.constant 0 : i32
    %c0_i32_0 = arith.constant 0 : i32
    %c0_i32_1 = arith.constant 0 : i32
    return %c0_i32, %c0_i32_0 : i32, i32
  }
  func.func @transform_15(%arg0: i32) -> (i32, i32, i32) {
    %c0_i32 = arith.constant 0 : i32
    %c0_i32_0 = arith.constant 0 : i32
    %c0_i32_1 = arith.constant 0 : i32
    return %arg0, %c0_i32, %c0_i32_0 : i32, i32, i32
  }
  func.func @transform_16(%arg0: i32) -> (i32, i32, i32) {
    %c0_i32 = arith.constant 0 : i32
    %c0_i32_0 = arith.constant 0 : i32
    %c0_i32_1 = arith.constant 0 : i32
    return %arg0, %c0_i32, %c0_i32_0 : i32, i32, i32
  }
  func.func @transform_17(%arg0: i32) -> (i32, i32, i32) {
    %c0_i32 = arith.constant 0 : i32
    %c0_i32_0 = arith.constant 0 : i32
    %c0_i32_1 = arith.constant 0 : i32
    return %arg0, %c0_i32, %c0_i32_0 : i32, i32, i32
  }
  func.func @transform_18(%arg0: i32) -> (i32, i32, i32) {
    %c0_i32 = arith.constant 0 : i32
    %c0_i32_0 = arith.constant 0 : i32
    %c0_i32_1 = arith.constant 0 : i32
    return %arg0, %c0_i32, %c0_i32_0 : i32, i32, i32
  }
  func.func @transform_19(%arg0: i32) -> (i32, i32, i32) {
    %c0_i32 = arith.constant 0 : i32
    %c0_i32_0 = arith.constant 0 : i32
    %c0_i32_1 = arith.constant 0 : i32
    return %arg0, %c0_i32, %c0_i32_0 : i32, i32, i32
  }
  func.func @transform_20(%arg0: i32) -> (i32, i32, i32) {
    %c0_i32 = arith.constant 0 : i32
    %c0_i32_0 = arith.constant 0 : i32
    %c0_i32_1 = arith.constant 0 : i32
    return %arg0, %c0_i32, %c0_i32_0 : i32, i32, i32
  }
  func.func @transform_21(%arg0: i32) -> (i32, i32, i32) {
    %c0_i32 = arith.constant 0 : i32
    %c0_i32_0 = arith.constant 0 : i32
    %c0_i32_1 = arith.constant 0 : i32
    return %arg0, %c0_i32, %c0_i32_0 : i32, i32, i32
  }
}

</mosaic_0001>

<bundles_post_ra>
// kernel: tpu_custom_call.1
= control target key start
LH: loop header
LB: loop body
LE: loop exit
PB: predicated region body
PF: predicated region fallthrough
CT: control target
= control target key end

     0   :  { %s22185_s0 = inlined_call_operand.vmem [shape: f32[2,8,128], index: 0, kind: input, shape index: {}]   ;;  %s22186_s1 = inlined_call_operand.vmem [shape: f32[15,16,8], index: 1, kind: input, shape index: {}]   ;;  %s22187_s2 = inlined_call_operand.vmem [shape: f32[16,1], index: 2, kind: input, shape index: {}]   ;;  %s22188_s3 = inlined_call_operand.vmem [shape: f32[11,16,4], index: 3, kind: input, shape index: {}]   ;;  %s22189_s4 = inlined_call_operand.vmem [shape: f32[16,1], index: 4, kind: input, shape index: {}]   ;;  %s22190_s5 = inlined_call_operand.vmem [shape: f32[11,16,4], index: 5, kind: input, shape index: {}]   ;;  %s22191_s6 = inlined_call_operand.vmem [shape: f32[16,1], index: 6, kind: input, shape index: {}]   ;;  %s22192_s7 = inlined_call_operand.vmem [shape: f32[11,16,4], index: 7, kind: input, shape index: {}]   ;;  %s22193_s8 = inlined_call_operand.vmem [shape: f32[16,1], index: 8, kind: input, shape index: {}]   ;;  %s22194_s9 = inlined_call_operand.vmem [shape: f32[11,16,4], index: 9, kind: input, shape index: {}]   ;;  %s22195_s10 = inlined_call_operand.vmem [shape: f32[16,1], index: 10, kind: input, shape index: {}]   ;;  %s22196_s11 = inlined_call_operand.vmem [shape: f32[5,32,16], index: 11, kind: input, shape index: {}]   ;;  %s22197_s12 = inlined_call_operand.vmem [shape: f32[32,1], index: 12, kind: input, shape index: {}]   ;;  %s22198_s13 = inlined_call_operand.vmem [shape: f32[3,8,32], index: 13, kind: input, shape index: {}]   ;;  %s22199_s14 = inlined_call_operand.vmem [shape: f32[8,1], index: 14, kind: input, shape index: {}]   ;;  %s22200_s15 = inlined_call_operand.hbm [shape: f32[2,16,128], index: 15, kind: output, shape index: {0}]   ;;  %s22201_s16 = inlined_call_operand.hbm [shape: f32[2,16,128], index: 16, kind: output, shape index: {1}]   ;;  %s22202_s17 = inlined_call_operand.hbm [shape: f32[2,16,128], index: 17, kind: output, shape index: {2}]   ;;  %s22203_s18 = inlined_call_operand.hbm [shape: f32[2,16,128], index: 18, kind: output, shape index: {3}]   ;;  %s22204_s19 = inlined_call_operand.hbm [shape: f32[2,16,128], index: 19, kind: output, shape index: {4}]   ;;  %s22205_s20 = inlined_call_operand.hbm [shape: f32[2,32,128], index: 20, kind: output, shape index: {5}]   ;;  %s22206_s21 = inlined_call_operand.hbm [shape: f32[2,8,128], index: 21, kind: output, shape index: {6}]  }
   0x1   :  { %22257 = sst [smem:[#allocation25_spill]] %s22185_s0 }
   0x2   :  { %22258 = sst [smem:[#allocation26_spill]] %s22186_s1 }
   0x3   :  { %22259 = sst [smem:[#allocation27_spill]] %s22187_s2 }
   0x4   :  { %22260 = sst [smem:[#allocation28_spill]] %s22188_s3 }
   0x5   :  { %22261 = sst [smem:[#allocation29_spill]] %s22189_s4 }
   0x6   :  { %22262 = sst [smem:[#allocation30_spill]] %s22190_s5 }
   0x7   :  { %22263 = sst [smem:[#allocation31_spill]] %s22191_s6 }
   0x8   :  { %22264 = sst [smem:[#allocation32_spill]] %s22192_s7 }
   0x9   :  { %22265 = sst [smem:[#allocation33_spill]] %s22193_s8 }
   0xa   :  { %22266 = sst [smem:[#allocation34_spill]] %s22194_s9 }
   0xb   :  { %22267 = sst [smem:[#allocation35_spill]] %s22195_s10 }
   0xc   :  { %22268 = sst [smem:[#allocation36_spill]] %s22200_s15 }
   0xd   :  { %22269 = sst [smem:[#allocation37_spill]] %s22201_s16 }
   0xe   :  { %22270 = sst [smem:[#allocation38_spill]] %s22202_s17 }
   0xf   :  { %22271 = sst [smem:[#allocation39_spill]] %s22203_s18 }
  0x10   :  { %22272 = sst [smem:[#allocation40_spill]] %s22204_s19 }
  0x11   :  { %22273 = sst [smem:[#allocation41_spill]] %s22205_s20 }
  0x12   :  { %22274 = sst [smem:[#allocation42_spill]] %s22206_s21 }
  0x13   :  { %27 = vsyncpa [#allocation3], 0 }
  0x14   :  { %29 = vsyncpa [#allocation3 + $0x1], 0 }
  0x15   :  { %30 = vsyncpa [#allocation5], 0 }
  0x16   :  { %32 = vsyncpa [#allocation5 + $0x1], 0 }
  0x17   :  { %33 = vsyncpa [#allocation8], 0 }
  0x18   :  { %35 = vsyncpa [#allocation8 + $0x1], 0 }
  0x19   :  { %36 = vsyncpa [#allocation11], 0 }
  0x1a   :  { %38 = vsyncpa [#allocation11 + $0x1], 0  ;;  %s20188_s2 = smov 0   ;;  %s20190_s25 = smov 0  }
  0x1b   :  { %s20192_s26 = smov 0   ;;  %s20194_s27 = smov 0  }
  0x1c LB: > { %22275 = sst [smem:[#allocation17_spill]] %s20035_s2  ;;  %s20209_s3 = sadd.s32 4294967295, %s20047_s27   ;;  %s20047_s27 = sphi %s20194_s27, %s22324_s27   ;;  %s20043_s26 = sphi %s20192_s26, %s22327_s26   ;;  %s20039_s25 = sphi %s20190_s25, %s22326_s25   ;;  %s20035_s2 = sphi %s20188_s2, %s22325_s2  }
  0x1d   : > { %22276 = sst [smem:[#allocation18_spill]] %s20039_s25  ;;  %s22212_s28 = sadd.s32 4294967294, %s20047_s27  }
  0x1e   : > { %22277 = sst [smem:[#allocation19_spill]] %s20043_s26  ;;  %s20213_s29 = sadd.s32 1, %s20047_s27  }
  0x1f   : > { %22278 = sst [smem:[#allocation20_spill]] %s20047_s27  ;;  %s371_s0 = sadd.s32 1, %s20043_s26 }
  0x20   : > { %22279 = sst [smem:[#allocation21_spill]] %s20213_s29  ;;  %s368_s4 = ssub.s32 %s20047_s27, %s20213_s29 }
  0x21   : > { %p381_p0 = scmp.ne.s32.totalorder %s20043_s26, %s20039_s25  ;;  %p369_p1 = scmp.eq.s32.totalorder %s368_s4, 0 }
  0x22   : > { %p382_p2 = scmp.eq.s32.totalorder %s20209_s3, 1  ;;  %p387_p3 = scmp.ne.s32.totalorder %s20039_s25, %s20035_s2 }
  0x23   : > { %p388_p4 = scmp.eq.s32.totalorder %s22212_s28, 1  ;;  %p17212_p7 = scmp.ge.s32.totalorder %s20047_s27, 1 }
  0x24   : > { %s20226_s30 = scalar_select %p369_p1, %s20043_s26, %s371_s0  }
  0x25   : > { %p20228_p5 = por %p382_p2, %p381_p0  ;;  %p20232_p6 = por %p388_p4, %p387_p3 }
  0x26   : > { %22280 = sst [smem:[#allocation22_spill]] %s20226_s30  ;;  %p611_p8 = scmp.lt.s32.totalorder %s20047_s27, 3 }
  0x27   : > { %s22282_s22 = scalar_select %p20232_p6, 1, 0 }
  0x28   : > { %p612_p9 = pnand %p17212_p7, %p611_p8 }
  0x29   : > { %22283 = sst [smem:[#allocation23_spill]] %s22282_s22 }
  0x2a   : > { %615 = sbr.rel (%p612_p9) target bundleno = 3342 (0xd0e), region = 80 }
  0x31   : > { %p700_p10 = scmp.lt.s32.totalorder %s20209_s3, 1  ;;  %s22284_s24 = sld [smem:[#allocation26_spill]]  ;;  %vm714_vm0 = vcmask 64512   ;;  %v20063_v4 = vmov 0   ;;  %v20064_v48 = vmov 0.0   ;;  %v704_v49 = vlaneseq }
  0x32   : > { %s22285_s26 = sld [smem:[#allocation25_spill]]  ;;  %s22232_s22 = smov 127   ;;  %19764 = vset.pattern.permute.xlu1 %v20063_v4  ;;  %19763 = vset.pattern.permute.xlu0 %v20063_v4  ;;  %vm20065_vm1 = vmmov 0   ;;  %vm2061_vm5 = vcmask 1043456   ;;  %vm2057_vm6 = vcmask 31744  }
  0x33   : > { %s701_s0 = scalar_select %p700_p10, %s20209_s3, 1  ;;  %18303 = vmatprep.subr.mxu1 %v20064_v48  ;;  %18305 = vmatprep.mubr.msk.f32.mxu1 %vm20065_vm1, %v20064_v48  ;;  %v20388_v51 = vand.u32 127, %v704_v49 }
  0x34   : > { %s22224_s2 = smov 125   ;;  %s22228_s27 = smov 126  }
  0x35   : > { %s17220_s4 = sshll.u32 %s701_s0, 3  ;;  %s22220_s23 = smov 124   ;;  %vm2041_vm3 = vcmp.lt.s32.totalorder %v20388_v51, 78  ;;  %vm5530_vm8 = vcmp.lt.s32.totalorder %v20388_v51, 68  ;;  %vm9017_vm11 = vcmp.lt.s32.totalorder %v20388_v51, 58  ;;  %vm12504_vm14 = vcmp.lt.s32.totalorder %v20388_v51, 48 }
  0x36   : > { %s22222_s1 = smov 123   ;;  %s22226_s0 = smov 122  }
  0x37   : > { %v17221_v0 = vld [vmem:[%s22284_s24 + $0x10] sm:$0xff]  ;;  %s22235_s28 = smov 120   ;;  %s22237_s30 = smov 118   ;;  %v17222_v6 = vld [vmem:[%s22284_s24 + $0x18] sm:$0xff]  ;;  %v707_v7 = vld [vmem:[%s22284_s24] sm:$0xff] }
  0x38   : > { %18230 = vmatprep.mubr.msk.f32.mxu0 %vm714_vm0, %v17221_v0  ;;  %s703_s29 = scalar_lea.vmem %s22285_s26, %s17220_s4  ;;  %s22230_s26 = smov 121   ;;  %v708_v9 = vld [vmem:[%s22284_s24 + $0x8] sm:$0xff]  ;;  %v17227_v10 = vld [vmem:[%s22284_s24 + $0x20] sm:$0xff]  ;;  %v17231_v13 = vld [vmem:[%s22284_s24 + $0x30] sm:$0xff] }
  0x39   : > { %v706_v1 = vld [vmem:[%s703_s29] sm:$0xff]  ;;  %s22239_s29 = smov 119   ;;  %s20059_s4 = smov 117   ;;  %v17228_v12 = vld [vmem:[%s22284_s24 + $0x28] sm:$0xff]  ;;  %v17232_v15 = vld [vmem:[%s22284_s24 + $0x38] sm:$0xff] }
  0x3a   : > { %709 = vrot.lane.b32.xlu0 %v706_v1, %s22232_s22  ;;  %965 = vrot.lane.b32.xlu1 %v706_v1, %s22224_s2  ;;  %s20062_s2 = smov 114   ;;  %v17235_v16 = vld [vmem:[%s22284_s24 + $0x40] sm:$0xff]  ;;  %v17236_v18 = vld [vmem:[%s22284_s24 + $0x48] sm:$0xff]  ;;  %s20386_s21 = sand.u32 1, %s20039_s25  }
  0x3b   : > { %v17239_v19 = vld [vmem:[%s22284_s24 + $0x50] sm:$0xff]  ;;  %v17240_v21 = vld [vmem:[%s22284_s24 + $0x58] sm:$0xff]  ;;  %v17243_v22 = vld [vmem:[%s22284_s24 + $0x60] sm:$0xff]  ;;  %s22299_s17 = sld [smem:[#allocation29_spill]]  ;;  %s22300_s16 = sld [smem:[#allocation28_spill]] }
  0x3c   : > { %v17244_v24 = vld [vmem:[%s22284_s24 + $0x68] sm:$0xff]  ;;  %v17247_v25 = vld [vmem:[%s22284_s24 + $0x70] sm:$0xff]  ;;  %v17248_v27 = vld [vmem:[%s22284_s24 + $0x78] sm:$0xff]  ;;  %s22301_s6 = sld [smem:[#allocation31_spill]]  ;;  %s22303_s8 = sld [smem:[#allocation33_spill]] }
  0x3d   : > { %v17251_v28 = vld [vmem:[%s22284_s24 + $0x80] sm:$0xff]  ;;  %v17252_v30 = vld [vmem:[%s22284_s24 + $0x88] sm:$0xff]  ;;  %v17255_v31 = vld [vmem:[%s22284_s24 + $0x90] sm:$0xff]  ;;  %s22304_s7 = sld [smem:[#allocation32_spill]]  ;;  %s22305_s10 = sld [smem:[#allocation35_spill]] }
  0x3e   : > { %877 = vrot.lane.b32.xlu0 %v706_v1, %s22228_s27  ;;  %1053 = vrot.lane.b32.xlu1 %v706_v1, %s22220_s23  ;;  %s20060_s23 = smov 116   ;;  %v17256_v33 = vld [vmem:[%s22284_s24 + $0x98] sm:$0xff]  ;;  %v17259_v34 = vld [vmem:[%s22284_s24 + $0xa0] sm:$0xff]  ;;  %s20391_s27 = sshll.u32 %s20386_s21, 4 }
  0x3f   : > { %v17260_v36 = vld [vmem:[%s22284_s24 + $0xa8] sm:$0xff]  ;;  %v17263_v37 = vld [vmem:[%s22284_s24 + $0xb0] sm:$0xff]  ;;  %v17264_v39 = vld [vmem:[%s22284_s24 + $0xb8] sm:$0xff]  ;;  %s20732_s15 = scalar_lea.vmem [#allocation4], %s20391_s27  ;;  %s21071_s19 = scalar_lea.vmem [#allocation6], %s20391_s27 }
  0x40   : > { %v17267_v40 = vld [vmem:[%s22284_s24 + $0xc0] sm:$0xff]  ;;  %v17268_v42 = vld [vmem:[%s22284_s24 + $0xc8] sm:$0xff]  ;;  %v17271_v43 = vld [vmem:[%s22284_s24 + $0xd0] sm:$0xff]  ;;  %s21407_s18 = scalar_lea.vmem [#allocation7], %s20391_s27  ;;  %s22306_s9 = sld [smem:[#allocation34_spill]] }
  0x41   : > { %v17272_v45 = vld [vmem:[%s22284_s24 + $0xd8] sm:$0xff]  ;;  %v17275_v46 = vld [vmem:[%s22284_s24 + $0xe0] sm:$0xff]  ;;  %v17276_v47 = vld [vmem:[%s22284_s24 + $0xe8] sm:$0xff]  ;;  %s22298_s24 = smov 118   ;;  %s16887_s20 = sshll.u32 %s20732_s15, 4  ;;  %s21923_s20 = int_to_ptr.vmem [resolvable:$true] %s16887_s20 }
  0x42   : > { %1141 = vrot.lane.b32.xlu0 %v706_v1, %s22222_s1  ;;  %1229 = vrot.lane.b32.xlu1 %v706_v1, %s22226_s0  ;;  %s20061_s1 = smov 115   ;;  %s22288_s0 = smov 127   ;;  %v5511_v63 = vld [vmem:[%s22299_s17 + $0x8] sm:$0xff]  ;;  %v5510_v0 = vld [vmem:[%s22299_s17] sm:$0xff] }
  0x43   : > { %v17337_v49 = vld [vmem:[%s22300_s16 + $0x60] sm:$0xff]  ;;  %s22302_s17 = sld [smem:[#allocation30_spill]]  ;;  %s19805_s25 = scalar_lea.vmem %s21923_s20, 256 }
  0x44   : > { %p19806_p11 = scmp.ne.s32.totalorder %s21923_s20, %s19805_s25 }
  0x46   : > { %1317 = vrot.lane.b32.xlu0 %v706_v1, %s22230_s26  ;;  %1405 = vrot.lane.b32.xlu1 %v706_v1, %s22235_s28  ;;  %s22286_s26 = sld [smem:[#allocation27_spill]]  ;;  %s22290_s28 = smov 126  }
  0x47   : > { %p19807_p12 = pnand %p19806_p11, %p20228_p5 }
  0x49   : > { %p19808_p13 = pneg %p19807_p12 }
  0x4a   : > { %1493 = vrot.lane.b32.xlu0 %v706_v1, %s22239_s29  ;;  %1581 = vrot.lane.b32.xlu1 %v706_v1, %s22237_s30  ;;  %s22295_s30 = smov 121   ;;  %s22296_s29 = smov 120  }
  0x4c   : > { %s22287_s22 = smov %s22286_s26  ;;  %v2022_v2 = vld [vmem:[%s22286_s26 + $0x8] sm:$0xff]  ;;  %s20399_s26 = scalar_lea.vmem [#allocation2], %s20391_s27 }
  0x4d   : > { %v2021_v3 = vld [vmem:[%s22287_s22] sm:$0xff]  ;;  %22289 = sst [smem:[#allocation24_spill]] %s20399_s26  ;;  %s22297_s22 = smov 119  }
  0x4e   : > { %1669 = vrot.lane.b32.xlu0 %v706_v1, %s20059_s4  ;;  %1757 = vrot.lane.b32.xlu1 %v706_v1, %s20060_s23  ;;  %s22291_s4 = smov 125   ;;  %s22292_s23 = smov 124  }
  0x52   : > { %1845 = vrot.lane.b32.xlu0 %v706_v1, %s20061_s1  ;;  %1933 = vrot.lane.b32.xlu1 %v706_v1, %s20062_s2  ;;  %s22293_s2 = smov 123   ;;  %s22294_s1 = smov 122  }
  0x56   : > { %2030 = vperm.xlu1 %19764, %v2022_v2   ;;  %2025 = vperm.xlu0 %19763, %v2021_v3   ;;  %v2048_v3 = vld [vmem:[%s22300_s16] sm:$0xff] }
  0xac   : > { %v710_v5 = vpop.permute.xlu0 %709  ;;  %v966_v11 = vpop.permute.xlu1 %965 }
  0xad   : > { %18228 = vmatprep.subr.mxu0 %v710_v5 }
  0xae   : > { %18229 = vmatpush3.msra.mxu0 %v710_v5 }
  0xaf   : > { %18231 = vmatmul.mubr.msk.f32.vlgmr.msra.gmra.mrb[0].mxu0 %vm714_vm0, %v17222_v6  ;;  %18233 = vmatprep.subr.mxu0 %v706_v1 }
  0xb0   : > { %18234 = vmatpush3.msra.mxu0 %v706_v1  ;;  %18235 = vmatprep.mubr.msk.f32.mxu0 %vm714_vm0, %v707_v7  ;;  %v878_v8 = vpop.permute.xlu0 %877  ;;  %v1054_v14 = vpop.permute.xlu1 %1053  ;;  %v17279_v1 = vld [vmem:[%s22300_s16 + $0x10] sm:$0xff]  ;;  %v2287_v7 = vrot.slane %v2048_v3, 4 }
  0xb1   : > { %18238 = vmatprep.subr.mxu0 %v878_v8  ;;  %v2211_v5 = vrot.slane %v17279_v1, 4 }
  0xb4   : > { %v1142_v17 = vpop.permute.xlu0 %1141  ;;  %v1230_v20 = vpop.permute.xlu1 %1229 }
  0xb7   : > { %18236 = vmatmul.mubr.msk.f32.vlgmr.msra.gmra.mrb[0].mxu0 %vm714_vm0, %v708_v9  ;;  %v17280_v9 = vld [vmem:[%s22300_s16 + $0x18] sm:$0xff] }
  0xb8   : > { %18239 = vmatpush3.msra.mxu0 %v878_v8  ;;  %18240 = vmatprep.mubr.msk.f32.mxu0 %vm714_vm0, %v17227_v10  ;;  %v1318_v23 = vpop.permute.xlu0 %1317  ;;  %v1406_v26 = vpop.permute.xlu1 %1405  ;;  %v2049_v10 = vld [vmem:[%s22300_s16 + $0x8] sm:$0xff] }
  0xb9   : > { %18243 = vmatprep.subr.mxu0 %v966_v11 }
  0xbc   : > { %v1494_v29 = vpop.permute.xlu0 %1493  ;;  %v1582_v32 = vpop.permute.xlu1 %1581 }
  0xbf   : > { %18241 = vmatmul.mubr.msk.f32.vlgmr.msra.gmra.mrb[0].mxu0 %vm714_vm0, %v17228_v12  ;;  %v2515_v12 = vrot.slane %v17280_v9, 4 }
  0xc0   : > { %18244 = vmatpush3.msra.mxu0 %v966_v11  ;;  %18245 = vmatprep.mubr.msk.f32.mxu0 %vm714_vm0, %v17231_v13  ;;  %v1670_v35 = vpop.permute.xlu0 %1669  ;;  %v1758_v38 = vpop.permute.xlu1 %1757 }
  0xc1   : > { %18248 = vmatprep.subr.mxu0 %v1054_v14 }
  0xc4   : > { %v1846_v41 = vpop.permute.xlu0 %1845  ;;  %v1934_v44 = vpop.permute.xlu1 %1933 }
  0xc7   : > { %18246 = vmatmul.mubr.msk.f32.vlgmr.msra.gmra.mrb[0].mxu0 %vm714_vm0, %v17232_v15 }
  0xc8   : > { %18249 = vmatpush3.msra.mxu0 %v1054_v14  ;;  %18250 = vmatprep.mubr.msk.f32.mxu0 %vm714_vm0, %v17235_v16  ;;  %v2591_v14 = vrot.slane %v2049_v10, 4  ;;  %v17297_v16 = vld [vmem:[%s22300_s16 + $0x20] sm:$0xff] }
  0xc9   : > { %18253 = vmatprep.subr.mxu0 %v1142_v17 }
  0xcf   : > { %18251 = vmatmul.mubr.msk.f32.vlgmr.msra.gmra.mrb[0].mxu0 %vm714_vm0, %v17236_v18  ;;  %v2751_v18 = vrot.slane %v17297_v16, 4 }
  0xd0   : > { %18254 = vmatpush3.msra.mxu0 %v1142_v17  ;;  %18255 = vmatprep.mubr.msk.f32.mxu0 %vm714_vm0, %v17239_v19 }
  0xd1   : > { %18258 = vmatprep.subr.mxu0 %v1230_v20 }
  0xd5   : > { %v2031_v50 = vpop.permute.xlu1 %2030  ;;  %v2026_v52 = vpop.permute.xlu0 %2025 }
  0xd7   : > { %18256 = vmatmul.mubr.msk.f32.vlgmr.msra.gmra.mrb[0].mxu0 %vm714_vm0, %v17240_v21 }
  0xd8   : > { %18259 = vmatpush3.msra.mxu0 %v1230_v20  ;;  %18260 = vmatprep.mubr.msk.f32.mxu0 %vm714_vm0, %v17243_v22  ;;  %v17298_v20 = vld [vmem:[%s22300_s16 + $0x28] sm:$0xff] }
  0xd9   : > { %18263 = vmatprep.subr.mxu0 %v1318_v23  ;;  %v2905_v22 = vrot.slane %v17298_v20, 4 }
  0xdf   : > { %18261 = vmatmul.mubr.msk.f32.vlgmr.msra.gmra.mrb[0].mxu0 %vm714_vm0, %v17244_v24  ;;  %v17307_v24 = vld [vmem:[%s22300_s16 + $0x30] sm:$0xff] }
  0xe0   : > { %18264 = vmatpush3.msra.mxu0 %v1318_v23  ;;  %18265 = vmatprep.mubr.msk.f32.mxu0 %vm714_vm0, %v17247_v25 }
  0xe1   : > { %18268 = vmatprep.subr.mxu0 %v1406_v26 }
  0xe7   : > { %18266 = vmatmul.mubr.msk.f32.vlgmr.msra.gmra.mrb[0].mxu0 %vm714_vm0, %v17248_v27 }
  0xe8   : > { %18269 = vmatpush3.msra.mxu0 %v1406_v26  ;;  %18270 = vmatprep.mubr.msk.f32.mxu0 %vm714_vm0, %v17251_v28  ;;  %v3066_v26 = vrot.slane %v17307_v24, 4  ;;  %v17308_v28 = vld [vmem:[%s22300_s16 + $0x38] sm:$0xff] }
  0xe9   : > { %18273 = vmatprep.subr.mxu0 %v1494_v29 }
  0xef   : > { %18271 = vmatmul.mubr.msk.f32.vlgmr.msra.gmra.mrb[0].mxu0 %vm714_vm0, %v17252_v30  ;;  %v3220_v30 = vrot.slane %v17308_v28, 4 }
  0xf0   : > { %18274 = vmatpush3.msra.mxu0 %v1494_v29  ;;  %18275 = vmatprep.mubr.msk.f32.mxu0 %vm714_vm0, %v17255_v31 }
  0xf1   : > { %18278 = vmatprep.subr.mxu0 %v1582_v32 }
  0xf7   : > { %18276 = vmatmul.mubr.msk.f32.vlgmr.msra.gmra.mrb[0].mxu0 %vm714_vm0, %v17256_v33 }
  0xf8   : > { %18279 = vmatpush3.msra.mxu0 %v1582_v32  ;;  %18280 = vmatprep.mubr.msk.f32.mxu0 %vm714_vm0, %v17259_v34  ;;  %v17317_v32 = vld [vmem:[%s22300_s16 + $0x40] sm:$0xff] }
  0xf9   : > { %18283 = vmatprep.subr.mxu0 %v1670_v35  ;;  %v3381_v34 = vrot.slane %v17317_v32, 4 }
  0xff   : > { %18281 = vmatmul.mubr.msk.f32.vlgmr.msra.gmra.mrb[0].mxu0 %vm714_vm0, %v17260_v36  ;;  %v17318_v36 = vld [vmem:[%s22300_s16 + $0x48] sm:$0xff] }
 0x100   : > { %18284 = vmatpush3.msra.mxu0 %v1670_v35  ;;  %18285 = vmatprep.mubr.msk.f32.mxu0 %vm714_vm0, %v17263_v37 }
 0x101   : > { %18288 = vmatprep.subr.mxu0 %v1758_v38 }
 0x107   : > { %18286 = vmatmul.mubr.msk.f32.vlgmr.msra.gmra.mrb[0].mxu0 %vm714_vm0, %v17264_v39 }
 0x108   : > { %18289 = vmatpush3.msra.mxu0 %v1758_v38  ;;  %18290 = vmatprep.mubr.msk.f32.mxu0 %vm714_vm0, %v17267_v40  ;;  %v3535_v38 = vrot.slane %v17318_v36, 4  ;;  %v17327_v40 = vld [vmem:[%s22300_s16 + $0x50] sm:$0xff] }
 0x109   : > { %18293 = vmatprep.subr.mxu0 %v1846_v41 }
 0x10f   : > { %18291 = vmatmul.mubr.msk.f32.vlgmr.msra.gmra.mrb[0].mxu0 %vm714_vm0, %v17268_v42  ;;  %v3696_v42 = vrot.slane %v17327_v40, 4 }
 0x110   : > { %18294 = vmatpush3.msra.mxu0 %v1846_v41  ;;  %18295 = vmatprep.mubr.msk.f32.mxu0 %vm714_vm0, %v17271_v43 }
 0x111   : > { %18298 = vmatprep.subr.mxu0 %v1934_v44 }
 0x117   : > { %18296 = vmatmul.mubr.msk.f32.vlgmr.msra.gmra.mrb[0].mxu0 %vm714_vm0, %v17272_v45 }
 0x118   : > { %18299 = vmatpush3.msra.mxu0 %v1934_v44  ;;  %18300 = vmatprep.mubr.msk.f32.mxu0 %vm714_vm0, %v17275_v46  ;;  %v17328_v44 = vld [vmem:[%s22300_s16 + $0x58] sm:$0xff] }
 0x119   : > { %18523 = vmatprep.subr.mxu0 %v20064_v48  ;;  %v3850_v46 = vrot.slane %v17328_v44, 4 }
 0x11f   : > { %18301 = vmatmul.mubr.msk.f32.vlgmr.msra.gmra.mrb[0].mxu0 %vm714_vm0, %v17276_v47 }
 0x120   : > { %18525 = vmatprep.mubr.msk.f32.mxu0 %vm20065_vm1, %v20064_v48 }
 0x1f2   : > { %v18302_v53 = vpop.f32.mrb[0].mxu0 }
 0x1f3   : > { %v2034_v54 = vadd.f32 %v18302_v53, %v2031_v50  ;;  %v2010_v55 = vpop.f32.mrb[1].mxu0 }
 0x1f4   : > { %v2033_v56 = vadd.f32 %v2026_v52, %v2010_v55  ;;  %v4011_v52 = vrot.slane %v17337_v49, 4 }
 0x1f5   : > { %vm2036_vm2 = vcmp.ge.f32.partialorder %v2034_v54, 0.0  ;;  %v2038_v57 = vmul.f32 0.2, %v2034_v54 }
 0x1f6   : > { %vm2035_vm4 = vcmp.ge.f32.partialorder %v2033_v56, 0.0  ;;  %v2037_v58 = vmul.f32 0.2, %v2033_v56 }
 0x1f7   : > { %v2040_v59 = vsel %vm2036_vm2, %v2034_v54, %v2038_v57  ;;  %v17338_v54 = vld [vmem:[%s22300_s16 + $0x68] sm:$0xff]  ;;  %vm15991_vm2 = vcmp.lt.s32.totalorder %v20388_v51, 38 }
 0x1f8   : > { %v20394_v60 = vsel %vm2041_vm3, %v2040_v59, 0.0  ;;  %v2039_v61 = vsel %vm2035_vm4, %v2033_v56, %v2037_v58  ;;  %v4165_v56 = vrot.slane %v17338_v54, 4  ;;  %v17347_v58 = vld [vmem:[%s22300_s16 + $0x70] sm:$0xff] }
 0x1f9   : > { %v2044_v62 = vsel %vm2041_vm3, %v2039_v61, 0.0  ;;  %2052 = vrot.lane.b32.xlu0 %v20394_v60, %s22288_s0  ;;  %2047 = vst [vmem:[%s20399_s26 + $0x8] sm:$0xff] %v20394_v60  ;;  %v2592_v13 = vrot.slane %v20394_v60, 4  ;;  %vm16015_vm3 = vcmask 130048  }
 0x1fa   : > { %2050 = vrot.lane.b32.xlu1 %v2044_v62, %s22288_s0  ;;  %2046 = vst [vmem:[%s20399_s26] sm:$0xff] %v2044_v62  ;;  %v2288_v6 = vrot.slane %v2044_v62, 4  ;;  %s20067_s26 = smov 1  }
 0x1fd   : > { %2669 = vrot.lane.b32.xlu0 %v20394_v60, %s22290_s28 }
 0x1fe   : > { %2667 = vrot.lane.b32.xlu1 %v2044_v62, %s22290_s28 }
 0x201   : > { %2984 = vrot.lane.b32.xlu0 %v20394_v60, %s22291_s4 }
 0x202   : > { %2982 = vrot.lane.b32.xlu1 %v2044_v62, %s22291_s4 }
 0x205   : > { %3299 = vrot.lane.b32.xlu0 %v20394_v60, %s22292_s23 }
 0x206   : > { %3297 = vrot.lane.b32.xlu1 %v2044_v62, %s22292_s23 }
 0x209   : > { %3614 = vrot.lane.b32.xlu0 %v20394_v60, %s22293_s2 }
 0x20a   : > { %3612 = vrot.lane.b32.xlu1 %v2044_v62, %s22293_s2 }
 0x20d   : > { %3929 = vrot.lane.b32.xlu0 %v20394_v60, %s22294_s1 }
 0x20e   : > { %3927 = vrot.lane.b32.xlu1 %v2044_v62, %s22294_s1 }
 0x211   : > { %4244 = vrot.lane.b32.xlu0 %v20394_v60, %s22295_s30 }
 0x212   : > { %4242 = vrot.lane.b32.xlu1 %v2044_v62, %s22295_s30 }
 0x215   : > { %4559 = vrot.lane.b32.xlu0 %v20394_v60, %s22296_s29 }
 0x216   : > { %4557 = vrot.lane.b32.xlu1 %v2044_v62, %s22296_s29 }
 0x219   : > { %4874 = vrot.lane.b32.xlu0 %v20394_v60, %s22297_s22 }
 0x21a   : > { %4872 = vrot.lane.b32.xlu1 %v2044_v62, %s22297_s22 }
 0x21d   : > { %5189 = vrot.lane.b32.xlu0 %v20394_v60, %s22298_s24 }
 0x21e   : > { %5187 = vrot.lane.b32.xlu1 %v2044_v62, %s22298_s24 }
 0x221   : > { %5519 = vperm.xlu0 %19763, %v5511_v63  }
 0x222   : > { %5514 = vperm.xlu1 %19764, %v5510_v0  }
 0x26b   : > { %v2053_v8 = vpop.permute.xlu0 %2052 }
 0x26c   : > { %v2051_v2 = vpop.permute.xlu1 %2050  ;;  %v2516_v11 = vrot.slane %v2053_v8, 4 }
 0x26d   : > { %18304 = vmatpush3.msk.msra.mxu1 %vm2061_vm5, %v2051_v2  ;;  %v2212_v4 = vrot.slane %v2051_v2, 4  ;;  %v17357_v2 = vld [vmem:[%s22300_s16 + $0x80] sm:$0xff] }
 0x26e   : > { %18306 = vmatmul.mubr.msk.f32.vlgmr.msra.gmra.mrb[0].mxu1 %vm2057_vm6, %v17279_v1  ;;  %18308 = vmatprep.subr.mxu1 %v20064_v48 }
 0x26f   : > { %18309 = vmatpush3.msk.msra.mxu1 %vm2061_vm5, %v2044_v62  ;;  %18310 = vmatprep.mubr.msk.f32.mxu1 %vm20065_vm1, %v20064_v48  ;;  %v2670_v19 = vpop.permute.xlu0 %2669  ;;  %v17348_v62 = vld [vmem:[%s22300_s16 + $0x78] sm:$0xff] }
 0x270   : > { %18313 = vmatprep.subr.mxu1 %v20064_v48  ;;  %v2668_v15 = vpop.permute.xlu1 %2667  ;;  %v2906_v21 = vrot.slane %v2670_v19, 4  ;;  %v4480_v0 = vrot.slane %v17348_v62, 4 }
 0x271   : > { %v2752_v17 = vrot.slane %v2668_v15, 4 }
 0x273   : > { %v2985_v27 = vpop.permute.xlu0 %2984 }
 0x274   : > { %v2983_v23 = vpop.permute.xlu1 %2982  ;;  %v3221_v29 = vrot.slane %v2985_v27, 4 }
 0x275   : > { %v3067_v25 = vrot.slane %v2983_v23, 4 }
 0x276   : > { %18311 = vmatmul.mubr.msk.f32.vlgmr.msra.gmra.mrb[0].mxu1 %vm2057_vm6, %v2048_v3 }
 0x277   : > { %18314 = vmatpush3.msk.msra.mxu1 %vm2061_vm5, %v2212_v4  ;;  %18315 = vmatprep.mubr.msk.f32.mxu1 %vm20065_vm1, %v20064_v48  ;;  %v3300_v35 = vpop.permute.xlu0 %3299  ;;  %v4641_v4 = vrot.slane %v17357_v2, 4 }
 0x278   : > { %18318 = vmatprep.subr.mxu1 %v20064_v48  ;;  %v3298_v31 = vpop.permute.xlu1 %3297  ;;  %v3536_v37 = vrot.slane %v3300_v35, 4 }
 0x279   : > { %v3382_v33 = vrot.slane %v3298_v31, 4 }
 0x27a   : > { %18316 = vmatmul.mubr.msk.f32.vlgmr.msra.gmra.mrb[2].mxu1 %vm2057_vm6, %v2211_v5 }
 0x27b   : > { %18319 = vmatpush3.msk.msra.mxu1 %vm2061_vm5, %v2288_v6  ;;  %18320 = vmatprep.mubr.msk.f32.mxu1 %vm20065_vm1, %v20064_v48  ;;  %v3615_v43 = vpop.permute.xlu0 %3614  ;;  %v17358_v6 = vld [vmem:[%s22300_s16 + $0x88] sm:$0xff] }
 0x27c   : > { %18323 = vmatprep.subr.mxu1 %v20064_v48  ;;  %v3613_v39 = vpop.permute.xlu1 %3612  ;;  %v3851_v45 = vrot.slane %v3615_v43, 4 }
 0x27d   : > { %v3697_v41 = vrot.slane %v3613_v39, 4 }
 0x27f   : > { %v3930_v53 = vpop.permute.xlu0 %3929 }
 0x280   : > { %v3928_v47 = vpop.permute.xlu1 %3927  ;;  %v4166_v55 = vrot.slane %v3930_v53, 4 }
 0x281   : > { %v4012_v50 = vrot.slane %v3928_v47, 4 }
 0x282   : > { %18321 = vmatmul.mubr.msk.f32.vlgmr.msra.gmra.mrb[2].mxu1 %vm2057_vm6, %v2287_v7 }
 0x283   : > { %18324 = vmatpush3.msk.msra.mxu1 %vm2061_vm5, %v2053_v8  ;;  %18325 = vmatprep.mubr.msk.f32.mxu1 %vm20065_vm1, %v20064_v48  ;;  %v4245_v61 = vpop.permute.xlu0 %4244  ;;  %v4795_v8 = vrot.slane %v17358_v6, 4 }
 0x284   : > { %18328 = vmatprep.subr.mxu1 %v20064_v48  ;;  %v4243_v57 = vpop.permute.xlu1 %4242  ;;  %v4481_v63 = vrot.slane %v4245_v61, 4 }
 0x285   : > { %v4327_v59 = vrot.slane %v4243_v57, 4 }
 0x286   : > { %18326 = vmatmul.mubr.msk.f32.vlgmr.msra.gmra.mrb[4].mxu1 %vm2057_vm6, %v17280_v9 }
 0x287   : > { %18329 = vmatpush3.msk.msra.mxu1 %vm2061_vm5, %v20394_v60  ;;  %18330 = vmatprep.mubr.msk.f32.mxu1 %vm20065_vm1, %v20064_v48  ;;  %v4326_v60 = vrot.slane %v17347_v58, 4  ;;  %v4560_v5 = vpop.permute.xlu0 %4559 }
 0x288   : > { %18333 = vmatprep.subr.mxu1 %v20064_v48  ;;  %v4558_v1 = vpop.permute.xlu1 %4557  ;;  %v4796_v7 = vrot.slane %v4560_v5, 4 }
 0x289   : > { %v4642_v3 = vrot.slane %v4558_v1, 4 }
 0x28c   : > { %v4873_v9 = vpop.permute.xlu1 %4872 }
 0x28e   : > { %18331 = vmatmul.mubr.msk.f32.vlgmr.msra.gmra.mrb[4].mxu1 %vm2057_vm6, %v2049_v10  ;;  %v17367_v10 = vld [vmem:[%s22300_s16 + $0x90] sm:$0xff] }
 0x28f   : > { %18334 = vmatpush3.msk.msra.mxu1 %vm2061_vm5, %v2516_v11  ;;  %18335 = vmatprep.mubr.msk.f32.mxu1 %vm20065_vm1, %v20064_v48  ;;  %v4957_v11 = vrot.slane %v4873_v9, 4 }
 0x290   : > { %18338 = vmatprep.subr.mxu1 %v20064_v48 }
 0x292   : > { %18336 = vmatmul.mubr.msk.f32.vlgmr.msra.gmra.mrb[6].mxu1 %vm2057_vm6, %v2515_v12  ;;  %v4956_v12 = vrot.slane %v17367_v10, 4 }
 0x293   : > { %18339 = vmatpush3.msk.msra.mxu1 %vm2061_vm5, %v2592_v13  ;;  %18340 = vmatprep.mubr.msk.f32.mxu1 %vm20065_vm1, %v20064_v48  ;;  %v4875_v13 = vpop.permute.xlu0 %4874 }
 0x294   : > { %18343 = vmatprep.subr.mxu1 %v20064_v48 }
 0x29a   : > { %18341 = vmatmul.mubr.msk.f32.vlgmr.msra.gmra.mrb[6].mxu1 %vm2057_vm6, %v2591_v14  ;;  %v17368_v14 = vld [vmem:[%s22300_s16 + $0x98] sm:$0xff] }
 0x29b   : > { %18344 = vmatpush3.msk.msra.mxu1 %vm2061_vm5, %v2668_v15  ;;  %18345 = vmatprep.mubr.msk.f32.mxu1 %vm20065_vm1, %v20064_v48  ;;  %v5111_v15 = vrot.slane %v4875_v13, 4 }
 0x29c   : > { %18348 = vmatprep.subr.mxu1 %v20064_v48 }
 0x29e   : > { %18346 = vmatmul.mubr.msk.f32.vlgmr.msra.gmra.mrb[0].mxu1 %vm2057_vm6, %v17297_v16  ;;  %v5110_v16 = vrot.slane %v17368_v14, 4 }
 0x29f   : > { %18349 = vmatpush3.msk.msra.mxu1 %vm2061_vm5, %v2752_v17  ;;  %18350 = vmatprep.mubr.msk.f32.mxu1 %vm20065_vm1, %v20064_v48  ;;  %v5188_v17 = vpop.permute.xlu1 %5187 }
 0x2a0   : > { %18353 = vmatprep.subr.mxu1 %v20064_v48 }
 0x2a2   : > { %18351 = vmatmul.mubr.msk.f32.vlgmr.msra.gmra.mrb[2].mxu1 %vm2057_vm6, %v2751_v18  ;;  %v17377_v18 = vld [vmem:[%s22300_s16 + $0xa0] sm:$0xff] }
 0x2a3   : > { %18354 = vmatpush3.msk.msra.mxu1 %vm2061_vm5, %v2670_v19  ;;  %18355 = vmatprep.mubr.msk.f32.mxu1 %vm20065_vm1, %v20064_v48  ;;  %v5272_v19 = vrot.slane %v5188_v17, 4 }
 0x2a4   : > { %18358 = vmatprep.subr.mxu1 %v20064_v48 }
 0x2a6   : > { %18356 = vmatmul.mubr.msk.f32.vlgmr.msra.gmra.mrb[4].mxu1 %vm2057_vm6, %v17298_v20  ;;  %v5271_v20 = vrot.slane %v17377_v18, 4 }
 0x2a7   : > { %18359 = vmatpush3.msk.msra.mxu1 %vm2061_vm5, %v2906_v21  ;;  %18360 = vmatprep.mubr.msk.f32.mxu1 %vm20065_vm1, %v20064_v48  ;;  %v5190_v21 = vpop.permute.xlu0 %5189 }
 0x2a8   : > { %18363 = vmatprep.subr.mxu1 %v20064_v48 }
 0x2aa   : > { %18361 = vmatmul.mubr.msk.f32.vlgmr.msra.gmra.mrb[6].mxu1 %vm2057_vm6, %v2905_v22  ;;  %v17378_v22 = vld [vmem:[%s22300_s16 + $0xa8] sm:$0xff] }
 0x2ab   : > { %18364 = vmatpush3.msk.msra.mxu1 %vm2061_vm5, %v2983_v23  ;;  %18365 = vmatprep.mubr.msk.f32.mxu1 %vm20065_vm1, %v20064_v48  ;;  %v5426_v23 = vrot.slane %v5190_v21, 4 }
 0x2ac   : > { %18368 = vmatprep.subr.mxu1 %v20064_v48 }
 0x2ae   : > { %18366 = vmatmul.mubr.msk.f32.vlgmr.msra.gmra.mrb[0].mxu1 %vm2057_vm6, %v17307_v24  ;;  %v5425_v24 = vrot.slane %v17378_v22, 4 }
 0x2af   : > { %18369 = vmatpush3.msk.msra.mxu1 %vm2061_vm5, %v3067_v25  ;;  %18370 = vmatprep.mubr.msk.f32.mxu1 %vm20065_vm1, %v20064_v48 }
 0x2b0   : > { %18373 = vmatprep.subr.mxu1 %v20064_v48 }
 0x2b2   : > { %18371 = vmatmul.mubr.msk.f32.vlgmr.msra.gmra.mrb[2].mxu1 %vm2057_vm6, %v3066_v26 }
 0x2b3   : > { %18374 = vmatpush3.msk.msra.mxu1 %vm2061_vm5, %v2985_v27  ;;  %18375 = vmatprep.mubr.msk.f32.mxu1 %vm20065_vm1, %v20064_v48 }
 0x2b4   : > { %18378 = vmatprep.subr.mxu1 %v20064_v48 }
 0x2b6   : > { %18376 = vmatmul.mubr.msk.f32.vlgmr.msra.gmra.mrb[4].mxu1 %vm2057_vm6, %v17308_v28 }
 0x2b7   : > { %18379 = vmatpush3.msk.msra.mxu1 %vm2061_vm5, %v3221_v29  ;;  %18380 = vmatprep.mubr.msk.f32.mxu1 %vm20065_vm1, %v20064_v48 }
 0x2b8   : > { %18383 = vmatprep.subr.mxu1 %v20064_v48 }
 0x2ba   : > { %18381 = vmatmul.mubr.msk.f32.vlgmr.msra.gmra.mrb[6].mxu1 %vm2057_vm6, %v3220_v30  ;;  %v5515_v30 = vpop.permute.xlu1 %5514 }
 0x2bb   : > { %18384 = vmatpush3.msk.msra.mxu1 %vm2061_vm5, %v3298_v31  ;;  %18385 = vmatprep.mubr.msk.f32.mxu1 %vm20065_vm1, %v20064_v48 }
 0x2bc   : > { %18388 = vmatprep.subr.mxu1 %v20064_v48 }
 0x2be   : > { %18386 = vmatmul.mubr.msk.f32.vlgmr.msra.gmra.mrb[0].mxu1 %vm2057_vm6, %v17317_v32 }
 0x2bf   : > { %18389 = vmatpush3.msk.msra.mxu1 %vm2061_vm5, %v3382_v33  ;;  %18390 = vmatprep.mubr.msk.f32.mxu1 %vm20065_vm1, %v20064_v48 }
 0x2c0   : > { %18393 = vmatprep.subr.mxu1 %v20064_v48 }
 0x2c2   : > { %18391 = vmatmul.mubr.msk.f32.vlgmr.msra.gmra.mrb[2].mxu1 %vm2057_vm6, %v3381_v34 }
 0x2c3   : > { %18394 = vmatpush3.msk.msra.mxu1 %vm2061_vm5, %v3300_v35  ;;  %18395 = vmatprep.mubr.msk.f32.mxu1 %vm20065_vm1, %v20064_v48 }
 0x2c4   : > { %18398 = vmatprep.subr.mxu1 %v20064_v48 }
 0x2c6   : > { %18396 = vmatmul.mubr.msk.f32.vlgmr.msra.gmra.mrb[4].mxu1 %vm2057_vm6, %v17318_v36 }
 0x2c7   : > { %18399 = vmatpush3.msk.msra.mxu1 %vm2061_vm5, %v3536_v37  ;;  %18400 = vmatprep.mubr.msk.f32.mxu1 %vm20065_vm1, %v20064_v48 }
 0x2c8   : > { %18403 = vmatprep.subr.mxu1 %v20064_v48 }
 0x2ca   : > { %18401 = vmatmul.mubr.msk.f32.vlgmr.msra.gmra.mrb[6].mxu1 %vm2057_vm6, %v3535_v38 }
 0x2cb   : > { %18404 = vmatpush3.msk.msra.mxu1 %vm2061_vm5, %v3613_v39  ;;  %18405 = vmatprep.mubr.msk.f32.mxu1 %vm20065_vm1, %v20064_v48 }
 0x2cc   : > { %18408 = vmatprep.subr.mxu1 %v20064_v48 }
 0x2ce   : > { %18406 = vmatmul.mubr.msk.f32.vlgmr.msra.gmra.mrb[0].mxu1 %vm2057_vm6, %v17327_v40 }
 0x2cf   : > { %18409 = vmatpush3.msk.msra.mxu1 %vm2061_vm5, %v3697_v41  ;;  %18410 = vmatprep.mubr.msk.f32.mxu1 %vm20065_vm1, %v20064_v48  ;;  %v5520_v41 = vpop.permute.xlu0 %5519 }
 0x2d0   : > { %18413 = vmatprep.subr.mxu1 %v20064_v48 }
 0x2d2   : > { %18411 = vmatmul.mubr.msk.f32.vlgmr.msra.gmra.mrb[2].mxu1 %vm2057_vm6, %v3696_v42 }
 0x2d3   : > { %18414 = vmatpush3.msk.msra.mxu1 %vm2061_vm5, %v3615_v43  ;;  %18415 = vmatprep.mubr.msk.f32.mxu1 %vm20065_vm1, %v20064_v48 }
 0x2d4   : > { %18418 = vmatprep.subr.mxu1 %v20064_v48 }
 0x2d6   : > { %18416 = vmatmul.mubr.msk.f32.vlgmr.msra.gmra.mrb[4].mxu1 %vm2057_vm6, %v17328_v44 }
 0x2d7   : > { %18419 = vmatpush3.msk.msra.mxu1 %vm2061_vm5, %v3851_v45  ;;  %18420 = vmatprep.mubr.msk.f32.mxu1 %vm20065_vm1, %v20064_v48 }
 0x2d8   : > { %18423 = vmatprep.subr.mxu1 %v20064_v48 }
 0x2da   : > { %18421 = vmatmul.mubr.msk.f32.vlgmr.msra.gmra.mrb[6].mxu1 %vm2057_vm6, %v3850_v46 }
 0x2db   : > { %18424 = vmatpush3.msk.msra.mxu1 %vm2061_vm5, %v3928_v47  ;;  %18425 = vmatprep.mubr.msk.f32.mxu1 %vm20065_vm1, %v20064_v48  ;;  %v8997_v47 = vld [vmem:[%s22301_s6] sm:$0xff] }
 0x2dc   : > { %18428 = vmatprep.subr.mxu1 %v20064_v48 }
 0x2de   : > { %18426 = vmatmul.mubr.msk.f32.vlgmr.msra.gmra.mrb[0].mxu1 %vm2057_vm6, %v17337_v49  ;;  %v8998_v49 = vld [vmem:[%s22301_s6 + $0x8] sm:$0xff]  ;;  %s21742_s6 = scalar_lea.vmem [#allocation9], %s20391_s27  ;;  %s20066_s27 = smov 2  }
 0x2df   : > { %18429 = vmatpush3.msk.msra.mxu1 %vm2061_vm5, %v4012_v50  ;;  %18430 = vmatprep.mubr.msk.f32.mxu1 %vm20065_vm1, %v20064_v48  ;;  %v17387_v50 = vld [vmem:[%s22302_s17 + $0x10] sm:$0xff] }
 0x2e0   : > { %18433 = vmatprep.subr.mxu1 %v20064_v48 }
 0x2e2   : > { %18431 = vmatmul.mubr.msk.f32.vlgmr.msra.gmra.mrb[2].mxu1 %vm2057_vm6, %v4011_v52 }
 0x2e3   : > { %18434 = vmatpush3.msk.msra.mxu1 %vm2061_vm5, %v3930_v53  ;;  %18435 = vmatprep.mubr.msk.f32.mxu1 %vm20065_vm1, %v20064_v48  ;;  %v5537_v53 = vld [vmem:[%s22302_s17] sm:$0xff] }
 0x2e4   : > { %18438 = vmatprep.subr.mxu1 %v20064_v48 }
 0x2e6   : > { %18436 = vmatmul.mubr.msk.f32.vlgmr.msra.gmra.mrb[4].mxu1 %vm2057_vm6, %v17338_v54 }
 0x2e7   : > { %18439 = vmatpush3.msk.msra.mxu1 %vm2061_vm5, %v4166_v55  ;;  %18440 = vmatprep.mubr.msk.f32.mxu1 %vm20065_vm1, %v20064_v48  ;;  %v5698_v55 = vrot.slane %v17387_v50, 4 }
 0x2e8   : > { %18443 = vmatprep.subr.mxu1 %v20064_v48 }
 0x2ea   : > { %18441 = vmatmul.mubr.msk.f32.vlgmr.msra.gmra.mrb[6].mxu1 %vm2057_vm6, %v4165_v56 }
 0x2eb   : > { %18444 = vmatpush3.msk.msra.mxu1 %vm2061_vm5, %v4243_v57  ;;  %18445 = vmatprep.mubr.msk.f32.mxu1 %vm20065_vm1, %v20064_v48  ;;  %v5774_v57 = vrot.slane %v5537_v53, 4 }
 0x2ec   : > { %18448 = vmatprep.subr.mxu1 %v20064_v48 }
 0x2ee   : > { %18446 = vmatmul.mubr.msk.f32.vlgmr.msra.gmra.mrb[0].mxu1 %vm2057_vm6, %v17347_v58 }
 0x2ef   : > { %18449 = vmatpush3.msk.msra.mxu1 %vm2061_vm5, %v4327_v59  ;;  %18450 = vmatprep.mubr.msk.f32.mxu1 %vm20065_vm1, %v20064_v48  ;;  %v17388_v59 = vld [vmem:[%s22302_s17 + $0x18] sm:$0xff] }
 0x2f0   : > { %18453 = vmatprep.subr.mxu1 %v20064_v48 }
 0x2f2   : > { %18451 = vmatmul.mubr.msk.f32.vlgmr.msra.gmra.mrb[2].mxu1 %vm2057_vm6, %v4326_v60  ;;  %v5538_v60 = vld [vmem:[%s22302_s17 + $0x8] sm:$0xff] }
 0x2f3   : > { %18454 = vmatpush3.msk.msra.mxu1 %vm2061_vm5, %v4245_v61  ;;  %18455 = vmatprep.mubr.msk.f32.mxu1 %vm20065_vm1, %v20064_v48 }
 0x2f4   : > { %18458 = vmatprep.subr.mxu1 %v20064_v48 }
 0x2f6   : > { %18456 = vmatmul.mubr.msk.f32.vlgmr.msra.gmra.mrb[4].mxu1 %vm2057_vm6, %v17348_v62  ;;  %v6002_v62 = vrot.slane %v17388_v59, 4 }
 0x2f7   : > { %18459 = vmatpush3.msk.msra.mxu1 %vm2061_vm5, %v4481_v63  ;;  %18460 = vmatprep.mubr.msk.f32.mxu1 %vm20065_vm1, %v20064_v48 }
 0x2f8   : > { %18463 = vmatprep.subr.mxu1 %v20064_v48 }
 0x2fa   : > { %18461 = vmatmul.mubr.msk.f32.vlgmr.msra.gmra.mrb[6].mxu1 %vm2057_vm6, %v4480_v0  ;;  %v6078_v0 = vrot.slane %v5538_v60, 4 }
 0x2fb   : > { %18464 = vmatpush3.msk.msra.mxu1 %vm2061_vm5, %v4558_v1  ;;  %18465 = vmatprep.mubr.msk.f32.mxu1 %vm20065_vm1, %v20064_v48 }
 0x2fc   : > { %18468 = vmatprep.subr.mxu1 %v20064_v48 }
 0x2fe   : > { %18466 = vmatmul.mubr.msk.f32.vlgmr.msra.gmra.mrb[0].mxu1 %vm2057_vm6, %v17357_v2  ;;  %v17405_v2 = vld [vmem:[%s22302_s17 + $0x20] sm:$0xff] }
 0x2ff   : > { %18469 = vmatpush3.msk.msra.mxu1 %vm2061_vm5, %v4642_v3  ;;  %18470 = vmatprep.mubr.msk.f32.mxu1 %vm20065_vm1, %v20064_v48 }
 0x300   : > { %18473 = vmatprep.subr.mxu1 %v20064_v48 }
 0x302   : > { %18471 = vmatmul.mubr.msk.f32.vlgmr.msra.gmra.mrb[2].mxu1 %vm2057_vm6, %v4641_v4  ;;  %v6238_v4 = vrot.slane %v17405_v2, 4 }
 0x303   : > { %18474 = vmatpush3.msk.msra.mxu1 %vm2061_vm5, %v4560_v5  ;;  %18475 = vmatprep.mubr.msk.f32.mxu1 %vm20065_vm1, %v20064_v48 }
 0x304   : > { %18478 = vmatprep.subr.mxu1 %v20064_v48 }
 0x306   : > { %18476 = vmatmul.mubr.msk.f32.vlgmr.msra.gmra.mrb[4].mxu1 %vm2057_vm6, %v17358_v6  ;;  %v17406_v6 = vld [vmem:[%s22302_s17 + $0x28] sm:$0xff] }
 0x307   : > { %18479 = vmatpush3.msk.msra.mxu1 %vm2061_vm5, %v4796_v7  ;;  %18480 = vmatprep.mubr.msk.f32.mxu1 %vm20065_vm1, %v20064_v48 }
 0x308   : > { %18483 = vmatprep.subr.mxu1 %v20064_v48 }
 0x30a   : > { %18481 = vmatmul.mubr.msk.f32.vlgmr.msra.gmra.mrb[6].mxu1 %vm2057_vm6, %v4795_v8  ;;  %v6392_v8 = vrot.slane %v17406_v6, 4 }
 0x30b   : > { %18484 = vmatpush3.msk.msra.mxu1 %vm2061_vm5, %v4873_v9  ;;  %18485 = vmatprep.mubr.msk.f32.mxu1 %vm20065_vm1, %v20064_v48 }
 0x30c   : > { %18488 = vmatprep.subr.mxu1 %v20064_v48 }
 0x30e   : > { %18486 = vmatmul.mubr.msk.f32.vlgmr.msra.gmra.mrb[0].mxu1 %vm2057_vm6, %v17367_v10  ;;  %v17415_v10 = vld [vmem:[%s22302_s17 + $0x30] sm:$0xff] }
 0x30f   : > { %18489 = vmatpush3.msk.msra.mxu1 %vm2061_vm5, %v4957_v11  ;;  %18490 = vmatprep.mubr.msk.f32.mxu1 %vm20065_vm1, %v20064_v48 }
 0x310   : > { %18493 = vmatprep.subr.mxu1 %v20064_v48 }
 0x312   : > { %18491 = vmatmul.mubr.msk.f32.vlgmr.msra.gmra.mrb[2].mxu1 %vm2057_vm6, %v4956_v12  ;;  %v6553_v12 = vrot.slane %v17415_v10, 4 }
 0x313   : > { %18494 = vmatpush3.msk.msra.mxu1 %vm2061_vm5, %v4875_v13  ;;  %18495 = vmatprep.mubr.msk.f32.mxu1 %vm20065_vm1, %v20064_v48 }
 0x314   : > { %18498 = vmatprep.subr.mxu1 %v20064_v48 }
 0x316   : > { %18496 = vmatmul.mubr.msk.f32.vlgmr.msra.gmra.mrb[4].mxu1 %vm2057_vm6, %v17368_v14  ;;  %v17416_v14 = vld [vmem:[%s22302_s17 + $0x38] sm:$0xff] }
 0x317   : > { %18499 = vmatpush3.msk.msra.mxu1 %vm2061_vm5, %v5111_v15  ;;  %18500 = vmatprep.mubr.msk.f32.mxu1 %vm20065_vm1, %v20064_v48 }
 0x318   : > { %18503 = vmatprep.subr.mxu1 %v20064_v48 }
 0x31a   : > { %18501 = vmatmul.mubr.msk.f32.vlgmr.msra.gmra.mrb[6].mxu1 %vm2057_vm6, %v5110_v16  ;;  %v6707_v16 = vrot.slane %v17416_v14, 4 }
 0x31b   : > { %18504 = vmatpush3.msk.msra.mxu1 %vm2061_vm5, %v5188_v17  ;;  %18505 = vmatprep.mubr.msk.f32.mxu1 %vm20065_vm1, %v20064_v48 }
 0x31c   : > { %18508 = vmatprep.subr.mxu1 %v20064_v48 }
 0x31e   : > { %18506 = vmatmul.mubr.msk.f32.vlgmr.msra.gmra.mrb[0].mxu1 %vm2057_vm6, %v17377_v18  ;;  %v17425_v18 = vld [vmem:[%s22302_s17 + $0x40] sm:$0xff] }
 0x31f   : > { %18509 = vmatpush3.msk.msra.mxu1 %vm2061_vm5, %v5272_v19  ;;  %18510 = vmatprep.mubr.msk.f32.mxu1 %vm20065_vm1, %v20064_v48 }
 0x320   : > { %18513 = vmatprep.subr.mxu1 %v20064_v48 }
 0x322   : > { %18511 = vmatmul.mubr.msk.f32.vlgmr.msra.gmra.mrb[2].mxu1 %vm2057_vm6, %v5271_v20  ;;  %v6868_v20 = vrot.slane %v17425_v18, 4 }
 0x323   : > { %18514 = vmatpush3.msk.msra.mxu1 %vm2061_vm5, %v5190_v21  ;;  %18515 = vmatprep.mubr.msk.f32.mxu1 %vm20065_vm1, %v20064_v48 }
 0x324   : > { %18518 = vmatprep.subr.mxu1 %v20064_v48 }
 0x326   : > { %18516 = vmatmul.mubr.msk.f32.vlgmr.msra.gmra.mrb[4].mxu1 %vm2057_vm6, %v17378_v22  ;;  %v17426_v22 = vld [vmem:[%s22302_s17 + $0x48] sm:$0xff] }
 0x327   : > { %18519 = vmatpush3.msk.msra.mxu1 %vm2061_vm5, %v5426_v23  ;;  %18520 = vmatprep.mubr.msk.f32.mxu1 %vm20065_vm1, %v20064_v48 }
 0x328   : > { %18743 = vmatprep.subr.mxu1 %v20064_v48 }
 0x32a   : > { %18521 = vmatmul.mubr.msk.f32.vlgmr.msra.gmra.mrb[6].mxu1 %vm2057_vm6, %v5425_v24  ;;  %v7022_v24 = vrot.slane %v17426_v22, 4 }
 0x32b   : > { %18745 = vmatprep.mubr.msk.f32.mxu1 %vm20065_vm1, %v20064_v48 }
 0x3f1   : > { %v5266_v25 = vpop.f32.mrb[0].mxu1 }
 0x3f2   : > { %v18507_v26 = vpop.f32.mrb[1].mxu1 }
 0x3f3   : > { %v17435_v26 = vld [vmem:[%s22302_s17 + $0x50] sm:$0xff] }
 0x3f5   : > { %v5343_v27 = vpop.f32.mrb[2].mxu1 }
 0x3f6   : > { %v5503_v28 = vrot.slane %v5343_v27, 4  ;;  %v18512_v29 = vpop.f32.mrb[3].mxu1 }
 0x3f8   : > { %v5508_v31 = vsel %vm2061_vm5, %v5266_v25, %v5503_v28  ;;  %v7183_v28 = vrot.slane %v17435_v26, 4 }
 0x3f9   : > { %v5522_v32 = vadd.f32 %v5515_v30, %v5508_v31  ;;  %v5420_v33 = vpop.f32.mrb[4].mxu1  ;;  %v17436_v30 = vld [vmem:[%s22302_s17 + $0x58] sm:$0xff] }
 0x3fa   : > { %v18517_v34 = vpop.f32.mrb[5].mxu1 }
 0x3fb   : > { %vm5524_vm7 = vcmp.ge.f32.partialorder %v5522_v32, 0.0  ;;  %v5526_v35 = vmul.f32 0.2, %v5522_v32  ;;  %v17445_v34 = vld [vmem:[%s22302_s17 + $0x60] sm:$0xff] }
 0x3fd   : > { %v5528_v36 = vsel %vm5524_vm7, %v5522_v32, %v5526_v35  ;;  %v5497_v37 = vpop.f32.mrb[6].mxu1  ;;  %v7337_v32 = vrot.slane %v17436_v30, 4 }
 0x3fe   : > { %v5533_v38 = vsel %vm5530_vm8, %v5528_v36, 0.0  ;;  %v5506_v39 = vrot.slane %v5497_v37, 4  ;;  %v18522_v40 = vpop.f32.mrb[7].mxu1  ;;  %v7498_v36 = vrot.slane %v17445_v34, 4 }
 0x3ff   : > { %5539 = vrot.lane.b32.xlu1 %v5533_v38, %s22288_s0  ;;  %5535 = vst [vmem:[%s20732_s15] sm:$0xff] %v5533_v38  ;;  %v5775_v56 = vrot.slane %v5533_v38, 4 }
 0x400   : > { %v5509_v42 = vsel %vm2061_vm5, %v5420_v33, %v5506_v39 }
 0x401   : > { %v5523_v43 = vadd.f32 %v5520_v41, %v5509_v42  ;;  %v17455_v42 = vld [vmem:[%s22302_s17 + $0x70] sm:$0xff] }
 0x403   : > { %vm5525_vm9 = vcmp.ge.f32.partialorder %v5523_v43, 0.0  ;;  %v5527_v44 = vmul.f32 0.2, %v5523_v43  ;;  %6154 = vrot.lane.b32.xlu1 %v5533_v38, %s22290_s28 }
 0x405   : > { %v5529_v45 = vsel %vm5525_vm9, %v5523_v43, %v5527_v44  ;;  %v7813_v44 = vrot.slane %v17455_v42, 4 }
 0x406   : > { %v20739_v46 = vsel %vm5530_vm8, %v5529_v45, 0.0 }
 0x407   : > { %6469 = vrot.lane.b32.xlu1 %v5533_v38, %s22291_s4  ;;  %5541 = vrot.lane.b32.xlu0 %v20739_v46, %s22288_s0  ;;  %5536 = vst [vmem:[%s20732_s15 + $0x8] sm:$0xff] %v20739_v46  ;;  %v6079_v63 = vrot.slane %v20739_v46, 4 }
 0x40b   : > { %6784 = vrot.lane.b32.xlu1 %v5533_v38, %s22292_s23  ;;  %6156 = vrot.lane.b32.xlu0 %v20739_v46, %s22290_s28 }
 0x40f   : > { %7099 = vrot.lane.b32.xlu1 %v5533_v38, %s22293_s2  ;;  %6471 = vrot.lane.b32.xlu0 %v20739_v46, %s22291_s4 }
 0x413   : > { %7414 = vrot.lane.b32.xlu1 %v5533_v38, %s22294_s1  ;;  %6786 = vrot.lane.b32.xlu0 %v20739_v46, %s22292_s23 }
 0x417   : > { %7729 = vrot.lane.b32.xlu1 %v5533_v38, %s22295_s30  ;;  %7101 = vrot.lane.b32.xlu0 %v20739_v46, %s22293_s2 }
 0x41b   : > { %8044 = vrot.lane.b32.xlu1 %v5533_v38, %s22296_s29  ;;  %7416 = vrot.lane.b32.xlu0 %v20739_v46, %s22294_s1 }
 0x41f   : > { %8359 = vrot.lane.b32.xlu1 %v5533_v38, %s22297_s22  ;;  %7731 = vrot.lane.b32.xlu0 %v20739_v46, %s22295_s30 }
 0x423   : > { %8674 = vrot.lane.b32.xlu1 %v5533_v38, %s22298_s24  ;;  %8046 = vrot.lane.b32.xlu0 %v20739_v46, %s22296_s29 }
 0x427   : > { %9001 = vperm.xlu1 %19764, %v8997_v47   ;;  %8361 = vrot.lane.b32.xlu0 %v20739_v46, %s22297_s22 }
 0x42b   : > { %8676 = vrot.lane.b32.xlu0 %v20739_v46, %s22298_s24 }
 0x42f   : > { %9006 = vperm.xlu0 %19763, %v8998_v49  }
 0x471   : > { %v5540_v52 = vpop.permute.xlu1 %5539 }
 0x472   : > { %18524 = vmatpush3.msk.msra.mxu0 %vm2061_vm5, %v5540_v52  ;;  %v5699_v54 = vrot.slane %v5540_v52, 4  ;;  %v17465_v52 = vld [vmem:[%s22302_s17 + $0x80] sm:$0xff] }
 0x473   : > { %18526 = vmatmul.mubr.msk.f32.vlgmr.msra.gmra.mrb[2].mxu0 %vm2057_vm6, %v17387_v50  ;;  %18528 = vmatprep.subr.mxu0 %v20064_v48 }
 0x474   : > { %18529 = vmatpush3.msk.msra.mxu0 %vm2061_vm5, %v5533_v38  ;;  %18530 = vmatprep.mubr.msk.f32.mxu0 %vm20065_vm1, %v20064_v48  ;;  %v17446_v38 = vld [vmem:[%s22302_s17 + $0x68] sm:$0xff] }
 0x475   : > { %18533 = vmatprep.subr.mxu0 %v20064_v48  ;;  %v6155_v1 = vpop.permute.xlu1 %6154  ;;  %v7652_v40 = vrot.slane %v17446_v38, 4 }
 0x476   : > { %v6239_v3 = vrot.slane %v6155_v1, 4 }
 0x479   : > { %v5542_v58 = vpop.permute.xlu0 %5541  ;;  %v6470_v9 = vpop.permute.xlu1 %6469 }
 0x47a   : > { %v6003_v61 = vrot.slane %v5542_v58, 4  ;;  %v6554_v11 = vrot.slane %v6470_v9, 4 }
 0x47b   : > { %18531 = vmatmul.mubr.msk.f32.vlgmr.msra.gmra.mrb[2].mxu0 %vm2057_vm6, %v5537_v53 }
 0x47c   : > { %18534 = vmatpush3.msk.msra.mxu0 %vm2061_vm5, %v5699_v54  ;;  %18535 = vmatprep.mubr.msk.f32.mxu0 %vm20065_vm1, %v20064_v48  ;;  %v8128_v54 = vrot.slane %v17465_v52, 4 }
 0x47d   : > { %18538 = vmatprep.subr.mxu0 %v20064_v48  ;;  %v6157_v5 = vpop.permute.xlu0 %6156  ;;  %v6785_v17 = vpop.permute.xlu1 %6784 }
 0x47e   : > { %v6393_v7 = vrot.slane %v6157_v5, 4  ;;  %v6869_v19 = vrot.slane %v6785_v17, 4 }
 0x47f   : > { %18536 = vmatmul.mubr.msk.f32.vlgmr.msra.gmra.mrb[4].mxu0 %vm2057_vm6, %v5698_v55 }
 0x480   : > { %18539 = vmatpush3.msk.msra.mxu0 %vm2061_vm5, %v5775_v56  ;;  %18540 = vmatprep.mubr.msk.f32.mxu0 %vm20065_vm1, %v20064_v48  ;;  %v17466_v56 = vld [vmem:[%s22302_s17 + $0x88] sm:$0xff] }
 0x481   : > { %18543 = vmatprep.subr.mxu0 %v20064_v48  ;;  %v6472_v13 = vpop.permute.xlu0 %6471  ;;  %v7100_v25 = vpop.permute.xlu1 %7099 }
 0x482   : > { %v6708_v15 = vrot.slane %v6472_v13, 4  ;;  %v7184_v27 = vrot.slane %v7100_v25, 4 }
 0x485   : > { %v6787_v21 = vpop.permute.xlu0 %6786  ;;  %v7415_v33 = vpop.permute.xlu1 %7414 }
 0x486   : > { %v7023_v23 = vrot.slane %v6787_v21, 4  ;;  %v7499_v35 = vrot.slane %v7415_v33, 4 }
 0x487   : > { %18541 = vmatmul.mubr.msk.f32.vlgmr.msra.gmra.mrb[4].mxu0 %vm2057_vm6, %v5774_v57 }
 0x488   : > { %18544 = vmatpush3.msk.msra.mxu0 %vm2061_vm5, %v5542_v58  ;;  %18545 = vmatprep.mubr.msk.f32.mxu0 %vm20065_vm1, %v20064_v48  ;;  %v8282_v58 = vrot.slane %v17466_v56, 4 }
 0x489   : > { %18548 = vmatprep.subr.mxu0 %v20064_v48  ;;  %v7102_v29 = vpop.permute.xlu0 %7101  ;;  %v7730_v41 = vpop.permute.xlu1 %7729 }
 0x48a   : > { %v7338_v31 = vrot.slane %v7102_v29, 4  ;;  %v7814_v43 = vrot.slane %v7730_v41, 4 }
 0x48b   : > { %18546 = vmatmul.mubr.msk.f32.vlgmr.msra.gmra.mrb[6].mxu0 %vm2057_vm6, %v17388_v59 }
 0x48c   : > { %18549 = vmatpush3.msk.msra.mxu0 %vm2061_vm5, %v20739_v46  ;;  %18550 = vmatprep.mubr.msk.f32.mxu0 %vm20065_vm1, %v20064_v48  ;;  %v17456_v46 = vld [vmem:[%s22302_s17 + $0x78] sm:$0xff] }
 0x48d   : > { %18553 = vmatprep.subr.mxu0 %v20064_v48  ;;  %v7417_v37 = vpop.permute.xlu0 %7416  ;;  %v7967_v49 = vrot.slane %v17456_v46, 4  ;;  %v8045_v50 = vpop.permute.xlu1 %8044 }
 0x48e   : > { %v7653_v39 = vrot.slane %v7417_v37, 4  ;;  %v8129_v53 = vrot.slane %v8045_v50, 4 }
 0x491   : > { %v7732_v45 = vpop.permute.xlu0 %7731  ;;  %v8360_v59 = vpop.permute.xlu1 %8359 }
 0x492   : > { %v7968_v47 = vrot.slane %v7732_v45, 4 }
 0x493   : > { %18551 = vmatmul.mubr.msk.f32.vlgmr.msra.gmra.mrb[6].mxu0 %vm2057_vm6, %v5538_v60  ;;  %v17475_v60 = vld [vmem:[%s22302_s17 + $0x90] sm:$0xff] }
 0x494   : > { %18554 = vmatpush3.msk.msra.mxu0 %vm2061_vm5, %v6003_v61  ;;  %18555 = vmatprep.mubr.msk.f32.mxu0 %vm20065_vm1, %v20064_v48  ;;  %v8444_v61 = vrot.slane %v8360_v59, 4 }
 0x495   : > { %18558 = vmatprep.subr.mxu0 %v20064_v48  ;;  %v8047_v55 = vpop.permute.xlu0 %8046 }
 0x496   : > { %v8283_v57 = vrot.slane %v8047_v55, 4 }
 0x497   : > { %18556 = vmatmul.mubr.msk.f32.vlgmr.msra.gmra.mrb[8].mxu0 %vm2057_vm6, %v6002_v62  ;;  %v8443_v62 = vrot.slane %v17475_v60, 4 }
 0x498   : > { %18559 = vmatpush3.msk.msra.mxu0 %vm2061_vm5, %v6079_v63  ;;  %18560 = vmatprep.mubr.msk.f32.mxu0 %vm20065_vm1, %v20064_v48 }
 0x499   : > { %18563 = vmatprep.subr.mxu0 %v20064_v48  ;;  %v8362_v63 = vpop.permute.xlu0 %8361 }
 0x49f   : > { %18561 = vmatmul.mubr.msk.f32.vlgmr.msra.gmra.mrb[8].mxu0 %vm2057_vm6, %v6078_v0  ;;  %v17476_v0 = vld [vmem:[%s22302_s17 + $0x98] sm:$0xff] }
 0x4a0   : > { %18564 = vmatpush3.msk.msra.mxu0 %vm2061_vm5, %v6155_v1  ;;  %18565 = vmatprep.mubr.msk.f32.mxu0 %vm20065_vm1, %v20064_v48  ;;  %v8598_v1 = vrot.slane %v8362_v63, 4 }
 0x4a1   : > { %18568 = vmatprep.subr.mxu0 %v20064_v48 }
 0x4a3   : > { %18566 = vmatmul.mubr.msk.f32.vlgmr.msra.gmra.mrb[2].mxu0 %vm2057_vm6, %v17405_v2  ;;  %v8597_v2 = vrot.slane %v17476_v0, 4 }
 0x4a4   : > { %18569 = vmatpush3.msk.msra.mxu0 %vm2061_vm5, %v6239_v3  ;;  %18570 = vmatprep.mubr.msk.f32.mxu0 %vm20065_vm1, %v20064_v48  ;;  %v8675_v3 = vpop.permute.xlu1 %8674 }
 0x4a5   : > { %18573 = vmatprep.subr.mxu0 %v20064_v48 }
 0x4a7   : > { %18571 = vmatmul.mubr.msk.f32.vlgmr.msra.gmra.mrb[4].mxu0 %vm2057_vm6, %v6238_v4  ;;  %v17485_v4 = vld [vmem:[%s22302_s17 + $0xa0] sm:$0xff] }
 0x4a8   : > { %18574 = vmatpush3.msk.msra.mxu0 %vm2061_vm5, %v6157_v5  ;;  %18575 = vmatprep.mubr.msk.f32.mxu0 %vm20065_vm1, %v20064_v48  ;;  %v8759_v5 = vrot.slane %v8675_v3, 4 }
 0x4a9   : > { %18578 = vmatprep.subr.mxu0 %v20064_v48 }
 0x4ab   : > { %18576 = vmatmul.mubr.msk.f32.vlgmr.msra.gmra.mrb[6].mxu0 %vm2057_vm6, %v17406_v6  ;;  %v8758_v6 = vrot.slane %v17485_v4, 4 }
 0x4ac   : > { %18579 = vmatpush3.msk.msra.mxu0 %vm2061_vm5, %v6393_v7  ;;  %18580 = vmatprep.mubr.msk.f32.mxu0 %vm20065_vm1, %v20064_v48  ;;  %v8677_v7 = vpop.permute.xlu0 %8676 }
 0x4ad   : > { %18583 = vmatprep.subr.mxu0 %v20064_v48 }
 0x4af   : > { %18581 = vmatmul.mubr.msk.f32.vlgmr.msra.gmra.mrb[8].mxu0 %vm2057_vm6, %v6392_v8  ;;  %v17486_v8 = vld [vmem:[%s22302_s17 + $0xa8] sm:$0xff] }
 0x4b0   : > { %18584 = vmatpush3.msk.msra.mxu0 %vm2061_vm5, %v6470_v9  ;;  %18585 = vmatprep.mubr.msk.f32.mxu0 %vm20065_vm1, %v20064_v48  ;;  %v8913_v9 = vrot.slane %v8677_v7, 4 }
 0x4b1   : > { %18588 = vmatprep.subr.mxu0 %v20064_v48 }
 0x4b3   : > { %18586 = vmatmul.mubr.msk.f32.vlgmr.msra.gmra.mrb[2].mxu0 %vm2057_vm6, %v17415_v10  ;;  %v8912_v10 = vrot.slane %v17486_v8, 4 }
 0x4b4   : > { %18589 = vmatpush3.msk.msra.mxu0 %vm2061_vm5, %v6554_v11  ;;  %18590 = vmatprep.mubr.msk.f32.mxu0 %vm20065_vm1, %v20064_v48 }
 0x4b5   : > { %18593 = vmatprep.subr.mxu0 %v20064_v48 }
 0x4b7   : > { %18591 = vmatmul.mubr.msk.f32.vlgmr.msra.gmra.mrb[4].mxu0 %vm2057_vm6, %v6553_v12 }
 0x4b8   : > { %18594 = vmatpush3.msk.msra.mxu0 %vm2061_vm5, %v6472_v13  ;;  %18595 = vmatprep.mubr.msk.f32.mxu0 %vm20065_vm1, %v20064_v48 }
 0x4b9   : > { %18598 = vmatprep.subr.mxu0 %v20064_v48 }
 0x4bb   : > { %18596 = vmatmul.mubr.msk.f32.vlgmr.msra.gmra.mrb[6].mxu0 %vm2057_vm6, %v17416_v14 }
 0x4bc   : > { %18599 = vmatpush3.msk.msra.mxu0 %vm2061_vm5, %v6708_v15  ;;  %18600 = vmatprep.mubr.msk.f32.mxu0 %vm20065_vm1, %v20064_v48 }
 0x4bd   : > { %18603 = vmatprep.subr.mxu0 %v20064_v48 }
 0x4bf   : > { %18601 = vmatmul.mubr.msk.f32.vlgmr.msra.gmra.mrb[8].mxu0 %vm2057_vm6, %v6707_v16  ;;  %v9002_v16 = vpop.permute.xlu1 %9001 }
 0x4c0   : > { %18604 = vmatpush3.msk.msra.mxu0 %vm2061_vm5, %v6785_v17  ;;  %18605 = vmatprep.mubr.msk.f32.mxu0 %vm20065_vm1, %v20064_v48 }
 0x4c1   : > { %18608 = vmatprep.subr.mxu0 %v20064_v48 }
 0x4c3   : > { %18606 = vmatmul.mubr.msk.f32.vlgmr.msra.gmra.mrb[2].mxu0 %vm2057_vm6, %v17425_v18 }
 0x4c4   : > { %18609 = vmatpush3.msk.msra.mxu0 %vm2061_vm5, %v6869_v19  ;;  %18610 = vmatprep.mubr.msk.f32.mxu0 %vm20065_vm1, %v20064_v48 }
 0x4c5   : > { %18613 = vmatprep.subr.mxu0 %v20064_v48 }
 0x4c7   : > { %18611 = vmatmul.mubr.msk.f32.vlgmr.msra.gmra.mrb[4].mxu0 %vm2057_vm6, %v6868_v20 }
 0x4c8   : > { %18614 = vmatpush3.msk.msra.mxu0 %vm2061_vm5, %v6787_v21  ;;  %18615 = vmatprep.mubr.msk.f32.mxu0 %vm20065_vm1, %v20064_v48 }
 0x4c9   : > { %18618 = vmatprep.subr.mxu0 %v20064_v48 }
 0x4cb   : > { %18616 = vmatmul.mubr.msk.f32.vlgmr.msra.gmra.mrb[6].mxu0 %vm2057_vm6, %v17426_v22 }
 0x4cc   : > { %18619 = vmatpush3.msk.msra.mxu0 %vm2061_vm5, %v7023_v23  ;;  %18620 = vmatprep.mubr.msk.f32.mxu0 %vm20065_vm1, %v20064_v48 }
 0x4cd   : > { %18623 = vmatprep.subr.mxu0 %v20064_v48 }
 0x4cf   : > { %18621 = vmatmul.mubr.msk.f32.vlgmr.msra.gmra.mrb[8].mxu0 %vm2057_vm6, %v7022_v24 }
 0x4d0   : > { %18624 = vmatpush3.msk.msra.mxu0 %vm2061_vm5, %v7100_v25  ;;  %18625 = vmatprep.mubr.msk.f32.mxu0 %vm20065_vm1, %v20064_v48 }
 0x4d1   : > { %18628 = vmatprep.subr.mxu0 %v20064_v48 }
 0x4d3   : > { %18626 = vmatmul.mubr.msk.f32.vlgmr.msra.gmra.mrb[2].mxu0 %vm2057_vm6, %v17435_v26 }
 0x4d4   : > { %18629 = vmatpush3.msk.msra.mxu0 %vm2061_vm5, %v7184_v27  ;;  %18630 = vmatprep.mubr.msk.f32.mxu0 %vm20065_vm1, %v20064_v48  ;;  %v9007_v27 = vpop.permute.xlu0 %9006 }
 0x4d5   : > { %18633 = vmatprep.subr.mxu0 %v20064_v48 }
 0x4d7   : > { %18631 = vmatmul.mubr.msk.f32.vlgmr.msra.gmra.mrb[4].mxu0 %vm2057_vm6, %v7183_v28 }
 0x4d8   : > { %18634 = vmatpush3.msk.msra.mxu0 %vm2061_vm5, %v7102_v29  ;;  %18635 = vmatprep.mubr.msk.f32.mxu0 %vm20065_vm1, %v20064_v48 }
 0x4d9   : > { %18638 = vmatprep.subr.mxu0 %v20064_v48 }
 0x4db   : > { %18636 = vmatmul.mubr.msk.f32.vlgmr.msra.gmra.mrb[6].mxu0 %vm2057_vm6, %v17436_v30 }
 0x4dc   : > { %18639 = vmatpush3.msk.msra.mxu0 %vm2061_vm5, %v7338_v31  ;;  %18640 = vmatprep.mubr.msk.f32.mxu0 %vm20065_vm1, %v20064_v48 }
 0x4dd   : > { %18643 = vmatprep.subr.mxu0 %v20064_v48 }
 0x4df   : > { %18641 = vmatmul.mubr.msk.f32.vlgmr.msra.gmra.mrb[8].mxu0 %vm2057_vm6, %v7337_v32 }
 0x4e0   : > { %18644 = vmatpush3.msk.msra.mxu0 %vm2061_vm5, %v7415_v33  ;;  %18645 = vmatprep.mubr.msk.f32.mxu0 %vm20065_vm1, %v20064_v48  ;;  %v12484_v33 = vld [vmem:[%s22303_s8] sm:$0xff] }
 0x4e1   : > { %18648 = vmatprep.subr.mxu0 %v20064_v48 }
 0x4e3   : > { %18646 = vmatmul.mubr.msk.f32.vlgmr.msra.gmra.mrb[2].mxu0 %vm2057_vm6, %v17445_v34  ;;  %v12485_v34 = vld [vmem:[%s22303_s8 + $0x8] sm:$0xff] }
 0x4e4   : > { %18649 = vmatpush3.msk.msra.mxu0 %vm2061_vm5, %v7499_v35  ;;  %18650 = vmatprep.mubr.msk.f32.mxu0 %vm20065_vm1, %v20064_v48  ;;  %v17495_v35 = vld [vmem:[%s22304_s7 + $0x10] sm:$0xff] }
 0x4e5   : > { %18653 = vmatprep.subr.mxu0 %v20064_v48 }
 0x4e7   : > { %18651 = vmatmul.mubr.msk.f32.vlgmr.msra.gmra.mrb[4].mxu0 %vm2057_vm6, %v7498_v36 }
 0x4e8   : > { %18654 = vmatpush3.msk.msra.mxu0 %vm2061_vm5, %v7417_v37  ;;  %18655 = vmatprep.mubr.msk.f32.mxu0 %vm20065_vm1, %v20064_v48  ;;  %v9024_v37 = vld [vmem:[%s22304_s7] sm:$0xff] }
 0x4e9   : > { %18658 = vmatprep.subr.mxu0 %v20064_v48 }
 0x4eb   : > { %18656 = vmatmul.mubr.msk.f32.vlgmr.msra.gmra.mrb[6].mxu0 %vm2057_vm6, %v17446_v38 }
 0x4ec   : > { %18659 = vmatpush3.msk.msra.mxu0 %vm2061_vm5, %v7653_v39  ;;  %18660 = vmatprep.mubr.msk.f32.mxu0 %vm20065_vm1, %v20064_v48  ;;  %v9185_v39 = vrot.slane %v17495_v35, 4 }
 0x4ed   : > { %18663 = vmatprep.subr.mxu0 %v20064_v48 }
 0x4ef   : > { %18661 = vmatmul.mubr.msk.f32.vlgmr.msra.gmra.mrb[8].mxu0 %vm2057_vm6, %v7652_v40 }
 0x4f0   : > { %18664 = vmatpush3.msk.msra.mxu0 %vm2061_vm5, %v7730_v41  ;;  %18665 = vmatprep.mubr.msk.f32.mxu0 %vm20065_vm1, %v20064_v48  ;;  %v9261_v41 = vrot.slane %v9024_v37, 4 }
 0x4f1   : > { %18668 = vmatprep.subr.mxu0 %v20064_v48 }
 0x4f3   : > { %18666 = vmatmul.mubr.msk.f32.vlgmr.msra.gmra.mrb[2].mxu0 %vm2057_vm6, %v17455_v42 }
 0x4f4   : > { %18669 = vmatpush3.msk.msra.mxu0 %vm2061_vm5, %v7814_v43  ;;  %18670 = vmatprep.mubr.msk.f32.mxu0 %vm20065_vm1, %v20064_v48  ;;  %v17496_v43 = vld [vmem:[%s22304_s7 + $0x18] sm:$0xff] }
 0x4f5   : > { %18673 = vmatprep.subr.mxu0 %v20064_v48 }
 0x4f7   : > { %18671 = vmatmul.mubr.msk.f32.vlgmr.msra.gmra.mrb[4].mxu0 %vm2057_vm6, %v7813_v44  ;;  %v9025_v44 = vld [vmem:[%s22304_s7 + $0x8] sm:$0xff] }
 0x4f8   : > { %18674 = vmatpush3.msk.msra.mxu0 %vm2061_vm5, %v7732_v45  ;;  %18675 = vmatprep.mubr.msk.f32.mxu0 %vm20065_vm1, %v20064_v48 }
 0x4f9   : > { %18678 = vmatprep.subr.mxu0 %v20064_v48 }
 0x4fb   : > { %18676 = vmatmul.mubr.msk.f32.vlgmr.msra.gmra.mrb[6].mxu0 %vm2057_vm6, %v17456_v46  ;;  %v9489_v46 = vrot.slane %v17496_v43, 4 }
 0x4fc   : > { %18679 = vmatpush3.msk.msra.mxu0 %vm2061_vm5, %v7968_v47  ;;  %18680 = vmatprep.mubr.msk.f32.mxu0 %vm20065_vm1, %v20064_v48 }
 0x4fd   : > { %18683 = vmatprep.subr.mxu0 %v20064_v48 }
 0x4ff   : > { %18681 = vmatmul.mubr.msk.f32.vlgmr.msra.gmra.mrb[8].mxu0 %vm2057_vm6, %v7967_v49  ;;  %v9565_v49 = vrot.slane %v9025_v44, 4 }
 0x500   : > { %18684 = vmatpush3.msk.msra.mxu0 %vm2061_vm5, %v8045_v50  ;;  %18685 = vmatprep.mubr.msk.f32.mxu0 %vm20065_vm1, %v20064_v48 }
 0x501   : > { %18688 = vmatprep.subr.mxu0 %v20064_v48 }
 0x503   : > { %18686 = vmatmul.mubr.msk.f32.vlgmr.msra.gmra.mrb[2].mxu0 %vm2057_vm6, %v17465_v52  ;;  %v17513_v52 = vld [vmem:[%s22304_s7 + $0x20] sm:$0xff] }
 0x504   : > { %18689 = vmatpush3.msk.msra.mxu0 %vm2061_vm5, %v8129_v53  ;;  %18690 = vmatprep.mubr.msk.f32.mxu0 %vm20065_vm1, %v20064_v48 }
 0x505   : > { %18693 = vmatprep.subr.mxu0 %v20064_v48 }
 0x507   : > { %18691 = vmatmul.mubr.msk.f32.vlgmr.msra.gmra.mrb[4].mxu0 %vm2057_vm6, %v8128_v54  ;;  %v9725_v54 = vrot.slane %v17513_v52, 4 }
 0x508   : > { %18694 = vmatpush3.msk.msra.mxu0 %vm2061_vm5, %v8047_v55  ;;  %18695 = vmatprep.mubr.msk.f32.mxu0 %vm20065_vm1, %v20064_v48 }
 0x509   : > { %18698 = vmatprep.subr.mxu0 %v20064_v48 }
 0x50b   : > { %18696 = vmatmul.mubr.msk.f32.vlgmr.msra.gmra.mrb[6].mxu0 %vm2057_vm6, %v17466_v56  ;;  %v17514_v56 = vld [vmem:[%s22304_s7 + $0x28] sm:$0xff] }
 0x50c   : > { %18699 = vmatpush3.msk.msra.mxu0 %vm2061_vm5, %v8283_v57  ;;  %18700 = vmatprep.mubr.msk.f32.mxu0 %vm20065_vm1, %v20064_v48 }
 0x50d   : > { %18703 = vmatprep.subr.mxu0 %v20064_v48 }
 0x50f   : > { %18701 = vmatmul.mubr.msk.f32.vlgmr.msra.gmra.mrb[8].mxu0 %vm2057_vm6, %v8282_v58  ;;  %v9879_v58 = vrot.slane %v17514_v56, 4 }
 0x510   : > { %18704 = vmatpush3.msk.msra.mxu0 %vm2061_vm5, %v8360_v59  ;;  %18705 = vmatprep.mubr.msk.f32.mxu0 %vm20065_vm1, %v20064_v48 }
 0x511   : > { %18708 = vmatprep.subr.mxu0 %v20064_v48 }
 0x513   : > { %18706 = vmatmul.mubr.msk.f32.vlgmr.msra.gmra.mrb[2].mxu0 %vm2057_vm6, %v17475_v60  ;;  %v17523_v60 = vld [vmem:[%s22304_s7 + $0x30] sm:$0xff] }
 0x514   : > { %18709 = vmatpush3.msk.msra.mxu0 %vm2061_vm5, %v8444_v61  ;;  %18710 = vmatprep.mubr.msk.f32.mxu0 %vm20065_vm1, %v20064_v48 }
 0x515   : > { %18713 = vmatprep.subr.mxu0 %v20064_v48 }
 0x517   : > { %18711 = vmatmul.mubr.msk.f32.vlgmr.msra.gmra.mrb[4].mxu0 %vm2057_vm6, %v8443_v62  ;;  %v10040_v62 = vrot.slane %v17523_v60, 4 }
 0x518   : > { %18714 = vmatpush3.msk.msra.mxu0 %vm2061_vm5, %v8362_v63  ;;  %18715 = vmatprep.mubr.msk.f32.mxu0 %vm20065_vm1, %v20064_v48 }
 0x519   : > { %18718 = vmatprep.subr.mxu0 %v20064_v48 }
 0x51b   : > { %18716 = vmatmul.mubr.msk.f32.vlgmr.msra.gmra.mrb[6].mxu0 %vm2057_vm6, %v17476_v0  ;;  %v17524_v0 = vld [vmem:[%s22304_s7 + $0x38] sm:$0xff] }
 0x51c   : > { %18719 = vmatpush3.msk.msra.mxu0 %vm2061_vm5, %v8598_v1  ;;  %18720 = vmatprep.mubr.msk.f32.mxu0 %vm20065_vm1, %v20064_v48 }
 0x51d   : > { %18723 = vmatprep.subr.mxu0 %v20064_v48 }
 0x51f   : > { %18721 = vmatmul.mubr.msk.f32.vlgmr.msra.gmra.mrb[8].mxu0 %vm2057_vm6, %v8597_v2  ;;  %v10194_v2 = vrot.slane %v17524_v0, 4 }
 0x520   : > { %18724 = vmatpush3.msk.msra.mxu0 %vm2061_vm5, %v8675_v3  ;;  %18725 = vmatprep.mubr.msk.f32.mxu0 %vm20065_vm1, %v20064_v48 }
 0x521   : > { %18728 = vmatprep.subr.mxu0 %v20064_v48 }
 0x523   : > { %18726 = vmatmul.mubr.msk.f32.vlgmr.msra.gmra.mrb[2].mxu0 %vm2057_vm6, %v17485_v4  ;;  %v17533_v4 = vld [vmem:[%s22304_s7 + $0x40] sm:$0xff] }
 0x524   : > { %18729 = vmatpush3.msk.msra.mxu0 %vm2061_vm5, %v8759_v5  ;;  %18730 = vmatprep.mubr.msk.f32.mxu0 %vm20065_vm1, %v20064_v48 }
 0x525   : > { %18733 = vmatprep.subr.mxu0 %v20064_v48 }
 0x527   : > { %18731 = vmatmul.mubr.msk.f32.vlgmr.msra.gmra.mrb[4].mxu0 %vm2057_vm6, %v8758_v6  ;;  %v10355_v6 = vrot.slane %v17533_v4, 4 }
 0x528   : > { %18734 = vmatpush3.msk.msra.mxu0 %vm2061_vm5, %v8677_v7  ;;  %18735 = vmatprep.mubr.msk.f32.mxu0 %vm20065_vm1, %v20064_v48 }
 0x529   : > { %18738 = vmatprep.subr.mxu0 %v20064_v48 }
 0x52b   : > { %18736 = vmatmul.mubr.msk.f32.vlgmr.msra.gmra.mrb[6].mxu0 %vm2057_vm6, %v17486_v8  ;;  %v17534_v8 = vld [vmem:[%s22304_s7 + $0x48] sm:$0xff] }
 0x52c   : > { %18739 = vmatpush3.msk.msra.mxu0 %vm2061_vm5, %v8913_v9  ;;  %18740 = vmatprep.mubr.msk.f32.mxu0 %vm20065_vm1, %v20064_v48 }
 0x52d   : > { %18963 = vmatprep.subr.mxu0 %v20064_v48 }
 0x52f   : > { %18741 = vmatmul.mubr.msk.f32.vlgmr.msra.gmra.mrb[8].mxu0 %vm2057_vm6, %v8912_v10  ;;  %v10509_v10 = vrot.slane %v17534_v8, 4 }
 0x530   : > { %18965 = vmatprep.mubr.msk.f32.mxu0 %vm20065_vm1, %v20064_v48 }
 0x5f6   : > { %v8753_v11 = vpop.f32.mrb[2].mxu0 }
 0x5f7   : > { %v18727_v12 = vpop.f32.mrb[3].mxu0 }
 0x5f8   : > { %v17543_v12 = vld [vmem:[%s22304_s7 + $0x50] sm:$0xff] }
 0x5fa   : > { %v8830_v13 = vpop.f32.mrb[4].mxu0 }
 0x5fb   : > { %v8990_v14 = vrot.slane %v8830_v13, 4  ;;  %v18732_v15 = vpop.f32.mrb[5].mxu0 }
 0x5fd   : > { %v8995_v17 = vsel %vm2061_vm5, %v8753_v11, %v8990_v14  ;;  %v10670_v14 = vrot.slane %v17543_v12, 4 }
 0x5fe   : > { %v9009_v18 = vadd.f32 %v9002_v16, %v8995_v17  ;;  %v8907_v19 = vpop.f32.mrb[6].mxu0  ;;  %v17544_v16 = vld [vmem:[%s22304_s7 + $0x58] sm:$0xff] }
 0x5ff   : > { %v18737_v20 = vpop.f32.mrb[7].mxu0 }
 0x600   : > { %vm9011_vm10 = vcmp.ge.f32.partialorder %v9009_v18, 0.0  ;;  %v9013_v21 = vmul.f32 0.2, %v9009_v18  ;;  %v17553_v20 = vld [vmem:[%s22304_s7 + $0x60] sm:$0xff] }
 0x602   : > { %v9015_v22 = vsel %vm9011_vm10, %v9009_v18, %v9013_v21  ;;  %v8984_v23 = vpop.f32.mrb[8].mxu0  ;;  %v10824_v18 = vrot.slane %v17544_v16, 4 }
 0x603   : > { %v9020_v24 = vsel %vm9017_vm11, %v9015_v22, 0.0  ;;  %v8993_v25 = vrot.slane %v8984_v23, 4  ;;  %v18742_v26 = vpop.f32.mrb[9].mxu0  ;;  %v10985_v22 = vrot.slane %v17553_v20, 4 }
 0x604   : > { %9026 = vrot.lane.b32.xlu1 %v9020_v24, %s22288_s0  ;;  %9022 = vst [vmem:[%s21071_s19] sm:$0xff] %v9020_v24  ;;  %v9262_v40 = vrot.slane %v9020_v24, 4 }
 0x605   : > { %v8996_v28 = vsel %vm2061_vm5, %v8907_v19, %v8993_v25 }
 0x606   : > { %v9010_v29 = vadd.f32 %v9007_v27, %v8996_v28  ;;  %v17563_v28 = vld [vmem:[%s22304_s7 + $0x70] sm:$0xff] }
 0x608   : > { %vm9012_vm12 = vcmp.ge.f32.partialorder %v9010_v29, 0.0  ;;  %v9014_v30 = vmul.f32 0.2, %v9010_v29  ;;  %9641 = vrot.lane.b32.xlu1 %v9020_v24, %s22290_s28 }
 0x60a   : > { %v9016_v31 = vsel %vm9012_vm12, %v9010_v29, %v9014_v30  ;;  %v11300_v30 = vrot.slane %v17563_v28, 4 }
 0x60b   : > { %v21078_v32 = vsel %vm9017_vm11, %v9016_v31, 0.0 }
 0x60c   : > { %9956 = vrot.lane.b32.xlu1 %v9020_v24, %s22291_s4  ;;  %9028 = vrot.lane.b32.xlu0 %v21078_v32, %s22288_s0  ;;  %9023 = vst [vmem:[%s21071_s19 + $0x8] sm:$0xff] %v21078_v32  ;;  %v9566_v47 = vrot.slane %v21078_v32, 4 }
 0x610   : > { %10271 = vrot.lane.b32.xlu1 %v9020_v24, %s22292_s23  ;;  %9643 = vrot.lane.b32.xlu0 %v21078_v32, %s22290_s28 }
 0x614   : > { %10586 = vrot.lane.b32.xlu1 %v9020_v24, %s22293_s2  ;;  %9958 = vrot.lane.b32.xlu0 %v21078_v32, %s22291_s4 }
 0x618   : > { %10901 = vrot.lane.b32.xlu1 %v9020_v24, %s22294_s1  ;;  %10273 = vrot.lane.b32.xlu0 %v21078_v32, %s22292_s23 }
 0x61c   : > { %11216 = vrot.lane.b32.xlu1 %v9020_v24, %s22295_s30  ;;  %10588 = vrot.lane.b32.xlu0 %v21078_v32, %s22293_s2 }
 0x620   : > { %11531 = vrot.lane.b32.xlu1 %v9020_v24, %s22296_s29  ;;  %10903 = vrot.lane.b32.xlu0 %v21078_v32, %s22294_s1 }
 0x624   : > { %11846 = vrot.lane.b32.xlu1 %v9020_v24, %s22297_s22  ;;  %11218 = vrot.lane.b32.xlu0 %v21078_v32, %s22295_s30 }
 0x628   : > { %12161 = vrot.lane.b32.xlu1 %v9020_v24, %s22298_s24  ;;  %11533 = vrot.lane.b32.xlu0 %v21078_v32, %s22296_s29 }
 0x62c   : > { %12488 = vperm.xlu1 %19764, %v12484_v33   ;;  %11848 = vrot.lane.b32.xlu0 %v21078_v32, %s22297_s22 }
 0x630   : > { %12163 = vrot.lane.b32.xlu0 %v21078_v32, %s22298_s24 }
 0x634   : > { %12493 = vperm.xlu0 %19763, %v12485_v34  }
 0x676   : > { %v9027_v36 = vpop.permute.xlu1 %9026 }
 0x677   : > { %18744 = vmatpush3.msk.msra.mxu1 %vm2061_vm5, %v9027_v36  ;;  %v9186_v38 = vrot.slane %v9027_v36, 4  ;;  %v17573_v36 = vld [vmem:[%s22304_s7 + $0x80] sm:$0xff] }
 0x678   : > { %18746 = vmatmul.mubr.msk.f32.vlgmr.msra.gmra.mrb[8].mxu1 %vm2057_vm6, %v17495_v35  ;;  %18748 = vmatprep.subr.mxu1 %v20064_v48 }
 0x679   : > { %18749 = vmatpush3.msk.msra.mxu1 %vm2061_vm5, %v9020_v24  ;;  %18750 = vmatprep.mubr.msk.f32.mxu1 %vm20065_vm1, %v20064_v48  ;;  %v17554_v24 = vld [vmem:[%s22304_s7 + $0x68] sm:$0xff] }
 0x67a   : > { %18753 = vmatprep.subr.mxu1 %v20064_v48  ;;  %v9642_v50 = vpop.permute.xlu1 %9641  ;;  %v11139_v26 = vrot.slane %v17554_v24, 4 }
 0x67b   : > { %v9726_v53 = vrot.slane %v9642_v50, 4 }
 0x67e   : > { %v9029_v42 = vpop.permute.xlu0 %9028  ;;  %v9957_v59 = vpop.permute.xlu1 %9956 }
 0x67f   : > { %v9490_v45 = vrot.slane %v9029_v42, 4  ;;  %v10041_v61 = vrot.slane %v9957_v59, 4 }
 0x680   : > { %18751 = vmatmul.mubr.msk.f32.vlgmr.msra.gmra.mrb[8].mxu1 %vm2057_vm6, %v9024_v37 }
 0x681   : > { %18754 = vmatpush3.msk.msra.mxu1 %vm2061_vm5, %v9186_v38  ;;  %18755 = vmatprep.mubr.msk.f32.mxu1 %vm20065_vm1, %v20064_v48  ;;  %v11615_v38 = vrot.slane %v17573_v36, 4 }
 0x682   : > { %18758 = vmatprep.subr.mxu1 %v20064_v48  ;;  %v9644_v55 = vpop.permute.xlu0 %9643  ;;  %v10272_v3 = vpop.permute.xlu1 %10271 }
 0x683   : > { %v9880_v57 = vrot.slane %v9644_v55, 4  ;;  %v10356_v5 = vrot.slane %v10272_v3, 4 }
 0x684   : > { %18756 = vmatmul.mubr.msk.f32.vlgmr.msra.gmra.mrb[10].mxu1 %vm2057_vm6, %v9185_v39 }
 0x685   : > { %18759 = vmatpush3.msk.msra.mxu1 %vm2061_vm5, %v9262_v40  ;;  %18760 = vmatprep.mubr.msk.f32.mxu1 %vm20065_vm1, %v20064_v48  ;;  %v17574_v40 = vld [vmem:[%s22304_s7 + $0x88] sm:$0xff] }
 0x686   : > { %18763 = vmatprep.subr.mxu1 %v20064_v48  ;;  %v9959_v63 = vpop.permute.xlu0 %9958  ;;  %v10587_v11 = vpop.permute.xlu1 %10586 }
 0x687   : > { %v10195_v1 = vrot.slane %v9959_v63, 4  ;;  %v10671_v13 = vrot.slane %v10587_v11, 4 }
 0x68a   : > { %v10274_v7 = vpop.permute.xlu0 %10273  ;;  %v10902_v19 = vpop.permute.xlu1 %10901 }
 0x68b   : > { %v10510_v9 = vrot.slane %v10274_v7, 4  ;;  %v10986_v21 = vrot.slane %v10902_v19, 4 }
 0x68c   : > { %18761 = vmatmul.mubr.msk.f32.vlgmr.msra.gmra.mrb[10].mxu1 %vm2057_vm6, %v9261_v41 }
 0x68d   : > { %18764 = vmatpush3.msk.msra.mxu1 %vm2061_vm5, %v9029_v42  ;;  %18765 = vmatprep.mubr.msk.f32.mxu1 %vm20065_vm1, %v20064_v48  ;;  %v11769_v42 = vrot.slane %v17574_v40, 4 }
 0x68e   : > { %18768 = vmatprep.subr.mxu1 %v20064_v48  ;;  %v10589_v15 = vpop.permute.xlu0 %10588  ;;  %v11217_v27 = vpop.permute.xlu1 %11216 }
 0x68f   : > { %v10825_v17 = vrot.slane %v10589_v15, 4  ;;  %v11301_v29 = vrot.slane %v11217_v27, 4 }
 0x690   : > { %18766 = vmatmul.mubr.msk.f32.vlgmr.msra.gmra.mrb[12].mxu1 %vm2057_vm6, %v17496_v43 }
 0x691   : > { %18769 = vmatpush3.msk.msra.mxu1 %vm2061_vm5, %v21078_v32  ;;  %18770 = vmatprep.mubr.msk.f32.mxu1 %vm20065_vm1, %v20064_v48  ;;  %v17564_v32 = vld [vmem:[%s22304_s7 + $0x78] sm:$0xff] }
 0x692   : > { %18773 = vmatprep.subr.mxu1 %v20064_v48  ;;  %v10904_v23 = vpop.permute.xlu0 %10903  ;;  %v11454_v34 = vrot.slane %v17564_v32, 4  ;;  %v11532_v35 = vpop.permute.xlu1 %11531 }
 0x693   : > { %v11140_v25 = vrot.slane %v10904_v23, 4  ;;  %v11616_v37 = vrot.slane %v11532_v35, 4 }
 0x696   : > { %v11219_v31 = vpop.permute.xlu0 %11218  ;;  %v11847_v43 = vpop.permute.xlu1 %11846 }
 0x697   : > { %v11455_v33 = vrot.slane %v11219_v31, 4 }
 0x698   : > { %18771 = vmatmul.mubr.msk.f32.vlgmr.msra.gmra.mrb[12].mxu1 %vm2057_vm6, %v9025_v44  ;;  %v17583_v44 = vld [vmem:[%s22304_s7 + $0x90] sm:$0xff] }
 0x699   : > { %18774 = vmatpush3.msk.msra.mxu1 %vm2061_vm5, %v9490_v45  ;;  %18775 = vmatprep.mubr.msk.f32.mxu1 %vm20065_vm1, %v20064_v48  ;;  %v11931_v45 = vrot.slane %v11847_v43, 4 }
 0x69a   : > { %18778 = vmatprep.subr.mxu1 %v20064_v48  ;;  %v11534_v39 = vpop.permute.xlu0 %11533 }
 0x69b   : > { %v11770_v41 = vrot.slane %v11534_v39, 4 }
 0x69c   : > { %18776 = vmatmul.mubr.msk.f32.vlgmr.msra.gmra.mrb[14].mxu1 %vm2057_vm6, %v9489_v46  ;;  %v11930_v46 = vrot.slane %v17583_v44, 4 }
 0x69d   : > { %18779 = vmatpush3.msk.msra.mxu1 %vm2061_vm5, %v9566_v47  ;;  %18780 = vmatprep.mubr.msk.f32.mxu1 %vm20065_vm1, %v20064_v48 }
 0x69e   : > { %18783 = vmatprep.subr.mxu1 %v20064_v48  ;;  %v11849_v47 = vpop.permute.xlu0 %11848 }
 0x6a4   : > { %18781 = vmatmul.mubr.msk.f32.vlgmr.msra.gmra.mrb[14].mxu1 %vm2057_vm6, %v9565_v49  ;;  %v17584_v49 = vld [vmem:[%s22304_s7 + $0x98] sm:$0xff] }
 0x6a5   : > { %18784 = vmatpush3.msk.msra.mxu1 %vm2061_vm5, %v9642_v50  ;;  %18785 = vmatprep.mubr.msk.f32.mxu1 %vm20065_vm1, %v20064_v48  ;;  %v12085_v50 = vrot.slane %v11849_v47, 4 }
 0x6a6   : > { %18788 = vmatprep.subr.mxu1 %v20064_v48 }
 0x6a8   : > { %18786 = vmatmul.mubr.msk.f32.vlgmr.msra.gmra.mrb[8].mxu1 %vm2057_vm6, %v17513_v52  ;;  %v12084_v52 = vrot.slane %v17584_v49, 4 }
 0x6a9   : > { %18789 = vmatpush3.msk.msra.mxu1 %vm2061_vm5, %v9726_v53  ;;  %18790 = vmatprep.mubr.msk.f32.mxu1 %vm20065_vm1, %v20064_v48  ;;  %v12162_v53 = vpop.permute.xlu1 %12161 }
 0x6aa   : > { %18793 = vmatprep.subr.mxu1 %v20064_v48 }
 0x6ac   : > { %18791 = vmatmul.mubr.msk.f32.vlgmr.msra.gmra.mrb[10].mxu1 %vm2057_vm6, %v9725_v54  ;;  %v17593_v54 = vld [vmem:[%s22304_s7 + $0xa0] sm:$0xff] }
 0x6ad   : > { %18794 = vmatpush3.msk.msra.mxu1 %vm2061_vm5, %v9644_v55  ;;  %18795 = vmatprep.mubr.msk.f32.mxu1 %vm20065_vm1, %v20064_v48  ;;  %v12246_v55 = vrot.slane %v12162_v53, 4 }
 0x6ae   : > { %18798 = vmatprep.subr.mxu1 %v20064_v48 }
 0x6b0   : > { %18796 = vmatmul.mubr.msk.f32.vlgmr.msra.gmra.mrb[12].mxu1 %vm2057_vm6, %v17514_v56  ;;  %v12245_v56 = vrot.slane %v17593_v54, 4 }
 0x6b1   : > { %18799 = vmatpush3.msk.msra.mxu1 %vm2061_vm5, %v9880_v57  ;;  %18800 = vmatprep.mubr.msk.f32.mxu1 %vm20065_vm1, %v20064_v48  ;;  %v12164_v57 = vpop.permute.xlu0 %12163 }
 0x6b2   : > { %18803 = vmatprep.subr.mxu1 %v20064_v48 }
 0x6b4   : > { %18801 = vmatmul.mubr.msk.f32.vlgmr.msra.gmra.mrb[14].mxu1 %vm2057_vm6, %v9879_v58  ;;  %v17594_v58 = vld [vmem:[%s22304_s7 + $0xa8] sm:$0xff] }
 0x6b5   : > { %18804 = vmatpush3.msk.msra.mxu1 %vm2061_vm5, %v9957_v59  ;;  %18805 = vmatprep.mubr.msk.f32.mxu1 %vm20065_vm1, %v20064_v48  ;;  %v12400_v59 = vrot.slane %v12164_v57, 4 }
 0x6b6   : > { %18808 = vmatprep.subr.mxu1 %v20064_v48 }
 0x6b8   : > { %18806 = vmatmul.mubr.msk.f32.vlgmr.msra.gmra.mrb[8].mxu1 %vm2057_vm6, %v17523_v60  ;;  %v12399_v60 = vrot.slane %v17594_v58, 4 }
 0x6b9   : > { %18809 = vmatpush3.msk.msra.mxu1 %vm2061_vm5, %v10041_v61  ;;  %18810 = vmatprep.mubr.msk.f32.mxu1 %vm20065_vm1, %v20064_v48 }
 0x6ba   : > { %18813 = vmatprep.subr.mxu1 %v20064_v48 }
 0x6bc   : > { %18811 = vmatmul.mubr.msk.f32.vlgmr.msra.gmra.mrb[10].mxu1 %vm2057_vm6, %v10040_v62 }
 0x6bd   : > { %18814 = vmatpush3.msk.msra.mxu1 %vm2061_vm5, %v9959_v63  ;;  %18815 = vmatprep.mubr.msk.f32.mxu1 %vm20065_vm1, %v20064_v48 }
 0x6be   : > { %18818 = vmatprep.subr.mxu1 %v20064_v48 }
 0x6c0   : > { %18816 = vmatmul.mubr.msk.f32.vlgmr.msra.gmra.mrb[12].mxu1 %vm2057_vm6, %v17524_v0 }
 0x6c1   : > { %18819 = vmatpush3.msk.msra.mxu1 %vm2061_vm5, %v10195_v1  ;;  %18820 = vmatprep.mubr.msk.f32.mxu1 %vm20065_vm1, %v20064_v48 }
 0x6c2   : > { %18823 = vmatprep.subr.mxu1 %v20064_v48 }
 0x6c4   : > { %18821 = vmatmul.mubr.msk.f32.vlgmr.msra.gmra.mrb[14].mxu1 %vm2057_vm6, %v10194_v2  ;;  %v12489_v2 = vpop.permute.xlu1 %12488 }
 0x6c5   : > { %18824 = vmatpush3.msk.msra.mxu1 %vm2061_vm5, %v10272_v3  ;;  %18825 = vmatprep.mubr.msk.f32.mxu1 %vm20065_vm1, %v20064_v48 }
 0x6c6   : > { %18828 = vmatprep.subr.mxu1 %v20064_v48 }
 0x6c8   : > { %18826 = vmatmul.mubr.msk.f32.vlgmr.msra.gmra.mrb[8].mxu1 %vm2057_vm6, %v17533_v4 }
 0x6c9   : > { %18829 = vmatpush3.msk.msra.mxu1 %vm2061_vm5, %v10356_v5  ;;  %18830 = vmatprep.mubr.msk.f32.mxu1 %vm20065_vm1, %v20064_v48 }
 0x6ca   : > { %18833 = vmatprep.subr.mxu1 %v20064_v48 }
 0x6cc   : > { %18831 = vmatmul.mubr.msk.f32.vlgmr.msra.gmra.mrb[10].mxu1 %vm2057_vm6, %v10355_v6 }
 0x6cd   : > { %18834 = vmatpush3.msk.msra.mxu1 %vm2061_vm5, %v10274_v7  ;;  %18835 = vmatprep.mubr.msk.f32.mxu1 %vm20065_vm1, %v20064_v48 }
 0x6ce   : > { %18838 = vmatprep.subr.mxu1 %v20064_v48 }
 0x6d0   : > { %18836 = vmatmul.mubr.msk.f32.vlgmr.msra.gmra.mrb[12].mxu1 %vm2057_vm6, %v17534_v8 }
 0x6d1   : > { %18839 = vmatpush3.msk.msra.mxu1 %vm2061_vm5, %v10510_v9  ;;  %18840 = vmatprep.mubr.msk.f32.mxu1 %vm20065_vm1, %v20064_v48 }
 0x6d2   : > { %18843 = vmatprep.subr.mxu1 %v20064_v48 }
 0x6d4   : > { %18841 = vmatmul.mubr.msk.f32.vlgmr.msra.gmra.mrb[14].mxu1 %vm2057_vm6, %v10509_v10 }
 0x6d5   : > { %18844 = vmatpush3.msk.msra.mxu1 %vm2061_vm5, %v10587_v11  ;;  %18845 = vmatprep.mubr.msk.f32.mxu1 %vm20065_vm1, %v20064_v48 }
 0x6d6   : > { %18848 = vmatprep.subr.mxu1 %v20064_v48 }
 0x6d8   : > { %18846 = vmatmul.mubr.msk.f32.vlgmr.msra.gmra.mrb[8].mxu1 %vm2057_vm6, %v17543_v12 }
 0x6d9   : > { %18849 = vmatpush3.msk.msra.mxu1 %vm2061_vm5, %v10671_v13  ;;  %18850 = vmatprep.mubr.msk.f32.mxu1 %vm20065_vm1, %v20064_v48  ;;  %v12494_v13 = vpop.permute.xlu0 %12493 }
 0x6da   : > { %18853 = vmatprep.subr.mxu1 %v20064_v48 }
 0x6dc   : > { %18851 = vmatmul.mubr.msk.f32.vlgmr.msra.gmra.mrb[10].mxu1 %vm2057_vm6, %v10670_v14 }
 0x6dd   : > { %18854 = vmatpush3.msk.msra.mxu1 %vm2061_vm5, %v10589_v15  ;;  %18855 = vmatprep.mubr.msk.f32.mxu1 %vm20065_vm1, %v20064_v48 }
 0x6de   : > { %18858 = vmatprep.subr.mxu1 %v20064_v48 }
 0x6e0   : > { %18856 = vmatmul.mubr.msk.f32.vlgmr.msra.gmra.mrb[12].mxu1 %vm2057_vm6, %v17544_v16 }
 0x6e1   : > { %18859 = vmatpush3.msk.msra.mxu1 %vm2061_vm5, %v10825_v17  ;;  %18860 = vmatprep.mubr.msk.f32.mxu1 %vm20065_vm1, %v20064_v48 }
 0x6e2   : > { %18863 = vmatprep.subr.mxu1 %v20064_v48 }
 0x6e4   : > { %18861 = vmatmul.mubr.msk.f32.vlgmr.msra.gmra.mrb[14].mxu1 %vm2057_vm6, %v10824_v18 }
 0x6e5   : > { %18864 = vmatpush3.msk.msra.mxu1 %vm2061_vm5, %v10902_v19  ;;  %18865 = vmatprep.mubr.msk.f32.mxu1 %vm20065_vm1, %v20064_v48  ;;  %v15971_v19 = vld [vmem:[%s22305_s10] sm:$0xff] }
 0x6e6   : > { %18868 = vmatprep.subr.mxu1 %v20064_v48 }
 0x6e8   : > { %18866 = vmatmul.mubr.msk.f32.vlgmr.msra.gmra.mrb[8].mxu1 %vm2057_vm6, %v17553_v20  ;;  %v15972_v20 = vld [vmem:[%s22305_s10 + $0x8] sm:$0xff] }
 0x6e9   : > { %18869 = vmatpush3.msk.msra.mxu1 %vm2061_vm5, %v10986_v21  ;;  %18870 = vmatprep.mubr.msk.f32.mxu1 %vm20065_vm1, %v20064_v48  ;;  %v17603_v21 = vld [vmem:[%s22306_s9 + $0x10] sm:$0xff] }
 0x6ea   : > { %18873 = vmatprep.subr.mxu1 %v20064_v48 }
 0x6ec   : > { %18871 = vmatmul.mubr.msk.f32.vlgmr.msra.gmra.mrb[10].mxu1 %vm2057_vm6, %v10985_v22 }
 0x6ed   : > { %18874 = vmatpush3.msk.msra.mxu1 %vm2061_vm5, %v10904_v23  ;;  %18875 = vmatprep.mubr.msk.f32.mxu1 %vm20065_vm1, %v20064_v48  ;;  %v12511_v23 = vld [vmem:[%s22306_s9] sm:$0xff] }
 0x6ee   : > { %18878 = vmatprep.subr.mxu1 %v20064_v48 }
 0x6f0   : > { %18876 = vmatmul.mubr.msk.f32.vlgmr.msra.gmra.mrb[12].mxu1 %vm2057_vm6, %v17554_v24 }
 0x6f1   : > { %18879 = vmatpush3.msk.msra.mxu1 %vm2061_vm5, %v11140_v25  ;;  %18880 = vmatprep.mubr.msk.f32.mxu1 %vm20065_vm1, %v20064_v48  ;;  %v12672_v25 = vrot.slane %v17603_v21, 4 }
 0x6f2   : > { %18883 = vmatprep.subr.mxu1 %v20064_v48 }
 0x6f4   : > { %18881 = vmatmul.mubr.msk.f32.vlgmr.msra.gmra.mrb[14].mxu1 %vm2057_vm6, %v11139_v26 }
 0x6f5   : > { %18884 = vmatpush3.msk.msra.mxu1 %vm2061_vm5, %v11217_v27  ;;  %18885 = vmatprep.mubr.msk.f32.mxu1 %vm20065_vm1, %v20064_v48  ;;  %v12748_v27 = vrot.slane %v12511_v23, 4 }
 0x6f6   : > { %18888 = vmatprep.subr.mxu1 %v20064_v48 }
 0x6f8   : > { %18886 = vmatmul.mubr.msk.f32.vlgmr.msra.gmra.mrb[8].mxu1 %vm2057_vm6, %v17563_v28 }
 0x6f9   : > { %18889 = vmatpush3.msk.msra.mxu1 %vm2061_vm5, %v11301_v29  ;;  %18890 = vmatprep.mubr.msk.f32.mxu1 %vm20065_vm1, %v20064_v48  ;;  %v17604_v29 = vld [vmem:[%s22306_s9 + $0x18] sm:$0xff] }
 0x6fa   : > { %18893 = vmatprep.subr.mxu1 %v20064_v48 }
 0x6fc   : > { %18891 = vmatmul.mubr.msk.f32.vlgmr.msra.gmra.mrb[10].mxu1 %vm2057_vm6, %v11300_v30  ;;  %v12512_v30 = vld [vmem:[%s22306_s9 + $0x8] sm:$0xff] }
 0x6fd   : > { %18894 = vmatpush3.msk.msra.mxu1 %vm2061_vm5, %v11219_v31  ;;  %18895 = vmatprep.mubr.msk.f32.mxu1 %vm20065_vm1, %v20064_v48 }
 0x6fe   : > { %18898 = vmatprep.subr.mxu1 %v20064_v48 }
 0x700   : > { %18896 = vmatmul.mubr.msk.f32.vlgmr.msra.gmra.mrb[12].mxu1 %vm2057_vm6, %v17564_v32  ;;  %v12976_v32 = vrot.slane %v17604_v29, 4 }
 0x701   : > { %18899 = vmatpush3.msk.msra.mxu1 %vm2061_vm5, %v11455_v33  ;;  %18900 = vmatprep.mubr.msk.f32.mxu1 %vm20065_vm1, %v20064_v48 }
 0x702   : > { %18903 = vmatprep.subr.mxu1 %v20064_v48 }
 0x704   : > { %18901 = vmatmul.mubr.msk.f32.vlgmr.msra.gmra.mrb[14].mxu1 %vm2057_vm6, %v11454_v34  ;;  %v13052_v34 = vrot.slane %v12512_v30, 4 }
 0x705   : > { %18904 = vmatpush3.msk.msra.mxu1 %vm2061_vm5, %v11532_v35  ;;  %18905 = vmatprep.mubr.msk.f32.mxu1 %vm20065_vm1, %v20064_v48 }
 0x706   : > { %18908 = vmatprep.subr.mxu1 %v20064_v48 }
 0x708   : > { %18906 = vmatmul.mubr.msk.f32.vlgmr.msra.gmra.mrb[8].mxu1 %vm2057_vm6, %v17573_v36  ;;  %v17621_v36 = vld [vmem:[%s22306_s9 + $0x20] sm:$0xff] }
 0x709   : > { %18909 = vmatpush3.msk.msra.mxu1 %vm2061_vm5, %v11616_v37  ;;  %18910 = vmatprep.mubr.msk.f32.mxu1 %vm20065_vm1, %v20064_v48 }
 0x70a   : > { %18913 = vmatprep.subr.mxu1 %v20064_v48 }
 0x70c   : > { %18911 = vmatmul.mubr.msk.f32.vlgmr.msra.gmra.mrb[10].mxu1 %vm2057_vm6, %v11615_v38  ;;  %v13212_v38 = vrot.slane %v17621_v36, 4 }
 0x70d   : > { %18914 = vmatpush3.msk.msra.mxu1 %vm2061_vm5, %v11534_v39  ;;  %18915 = vmatprep.mubr.msk.f32.mxu1 %vm20065_vm1, %v20064_v48 }
 0x70e   : > { %18918 = vmatprep.subr.mxu1 %v20064_v48 }
 0x710   : > { %18916 = vmatmul.mubr.msk.f32.vlgmr.msra.gmra.mrb[12].mxu1 %vm2057_vm6, %v17574_v40  ;;  %v17622_v40 = vld [vmem:[%s22306_s9 + $0x28] sm:$0xff] }
 0x711   : > { %18919 = vmatpush3.msk.msra.mxu1 %vm2061_vm5, %v11770_v41  ;;  %18920 = vmatprep.mubr.msk.f32.mxu1 %vm20065_vm1, %v20064_v48 }
 0x712   : > { %18923 = vmatprep.subr.mxu1 %v20064_v48 }
 0x714   : > { %18921 = vmatmul.mubr.msk.f32.vlgmr.msra.gmra.mrb[14].mxu1 %vm2057_vm6, %v11769_v42  ;;  %v13366_v42 = vrot.slane %v17622_v40, 4 }
 0x715   : > { %18924 = vmatpush3.msk.msra.mxu1 %vm2061_vm5, %v11847_v43  ;;  %18925 = vmatprep.mubr.msk.f32.mxu1 %vm20065_vm1, %v20064_v48 }
 0x716   : > { %18928 = vmatprep.subr.mxu1 %v20064_v48 }
 0x718   : > { %18926 = vmatmul.mubr.msk.f32.vlgmr.msra.gmra.mrb[8].mxu1 %vm2057_vm6, %v17583_v44  ;;  %v17631_v44 = vld [vmem:[%s22306_s9 + $0x30] sm:$0xff] }
 0x719   : > { %18929 = vmatpush3.msk.msra.mxu1 %vm2061_vm5, %v11931_v45  ;;  %18930 = vmatprep.mubr.msk.f32.mxu1 %vm20065_vm1, %v20064_v48 }
 0x71a   : > { %18933 = vmatprep.subr.mxu1 %v20064_v48 }
 0x71c   : > { %18931 = vmatmul.mubr.msk.f32.vlgmr.msra.gmra.mrb[10].mxu1 %vm2057_vm6, %v11930_v46  ;;  %v13527_v46 = vrot.slane %v17631_v44, 4 }
 0x71d   : > { %18934 = vmatpush3.msk.msra.mxu1 %vm2061_vm5, %v11849_v47  ;;  %18935 = vmatprep.mubr.msk.f32.mxu1 %vm20065_vm1, %v20064_v48 }
 0x71e   : > { %18938 = vmatprep.subr.mxu1 %v20064_v48 }
 0x720   : > { %18936 = vmatmul.mubr.msk.f32.vlgmr.msra.gmra.mrb[12].mxu1 %vm2057_vm6, %v17584_v49  ;;  %v17632_v49 = vld [vmem:[%s22306_s9 + $0x38] sm:$0xff] }
 0x721   : > { %18939 = vmatpush3.msk.msra.mxu1 %vm2061_vm5, %v12085_v50  ;;  %18940 = vmatprep.mubr.msk.f32.mxu1 %vm20065_vm1, %v20064_v48 }
 0x722   : > { %18943 = vmatprep.subr.mxu1 %v20064_v48 }
 0x724   : > { %18941 = vmatmul.mubr.msk.f32.vlgmr.msra.gmra.mrb[14].mxu1 %vm2057_vm6, %v12084_v52  ;;  %v13681_v52 = vrot.slane %v17632_v49, 4 }
 0x725   : > { %18944 = vmatpush3.msk.msra.mxu1 %vm2061_vm5, %v12162_v53  ;;  %18945 = vmatprep.mubr.msk.f32.mxu1 %vm20065_vm1, %v20064_v48 }
 0x726   : > { %18948 = vmatprep.subr.mxu1 %v20064_v48 }
 0x728   : > { %18946 = vmatmul.mubr.msk.f32.vlgmr.msra.gmra.mrb[8].mxu1 %vm2057_vm6, %v17593_v54  ;;  %v17641_v54 = vld [vmem:[%s22306_s9 + $0x40] sm:$0xff] }
 0x729   : > { %18949 = vmatpush3.msk.msra.mxu1 %vm2061_vm5, %v12246_v55  ;;  %18950 = vmatprep.mubr.msk.f32.mxu1 %vm20065_vm1, %v20064_v48 }
 0x72a   : > { %18953 = vmatprep.subr.mxu1 %v20064_v48 }
 0x72c   : > { %18951 = vmatmul.mubr.msk.f32.vlgmr.msra.gmra.mrb[10].mxu1 %vm2057_vm6, %v12245_v56  ;;  %v13842_v56 = vrot.slane %v17641_v54, 4 }
 0x72d   : > { %18954 = vmatpush3.msk.msra.mxu1 %vm2061_vm5, %v12164_v57  ;;  %18955 = vmatprep.mubr.msk.f32.mxu1 %vm20065_vm1, %v20064_v48 }
 0x72e   : > { %18958 = vmatprep.subr.mxu1 %v20064_v48 }
 0x730   : > { %18956 = vmatmul.mubr.msk.f32.vlgmr.msra.gmra.mrb[12].mxu1 %vm2057_vm6, %v17594_v58  ;;  %v17642_v58 = vld [vmem:[%s22306_s9 + $0x48] sm:$0xff] }
 0x731   : > { %18959 = vmatpush3.msk.msra.mxu1 %vm2061_vm5, %v12400_v59  ;;  %18960 = vmatprep.mubr.msk.f32.mxu1 %vm20065_vm1, %v20064_v48 }
 0x734   : > { %18961 = vmatmul.mubr.msk.f32.vlgmr.msra.gmra.mrb[14].mxu1 %vm2057_vm6, %v12399_v60  ;;  %v13996_v60 = vrot.slane %v17642_v58, 4 }
 0x7fb   : > { %v12240_v61 = vpop.f32.mrb[8].mxu1 }
 0x7fc   : > { %v18947_v62 = vpop.f32.mrb[9].mxu1 }
 0x7fd   : > { %v17651_v62 = vld [vmem:[%s22306_s9 + $0x50] sm:$0xff] }
 0x7ff   : > { %v12317_v63 = vpop.f32.mrb[10].mxu1 }
 0x800   : > { %v12477_v0 = vrot.slane %v12317_v63, 4  ;;  %v18952_v1 = vpop.f32.mrb[11].mxu1 }
 0x802   : > { %v12482_v3 = vsel %vm2061_vm5, %v12240_v61, %v12477_v0  ;;  %v14157_v0 = vrot.slane %v17651_v62, 4 }
 0x803   : > { %v12496_v4 = vadd.f32 %v12489_v2, %v12482_v3  ;;  %v12394_v5 = vpop.f32.mrb[12].mxu1  ;;  %v17652_v2 = vld [vmem:[%s22306_s9 + $0x58] sm:$0xff] }
 0x804   : > { %v18957_v6 = vpop.f32.mrb[13].mxu1 }
 0x805   : > { %vm12498_vm13 = vcmp.ge.f32.partialorder %v12496_v4, 0.0  ;;  %v12500_v7 = vmul.f32 0.2, %v12496_v4  ;;  %v17661_v6 = vld [vmem:[%s22306_s9 + $0x60] sm:$0xff] }
 0x807   : > { %v12502_v8 = vsel %vm12498_vm13, %v12496_v4, %v12500_v7  ;;  %v12471_v9 = vpop.f32.mrb[14].mxu1  ;;  %v14311_v4 = vrot.slane %v17652_v2, 4 }
 0x808   : > { %v12507_v10 = vsel %vm12504_vm14, %v12502_v8, 0.0  ;;  %v12480_v11 = vrot.slane %v12471_v9, 4  ;;  %v18962_v12 = vpop.f32.mrb[15].mxu1  ;;  %v14472_v8 = vrot.slane %v17661_v6, 4 }
 0x809   : > { %12513 = vrot.lane.b32.xlu1 %v12507_v10, %s22288_s0  ;;  %12509 = vst [vmem:[%s21407_s18] sm:$0xff] %v12507_v10  ;;  %v12749_v26 = vrot.slane %v12507_v10, 4 }
 0x80a   : > { %v12483_v14 = vsel %vm2061_vm5, %v12394_v5, %v12480_v11 }
 0x80b   : > { %v12497_v15 = vadd.f32 %v12494_v13, %v12483_v14  ;;  %v17671_v14 = vld [vmem:[%s22306_s9 + $0x70] sm:$0xff] }
 0x80d   : > { %vm12499_vm15 = vcmp.ge.f32.partialorder %v12497_v15, 0.0  ;;  %v12501_v16 = vmul.f32 0.2, %v12497_v15  ;;  %13128 = vrot.lane.b32.xlu1 %v12507_v10, %s22290_s28 }
 0x80f   : > { %v12503_v17 = vsel %vm12499_vm15, %v12497_v15, %v12501_v16  ;;  %v14787_v16 = vrot.slane %v17671_v14, 4 }
 0x810   : > { %v21414_v18 = vsel %vm12504_vm14, %v12503_v17, 0.0 }
 0x811   : > { %13443 = vrot.lane.b32.xlu1 %v12507_v10, %s22291_s4  ;;  %12515 = vrot.lane.b32.xlu0 %v21414_v18, %s22288_s0  ;;  %12510 = vst [vmem:[%s21407_s18 + $0x8] sm:$0xff] %v21414_v18  ;;  %v13053_v33 = vrot.slane %v21414_v18, 4 }
 0x815   : > { %13758 = vrot.lane.b32.xlu1 %v12507_v10, %s22292_s23  ;;  %13130 = vrot.lane.b32.xlu0 %v21414_v18, %s22290_s28 }
 0x819   : > { %14073 = vrot.lane.b32.xlu1 %v12507_v10, %s22293_s2  ;;  %13445 = vrot.lane.b32.xlu0 %v21414_v18, %s22291_s4 }
 0x81d   : > { %14388 = vrot.lane.b32.xlu1 %v12507_v10, %s22294_s1  ;;  %13760 = vrot.lane.b32.xlu0 %v21414_v18, %s22292_s23 }
 0x821   : > { %14703 = vrot.lane.b32.xlu1 %v12507_v10, %s22295_s30  ;;  %14075 = vrot.lane.b32.xlu0 %v21414_v18, %s22293_s2 }
 0x825   : > { %15018 = vrot.lane.b32.xlu1 %v12507_v10, %s22296_s29  ;;  %14390 = vrot.lane.b32.xlu0 %v21414_v18, %s22294_s1  ;;  %s21911_s1 = sand.u32 1, %s20209_s3  }
 0x829   : > { %15333 = vrot.lane.b32.xlu1 %v12507_v10, %s22297_s22  ;;  %14705 = vrot.lane.b32.xlu0 %v21414_v18, %s22295_s30  ;;  %s21914_s30 = sshll.u32 %s20209_s3, 8 }
 0x82d   : > { %15648 = vrot.lane.b32.xlu1 %v12507_v10, %s22298_s24  ;;  %15020 = vrot.lane.b32.xlu0 %v21414_v18, %s22296_s29 }
 0x831   : > { %15975 = vperm.xlu1 %19764, %v15971_v19   ;;  %15335 = vrot.lane.b32.xlu0 %v21414_v18, %s22297_s22 }
 0x835   : > { %15650 = vrot.lane.b32.xlu0 %v21414_v18, %s22298_s24  ;;  %s17218_s24 = sshll.u32 %s20386_s21, 5 }
 0x839   : > { %15980 = vperm.xlu0 %19763, %v15972_v20  }
 0x87b   : > { %v12514_v22 = vpop.permute.xlu1 %12513 }
 0x87c   : > { %18964 = vmatpush3.msk.msra.mxu0 %vm2061_vm5, %v12514_v22  ;;  %v12673_v24 = vrot.slane %v12514_v22, 4  ;;  %v17681_v22 = vld [vmem:[%s22306_s9 + $0x80] sm:$0xff] }
 0x87d   : > { %18966 = vmatmul.mubr.msk.f32.vlgmr.msra.gmra.mrb[10].mxu0 %vm2057_vm6, %v17603_v21  ;;  %18968 = vmatprep.subr.mxu0 %v20064_v48 }
 0x87e   : > { %18969 = vmatpush3.msk.msra.mxu0 %vm2061_vm5, %v12507_v10  ;;  %18970 = vmatprep.mubr.msk.f32.mxu0 %vm20065_vm1, %v20064_v48  ;;  %v17662_v10 = vld [vmem:[%s22306_s9 + $0x68] sm:$0xff] }
 0x87f   : > { %18973 = vmatprep.subr.mxu0 %v20064_v48  ;;  %v13129_v35 = vpop.permute.xlu1 %13128  ;;  %v14626_v12 = vrot.slane %v17662_v10, 4 }
 0x880   : > { %v13213_v37 = vrot.slane %v13129_v35, 4 }
 0x883   : > { %v12516_v28 = vpop.permute.xlu0 %12515  ;;  %v13444_v43 = vpop.permute.xlu1 %13443 }
 0x884   : > { %v12977_v31 = vrot.slane %v12516_v28, 4  ;;  %v13528_v45 = vrot.slane %v13444_v43, 4 }
 0x885   : > { %18971 = vmatmul.mubr.msk.f32.vlgmr.msra.gmra.mrb[10].mxu0 %vm2057_vm6, %v12511_v23 }
 0x886   : > { %18974 = vmatpush3.msk.msra.mxu0 %vm2061_vm5, %v12673_v24  ;;  %18975 = vmatprep.mubr.msk.f32.mxu0 %vm20065_vm1, %v20064_v48  ;;  %v15102_v24 = vrot.slane %v17681_v22, 4 }
 0x887   : > { %18978 = vmatprep.subr.mxu0 %v20064_v48  ;;  %v13131_v39 = vpop.permute.xlu0 %13130  ;;  %v13759_v53 = vpop.permute.xlu1 %13758 }
 0x888   : > { %v13367_v41 = vrot.slane %v13131_v39, 4  ;;  %v13843_v55 = vrot.slane %v13759_v53, 4 }
 0x889   : > { %18976 = vmatmul.mubr.msk.f32.vlgmr.msra.gmra.mrb[12].mxu0 %vm2057_vm6, %v12672_v25 }
 0x88a   : > { %18979 = vmatpush3.msk.msra.mxu0 %vm2061_vm5, %v12749_v26  ;;  %18980 = vmatprep.mubr.msk.f32.mxu0 %vm20065_vm1, %v20064_v48  ;;  %v17682_v26 = vld [vmem:[%s22306_s9 + $0x88] sm:$0xff] }
 0x88b   : > { %18983 = vmatprep.subr.mxu0 %v20064_v48  ;;  %v13446_v47 = vpop.permute.xlu0 %13445  ;;  %v14074_v61 = vpop.permute.xlu1 %14073 }
 0x88c   : > { %v13682_v50 = vrot.slane %v13446_v47, 4  ;;  %v14158_v63 = vrot.slane %v14074_v61, 4 }
 0x88f   : > { %v13761_v57 = vpop.permute.xlu0 %13760  ;;  %v14389_v5 = vpop.permute.xlu1 %14388 }
 0x890   : > { %v13997_v59 = vrot.slane %v13761_v57, 4  ;;  %v14473_v7 = vrot.slane %v14389_v5, 4 }
 0x891   : > { %18981 = vmatmul.mubr.msk.f32.vlgmr.msra.gmra.mrb[12].mxu0 %vm2057_vm6, %v12748_v27 }
 0x892   : > { %18984 = vmatpush3.msk.msra.mxu0 %vm2061_vm5, %v12516_v28  ;;  %18985 = vmatprep.mubr.msk.f32.mxu0 %vm20065_vm1, %v20064_v48  ;;  %v15256_v28 = vrot.slane %v17682_v26, 4 }
 0x893   : > { %18988 = vmatprep.subr.mxu0 %v20064_v48  ;;  %v14076_v1 = vpop.permute.xlu0 %14075  ;;  %v14704_v13 = vpop.permute.xlu1 %14703 }
 0x894   : > { %v14312_v3 = vrot.slane %v14076_v1, 4  ;;  %v14788_v15 = vrot.slane %v14704_v13, 4 }
 0x895   : > { %18986 = vmatmul.mubr.msk.f32.vlgmr.msra.gmra.mrb[14].mxu0 %vm2057_vm6, %v17604_v29 }
 0x896   : > { %18989 = vmatpush3.msk.msra.mxu0 %vm2061_vm5, %v21414_v18  ;;  %18990 = vmatprep.mubr.msk.f32.mxu0 %vm20065_vm1, %v20064_v48  ;;  %v17672_v18 = vld [vmem:[%s22306_s9 + $0x78] sm:$0xff] }
 0x897   : > { %18993 = vmatprep.subr.mxu0 %v20064_v48  ;;  %v14391_v9 = vpop.permute.xlu0 %14390  ;;  %v14941_v20 = vrot.slane %v17672_v18, 4  ;;  %v15019_v21 = vpop.permute.xlu1 %15018 }
 0x898   : > { %v14627_v11 = vrot.slane %v14391_v9, 4  ;;  %v15103_v23 = vrot.slane %v15019_v21, 4 }
 0x89b   : > { %v14706_v17 = vpop.permute.xlu0 %14705  ;;  %v15334_v29 = vpop.permute.xlu1 %15333 }
 0x89c   : > { %v14942_v19 = vrot.slane %v14706_v17, 4 }
 0x89d   : > { %18991 = vmatmul.mubr.msk.f32.vlgmr.msra.gmra.mrb[14].mxu0 %vm2057_vm6, %v12512_v30  ;;  %v17691_v30 = vld [vmem:[%s22306_s9 + $0x90] sm:$0xff] }
 0x89e   : > { %18994 = vmatpush3.msk.msra.mxu0 %vm2061_vm5, %v12977_v31  ;;  %18995 = vmatprep.mubr.msk.f32.mxu0 %vm20065_vm1, %v20064_v48  ;;  %v15418_v31 = vrot.slane %v15334_v29, 4 }
 0x89f   : > { %18998 = vmatprep.subr.mxu0 %v20064_v48  ;;  %v15021_v25 = vpop.permute.xlu0 %15020 }
 0x8a0   : > { %v15257_v27 = vrot.slane %v15021_v25, 4 }
 0x8a1   : > { %18996 = vmatmul.mubr.msk.f32.vlgmr.msra.gmra.mrb[16].mxu0 %vm2057_vm6, %v12976_v32  ;;  %v15417_v32 = vrot.slane %v17691_v30, 4 }
 0x8a2   : > { %18999 = vmatpush3.msk.msra.mxu0 %vm2061_vm5, %v13053_v33  ;;  %19000 = vmatprep.mubr.msk.f32.mxu0 %vm20065_vm1, %v20064_v48 }
 0x8a3   : > { %19003 = vmatprep.subr.mxu0 %v20064_v48  ;;  %v15336_v33 = vpop.permute.xlu0 %15335 }
 0x8a9   : > { %19001 = vmatmul.mubr.msk.f32.vlgmr.msra.gmra.mrb[16].mxu0 %vm2057_vm6, %v13052_v34  ;;  %v17692_v34 = vld [vmem:[%s22306_s9 + $0x98] sm:$0xff] }
 0x8aa   : > { %19004 = vmatpush3.msk.msra.mxu0 %vm2061_vm5, %v13129_v35  ;;  %19005 = vmatprep.mubr.msk.f32.mxu0 %vm20065_vm1, %v20064_v48  ;;  %v15572_v35 = vrot.slane %v15336_v33, 4 }
 0x8ab   : > { %19008 = vmatprep.subr.mxu0 %v20064_v48 }
 0x8ad   : > { %19006 = vmatmul.mubr.msk.f32.vlgmr.msra.gmra.mrb[10].mxu0 %vm2057_vm6, %v17621_v36  ;;  %v15571_v36 = vrot.slane %v17692_v34, 4 }
 0x8ae   : > { %19009 = vmatpush3.msk.msra.mxu0 %vm2061_vm5, %v13213_v37  ;;  %19010 = vmatprep.mubr.msk.f32.mxu0 %vm20065_vm1, %v20064_v48  ;;  %v15649_v37 = vpop.permute.xlu1 %15648 }
 0x8af   : > { %19013 = vmatprep.subr.mxu0 %v20064_v48 }
 0x8b1   : > { %19011 = vmatmul.mubr.msk.f32.vlgmr.msra.gmra.mrb[12].mxu0 %vm2057_vm6, %v13212_v38  ;;  %v17701_v38 = vld [vmem:[%s22306_s9 + $0xa0] sm:$0xff] }
 0x8b2   : > { %19014 = vmatpush3.msk.msra.mxu0 %vm2061_vm5, %v13131_v39  ;;  %19015 = vmatprep.mubr.msk.f32.mxu0 %vm20065_vm1, %v20064_v48  ;;  %v15733_v39 = vrot.slane %v15649_v37, 4 }
 0x8b3   : > { %19018 = vmatprep.subr.mxu0 %v20064_v48 }
 0x8b5   : > { %19016 = vmatmul.mubr.msk.f32.vlgmr.msra.gmra.mrb[14].mxu0 %vm2057_vm6, %v17622_v40  ;;  %v15732_v40 = vrot.slane %v17701_v38, 4 }
 0x8b6   : > { %19019 = vmatpush3.msk.msra.mxu0 %vm2061_vm5, %v13367_v41  ;;  %19020 = vmatprep.mubr.msk.f32.mxu0 %vm20065_vm1, %v20064_v48  ;;  %v15651_v41 = vpop.permute.xlu0 %15650 }
 0x8b7   : > { %19023 = vmatprep.subr.mxu0 %v20064_v48 }
 0x8b9   : > { %19021 = vmatmul.mubr.msk.f32.vlgmr.msra.gmra.mrb[16].mxu0 %vm2057_vm6, %v13366_v42  ;;  %v17702_v42 = vld [vmem:[%s22306_s9 + $0xa8] sm:$0xff] }
 0x8ba   : > { %19024 = vmatpush3.msk.msra.mxu0 %vm2061_vm5, %v13444_v43  ;;  %19025 = vmatprep.mubr.msk.f32.mxu0 %vm20065_vm1, %v20064_v48  ;;  %v15887_v43 = vrot.slane %v15651_v41, 4 }
 0x8bb   : > { %19028 = vmatprep.subr.mxu0 %v20064_v48 }
 0x8bd   : > { %19026 = vmatmul.mubr.msk.f32.vlgmr.msra.gmra.mrb[10].mxu0 %vm2057_vm6, %v17631_v44  ;;  %v15886_v44 = vrot.slane %v17702_v42, 4 }
 0x8be   : > { %19029 = vmatpush3.msk.msra.mxu0 %vm2061_vm5, %v13528_v45  ;;  %19030 = vmatprep.mubr.msk.f32.mxu0 %vm20065_vm1, %v20064_v48 }
 0x8bf   : > { %19033 = vmatprep.subr.mxu0 %v20064_v48 }
 0x8c1   : > { %19031 = vmatmul.mubr.msk.f32.vlgmr.msra.gmra.mrb[12].mxu0 %vm2057_vm6, %v13527_v46 }
 0x8c2   : > { %19034 = vmatpush3.msk.msra.mxu0 %vm2061_vm5, %v13446_v47  ;;  %19035 = vmatprep.mubr.msk.f32.mxu0 %vm20065_vm1, %v20064_v48 }
 0x8c3   : > { %19038 = vmatprep.subr.mxu0 %v20064_v48 }
 0x8c5   : > { %19036 = vmatmul.mubr.msk.f32.vlgmr.msra.gmra.mrb[14].mxu0 %vm2057_vm6, %v17632_v49 }
 0x8c6   : > { %19039 = vmatpush3.msk.msra.mxu0 %vm2061_vm5, %v13682_v50  ;;  %19040 = vmatprep.mubr.msk.f32.mxu0 %vm20065_vm1, %v20064_v48 }
 0x8c7   : > { %19043 = vmatprep.subr.mxu0 %v20064_v48 }
 0x8c9   : > { %19041 = vmatmul.mubr.msk.f32.vlgmr.msra.gmra.mrb[16].mxu0 %vm2057_vm6, %v13681_v52  ;;  %v15976_v52 = vpop.permute.xlu1 %15975 }
 0x8ca   : > { %19044 = vmatpush3.msk.msra.mxu0 %vm2061_vm5, %v13759_v53  ;;  %19045 = vmatprep.mubr.msk.f32.mxu0 %vm20065_vm1, %v20064_v48 }
 0x8cb   : > { %19048 = vmatprep.subr.mxu0 %v20064_v48 }
 0x8cd   : > { %19046 = vmatmul.mubr.msk.f32.vlgmr.msra.gmra.mrb[10].mxu0 %vm2057_vm6, %v17641_v54 }
 0x8ce   : > { %19049 = vmatpush3.msk.msra.mxu0 %vm2061_vm5, %v13843_v55  ;;  %19050 = vmatprep.mubr.msk.f32.mxu0 %vm20065_vm1, %v20064_v48 }
 0x8cf   : > { %19053 = vmatprep.subr.mxu0 %v20064_v48 }
 0x8d1   : > { %19051 = vmatmul.mubr.msk.f32.vlgmr.msra.gmra.mrb[12].mxu0 %vm2057_vm6, %v13842_v56 }
 0x8d2   : > { %19054 = vmatpush3.msk.msra.mxu0 %vm2061_vm5, %v13761_v57  ;;  %19055 = vmatprep.mubr.msk.f32.mxu0 %vm20065_vm1, %v20064_v48 }
 0x8d3   : > { %19058 = vmatprep.subr.mxu0 %v20064_v48 }
 0x8d5   : > { %19056 = vmatmul.mubr.msk.f32.vlgmr.msra.gmra.mrb[14].mxu0 %vm2057_vm6, %v17642_v58 }
 0x8d6   : > { %19059 = vmatpush3.msk.msra.mxu0 %vm2061_vm5, %v13997_v59  ;;  %19060 = vmatprep.mubr.msk.f32.mxu0 %vm20065_vm1, %v20064_v48 }
 0x8d7   : > { %19063 = vmatprep.subr.mxu0 %v20064_v48 }
 0x8d9   : > { %19061 = vmatmul.mubr.msk.f32.vlgmr.msra.gmra.mrb[16].mxu0 %vm2057_vm6, %v13996_v60 }
 0x8da   : > { %19064 = vmatpush3.msk.msra.mxu0 %vm2061_vm5, %v14074_v61  ;;  %19065 = vmatprep.mubr.msk.f32.mxu0 %vm20065_vm1, %v20064_v48 }
 0x8db   : > { %19068 = vmatprep.subr.mxu0 %v20064_v48 }
 0x8dd   : > { %19066 = vmatmul.mubr.msk.f32.vlgmr.msra.gmra.mrb[10].mxu0 %vm2057_vm6, %v17651_v62 }
 0x8de   : > { %19069 = vmatpush3.msk.msra.mxu0 %vm2061_vm5, %v14158_v63  ;;  %19070 = vmatprep.mubr.msk.f32.mxu0 %vm20065_vm1, %v20064_v48  ;;  %v15981_v63 = vpop.permute.xlu0 %15980 }
 0x8df   : > { %19073 = vmatprep.subr.mxu0 %v20064_v48 }
 0x8e1   : > { %19071 = vmatmul.mubr.msk.f32.vlgmr.msra.gmra.mrb[12].mxu0 %vm2057_vm6, %v14157_v0 }
 0x8e2   : > { %19074 = vmatpush3.msk.msra.mxu0 %vm2061_vm5, %v14076_v1  ;;  %19075 = vmatprep.mubr.msk.f32.mxu0 %vm20065_vm1, %v20064_v48 }
 0x8e3   : > { %19078 = vmatprep.subr.mxu0 %v20064_v48 }
 0x8e5   : > { %19076 = vmatmul.mubr.msk.f32.vlgmr.msra.gmra.mrb[14].mxu0 %vm2057_vm6, %v17652_v2  ;;  %v17711_v2 = vld [vmem:[%s22196_s11 + $0x20] sm:$0xff] }
 0x8e6   : > { %19079 = vmatpush3.msk.msra.mxu0 %vm2061_vm5, %v14312_v3  ;;  %19080 = vmatprep.mubr.msk.f32.mxu0 %vm20065_vm1, %v20064_v48 }
 0x8e7   : > { %19083 = vmatprep.subr.mxu0 %v20064_v48  ;;  %19187 = vmatprep.mubr.msk.f32.mxu1 %vm16015_vm3, %v17711_v2 }
 0x8e9   : > { %19081 = vmatmul.mubr.msk.f32.vlgmr.msra.gmra.mrb[16].mxu0 %vm2057_vm6, %v14311_v4 }
 0x8ea   : > { %19084 = vmatpush3.msk.msra.mxu0 %vm2061_vm5, %v14389_v5  ;;  %19085 = vmatprep.mubr.msk.f32.mxu0 %vm20065_vm1, %v20064_v48 }
 0x8eb   : > { %19088 = vmatprep.subr.mxu0 %v20064_v48 }
 0x8ed   : > { %19086 = vmatmul.mubr.msk.f32.vlgmr.msra.gmra.mrb[10].mxu0 %vm2057_vm6, %v17661_v6 }
 0x8ee   : > { %19089 = vmatpush3.msk.msra.mxu0 %vm2061_vm5, %v14473_v7  ;;  %19090 = vmatprep.mubr.msk.f32.mxu0 %vm20065_vm1, %v20064_v48 }
 0x8ef   : > { %19093 = vmatprep.subr.mxu0 %v20064_v48 }
 0x8f1   : > { %19091 = vmatmul.mubr.msk.f32.vlgmr.msra.gmra.mrb[12].mxu0 %vm2057_vm6, %v14472_v8  ;;  %v16537_v8 = vld [vmem:[%s22197_s12 + $0x8] sm:$0xff] }
 0x8f2   : > { %19094 = vmatpush3.msk.msra.mxu0 %vm2061_vm5, %v14391_v9  ;;  %19095 = vmatprep.mubr.msk.f32.mxu0 %vm20065_vm1, %v20064_v48  ;;  %v16536_v9 = vld [vmem:[%s22197_s12] sm:$0xff] }
 0x8f3   : > { %19098 = vmatprep.subr.mxu0 %v20064_v48 }
 0x8f5   : > { %19096 = vmatmul.mubr.msk.f32.vlgmr.msra.gmra.mrb[14].mxu0 %vm2057_vm6, %v17662_v10  ;;  %v16539_v10 = vld [vmem:[%s22197_s12 + $0x18] sm:$0xff] }
 0x8f6   : > { %19099 = vmatpush3.msk.msra.mxu0 %vm2061_vm5, %v14627_v11  ;;  %19100 = vmatprep.mubr.msk.f32.mxu0 %vm20065_vm1, %v20064_v48  ;;  %v16538_v11 = vld [vmem:[%s22197_s12 + $0x10] sm:$0xff] }
 0x8f7   : > { %19103 = vmatprep.subr.mxu0 %v20064_v48 }
 0x8f9   : > { %19101 = vmatmul.mubr.msk.f32.vlgmr.msra.gmra.mrb[16].mxu0 %vm2057_vm6, %v14626_v12 }
 0x8fa   : > { %19104 = vmatpush3.msk.msra.mxu0 %vm2061_vm5, %v14704_v13  ;;  %19105 = vmatprep.mubr.msk.f32.mxu0 %vm20065_vm1, %v20064_v48 }
 0x8fb   : > { %19108 = vmatprep.subr.mxu0 %v20064_v48 }
 0x8fd   : > { %19106 = vmatmul.mubr.msk.f32.vlgmr.msra.gmra.mrb[10].mxu0 %vm2057_vm6, %v17671_v14 }
 0x8fe   : > { %19109 = vmatpush3.msk.msra.mxu0 %vm2061_vm5, %v14788_v15  ;;  %19110 = vmatprep.mubr.msk.f32.mxu0 %vm20065_vm1, %v20064_v48 }
 0x8ff   : > { %19113 = vmatprep.subr.mxu0 %v20064_v48 }
 0x901   : > { %19111 = vmatmul.mubr.msk.f32.vlgmr.msra.gmra.mrb[12].mxu0 %vm2057_vm6, %v14787_v16 }
 0x902   : > { %19114 = vmatpush3.msk.msra.mxu0 %vm2061_vm5, %v14706_v17  ;;  %19115 = vmatprep.mubr.msk.f32.mxu0 %vm20065_vm1, %v20064_v48 }
 0x903   : > { %19118 = vmatprep.subr.mxu0 %v20064_v48 }
 0x905   : > { %19116 = vmatmul.mubr.msk.f32.vlgmr.msra.gmra.mrb[14].mxu0 %vm2057_vm6, %v17672_v18 }
 0x906   : > { %19119 = vmatpush3.msk.msra.mxu0 %vm2061_vm5, %v14942_v19  ;;  %19120 = vmatprep.mubr.msk.f32.mxu0 %vm20065_vm1, %v20064_v48 }
 0x907   : > { %19123 = vmatprep.subr.mxu0 %v20064_v48 }
 0x909   : > { %19121 = vmatmul.mubr.msk.f32.vlgmr.msra.gmra.mrb[16].mxu0 %vm2057_vm6, %v14941_v20  ;;  %v17712_v20 = vld [vmem:[%s22196_s11 + $0x28] sm:$0xff] }
 0x90a   : > { %19124 = vmatpush3.msk.msra.mxu0 %vm2061_vm5, %v15019_v21  ;;  %19125 = vmatprep.mubr.msk.f32.mxu0 %vm20065_vm1, %v20064_v48  ;;  %v17713_v21 = vld [vmem:[%s22196_s11 + $0x30] sm:$0xff] }
 0x90b   : > { %19128 = vmatprep.subr.mxu0 %v20064_v48 }
 0x90d   : > { %19126 = vmatmul.mubr.msk.f32.vlgmr.msra.gmra.mrb[10].mxu0 %vm2057_vm6, %v17681_v22 }
 0x90e   : > { %19129 = vmatpush3.msk.msra.mxu0 %vm2061_vm5, %v15103_v23  ;;  %19130 = vmatprep.mubr.msk.f32.mxu0 %vm20065_vm1, %v20064_v48 }
 0x90f   : > { %19133 = vmatprep.subr.mxu0 %v20064_v48 }
 0x911   : > { %19131 = vmatmul.mubr.msk.f32.vlgmr.msra.gmra.mrb[12].mxu0 %vm2057_vm6, %v15102_v24  ;;  %v17714_v24 = vld [vmem:[%s22196_s11 + $0x38] sm:$0xff] }
 0x912   : > { %19134 = vmatpush3.msk.msra.mxu0 %vm2061_vm5, %v15021_v25  ;;  %19135 = vmatprep.mubr.msk.f32.mxu0 %vm20065_vm1, %v20064_v48  ;;  %v16002_v25 = vld [vmem:[%s22196_s11] sm:$0xff] }
 0x913   : > { %19138 = vmatprep.subr.mxu0 %v20064_v48 }
 0x915   : > { %19136 = vmatmul.mubr.msk.f32.vlgmr.msra.gmra.mrb[14].mxu0 %vm2057_vm6, %v17682_v26 }
 0x916   : > { %19139 = vmatpush3.msk.msra.mxu0 %vm2061_vm5, %v15257_v27  ;;  %19140 = vmatprep.mubr.msk.f32.mxu0 %vm20065_vm1, %v20064_v48 }
 0x917   : > { %19143 = vmatprep.subr.mxu0 %v20064_v48 }
 0x919   : > { %19141 = vmatmul.mubr.msk.f32.vlgmr.msra.gmra.mrb[16].mxu0 %vm2057_vm6, %v15256_v28  ;;  %v16003_v28 = vld [vmem:[%s22196_s11 + $0x8] sm:$0xff] }
 0x91a   : > { %19144 = vmatpush3.msk.msra.mxu0 %vm2061_vm5, %v15334_v29  ;;  %19145 = vmatprep.mubr.msk.f32.mxu0 %vm20065_vm1, %v20064_v48  ;;  %v16004_v29 = vld [vmem:[%s22196_s11 + $0x10] sm:$0xff] }
 0x91b   : > { %19148 = vmatprep.subr.mxu0 %v20064_v48 }
 0x91d   : > { %19146 = vmatmul.mubr.msk.f32.vlgmr.msra.gmra.mrb[10].mxu0 %vm2057_vm6, %v17691_v30 }
 0x91e   : > { %19149 = vmatpush3.msk.msra.mxu0 %vm2061_vm5, %v15418_v31  ;;  %19150 = vmatprep.mubr.msk.f32.mxu0 %vm20065_vm1, %v20064_v48 }
 0x91f   : > { %19153 = vmatprep.subr.mxu0 %v20064_v48 }
 0x921   : > { %19151 = vmatmul.mubr.msk.f32.vlgmr.msra.gmra.mrb[12].mxu0 %vm2057_vm6, %v15417_v32  ;;  %v16005_v32 = vld [vmem:[%s22196_s11 + $0x18] sm:$0xff] }
 0x922   : > { %19154 = vmatpush3.msk.msra.mxu0 %vm2061_vm5, %v15336_v33  ;;  %19155 = vmatprep.mubr.msk.f32.mxu0 %vm20065_vm1, %v20064_v48  ;;  %v17723_v33 = vld [vmem:[%s22196_s11 + $0x40] sm:$0xff] }
 0x923   : > { %19158 = vmatprep.subr.mxu0 %v20064_v48 }
 0x925   : > { %19156 = vmatmul.mubr.msk.f32.vlgmr.msra.gmra.mrb[14].mxu0 %vm2057_vm6, %v17692_v34 }
 0x926   : > { %19159 = vmatpush3.msk.msra.mxu0 %vm2061_vm5, %v15572_v35  ;;  %19160 = vmatprep.mubr.msk.f32.mxu0 %vm20065_vm1, %v20064_v48 }
 0x927   : > { %19163 = vmatprep.subr.mxu0 %v20064_v48 }
 0x929   : > { %19161 = vmatmul.mubr.msk.f32.vlgmr.msra.gmra.mrb[16].mxu0 %vm2057_vm6, %v15571_v36  ;;  %v17724_v36 = vld [vmem:[%s22196_s11 + $0x48] sm:$0xff] }
 0x92a   : > { %19164 = vmatpush3.msk.msra.mxu0 %vm2061_vm5, %v15649_v37  ;;  %19165 = vmatprep.mubr.msk.f32.mxu0 %vm20065_vm1, %v20064_v48  ;;  %v17725_v37 = vld [vmem:[%s22196_s11 + $0x50] sm:$0xff] }
 0x92b   : > { %19168 = vmatprep.subr.mxu0 %v20064_v48 }
 0x92d   : > { %19166 = vmatmul.mubr.msk.f32.vlgmr.msra.gmra.mrb[10].mxu0 %vm2057_vm6, %v17701_v38 }
 0x92e   : > { %19169 = vmatpush3.msk.msra.mxu0 %vm2061_vm5, %v15733_v39  ;;  %19170 = vmatprep.mubr.msk.f32.mxu0 %vm20065_vm1, %v20064_v48  ;;  %v17726_v39 = vld [vmem:[%s22196_s11 + $0x58] sm:$0xff] }
 0x92f   : > { %19173 = vmatprep.subr.mxu0 %v20064_v48 }
 0x931   : > { %19171 = vmatmul.mubr.msk.f32.vlgmr.msra.gmra.mrb[12].mxu0 %vm2057_vm6, %v15732_v40  ;;  %v17733_v40 = vld [vmem:[%s22196_s11 + $0x60] sm:$0xff] }
 0x932   : > { %19174 = vmatpush3.msk.msra.mxu0 %vm2061_vm5, %v15651_v41  ;;  %19175 = vmatprep.mubr.msk.f32.mxu0 %vm20065_vm1, %v20064_v48  ;;  %v17734_v41 = vld [vmem:[%s22196_s11 + $0x68] sm:$0xff] }
 0x933   : > { %19178 = vmatprep.subr.mxu0 %v20064_v48 }
 0x935   : > { %19176 = vmatmul.mubr.msk.f32.vlgmr.msra.gmra.mrb[14].mxu0 %vm2057_vm6, %v17702_v42  ;;  %v17735_v42 = vld [vmem:[%s22196_s11 + $0x70] sm:$0xff] }
 0x936   : > { %19179 = vmatpush3.msk.msra.mxu0 %vm2061_vm5, %v15887_v43  ;;  %19180 = vmatprep.mubr.msk.f32.mxu0 %vm20065_vm1, %v20064_v48  ;;  %v17736_v43 = vld [vmem:[%s22196_s11 + $0x78] sm:$0xff] }
 0x939   : > { %19181 = vmatmul.mubr.msk.f32.vlgmr.msra.gmra.mrb[16].mxu0 %vm2057_vm6, %v15886_v44  ;;  %v17741_v44 = vld [vmem:[%s22196_s11 + $0x80] sm:$0xff]  ;;  %vm16587_vm6 = vcmask 261120  }
 0xa00   : > { %v15727_v45 = vpop.f32.mrb[10].mxu0 }
 0xa01   : > { %v19167_v46 = vpop.f32.mrb[11].mxu0 }
 0xa02   : > { %v17743_v46 = vld [vmem:[%s22196_s11 + $0x90] sm:$0xff] }
 0xa04   : > { %v15804_v47 = vpop.f32.mrb[12].mxu0 }
 0xa05   : > { %v15964_v49 = vrot.slane %v15804_v47, 4  ;;  %v19172_v50 = vpop.f32.mrb[13].mxu0  ;;  %v17744_v47 = vld [vmem:[%s22196_s11 + $0x98] sm:$0xff] }
 0xa07   : > { %v15969_v53 = vsel %vm2061_vm5, %v15727_v45, %v15964_v49  ;;  %v17742_v45 = vld [vmem:[%s22196_s11 + $0x88] sm:$0xff]  ;;  %v20068_v49 = vmov 0.0|0.0  }
 0xa08   : > { %v15983_v54 = vadd.f32 %v15976_v52, %v15969_v53  ;;  %v15881_v55 = vpop.f32.mrb[14].mxu0 }
 0xa09   : > { %v19177_v56 = vpop.f32.mrb[15].mxu0 }
 0xa0a   : > { %vm15985_vm0 = vcmp.ge.f32.partialorder %v15983_v54, 0.0  ;;  %v15987_v57 = vmul.f32 0.2, %v15983_v54 }
 0xa0c   : > { %v15989_v58 = vsel %vm15985_vm0, %v15983_v54, %v15987_v57  ;;  %v15958_v59 = vpop.f32.mrb[16].mxu0 }
 0xa0d   : > { %v15994_v60 = vsel %vm15991_vm2, %v15989_v58, 0.0  ;;  %v15967_v61 = vrot.slane %v15958_v59, 4  ;;  %v19182_v62 = vpop.f32.mrb[17].mxu0 }
 0xa0e   : > { %15996 = vst [vmem:[%s21742_s6] sm:$0xff] %v15994_v60 }
 0xa0f   : > { %v15970_v0 = vsel %vm2061_vm5, %v15881_v55, %v15967_v61  ;;  %vm21777_vm5 = vmpackc.low %vm15991_vm2, %vm15991_vm2 }
 0xa10   : > { %v15984_v1 = vadd.f32 %v15981_v63, %v15970_v0 }
 0xa12   : > { %vm15986_vm4 = vcmp.ge.f32.partialorder %v15984_v1, 0.0  ;;  %v15988_v3 = vmul.f32 0.2, %v15984_v1 }
 0xa14   : > { %v15990_v4 = vsel %vm15986_vm4, %v15984_v1, %v15988_v3 }
 0xa15   : > { %v15995_v5 = vsel %vm15991_vm2, %v15990_v4, 0.0  ;;  %v19274_v6 = vpack.c.bf16 %v15990_v4, %v15989_v58 }
 0xa16   : > { %v19770_v7 = vpack.i.bf16 %v15995_v5, %v15994_v60  ;;  %15997 = vst [vmem:[%s21742_s6 + $0x8] sm:$0xff] %v15995_v5 }
 0xa18   : > { %19771 = vrot.lane.b32.xlu0 %v19770_v7, %s20066_s27  ;;  %19766 = vrot.lane.b32.xlu1 %v19770_v7, %s20067_s26  ;;  %s20069_s27 = smov [#allocation4]  }
 0xa1c   : > { %19781 = vrot.lane.b32.xlu0 %v19770_v7, %s22290_s28  ;;  %19776 = vrot.lane.b32.xlu1 %v19770_v7, %s22288_s0  ;;  %s21861_s28 = scalar_lea.vmem [#allocation10], %s17218_s24  ;;  %s22309_s24 = sld [smem:[#allocation37_spill]] }
 0xa1d   : > { %s16951_s2 = sshll.u32 %s21861_s28, 4  ;;  %s21908_s2 = int_to_ptr.vmem [resolvable:$true] %s16951_s2 }
 0xa20   : > { %16547 = vperm.xlu0 %19763, %v16537_v8   ;;  %16542 = vperm.xlu1 %19764, %v16536_v9  }
 0xa22   : > { %s21920_s29 = scalar_lea.hbm %s22309_s24, %s21914_s30 }
 0xa24   : > { %16557 = vperm.xlu0 %19763, %v16539_v10   ;;  %16552 = vperm.xlu1 %19764, %v16538_v11   ;;  %v17749_v11 = vld [vmem:[%s22198_s13 + $0x8] sm:$0xff] }
 0xa8a   : > { %v19772_v12 = vpop.permute.xlu0 %19771  ;;  %v19767_v13 = vpop.permute.xlu1 %19766 }
 0xa8b   : > { %v19774_v14 = vunpack.i.h.bf16 %v19772_v12  ;;  %v19773_v15 = vunpack.i.l.bf16 %v19772_v12  ;;  %v19769_v16 = vunpack.i.h.bf16 %v19767_v13  ;;  %v19768_v17 = vunpack.i.l.bf16 %v19767_v13  ;;  %v16818_v12 = vld [vmem:[%s22199_s14] sm:$0xff] }
 0xa8d   : > { %v19266_v18 = vpack.c.bf16 %v19769_v16, %v19768_v17  ;;  %v19270_v19 = vpack.c.bf16 %v19774_v14, %v19773_v15 }
 0xa8e   : > { %v19777_v23 = vpop.permute.xlu1 %19776  ;;  %v19782_v31 = vpop.permute.xlu0 %19781 }
 0xa8f   : > { %19267 = vmatprep.subr.bf16.mxu1 %v19266_v18  ;;  %v19779_v26 = vunpack.i.h.bf16 %v19777_v23  ;;  %v19778_v27 = vunpack.i.l.bf16 %v19777_v23  ;;  %v19784_v34 = vunpack.i.h.bf16 %v19782_v31  ;;  %v19783_v35 = vunpack.i.l.bf16 %v19782_v31 }
 0xa90   : > { %19269 = vmatpush3.bf16.msra.mxu1 %v19266_v18 }
 0xa91   : > { %19271 = vmatprep.subr.bf16.mxu1 %v19270_v19  ;;  %v19280_v30 = vpack.c.bf16 %v19779_v26, %v19778_v27  ;;  %v19284_v38 = vpack.c.bf16 %v19784_v34, %v19783_v35 }
 0xa93   : > { %19188 = vmatmul.mubr.msk.f32.vlgmr.msra.gmra.mrb[16].mxu1 %vm16015_vm3, %v17712_v20 }
 0xa94   : > { %19273 = vmatpush3.bf16.msra.mxu1 %v19270_v19  ;;  %19190 = vmatprep.mubr.msk.f32.mxu1 %vm16015_vm3, %v17713_v21 }
 0xa95   : > { %19276 = vmatprep.subr.msk.bf16.mxu1 %vm21777_vm5, %v19274_v6 }
 0xa97   : > { %19191 = vmatmul.mubr.msk.f32.gmra.mrb[18].mxu1 %vm16015_vm3, %v17714_v24 }
 0xa98   : > { %19197 = vmatprep.mubr.msk.f32.mxu1 %vm16015_vm3, %v16002_v25  ;;  %v16584_v25 = vld [vmem:[%s22198_s13] sm:$0xff] }
 0xa9b   : > { %19198 = vmatmul.mubr.msk.f32.vlgmr.msra.gmra.mrb[16].mxu1 %vm16015_vm3, %v16003_v28 }
 0xa9c   : > { %19279 = vmatpush3.bf16.msk.msra.mxu1 %vm21777_vm5, %v19274_v6  ;;  %19200 = vmatprep.mubr.msk.f32.mxu1 %vm16015_vm3, %v16004_v29 }
 0xa9d   : > { %19281 = vmatprep.subr.bf16.mxu1 %v19280_v30 }
 0xa9f   : > { %19201 = vmatmul.mubr.msk.f32.gmra.mrb[18].mxu1 %vm16015_vm3, %v16005_v32  ;;  %v16548_v50 = vpop.permute.xlu0 %16547  ;;  %v16543_v52 = vpop.permute.xlu1 %16542 }
 0xaa0   : > { %19207 = vmatprep.mubr.msk.f32.mxu1 %vm16015_vm3, %v17723_v33 }
 0xaa3   : > { %19208 = vmatmul.mubr.msk.f32.vlgmr.msra.gmra.mrb[16].mxu1 %vm16015_vm3, %v17724_v36  ;;  %v16558_v58 = vpop.permute.xlu0 %16557  ;;  %v16553_v61 = vpop.permute.xlu1 %16552 }
 0xaa4   : > { %19283 = vmatpush3.bf16.msra.mxu1 %v19280_v30  ;;  %19210 = vmatprep.mubr.msk.f32.mxu1 %vm16015_vm3, %v17725_v37  ;;  %v17756_v30 = vld [vmem:[%s22198_s13 + $0x10] sm:$0xff] }
 0xaa5   : > { %19285 = vmatprep.subr.bf16.mxu1 %v19284_v38 }
 0xaa7   : > { %19211 = vmatmul.mubr.msk.f32.gmra.mrb[18].mxu1 %vm16015_vm3, %v17726_v39 }
 0xaa8   : > { %19217 = vmatprep.mubr.msk.f32.mxu1 %vm16015_vm3, %v17733_v40 }
 0xaab   : > { %19218 = vmatmul.mubr.msk.f32.vlgmr.msra.gmra.mrb[16].mxu1 %vm16015_vm3, %v17734_v41 }
 0xaac   : > { %19287 = vmatpush3.bf16.msra.mxu1 %v19284_v38  ;;  %19220 = vmatprep.mubr.msk.f32.mxu1 %vm16015_vm3, %v17735_v42 }
 0xaad   : > { %19288 = vmatprep.subr.bf16.mxu1 %v20068_v49 }
 0xaaf   : > { %19221 = vmatmul.mubr.msk.f32.gmra.mrb[18].mxu1 %vm16015_vm3, %v17736_v43 }
 0xab0   : > { %19227 = vmatprep.mubr.msk.f32.mxu1 %vm16015_vm3, %v17741_v44 }
 0xab3   : > { %19228 = vmatmul.mubr.msk.f32.vlgmr.msra.gmra.mrb[16].mxu1 %vm16015_vm3, %v17742_v45 }
 0xab4   : > { %19230 = vmatprep.mubr.msk.f32.mxu1 %vm16015_vm3, %v17743_v46 }
 0xab7   : > { %19231 = vmatmul.mubr.msk.f32.gmra.mrb[18].mxu1 %vm16015_vm3, %v17744_v47 }
 0xab8   : > { %19241 = vmatprep.mubr.msk.f32.mxu1 %vm20065_vm1, %v20064_v48 }
 0xb86   : > { %v19229_v53 = vpop.f32.mrb[16].mxu1 }
 0xb87   : > { %v16561_v54 = vadd.f32 %v19229_v53, %v16548_v50  ;;  %v16513_v55 = vpop.f32.mrb[17].mxu1 }
 0xb88   : > { %v16560_v56 = vadd.f32 %v16543_v52, %v16513_v55 }
 0xb89   : > { %v16565_v57 = vmax.f32 %v16561_v54, 0.0 }
 0xb8a   : > { %v16564_v59 = vmax.f32 %v16560_v56, 0.0  ;;  %v19232_v60 = vpop.f32.mrb[18].mxu1 }
 0xb8b   : > { %v16569_v62 = vsel %vm15991_vm2, %v16565_v57, 0.0  ;;  %v16563_v63 = vadd.f32 %v19232_v60, %v16558_v58  ;;  %v16523_v0 = vpop.f32.mrb[19].mxu1 }
 0xb8c   : > { %16573 = vst [vmem:[%s21861_s28 + $0x8] sm:$0xff] %v16569_v62  ;;  %v16568_v1 = vsel %vm15991_vm2, %v16564_v59, 0.0  ;;  %v19289_v2 = vpack.c.bf16 %v16565_v57, %v16564_v59  ;;  %v16562_v3 = vadd.f32 %v16553_v61, %v16523_v0 }
 0xb8d   : > { %v19795_v4 = vpack.i.bf16 %v16569_v62, %v16568_v1  ;;  %16572 = vst [vmem:[%s21861_s28] sm:$0xff] %v16568_v1  ;;  %v16567_v5 = vmax.f32 %v16563_v63, 0.0 }
 0xb8e   : > { %v16566_v6 = vmax.f32 %v16562_v3, 0.0  ;;  %19291 = vmatpush3.bf16.msk.msra.mxu1 %vm21777_vm5, %v19289_v2 }
 0xb8f   : > { %v16571_v7 = vsel %vm15991_vm2, %v16567_v5, 0.0  ;;  %19786 = vrot.lane.b32.xlu1 %v19795_v4, %s20067_s26  ;;  %19292 = vmatprep.subr.bf16.mxu1 %v20068_v49 }
 0xb90   : > { %16575 = vst [vmem:[%s21861_s28 + $0x18] sm:$0xff] %v16571_v7  ;;  %v16570_v8 = vsel %vm15991_vm2, %v16566_v6, 0.0  ;;  %v19293_v9 = vpack.c.bf16 %v16567_v5, %v16566_v6 }
 0xb91   : > { %v19800_v10 = vpack.i.bf16 %v16571_v7, %v16570_v8  ;;  %16574 = vst [vmem:[%s21861_s28 + $0x10] sm:$0xff] %v16570_v8  ;;  %s22253_s28 = scalar_lea.sflag [#allocation5], %s21911_s1 }
 0xb92   : > { %19295 = vmatpush3.bf16.msk.msra.mxu1 %vm21777_vm5, %v19293_v9 }
 0xb93   : > { %19796 = vrot.lane.b32.xlu1 %v19795_v4, %s22288_s0  ;;  %19791 = vrot.lane.b32.xlu0 %v19800_v10, %s20067_s26  ;;  %s19809_s26 = sshll.u32 %s20069_s27, 4  ;;  %s19810_s26 = int_to_ptr.vmem [resolvable:$false] %s19809_s26 }
 0xb94   : > { %19296 = vmatprep.subr.bf16.mxu1 %v20068_v49  ;;  %s19811_s4 = scalar_lea.vmem %s19810_s26, 512  ;;  %p19812_p0 = scmp.lt.s32.totalorder %s21923_s20, %s19810_s26 }
 0xb95   : > { %19242 = vmatmul.mubr.msk.f32.vlgmr.msra.gmra.mrb[20].mxu1 %vm16587_vm6, %v17749_v11  ;;  %p19813_p1 = scmp.lt.s32.totalorder %s19811_s4, %s19805_s25 }
 0xb96   : > { %19252 = vmatprep.mubr.msk.f32.mxu1 %vm20065_vm1, %v20064_v48 }
 0xb97   : > { %16821 = vperm.xlu1 %19764, %v16818_v12   ;;  %19801 = vrot.lane.b32.xlu0 %v19800_v10, %s22288_s0  ;;  %p19814_p2 = por %p19813_p1, %p19812_p0 }
 0xb99   : > { %p19815_p3 = pnand %p19814_p2, %p19808_p13 }
 0xc01   : > { %v19787_v13 = vpop.permute.xlu1 %19786 }
 0xc02   : > { %v19789_v14 = vunpack.i.h.bf16 %v19787_v13  ;;  %v19788_v15 = vunpack.i.l.bf16 %v19787_v13 }
 0xc04   : > { %v19297_v16 = vpack.c.bf16 %v19789_v14, %v19788_v15 }
 0xc05   : > { %v19797_v17 = vpop.permute.xlu1 %19796  ;;  %v19792_v18 = vpop.permute.xlu0 %19791 }
 0xc06   : > { %v19794_v19 = vunpack.i.h.bf16 %v19792_v18  ;;  %v19793_v20 = vunpack.i.l.bf16 %v19792_v18  ;;  %19298 = vmatpush3.bf16.msra.mxu1 %v19297_v16  ;;  %v19799_v21 = vunpack.i.h.bf16 %v19797_v17  ;;  %v19798_v22 = vunpack.i.l.bf16 %v19797_v17 }
 0xc07   : > { %19299 = vmatprep.subr.bf16.mxu1 %v20068_v49 }
 0xc08   : > { %v19300_v23 = vpack.c.bf16 %v19794_v19, %v19793_v20  ;;  %v19303_v26 = vpack.c.bf16 %v19799_v21, %v19798_v22 }
 0xc09   : > { %v19802_v24 = vpop.permute.xlu0 %19801 }
 0xc0a   : > { %19301 = vmatpush3.bf16.msra.mxu1 %v19300_v23  ;;  %v19804_v27 = vunpack.i.h.bf16 %v19802_v24  ;;  %v19803_v28 = vunpack.i.l.bf16 %v19802_v24 }
 0xc0b   : > { %19302 = vmatprep.subr.bf16.mxu1 %v20068_v49 }
 0xc0c   : > { %v19306_v29 = vpack.c.bf16 %v19804_v27, %v19803_v28 }
 0xc0d   : > { %19253 = vmatmul.mubr.msk.f32.vlgmr.msra.gmra.mrb[22].mxu1 %vm16587_vm6, %v16584_v25 }
 0xc0e   : > { %19304 = vmatpush3.bf16.msra.mxu1 %v19303_v26  ;;  %19263 = vmatprep.mubr.msk.f32.mxu1 %vm20065_vm1, %v20064_v48 }
 0xc0f   : > { %19305 = vmatprep.subr.bf16.mxu1 %v20068_v49 }
 0xc12   : > { %19307 = vmatpush3.bf16.msra.mxu1 %v19306_v29 }
 0xc15   : > { %19264 = vmatmul.mubr.msk.f32.vlgmr.msra.gmra.mrb[24].mxu1 %vm16587_vm6, %v17756_v30 }
 0xc68   : > { %v21905_v31 = vpop.f32.mrb[20].mxu1 }
 0xc69   : > { %v19243_v32 = vpop.f32.mrb[21].mxu1 }
 0xc6a   : > { %19818 = shalt.err (!%p19815_p3)
}
 0xc6b   : > { %s19819_s15 = scalar_lea.hbm %s21920_s29, 256  ;;  %s19823_s16 = scalar_lea.hbm %s22309_s24, 512 }
 0xc6c   : > { %p19820_p4 = scmp.ne.s32.totalorder %s21920_s29, %s19819_s15  ;;  %p19824_p9 = scmp.lt.u32.totalorder %s21920_s29, %s22309_s24 }
 0xc6d   : > { %p19825_p10 = scmp.lt.u32.totalorder %s19823_s16, %s19819_s15  ;;  %p19827_p12 = scmp.lt.u32.totalorder %s19819_s15, %s21920_s29 }
 0xc6e   : > { %p19821_p7 = pnand %p19820_p4, %p20228_p5 }
 0xc6f   : > { %p19826_p11 = por %p19825_p10, %p19824_p9 }
 0xc70   : > { %p19822_p8 = pneg %p19821_p7 }
 0xc71   : > { %p19828_p13 = por %p19827_p12, %p19826_p11 }
 0xc73   : > { %p19829_p0 = pnand %p19828_p13, %p19822_p8 }
 0xc75   : > { %19832 = shalt.err (!%p19829_p0)
}
 0xc76   : > { %s20070_s25 = smov 128   ;;  %s20071_s26 = smov 8  }
 0xc77   : > { %19673 = dma.vmem_to_hbm [thread:$0]  (%p20228_p5), %s21923_s20, 256, %s21920_s29, %s22253_s28, %s20070_s25, %s20070_s25, %s20071_s26  }
 0xc78   : > { %s22310_s0 = sld [smem:[#allocation39_spill]]  ;;  %s16919_s16 = sshll.u32 %s21407_s18, 4  ;;  %s21959_s16 = int_to_ptr.vmem [resolvable:$true] %s16919_s16 }
 0xc79   : > { %s17785_s22 = sshll.u32 %s20209_s3, 9  ;;  %s22255_s27 = scalar_lea.sflag [#allocation8], %s21911_s1 }
 0xc7a   : > { %s19833_s7 = scalar_lea.vmem %s21959_s16, 256  ;;  %s20072_s8 = smov [#allocation7]  }
 0xc7b   : > { %p19834_p1 = scmp.ne.s32.totalorder %s21959_s16, %s19833_s7  ;;  %s19837_s29 = sshll.u32 %s20072_s8, 4  ;;  %s19838_s29 = int_to_ptr.vmem [resolvable:$false] %s19837_s29 }
 0xc7c   : > { %s19839_s20 = scalar_lea.vmem %s19838_s29, 512  ;;  %p19840_p4 = scmp.lt.s32.totalorder %s21959_s16, %s19838_s29 }
 0xc7d   : > { %p19835_p2 = pnand %p19834_p1, %p20228_p5  ;;  %p19841_p7 = scmp.lt.s32.totalorder %s19839_s20, %s19833_s7 }
 0xc7e   : > { %s21956_s23 = scalar_lea.hbm %s22310_s0, %s21914_s30 }
 0xc7f   : > { %p19836_p3 = pneg %p19835_p2  ;;  %p19842_p8 = por %p19841_p7, %p19840_p4 }
 0xc81   : > { %p19843_p9 = pnand %p19842_p8, %p19836_p3 }
 0xc83   : > { %19846 = shalt.err (!%p19843_p9)
}
 0xc84   : > { %s19847_s18 = scalar_lea.hbm %s21956_s23, 256  ;;  %s19851_s8 = scalar_lea.hbm %s22310_s0, 512 }
 0xc85   : > { %p19848_p10 = scmp.ne.s32.totalorder %s21956_s23, %s19847_s18  ;;  %p19852_p13 = scmp.lt.u32.totalorder %s21956_s23, %s22310_s0 }
 0xc86   : > { %p19853_p0 = scmp.lt.u32.totalorder %s19851_s8, %s19847_s18  ;;  %p19855_p2 = scmp.lt.u32.totalorder %s19847_s18, %s21956_s23 }
 0xc87   : > { %p19849_p11 = pnand %p19848_p10, %p20228_p5 }
 0xc88   : > { %p19854_p1 = por %p19853_p0, %p19852_p13 }
 0xc89   : > { %p19850_p12 = pneg %p19849_p11 }
 0xc8a   : > { %p19856_p3 = por %p19855_p2, %p19854_p1 }
 0xc8c   : > { %p19857_p4 = pnand %p19856_p3, %p19850_p12 }
 0xc8e   : > { %19860 = shalt.err (!%p19857_p4)
}
 0xc8f   : > { %19675 = dma.vmem_to_hbm [thread:$0]  (%p20228_p5), %s21959_s16, 256, %s21956_s23, %s22255_s27, %s20070_s25, %s20070_s25, %s20071_s26  }
 0xc90   : > { %s22311_s20 = sld [smem:[#allocation41_spill]]  ;;  %s22256_s4 = scalar_lea.sflag [#allocation11], %s21911_s1 }
 0xc91   : > { %s19861_s15 = scalar_lea.vmem %s21908_s2, 512  ;;  %s20073_s8 = smov [#allocation10]  }
 0xc92   : > { %p19862_p7 = scmp.ne.s32.totalorder %s21908_s2, %s19861_s15  ;;  %s19865_s29 = sshll.u32 %s20073_s8, 4  ;;  %s19866_s29 = int_to_ptr.vmem [resolvable:$false] %s19865_s29 }
 0xc93   : > { %s19867_s0 = scalar_lea.vmem %s19866_s29, 1024  ;;  %p19868_p10 = scmp.lt.s32.totalorder %s21908_s2, %s19866_s29 }
 0xc94   : > { %p19863_p8 = pnand %p19862_p7, %p20228_p5  ;;  %p19869_p11 = scmp.lt.s32.totalorder %s19867_s0, %s19861_s15 }
 0xc96   : > { %s21994_s18 = scalar_lea.hbm %s22311_s20, %s17785_s22  ;;  %p19864_p9 = pneg %p19863_p8 }
 0xc97   : > { %p19870_p12 = por %p19869_p11, %p19868_p10 }
 0xc99   : > { %p19871_p13 = pnand %p19870_p12, %p19864_p9 }
 0xc9b   : > { %19874 = shalt.err (!%p19871_p13)
}
 0xc9c   : > { %s19875_s23 = scalar_lea.hbm %s21994_s18, 512  ;;  %s19879_s7 = scalar_lea.hbm %s22311_s20, 1024 }
 0xc9d   : > { %p19876_p0 = scmp.ne.s32.totalorder %s21994_s18, %s19875_s23  ;;  %p19880_p3 = scmp.lt.u32.totalorder %s21994_s18, %s22311_s20 }
 0xc9e   : > { %p19881_p4 = scmp.lt.u32.totalorder %s19879_s7, %s19875_s23  ;;  %p19883_p8 = scmp.lt.u32.totalorder %s19875_s23, %s21994_s18 }
 0xc9f   : > { %p19877_p1 = pnand %p19876_p0, %p20228_p5 }
 0xca0   : > { %p19882_p7 = por %p19881_p4, %p19880_p3 }
 0xca1   : > { %p19878_p2 = pneg %p19877_p1 }
 0xca2   : > { %p19884_p9 = por %p19883_p8, %p19882_p7 }
 0xca4   : > { %p19885_p10 = pnand %p19884_p9, %p19878_p2 }
 0xca6   : > { %19888 = shalt.err (!%p19885_p10)
}
 0xca7   : > { %s22312_s0 = sld [smem:[#allocation24_spill]]  ;;  %s22313_s23 = sld [smem:[#allocation36_spill]] }
 0xca8   : > { %19677 = dma.vmem_to_hbm [thread:$0]  (%p20228_p5), %s21908_s2, 512, %s21994_s18, %s22256_s4, %s20070_s25, %s20070_s25, %s20071_s26  }
 0xca9   : > { %s22314_s8 = sld [smem:[#allocation38_spill]]  ;;  %s16828_s9 = scalar_lea.sflag [#allocation3], %s20386_s21 }
 0xcaa   : > { %s20074_s2 = smov [#allocation2]  }
 0xcab   : > { %s19893_s18 = sshll.u32 %s20074_s2, 4  ;;  %s19894_s18 = int_to_ptr.vmem [resolvable:$false] %s19893_s18 }
 0xcad   : > { %s22027_s16 = scalar_lea.hbm %s22313_s23, %s21914_s30  ;;  %s16871_s22 = sshll.u32 %s22312_s0, 4  ;;  %s22030_s22 = int_to_ptr.vmem [resolvable:$true] %s16871_s22 }
 0xcae   : > { %s19889_s10 = scalar_lea.vmem %s22030_s22, 256  ;;  %s19895_s0 = scalar_lea.vmem %s19894_s18, 512 }
 0xcaf   : > { %s22036_s27 = scalar_lea.hbm %s22314_s8, %s21914_s30  ;;  %p19890_p11 = scmp.ne.s32.totalorder %s22030_s22, %s19889_s10 }
 0xcb0   : > { %p19896_p0 = scmp.lt.s32.totalorder %s22030_s22, %s19894_s18  ;;  %p19897_p1 = scmp.lt.s32.totalorder %s19895_s0, %s19889_s10 }
 0xcb1   : > { %p19891_p12 = pnand %p19890_p11, %p20228_p5 }
 0xcb2   : > { %p19898_p2 = por %p19897_p1, %p19896_p0 }
 0xcb3   : > { %p19892_p13 = pneg %p19891_p12 }
 0xcb5   : > { %p19899_p3 = pnand %p19898_p2, %p19892_p13 }
 0xcb7   : > { %19902 = shalt.err (!%p19899_p3)
}
 0xcb8   : > { %s19903_s15 = scalar_lea.hbm %s22027_s16, 256  ;;  %s19907_s28 = scalar_lea.hbm %s22313_s23, 512 }
 0xcb9   : > { %p19904_p4 = scmp.ne.s32.totalorder %s22027_s16, %s19903_s15  ;;  %p19908_p9 = scmp.lt.u32.totalorder %s22027_s16, %s22313_s23 }
 0xcba   : > { %p19909_p10 = scmp.lt.u32.totalorder %s19907_s28, %s19903_s15  ;;  %p19911_p12 = scmp.lt.u32.totalorder %s19903_s15, %s22027_s16 }
 0xcbb   : > { %p19905_p7 = pnand %p19904_p4, %p20228_p5 }
 0xcbc   : > { %p19910_p11 = por %p19909_p10, %p19908_p9 }
 0xcbd   : > { %p19906_p8 = pneg %p19905_p7 }
 0xcbe   : > { %p19912_p13 = por %p19911_p12, %p19910_p11 }
 0xcc0   : > { %p19913_p0 = pnand %p19912_p13, %p19906_p8 }
 0xcc2   : > { %19916 = shalt.err (!%p19913_p0)
}
 0xcc3   : > { %19672 = dma.vmem_to_hbm [thread:$0]  (%p20228_p5), %s22030_s22, 256, %s22027_s16, %s16828_s9, %s20070_s25, %s20070_s25, %s20071_s26  }
 0xcc4   : > { %s16903_s10 = sshll.u32 %s21071_s19, 4  ;;  %s22315_s29 = sld [smem:[#allocation40_spill]]  ;;  %s22072_s10 = int_to_ptr.vmem [resolvable:$true] %s16903_s10 }
 0xcc5   : > { %s16935_s28 = sshll.u32 %s21742_s6, 4  ;;  %s19917_s2 = scalar_lea.vmem %s22072_s10, 256  ;;  %s22103_s28 = int_to_ptr.vmem [resolvable:$true] %s16935_s28 }
 0xcc6   : > { %p19918_p1 = scmp.ne.s32.totalorder %s22072_s10, %s19917_s2  ;;  %s20075_s18 = smov [#allocation6]  }
 0xcc7   : > { %s19921_s4 = sshll.u32 %s20075_s18, 4  ;;  %s19922_s4 = int_to_ptr.vmem [resolvable:$false] %s19921_s4 }
 0xcc8   : > { %p19919_p2 = pnand %p19918_p1, %p20228_p5  ;;  %s19923_s9 = scalar_lea.vmem %s19922_s4, 512 }
 0xcc9   : > { %p19924_p4 = scmp.lt.s32.totalorder %s22072_s10, %s19922_s4  ;;  %p19925_p7 = scmp.lt.s32.totalorder %s19923_s9, %s19917_s2 }
 0xcca   : > { %s22070_s7 = scalar_lea.hbm %s22315_s29, %s21914_s30  ;;  %p19920_p3 = pneg %p19919_p2 }
 0xccb   : > { %p19926_p8 = por %p19925_p7, %p19924_p4 }
 0xccd   : > { %p19927_p9 = pnand %p19926_p8, %p19920_p3 }
 0xccf   : > { %19930 = shalt.err (!%p19927_p9)
}
 0xcd0   : > { %s19931_s19 = scalar_lea.hbm %s22036_s27, 256  ;;  %s19935_s22 = scalar_lea.hbm %s22314_s8, 512 }
 0xcd1   : > { %p19932_p10 = scmp.ne.s32.totalorder %s22036_s27, %s19931_s19  ;;  %p19936_p13 = scmp.lt.u32.totalorder %s22036_s27, %s22314_s8 }
 0xcd2   : > { %p19937_p0 = scmp.lt.u32.totalorder %s19935_s22, %s19931_s19  ;;  %p19939_p2 = scmp.lt.u32.totalorder %s19931_s19, %s22036_s27 }
 0xcd3   : > { %p19933_p11 = pnand %p19932_p10, %p20228_p5 }
 0xcd4   : > { %p19938_p1 = por %p19937_p0, %p19936_p13 }
 0xcd5   : > { %p19934_p12 = pneg %p19933_p11 }
 0xcd6   : > { %p19940_p3 = por %p19939_p2, %p19938_p1 }
 0xcd8   : > { %p19941_p4 = pnand %p19940_p3, %p19934_p12 }
 0xcda   : > { %19944 = shalt.err (!%p19941_p4)
}
 0xcdb   : > { %s22316_s15 = scalar_lea.sflag [#allocation5], %s21911_s1  ;;  %s19945_s2 = scalar_lea.vmem %s22103_s28, 256 }
 0xcdc   : > { %19674 = dma.vmem_to_hbm [thread:$0]  (%p20228_p5), %s22072_s10, 256, %s22036_s27, %s22316_s15, %s20070_s25, %s20070_s25, %s20071_s26  }
 0xcdd   : > { %p19946_p7 = scmp.ne.s32.totalorder %s22103_s28, %s19945_s2  ;;  %s20076_s18 = smov [#allocation9]  }
 0xcde   : > { %s19949_s9 = sshll.u32 %s20076_s18, 4  ;;  %s19950_s9 = int_to_ptr.vmem [resolvable:$false] %s19949_s9 }
 0xcdf   : > { %p19947_p8 = pnand %p19946_p7, %p20228_p5  ;;  %s19951_s19 = scalar_lea.vmem %s19950_s9, 512 }
 0xce0   : > { %p19952_p10 = scmp.lt.s32.totalorder %s22103_s28, %s19950_s9  ;;  %p19953_p11 = scmp.lt.s32.totalorder %s19951_s19, %s19945_s2 }
 0xce1   : > { %p19948_p9 = pneg %p19947_p8 }
 0xce2   : > { %p19954_p12 = por %p19953_p11, %p19952_p10 }
 0xce4   : > { %p19955_p13 = pnand %p19954_p12, %p19948_p9 }
 0xce6   : > { %19958 = shalt.err (!%p19955_p13)
}
 0xce7   : > { %s19959_s6 = scalar_lea.hbm %s22070_s7, 256  ;;  %s19963_s30 = scalar_lea.hbm %s22315_s29, 512 }
 0xce8   : > { %p19960_p0 = scmp.ne.s32.totalorder %s22070_s7, %s19959_s6  ;;  %p19964_p3 = scmp.lt.u32.totalorder %s22070_s7, %s22315_s29 }
 0xce9   : > { %p19965_p4 = scmp.lt.u32.totalorder %s19963_s30, %s19959_s6  ;;  %p19967_p8 = scmp.lt.u32.totalorder %s19959_s6, %s22070_s7 }
 0xcea   : > { %p19961_p1 = pnand %p19960_p0, %p20228_p5 }
 0xceb   : > { %p19966_p7 = por %p19965_p4, %p19964_p3 }
 0xcec   : > { %p19962_p2 = pneg %p19961_p1 }
 0xced   : > { %p19968_p9 = por %p19967_p8, %p19966_p7 }
 0xcef   : > { %p19969_p10 = pnand %p19968_p9, %p19962_p2 }
 0xcf1   : > { %19972 = shalt.err (!%p19969_p10)
}
 0xcf2   : > { %s22317_s0 = scalar_lea.sflag [#allocation8], %s21911_s1  ;;  %v16730_v48 = vpop.f32.mrb[22].mxu1  ;;  %s17219_s4 = sshll.u32 %s20386_s21, 3  ;;  %v16822_v38 = vpop.permute.xlu1 %16821 }
 0xcf3   : > { %19676 = dma.vmem_to_hbm [thread:$0]  (%p20228_p5), %s22103_s28, 256, %s22070_s7, %s22317_s0, %s20070_s25, %s20070_s25, %s20071_s26   ;;  %v16731_v33 = vadd.f32 %v16730_v48, %v21905_v31  ;;  %v19254_v34 = vpop.f32.mrb[23].mxu1 }
 0xcf4   : > { %v16813_v35 = vpop.f32.mrb[24].mxu1  ;;  %s17777_s15 = sshll.u32 %s20209_s3, 7  ;;  %s699_s2 = scalar_lea.vmem [#allocation12], %s17219_s4 }
 0xcf5   : > { %v16817_v36 = vadd.f32 %v16813_v35, %v16731_v33  ;;  %v19265_v37 = vpop.f32.mrb[25].mxu1  ;;  %s16967_s18 = sshll.u32 %s699_s2, 4  ;;  %s22318_s6 = sld [smem:[#allocation42_spill]]  ;;  %s22139_s18 = int_to_ptr.vmem [resolvable:$true] %s16967_s18 }
 0xcf6   : > { %s19973_s21 = scalar_lea.vmem %s22139_s18, 128  ;;  %s20077_s3 = smov [#allocation12]  }
 0xcf7   : > { %v16824_v39 = vadd.f32 %v16822_v38, %v16817_v36  ;;  %p19974_p11 = scmp.ne.s32.totalorder %s22139_s18, %s19973_s21  ;;  %s19977_s25 = sshll.u32 %s20077_s3, 4  ;;  %s19978_s25 = int_to_ptr.vmem [resolvable:$false] %s19977_s25 }
 0xcf8   : > { %s19979_s26 = scalar_lea.vmem %s19978_s25, 256  ;;  %p19980_p0 = scmp.lt.s32.totalorder %s22139_s18, %s19978_s25 }
 0xcf9   : > { %v16825_v40 = vsel %vm15991_vm2, %v16824_v39, 0.0  ;;  %p19975_p12 = pnand %p19974_p11, %p20228_p5  ;;  %p19981_p1 = scmp.lt.s32.totalorder %s19979_s26, %s19973_s21 }
 0xcfa   : > { %16826 = vst [vmem:[%s699_s2] sm:$0xff] %v16825_v40 }
 0xcfb   : > { %s22137_s27 = scalar_lea.hbm %s22318_s6, %s17777_s15  ;;  %p19976_p13 = pneg %p19975_p12 }
 0xcfc   : > { %p19982_p2 = por %p19981_p1, %p19980_p0 }
 0xcfe   : > { %p19983_p3 = pnand %p19982_p2, %p19976_p13 }
 0xd00   : > { %19986 = shalt.err (!%p19983_p3)
}
 0xd01   : > { %s19987_s7 = scalar_lea.hbm %s22137_s27, 128  ;;  %s19991_s30 = scalar_lea.hbm %s22318_s6, 256 }
 0xd02   : > { %p19988_p4 = scmp.ne.s32.totalorder %s22137_s27, %s19987_s7  ;;  %p19992_p9 = scmp.lt.u32.totalorder %s22137_s27, %s22318_s6 }
 0xd03   : > { %p19993_p10 = scmp.lt.u32.totalorder %s19991_s30, %s19987_s7  ;;  %p19995_p12 = scmp.lt.u32.totalorder %s19987_s7, %s22137_s27 }
 0xd04   : > { %p19989_p7 = pnand %p19988_p4, %p20228_p5 }
 0xd05   : > { %p19994_p11 = por %p19993_p10, %p19992_p9 }
 0xd06   : > { %p19990_p8 = pneg %p19989_p7 }
 0xd07   : > { %p19996_p13 = por %p19995_p12, %p19994_p11 }
 0xd09   : > { %p19997_p0 = pnand %p19996_p13, %p19990_p8 }
 0xd0b   : > { %20000 = shalt.err (!%p19997_p0)
}
 0xd0c   : > { %s22319_s0 = scalar_lea.sflag [#allocation11], %s21911_s1 }
 0xd0d   : > { %19678 = dma.vmem_to_hbm [thread:$0]  (%p20228_p5), %s22139_s18, 128, %s22137_s27, %s22319_s0  }
 0xd0e PF: > { %s22320_s4 = sld [smem:[#allocation20_spill]]  ;;  %s22321_s15 = sld [smem:[#allocation17_spill]] }
 0xd14   : > { %p19708_p1 = scmp.ge.s32.totalorder %s22320_s4, 2  ;;  %s16979_s9 = sand.u32 1, %s22321_s15  }
 0xd15   : > { %s16980_s19 = scalar_lea.sflag [#allocation3], %s16979_s9 }
 0xd16   : > { %p19687_p2 = pnand %p19708_p1, %p20232_p6 }
 0xd18   : > { %20018 = dma.done.wait (!%p19687_p2), %s16980_s19, 256  }
 0xd19   : > { %20020 = vsyncadd (!%p19687_p2), %s16980_s19, 4294967040  ;;  %s22323_s21 = sadd.s32 4294967294, %s22320_s4  }
 0xd1a   : > { %s16988_s3 = sand.u32 1, %s22323_s21  }
 0xd1b   : > { %s16989_s5 = scalar_lea.sflag [#allocation5], %s16988_s3 }
 0xd1c   : > { %20022 = dma.done.wait (!%p19687_p2), %s16989_s5, 512  }
 0xd1d   : > { %20024 = vsyncadd (!%p19687_p2), %s16989_s5, 4294966784  ;;  %s17007_s1 = scalar_lea.sflag [#allocation8], %s16988_s3 }
 0xd1e   : > { %20026 = dma.done.wait (!%p19687_p2), %s17007_s1, 512  }
 0xd1f   : > { %20028 = vsyncadd (!%p19687_p2), %s17007_s1, 4294966784  ;;  %s17025_s18 = scalar_lea.sflag [#allocation11], %s16988_s3 }
 0xd20   : > { %20030 = dma.done.wait (!%p19687_p2), %s17025_s18, 640  }
 0xd21   : > { %20032 = vsyncadd (!%p19687_p2), %s17025_s18, 4294966656  ;;  %s22324_s27 = sld [smem:[#allocation21_spill]]  ;;  %s22325_s2 = sld [smem:[#allocation18_spill]] }
 0xd22   : > { %s22326_s25 = sld [smem:[#allocation19_spill]]  ;;  %s22327_s26 = sld [smem:[#allocation22_spill]] }
 0xd27   : > { %p41_p5 = scmp.ge.s32.totalorder %s22324_s27, 4  }
 0xd29   :  { %43 = sbr.rel (!%p41_p5) target bundleno = 28 (0x1c), region = 271 }
 0xd30   :  { %17039 = vsyncpa [#allocation3], 1 }
 0xd31   :  { %17041 = vsyncpa [#allocation3 + $0x1], 1 }
 0xd32   :  { %17042 = vsyncpa [#allocation5], 1 }
 0xd33   :  { %17044 = vsyncpa [#allocation5 + $0x1], 1 }
 0xd34   :  { %17045 = vsyncpa [#allocation8], 1 }
 0xd35   :  { %17047 = vsyncpa [#allocation8 + $0x1], 1 }
 0xd36   :  { %17048 = vsyncpa [#allocation11], 1 }
 0xd37   :  { %17050 = vsyncpa [#allocation11 + $0x1], 1 }

</bundles_post_ra>
